<compile_context>
chip_gen: v7x
topology: tpu7x:2x2x1
jax: 0.10.0
libtpu: 0.0.40
codegen_flags: <defaults>
</compile_context>

<pallas_src>
import math
import functools

import jax
import jax.numpy as jnp
from jax import lax
from jax.experimental import pallas as pl
from jax.experimental.pallas import tpu as pltpu  # noqa: F401  (TPU backend)


# ----------------------------------------------------------------------------
# Pallas kernels
# ----------------------------------------------------------------------------
def _conv_bn_act_kernel(a_ref, w_ref, b_ref, g_ref, bb_ref, o_ref, *,
                        apply_relu, inv_m, eps):
    """(M,K)@(K,N) + bias, then train-mode BatchNorm over the M rows, + ReLU."""
    acc = jnp.dot(a_ref[...], w_ref[...], preferred_element_type=jnp.float32)
    acc = acc + b_ref[...]                                      # (M, N) fp32
    mean = jnp.sum(acc, axis=0, keepdims=True) * inv_m          # (1, N)
    cen = acc - mean
    var = jnp.sum(cen * cen, axis=0, keepdims=True) * inv_m     # biased (torch BN)
    scale = g_ref[...] * lax.rsqrt(var + eps)
    y = cen * scale + bb_ref[...]
    if apply_relu:
        y = jnp.maximum(y, 0.0)
    o_ref[...] = y.astype(o_ref.dtype)


def _matmul_bias_act_kernel(a_ref, w_ref, b_ref, o_ref, *, apply_relu):
    acc = jnp.dot(a_ref[...], w_ref[...], preferred_element_type=jnp.float32)
    acc = acc + b_ref[...]
    if apply_relu:
        acc = jnp.maximum(acc, 0.0)
    o_ref[...] = acc.astype(o_ref.dtype)


def _spec2d(m, n):
    return pl.BlockSpec((m, n), lambda i: (0, 0))


def conv_bn_act(patches, w_packed, bias, gamma, beta, *, relu, eps=1e-5):
    """Fused conv-as-matmul + bias + BatchNorm(batch stats) + optional ReLU."""
    M, K = patches.shape
    K2, N = w_packed.shape
    assert K == K2
    kernel = functools.partial(_conv_bn_act_kernel, apply_relu=relu,
                               inv_m=1.0 / M, eps=eps)
    return pl.pallas_call(
        kernel,
        grid=(1,),
        out_shape=jax.ShapeDtypeStruct((M, N), jnp.bfloat16),
        in_specs=[_spec2d(M, K), _spec2d(K, N),
                  _spec2d(1, N), _spec2d(1, N), _spec2d(1, N)],
        out_specs=_spec2d(M, N),
    )(patches, w_packed, bias.reshape(1, N), gamma.reshape(1, N),
      beta.reshape(1, N))


def matmul_bias_act(a, w, b, *, relu=False, out_dtype=jnp.float32):
    """(M,K) @ (K,N) + b[N] (optionally ReLU) on the MXU, single VMEM block."""
    M, K = a.shape
    K2, N = w.shape
    assert K == K2
    kernel = functools.partial(_matmul_bias_act_kernel, apply_relu=relu)
    return pl.pallas_call(
        kernel,
        grid=(1,),
        out_shape=jax.ShapeDtypeStruct((M, N), out_dtype),
        in_specs=[_spec2d(M, K), _spec2d(K, N), _spec2d(1, N)],
        out_specs=_spec2d(M, N),
    )(a, w, b.reshape(1, N))


# ----------------------------------------------------------------------------
# Conv1d / pooling glue (static-slice im2col in JAX, fused matmul+BN in Pallas)
# ----------------------------------------------------------------------------
def conv1d_bn_act(x_blc, w_packed, bias, gamma, beta, *, ksize, stride,
                  padding, relu):
    """x_blc: (B, L, Cin) bf16; w_packed: (ksize*Cin, Cout) bf16."""
    B, L, Cin = x_blc.shape
    Cout = w_packed.shape[1]
    xp = jnp.pad(x_blc, ((0, 0), (padding, padding), (0, 0)))
    Lp = L + 2 * padding
    L_out = (Lp - ksize) // stride + 1
    # Static strided slices (no gather); tap k -> channels [k*Cin, (k+1)*Cin).
    taps = [xp[:, k:k + (L_out - 1) * stride + 1:stride, :] for k in range(ksize)]
    a = jnp.concatenate(taps, axis=-1).reshape(B * L_out, ksize * Cin)
    out = conv_bn_act(a, w_packed, bias, gamma, beta, relu=relu)
    return out.reshape(B, L_out, Cout)


def maxpool1d(x_blc, ksize, stride):
    init = jnp.array(-jnp.inf, dtype=x_blc.dtype)
    return lax.reduce_window(x_blc, init, lax.max,
                             window_dimensions=(1, ksize, 1),
                             window_strides=(1, stride, 1),
                             padding="VALID")


def flatten_torch(x_blc):
    """(B, L, C) -> (B, C*L) matching torch.flatten(NCL, 1)."""
    B, L, C = x_blc.shape
    return jnp.transpose(x_blc, (0, 2, 1)).reshape(B, C * L)


# ----------------------------------------------------------------------------
# Parameter initialization (deterministic, synthetic; weights pre-packed bf16)
# ----------------------------------------------------------------------------
def _conv_params(key, cout, cin, k, *, cin_pad=None):
    kw, kb = jax.random.split(key)
    std = math.sqrt(1.0 / 32.0)
    w = jax.random.normal(kw, (cout, cin, k), jnp.float32) * std
    b = jax.random.normal(kb, (cout,), jnp.float32) * 0.01
    if cin_pad is not None and cin_pad > cin:
        w = jnp.pad(w, ((0, 0), (0, cin_pad - cin), (0, 0)))
        cin = cin_pad
    # (Cout, Cin, K) -> (K*Cin, Cout), k-major / channel-minor (matches im2col)
    w_packed = jnp.transpose(w, (2, 1, 0)).reshape(k * cin, cout)
    return {"w": w_packed.astype(jnp.bfloat16), "b": b}


def _linear_params(key, fout, fin):
    kw, kb = jax.random.split(key)
    s = math.sqrt(1.0 / fin)
    w = jax.random.normal(kw, (fout, fin), jnp.float32) * s
    b = jax.random.normal(kb, (fout,), jnp.float32) * s
    return {"w": jnp.transpose(w).astype(jnp.bfloat16), "b": b}   # (fin, fout)


def _bn_params(c):
    return {"g": jnp.ones((c,), jnp.float32), "b": jnp.zeros((c,), jnp.float32)}


def init_params(key):
    ks = jax.random.split(key, 10)
    return {
        # NormalCNN
        "n_c1": _conv_params(ks[0], 64, 12, 9),
        "n_c2": _conv_params(ks[1], 64, 64, 5),
        "n_c3": _conv_params(ks[2], 64, 64, 5),
        "n_c4": _conv_params(ks[3], 64, 64, 3),
        "n_bn1": _bn_params(64), "n_bn2": _bn_params(64),
        "n_bn3": _bn_params(64), "n_bn4": _bn_params(64),
        # transCNN (t_c1 input channels zero-padded 500 -> 512)
        "t_c1": _conv_params(ks[4], 512, 500, 3, cin_pad=512),
        "t_c2": _conv_params(ks[5], 512, 512, 3),
        "t_c3": _conv_params(ks[6], 256, 512, 3),
        "t_c4": _conv_params(ks[7], 256, 256, 3),
        "t_bn1": _bn_params(512), "t_bn2": _bn_params(512),
        "t_bn3": _bn_params(256), "t_bn4": _bn_params(256),
        # DF head. fc2's output is discarded by the reference forward (it
        # returns `out`), so fc2 is initialized but never computed.
        "fc1": _linear_params(ks[8], 512, 3584),
        "fc2": _linear_params(ks[9], 52, 512),
    }


# ----------------------------------------------------------------------------
# Forward passes
# ----------------------------------------------------------------------------
def normal_cnn(params, x_bcl):
    x = jnp.transpose(x_bcl, (0, 2, 1)).astype(jnp.bfloat16)      # (B, L, 12)

    out = conv1d_bn_act(x, params["n_c1"]["w"], params["n_c1"]["b"],
                        params["n_bn1"]["g"], params["n_bn1"]["b"],
                        ksize=9, stride=2, padding=4, relu=True)
    out = maxpool1d(out, 8, 2)
    out = conv1d_bn_act(out, params["n_c2"]["w"], params["n_c2"]["b"],
                        params["n_bn2"]["g"], params["n_bn2"]["b"],
                        ksize=5, stride=2, padding=2, relu=True)
    out = conv1d_bn_act(out, params["n_c3"]["w"], params["n_c3"]["b"],
                        params["n_bn3"]["g"], params["n_bn3"]["b"],
                        ksize=5, stride=2, padding=2, relu=True)
    out = conv1d_bn_act(out, params["n_c4"]["w"], params["n_c4"]["b"],
                        params["n_bn4"]["g"], params["n_bn4"]["b"],
                        ksize=3, stride=2, padding=1, relu=True)
    return flatten_torch(out)                                     # (B, 1024)


def trans_cnn(params, y_bcl):
    y = jnp.transpose(y_bcl, (0, 2, 1)).astype(jnp.bfloat16)      # (B, L, 500)
    y = jnp.pad(y, ((0, 0), (0, 0), (0, 512 - y.shape[2])))       # lane-align 512

    out = conv1d_bn_act(y, params["t_c1"]["w"], params["t_c1"]["b"],
                        params["t_bn1"]["g"], params["t_bn1"]["b"],
                        ksize=3, stride=1, padding=1, relu=False)
    out = conv1d_bn_act(out, params["t_c2"]["w"], params["t_c2"]["b"],
                        params["t_bn2"]["g"], params["t_bn2"]["b"],
                        ksize=3, stride=1, padding=1, relu=False)
    out = conv1d_bn_act(out, params["t_c3"]["w"], params["t_c3"]["b"],
                        params["t_bn3"]["g"], params["t_bn3"]["b"],
                        ksize=3, stride=1, padding=1, relu=False)
    out = conv1d_bn_act(out, params["t_c4"]["w"], params["t_c4"]["b"],
                        params["t_bn4"]["g"], params["t_bn4"]["b"],
                        ksize=3, stride=1, padding=1, relu=False)
    return flatten_torch(out)                                     # (B, 2560)


def df_forward(params, x, y, dropout_key):
    # TODO(synk): on v7x the two independent branches could run concurrently on
    # the two TensorCores (pl.core_map over a 2-core mesh); kept serial here.
    xf = normal_cnn(params, x)                                    # (B, 1024)
    yf = trans_cnn(params, y)                                     # (B, 2560)
    cat = jnp.concatenate([xf, yf], axis=1)                       # (B, 3584) bf16

    out = matmul_bias_act(cat, params["fc1"]["w"], params["fc1"]["b"],
                          relu=True, out_dtype=jnp.float32)       # (B, 512)

    # F.dropout(out, 0.2) with default training=True semantics (inverted).
    keep = jax.random.bernoulli(dropout_key, 0.8, out.shape)
    out = jnp.where(keep, out / 0.8, 0.0)

    # Reference computes F.relu(fc2(out)) but discards it; skipped (dead code).
    return out                                                    # (B, 512)


# ----------------------------------------------------------------------------
if __name__ == "__main__":
    key = jax.random.PRNGKey(0)
    k_param, k_x, k_y, k_drop = jax.random.split(key, 4)

    params = init_params(k_param)

    # Shapes fixed by fc1(3584, 512): NormalCNN needs L=500 (-> 64*16=1024),
    # transCNN needs L=10 (-> 256*10=2560); batch kept small (B=2).
    x = jax.random.normal(k_x, (2, 12, 500), dtype=jnp.float32)   # NCL
    y = jax.random.normal(k_y, (2, 500, 10), dtype=jnp.float32)   # NCL

    fwd = jax.jit(df_forward)
    out = fwd(params, x, y, k_drop)
    jax.block_until_ready(out)

    assert out.shape == (2, 512) and out.dtype == jnp.float32
    print("KERNEL_OK")
</pallas_src>

<mosaic_0001>
module attributes {stable_mosaic.version = 11 : i64} {
  func.func @_conv_bn_act_kernel(%arg0: i32, %arg1: memref<500x108xbf16, #tpu.memory_space<vmem>>, %arg2: memref<108x64xbf16, #tpu.memory_space<vmem>>, %arg3: memref<1x64xf32, #tpu.memory_space<vmem>>, %arg4: memref<1x64xf32, #tpu.memory_space<vmem>>, %arg5: memref<1x64xf32, #tpu.memory_space<vmem>>, %arg6: memref<500x64xbf16, #tpu.memory_space<vmem>>) attributes {dimension_semantics = [#tpu.dimension_semantics<arbitrary>], iteration_bounds = array<i64: 1>, scalar_prefetch = 0 : i64, scratch_operands = 0 : i64, tpu.core_type = #tpu.core_type<tc>, window_params = [{pipeline_mode = #tpu.pipeline_mode<synchronous>, transform_indices = @transform_0, window_bounds = array<i64: 500, 108>}, {pipeline_mode = #tpu.pipeline_mode<synchronous>, transform_indices = @transform_1, window_bounds = array<i64: 108, 64>}, {pipeline_mode = #tpu.pipeline_mode<synchronous>, transform_indices = @transform_2, window_bounds = array<i64: 1, 64>}, {pipeline_mode = #tpu.pipeline_mode<synchronous>, transform_indices = @transform_3, window_bounds = array<i64: 1, 64>}, {pipeline_mode = #tpu.pipeline_mode<synchronous>, transform_indices = @transform_4, window_bounds = array<i64: 1, 64>}, {pipeline_mode = #tpu.pipeline_mode<synchronous>, transform_indices = @transform_5, window_bounds = array<i64: 500, 64>}]} {
    %c0 = arith.constant 0 : index
    %c0_0 = arith.constant 0 : index
    %0 = vector.load %arg1[%c0, %c0_0] : memref<500x108xbf16, #tpu.memory_space<vmem>>, vector<500x108xbf16>
    %c0_1 = arith.constant 0 : index
    %c0_2 = arith.constant 0 : index
    %1 = vector.load %arg2[%c0_1, %c0_2] : memref<108x64xbf16, #tpu.memory_space<vmem>>, vector<108x64xbf16>
    %cst = arith.constant dense<0.000000e+00> : vector<500x64xf32>
    %2 = tpu.matmul %0, %1, %cst {dimension_numbers = #tpu.dot_dimension_numbers<[1], [0], [0], [1], [0, 0, 1, 1], [], []>} : vector<500x108xbf16>, vector<108x64xbf16>, vector<500x64xf32> -> vector<500x64xf32>
    %c0_3 = arith.constant 0 : index
    %c0_4 = arith.constant 0 : index
    %3 = vector.load %arg3[%c0_3, %c0_4] : memref<1x64xf32, #tpu.memory_space<vmem>>, vector<1x64xf32>
    %4 = vector.broadcast %3 : vector<1x64xf32> to vector<500x64xf32>
    %5 = arith.addf %2, %4 : vector<500x64xf32>
    %cst_5 = arith.constant dense<0.000000e+00> : vector<64xf32>
    %6 = vector.multi_reduction <add>, %5, %cst_5 [0] : vector<500x64xf32> to vector<64xf32>
    %7 = vector.shape_cast %6 : vector<64xf32> to vector<1x64xf32>
    %cst_6 = arith.constant 2.000000e-03 : f32
    %8 = vector.broadcast %cst_6 : f32 to vector<1x64xf32>
    %9 = arith.mulf %7, %8 : vector<1x64xf32>
    %10 = vector.broadcast %9 : vector<1x64xf32> to vector<500x64xf32>
    %11 = arith.subf %5, %10 : vector<500x64xf32>
    %12 = arith.mulf %11, %11 : vector<500x64xf32>
    %cst_7 = arith.constant dense<0.000000e+00> : vector<64xf32>
    %13 = vector.multi_reduction <add>, %12, %cst_7 [0] : vector<500x64xf32> to vector<64xf32>
    %14 = vector.shape_cast %13 : vector<64xf32> to vector<1x64xf32>
    %cst_8 = arith.constant 2.000000e-03 : f32
    %15 = vector.broadcast %cst_8 : f32 to vector<1x64xf32>
    %16 = arith.mulf %14, %15 : vector<1x64xf32>
    %c0_9 = arith.constant 0 : index
    %c0_10 = arith.constant 0 : index
    %17 = vector.load %arg4[%c0_9, %c0_10] : memref<1x64xf32, #tpu.memory_space<vmem>>, vector<1x64xf32>
    %cst_11 = arith.constant 9.99999974E-6 : f32
    %18 = vector.broadcast %cst_11 : f32 to vector<1x64xf32>
    %19 = arith.addf %16, %18 : vector<1x64xf32>
    %20 = math.rsqrt %19 : vector<1x64xf32>
    %21 = arith.mulf %17, %20 : vector<1x64xf32>
    %22 = vector.broadcast %21 : vector<1x64xf32> to vector<500x64xf32>
    %23 = arith.mulf %11, %22 : vector<500x64xf32>
    %c0_12 = arith.constant 0 : index
    %c0_13 = arith.constant 0 : index
    %24 = vector.load %arg5[%c0_12, %c0_13] : memref<1x64xf32, #tpu.memory_space<vmem>>, vector<1x64xf32>
    %25 = vector.broadcast %24 : vector<1x64xf32> to vector<500x64xf32>
    %26 = arith.addf %23, %25 : vector<500x64xf32>
    %cst_14 = arith.constant 0.000000e+00 : f32
    %27 = vector.broadcast %cst_14 : f32 to vector<500x64xf32>
    %28 = arith.maximumf %26, %27 : vector<500x64xf32>
    %29 = arith.truncf %28 : vector<500x64xf32> to vector<500x64xbf16>
    %c0_15 = arith.constant 0 : index
    %c0_16 = arith.constant 0 : index
    %30 = vector.load %arg6[%c0_15, %c0_16] : memref<500x64xbf16, #tpu.memory_space<vmem>>, vector<500x64xbf16>
    tpu.vector_store %arg6[%c0_15, %c0_16], %29 {strides = array<i32>} : memref<500x64xbf16, #tpu.memory_space<vmem>>, vector<500x64xbf16>,
    return
  }
  func.func @transform_0(%arg0: i32) -> (i32, i32) {
    %c0_i32 = arith.constant 0 : i32
    %c0_i32_0 = arith.constant 0 : i32
    %c0_i32_1 = arith.constant 0 : i32
    return %c0_i32, %c0_i32_0 : i32, i32
  }
  func.func @transform_1(%arg0: i32) -> (i32, i32) {
    %c0_i32 = arith.constant 0 : i32
    %c0_i32_0 = arith.constant 0 : i32
    %c0_i32_1 = arith.constant 0 : i32
    return %c0_i32, %c0_i32_0 : i32, i32
  }
  func.func @transform_2(%arg0: i32) -> (i32, i32) {
    %c0_i32 = arith.constant 0 : i32
    %c0_i32_0 = arith.constant 0 : i32
    %c0_i32_1 = arith.constant 0 : i32
    return %c0_i32, %c0_i32_0 : i32, i32
  }
  func.func @transform_3(%arg0: i32) -> (i32, i32) {
    %c0_i32 = arith.constant 0 : i32
    %c0_i32_0 = arith.constant 0 : i32
    %c0_i32_1 = arith.constant 0 : i32
    return %c0_i32, %c0_i32_0 : i32, i32
  }
  func.func @transform_4(%arg0: i32) -> (i32, i32) {
    %c0_i32 = arith.constant 0 : i32
    %c0_i32_0 = arith.constant 0 : i32
    %c0_i32_1 = arith.constant 0 : i32
    return %c0_i32, %c0_i32_0 : i32, i32
  }
  func.func @transform_5(%arg0: i32) -> (i32, i32) {
    %c0_i32 = arith.constant 0 : i32
    %c0_i32_0 = arith.constant 0 : i32
    %c0_i32_1 = arith.constant 0 : i32
    return %c0_i32, %c0_i32_0 : i32, i32
  }
}

module attributes {stable_mosaic.version = 11 : i64} {
  func.func @_conv_bn_act_kernel(%arg0: i32, %arg1: memref<122x320xbf16, #tpu.memory_space<vmem>>, %arg2: memref<320x64xbf16, #tpu.memory_space<vmem>>, %arg3: memref<1x64xf32, #tpu.memory_space<vmem>>, %arg4: memref<1x64xf32, #tpu.memory_space<vmem>>, %arg5: memref<1x64xf32, #tpu.memory_space<vmem>>, %arg6: memref<122x64xbf16, #tpu.memory_space<vmem>>) attributes {dimension_semantics = [#tpu.dimension_semantics<arbitrary>], iteration_bounds = array<i64: 1>, scalar_prefetch = 0 : i64, scratch_operands = 0 : i64, tpu.core_type = #tpu.core_type<tc>, window_params = [{pipeline_mode = #tpu.pipeline_mode<synchronous>, transform_indices = @transform_0, window_bounds = array<i64: 122, 320>}, {pipeline_mode = #tpu.pipeline_mode<synchronous>, transform_indices = @transform_1, window_bounds = array<i64: 320, 64>}, {pipeline_mode = #tpu.pipeline_mode<synchronous>, transform_indices = @transform_2, window_bounds = array<i64: 1, 64>}, {pipeline_mode = #tpu.pipeline_mode<synchronous>, transform_indices = @transform_3, window_bounds = array<i64: 1, 64>}, {pipeline_mode = #tpu.pipeline_mode<synchronous>, transform_indices = @transform_4, window_bounds = array<i64: 1, 64>}, {pipeline_mode = #tpu.pipeline_mode<synchronous>, transform_indices = @transform_5, window_bounds = array<i64: 122, 64>}]} {
    %c0 = arith.constant 0 : index
    %c0_0 = arith.constant 0 : index
    %0 = vector.load %arg1[%c0, %c0_0] : memref<122x320xbf16, #tpu.memory_space<vmem>>, vector<122x320xbf16>
    %c0_1 = arith.constant 0 : index
    %c0_2 = arith.constant 0 : index
    %1 = vector.load %arg2[%c0_1, %c0_2] : memref<320x64xbf16, #tpu.memory_space<vmem>>, vector<320x64xbf16>
    %cst = arith.constant dense<0.000000e+00> : vector<122x64xf32>
    %2 = tpu.matmul %0, %1, %cst {dimension_numbers = #tpu.dot_dimension_numbers<[1], [0], [0], [1], [0, 0, 1, 1], [], []>} : vector<122x320xbf16>, vector<320x64xbf16>, vector<122x64xf32> -> vector<122x64xf32>
    %c0_3 = arith.constant 0 : index
    %c0_4 = arith.constant 0 : index
    %3 = vector.load %arg3[%c0_3, %c0_4] : memref<1x64xf32, #tpu.memory_space<vmem>>, vector<1x64xf32>
    %4 = vector.broadcast %3 : vector<1x64xf32> to vector<122x64xf32>
    %5 = arith.addf %2, %4 : vector<122x64xf32>
    %cst_5 = arith.constant dense<0.000000e+00> : vector<64xf32>
    %6 = vector.multi_reduction <add>, %5, %cst_5 [0] : vector<122x64xf32> to vector<64xf32>
    %7 = vector.shape_cast %6 : vector<64xf32> to vector<1x64xf32>
    %cst_6 = arith.constant 0.00819672085 : f32
    %8 = vector.broadcast %cst_6 : f32 to vector<1x64xf32>
    %9 = arith.mulf %7, %8 : vector<1x64xf32>
    %10 = vector.broadcast %9 : vector<1x64xf32> to vector<122x64xf32>
    %11 = arith.subf %5, %10 : vector<122x64xf32>
    %12 = arith.mulf %11, %11 : vector<122x64xf32>
    %cst_7 = arith.constant dense<0.000000e+00> : vector<64xf32>
    %13 = vector.multi_reduction <add>, %12, %cst_7 [0] : vector<122x64xf32> to vector<64xf32>
    %14 = vector.shape_cast %13 : vector<64xf32> to vector<1x64xf32>
    %cst_8 = arith.constant 0.00819672085 : f32
    %15 = vector.broadcast %cst_8 : f32 to vector<1x64xf32>
    %16 = arith.mulf %14, %15 : vector<1x64xf32>
    %c0_9 = arith.constant 0 : index
    %c0_10 = arith.constant 0 : index
    %17 = vector.load %arg4[%c0_9, %c0_10] : memref<1x64xf32, #tpu.memory_space<vmem>>, vector<1x64xf32>
    %cst_11 = arith.constant 9.99999974E-6 : f32
    %18 = vector.broadcast %cst_11 : f32 to vector<1x64xf32>
    %19 = arith.addf %16, %18 : vector<1x64xf32>
    %20 = math.rsqrt %19 : vector<1x64xf32>
    %21 = arith.mulf %17, %20 : vector<1x64xf32>
    %22 = vector.broadcast %21 : vector<1x64xf32> to vector<122x64xf32>
    %23 = arith.mulf %11, %22 : vector<122x64xf32>
    %c0_12 = arith.constant 0 : index
    %c0_13 = arith.constant 0 : index
    %24 = vector.load %arg5[%c0_12, %c0_13] : memref<1x64xf32, #tpu.memory_space<vmem>>, vector<1x64xf32>
    %25 = vector.broadcast %24 : vector<1x64xf32> to vector<122x64xf32>
    %26 = arith.addf %23, %25 : vector<122x64xf32>
    %cst_14 = arith.constant 0.000000e+00 : f32
    %27 = vector.broadcast %cst_14 : f32 to vector<122x64xf32>
    %28 = arith.maximumf %26, %27 : vector<122x64xf32>
    %29 = arith.truncf %28 : vector<122x64xf32> to vector<122x64xbf16>
    %c0_15 = arith.constant 0 : index
    %c0_16 = arith.constant 0 : index
    %30 = vector.load %arg6[%c0_15, %c0_16] : memref<122x64xbf16, #tpu.memory_space<vmem>>, vector<122x64xbf16>
    tpu.vector_store %arg6[%c0_15, %c0_16], %29 {strides = array<i32>} : memref<122x64xbf16, #tpu.memory_space<vmem>>, vector<122x64xbf16>,
    return
  }
  func.func @transform_0(%arg0: i32) -> (i32, i32) {
    %c0_i32 = arith.constant 0 : i32
    %c0_i32_0 = arith.constant 0 : i32
    %c0_i32_1 = arith.constant 0 : i32
    return %c0_i32, %c0_i32_0 : i32, i32
  }
  func.func @transform_1(%arg0: i32) -> (i32, i32) {
    %c0_i32 = arith.constant 0 : i32
    %c0_i32_0 = arith.constant 0 : i32
    %c0_i32_1 = arith.constant 0 : i32
    return %c0_i32, %c0_i32_0 : i32, i32
  }
  func.func @transform_2(%arg0: i32) -> (i32, i32) {
    %c0_i32 = arith.constant 0 : i32
    %c0_i32_0 = arith.constant 0 : i32
    %c0_i32_1 = arith.constant 0 : i32
    return %c0_i32, %c0_i32_0 : i32, i32
  }
  func.func @transform_3(%arg0: i32) -> (i32, i32) {
    %c0_i32 = arith.constant 0 : i32
    %c0_i32_0 = arith.constant 0 : i32
    %c0_i32_1 = arith.constant 0 : i32
    return %c0_i32, %c0_i32_0 : i32, i32
  }
  func.func @transform_4(%arg0: i32) -> (i32, i32) {
    %c0_i32 = arith.constant 0 : i32
    %c0_i32_0 = arith.constant 0 : i32
    %c0_i32_1 = arith.constant 0 : i32
    return %c0_i32, %c0_i32_0 : i32, i32
  }
  func.func @transform_5(%arg0: i32) -> (i32, i32) {
    %c0_i32 = arith.constant 0 : i32
    %c0_i32_0 = arith.constant 0 : i32
    %c0_i32_1 = arith.constant 0 : i32
    return %c0_i32, %c0_i32_0 : i32, i32
  }
}

module attributes {stable_mosaic.version = 11 : i64} {
  func.func @_conv_bn_act_kernel(%arg0: i32, %arg1: memref<62x320xbf16, #tpu.memory_space<vmem>>, %arg2: memref<320x64xbf16, #tpu.memory_space<vmem>>, %arg3: memref<1x64xf32, #tpu.memory_space<vmem>>, %arg4: memref<1x64xf32, #tpu.memory_space<vmem>>, %arg5: memref<1x64xf32, #tpu.memory_space<vmem>>, %arg6: memref<62x64xbf16, #tpu.memory_space<vmem>>) attributes {dimension_semantics = [#tpu.dimension_semantics<arbitrary>], iteration_bounds = array<i64: 1>, scalar_prefetch = 0 : i64, scratch_operands = 0 : i64, tpu.core_type = #tpu.core_type<tc>, window_params = [{pipeline_mode = #tpu.pipeline_mode<synchronous>, transform_indices = @transform_0, window_bounds = array<i64: 62, 320>}, {pipeline_mode = #tpu.pipeline_mode<synchronous>, transform_indices = @transform_1, window_bounds = array<i64: 320, 64>}, {pipeline_mode = #tpu.pipeline_mode<synchronous>, transform_indices = @transform_2, window_bounds = array<i64: 1, 64>}, {pipeline_mode = #tpu.pipeline_mode<synchronous>, transform_indices = @transform_3, window_bounds = array<i64: 1, 64>}, {pipeline_mode = #tpu.pipeline_mode<synchronous>, transform_indices = @transform_4, window_bounds = array<i64: 1, 64>}, {pipeline_mode = #tpu.pipeline_mode<synchronous>, transform_indices = @transform_5, window_bounds = array<i64: 62, 64>}]} {
    %c0 = arith.constant 0 : index
    %c0_0 = arith.constant 0 : index
    %0 = vector.load %arg1[%c0, %c0_0] : memref<62x320xbf16, #tpu.memory_space<vmem>>, vector<62x320xbf16>
    %c0_1 = arith.constant 0 : index
    %c0_2 = arith.constant 0 : index
    %1 = vector.load %arg2[%c0_1, %c0_2] : memref<320x64xbf16, #tpu.memory_space<vmem>>, vector<320x64xbf16>
    %cst = arith.constant dense<0.000000e+00> : vector<62x64xf32>
    %2 = tpu.matmul %0, %1, %cst {dimension_numbers = #tpu.dot_dimension_numbers<[1], [0], [0], [1], [0, 0, 1, 1], [], []>} : vector<62x320xbf16>, vector<320x64xbf16>, vector<62x64xf32> -> vector<62x64xf32>
    %c0_3 = arith.constant 0 : index
    %c0_4 = arith.constant 0 : index
    %3 = vector.load %arg3[%c0_3, %c0_4] : memref<1x64xf32, #tpu.memory_space<vmem>>, vector<1x64xf32>
    %4 = vector.broadcast %3 : vector<1x64xf32> to vector<62x64xf32>
    %5 = arith.addf %2, %4 : vector<62x64xf32>
    %cst_5 = arith.constant dense<0.000000e+00> : vector<64xf32>
    %6 = vector.multi_reduction <add>, %5, %cst_5 [0] : vector<62x64xf32> to vector<64xf32>
    %7 = vector.shape_cast %6 : vector<64xf32> to vector<1x64xf32>
    %cst_6 = arith.constant 0.0161290318 : f32
    %8 = vector.broadcast %cst_6 : f32 to vector<1x64xf32>
    %9 = arith.mulf %7, %8 : vector<1x64xf32>
    %10 = vector.broadcast %9 : vector<1x64xf32> to vector<62x64xf32>
    %11 = arith.subf %5, %10 : vector<62x64xf32>
    %12 = arith.mulf %11, %11 : vector<62x64xf32>
    %cst_7 = arith.constant dense<0.000000e+00> : vector<64xf32>
    %13 = vector.multi_reduction <add>, %12, %cst_7 [0] : vector<62x64xf32> to vector<64xf32>
    %14 = vector.shape_cast %13 : vector<64xf32> to vector<1x64xf32>
    %cst_8 = arith.constant 0.0161290318 : f32
    %15 = vector.broadcast %cst_8 : f32 to vector<1x64xf32>
    %16 = arith.mulf %14, %15 : vector<1x64xf32>
    %c0_9 = arith.constant 0 : index
    %c0_10 = arith.constant 0 : index
    %17 = vector.load %arg4[%c0_9, %c0_10] : memref<1x64xf32, #tpu.memory_space<vmem>>, vector<1x64xf32>
    %cst_11 = arith.constant 9.99999974E-6 : f32
    %18 = vector.broadcast %cst_11 : f32 to vector<1x64xf32>
    %19 = arith.addf %16, %18 : vector<1x64xf32>
    %20 = math.rsqrt %19 : vector<1x64xf32>
    %21 = arith.mulf %17, %20 : vector<1x64xf32>
    %22 = vector.broadcast %21 : vector<1x64xf32> to vector<62x64xf32>
    %23 = arith.mulf %11, %22 : vector<62x64xf32>
    %c0_12 = arith.constant 0 : index
    %c0_13 = arith.constant 0 : index
    %24 = vector.load %arg5[%c0_12, %c0_13] : memref<1x64xf32, #tpu.memory_space<vmem>>, vector<1x64xf32>
    %25 = vector.broadcast %24 : vector<1x64xf32> to vector<62x64xf32>
    %26 = arith.addf %23, %25 : vector<62x64xf32>
    %cst_14 = arith.constant 0.000000e+00 : f32
    %27 = vector.broadcast %cst_14 : f32 to vector<62x64xf32>
    %28 = arith.maximumf %26, %27 : vector<62x64xf32>
    %29 = arith.truncf %28 : vector<62x64xf32> to vector<62x64xbf16>
    %c0_15 = arith.constant 0 : index
    %c0_16 = arith.constant 0 : index
    %30 = vector.load %arg6[%c0_15, %c0_16] : memref<62x64xbf16, #tpu.memory_space<vmem>>, vector<62x64xbf16>
    tpu.vector_store %arg6[%c0_15, %c0_16], %29 {strides = array<i32>} : memref<62x64xbf16, #tpu.memory_space<vmem>>, vector<62x64xbf16>,
    return
  }
  func.func @transform_0(%arg0: i32) -> (i32, i32) {
    %c0_i32 = arith.constant 0 : i32
    %c0_i32_0 = arith.constant 0 : i32
    %c0_i32_1 = arith.constant 0 : i32
    return %c0_i32, %c0_i32_0 : i32, i32
  }
  func.func @transform_1(%arg0: i32) -> (i32, i32) {
    %c0_i32 = arith.constant 0 : i32
    %c0_i32_0 = arith.constant 0 : i32
    %c0_i32_1 = arith.constant 0 : i32
    return %c0_i32, %c0_i32_0 : i32, i32
  }
  func.func @transform_2(%arg0: i32) -> (i32, i32) {
    %c0_i32 = arith.constant 0 : i32
    %c0_i32_0 = arith.constant 0 : i32
    %c0_i32_1 = arith.constant 0 : i32
    return %c0_i32, %c0_i32_0 : i32, i32
  }
  func.func @transform_3(%arg0: i32) -> (i32, i32) {
    %c0_i32 = arith.constant 0 : i32
    %c0_i32_0 = arith.constant 0 : i32
    %c0_i32_1 = arith.constant 0 : i32
    return %c0_i32, %c0_i32_0 : i32, i32
  }
  func.func @transform_4(%arg0: i32) -> (i32, i32) {
    %c0_i32 = arith.constant 0 : i32
    %c0_i32_0 = arith.constant 0 : i32
    %c0_i32_1 = arith.constant 0 : i32
    return %c0_i32, %c0_i32_0 : i32, i32
  }
  func.func @transform_5(%arg0: i32) -> (i32, i32) {
    %c0_i32 = arith.constant 0 : i32
    %c0_i32_0 = arith.constant 0 : i32
    %c0_i32_1 = arith.constant 0 : i32
    return %c0_i32, %c0_i32_0 : i32, i32
  }
}

module attributes {stable_mosaic.version = 11 : i64} {
  func.func @_conv_bn_act_kernel(%arg0: i32, %arg1: memref<32x192xbf16, #tpu.memory_space<vmem>>, %arg2: memref<192x64xbf16, #tpu.memory_space<vmem>>, %arg3: memref<1x64xf32, #tpu.memory_space<vmem>>, %arg4: memref<1x64xf32, #tpu.memory_space<vmem>>, %arg5: memref<1x64xf32, #tpu.memory_space<vmem>>, %arg6: memref<32x64xbf16, #tpu.memory_space<vmem>>) attributes {dimension_semantics = [#tpu.dimension_semantics<arbitrary>], iteration_bounds = array<i64: 1>, scalar_prefetch = 0 : i64, scratch_operands = 0 : i64, tpu.core_type = #tpu.core_type<tc>, window_params = [{pipeline_mode = #tpu.pipeline_mode<synchronous>, transform_indices = @transform_0, window_bounds = array<i64: 32, 192>}, {pipeline_mode = #tpu.pipeline_mode<synchronous>, transform_indices = @transform_1, window_bounds = array<i64: 192, 64>}, {pipeline_mode = #tpu.pipeline_mode<synchronous>, transform_indices = @transform_2, window_bounds = array<i64: 1, 64>}, {pipeline_mode = #tpu.pipeline_mode<synchronous>, transform_indices = @transform_3, window_bounds = array<i64: 1, 64>}, {pipeline_mode = #tpu.pipeline_mode<synchronous>, transform_indices = @transform_4, window_bounds = array<i64: 1, 64>}, {pipeline_mode = #tpu.pipeline_mode<synchronous>, transform_indices = @transform_5, window_bounds = array<i64: 32, 64>}]} {
    %c0 = arith.constant 0 : index
    %c0_0 = arith.constant 0 : index
    %0 = vector.load %arg1[%c0, %c0_0] : memref<32x192xbf16, #tpu.memory_space<vmem>>, vector<32x192xbf16>
    %c0_1 = arith.constant 0 : index
    %c0_2 = arith.constant 0 : index
    %1 = vector.load %arg2[%c0_1, %c0_2] : memref<192x64xbf16, #tpu.memory_space<vmem>>, vector<192x64xbf16>
    %cst = arith.constant dense<0.000000e+00> : vector<32x64xf32>
    %2 = tpu.matmul %0, %1, %cst {dimension_numbers = #tpu.dot_dimension_numbers<[1], [0], [0], [1], [0, 0, 1, 1], [], []>} : vector<32x192xbf16>, vector<192x64xbf16>, vector<32x64xf32> -> vector<32x64xf32>
    %c0_3 = arith.constant 0 : index
    %c0_4 = arith.constant 0 : index
    %3 = vector.load %arg3[%c0_3, %c0_4] : memref<1x64xf32, #tpu.memory_space<vmem>>, vector<1x64xf32>
    %4 = vector.broadcast %3 : vector<1x64xf32> to vector<32x64xf32>
    %5 = arith.addf %2, %4 : vector<32x64xf32>
    %cst_5 = arith.constant dense<0.000000e+00> : vector<64xf32>
    %6 = vector.multi_reduction <add>, %5, %cst_5 [0] : vector<32x64xf32> to vector<64xf32>
    %7 = vector.shape_cast %6 : vector<64xf32> to vector<1x64xf32>
    %cst_6 = arith.constant 3.125000e-02 : f32
    %8 = vector.broadcast %cst_6 : f32 to vector<1x64xf32>
    %9 = arith.mulf %7, %8 : vector<1x64xf32>
    %10 = vector.broadcast %9 : vector<1x64xf32> to vector<32x64xf32>
    %11 = arith.subf %5, %10 : vector<32x64xf32>
    %12 = arith.mulf %11, %11 : vector<32x64xf32>
    %cst_7 = arith.constant dense<0.000000e+00> : vector<64xf32>
    %13 = vector.multi_reduction <add>, %12, %cst_7 [0] : vector<32x64xf32> to vector<64xf32>
    %14 = vector.shape_cast %13 : vector<64xf32> to vector<1x64xf32>
    %cst_8 = arith.constant 3.125000e-02 : f32
    %15 = vector.broadcast %cst_8 : f32 to vector<1x64xf32>
    %16 = arith.mulf %14, %15 : vector<1x64xf32>
    %c0_9 = arith.constant 0 : index
    %c0_10 = arith.constant 0 : index
    %17 = vector.load %arg4[%c0_9, %c0_10] : memref<1x64xf32, #tpu.memory_space<vmem>>, vector<1x64xf32>
    %cst_11 = arith.constant 9.99999974E-6 : f32
    %18 = vector.broadcast %cst_11 : f32 to vector<1x64xf32>
    %19 = arith.addf %16, %18 : vector<1x64xf32>
    %20 = math.rsqrt %19 : vector<1x64xf32>
    %21 = arith.mulf %17, %20 : vector<1x64xf32>
    %22 = vector.broadcast %21 : vector<1x64xf32> to vector<32x64xf32>
    %23 = arith.mulf %11, %22 : vector<32x64xf32>
    %c0_12 = arith.constant 0 : index
    %c0_13 = arith.constant 0 : index
    %24 = vector.load %arg5[%c0_12, %c0_13] : memref<1x64xf32, #tpu.memory_space<vmem>>, vector<1x64xf32>
    %25 = vector.broadcast %24 : vector<1x64xf32> to vector<32x64xf32>
    %26 = arith.addf %23, %25 : vector<32x64xf32>
    %cst_14 = arith.constant 0.000000e+00 : f32
    %27 = vector.broadcast %cst_14 : f32 to vector<32x64xf32>
    %28 = arith.maximumf %26, %27 : vector<32x64xf32>
    %29 = arith.truncf %28 : vector<32x64xf32> to vector<32x64xbf16>
    %c0_15 = arith.constant 0 : index
    %c0_16 = arith.constant 0 : index
    %30 = vector.load %arg6[%c0_15, %c0_16] : memref<32x64xbf16, #tpu.memory_space<vmem>>, vector<32x64xbf16>
    tpu.vector_store %arg6[%c0_15, %c0_16], %29 {strides = array<i32>} : memref<32x64xbf16, #tpu.memory_space<vmem>>, vector<32x64xbf16>,
    return
  }
  func.func @transform_0(%arg0: i32) -> (i32, i32) {
    %c0_i32 = arith.constant 0 : i32
    %c0_i32_0 = arith.constant 0 : i32
    %c0_i32_1 = arith.constant 0 : i32
    return %c0_i32, %c0_i32_0 : i32, i32
  }
  func.func @transform_1(%arg0: i32) -> (i32, i32) {
    %c0_i32 = arith.constant 0 : i32
    %c0_i32_0 = arith.constant 0 : i32
    %c0_i32_1 = arith.constant 0 : i32
    return %c0_i32, %c0_i32_0 : i32, i32
  }
  func.func @transform_2(%arg0: i32) -> (i32, i32) {
    %c0_i32 = arith.constant 0 : i32
    %c0_i32_0 = arith.constant 0 : i32
    %c0_i32_1 = arith.constant 0 : i32
    return %c0_i32, %c0_i32_0 : i32, i32
  }
  func.func @transform_3(%arg0: i32) -> (i32, i32) {
    %c0_i32 = arith.constant 0 : i32
    %c0_i32_0 = arith.constant 0 : i32
    %c0_i32_1 = arith.constant 0 : i32
    return %c0_i32, %c0_i32_0 : i32, i32
  }
  func.func @transform_4(%arg0: i32) -> (i32, i32) {
    %c0_i32 = arith.constant 0 : i32
    %c0_i32_0 = arith.constant 0 : i32
    %c0_i32_1 = arith.constant 0 : i32
    return %c0_i32, %c0_i32_0 : i32, i32
  }
  func.func @transform_5(%arg0: i32) -> (i32, i32) {
    %c0_i32 = arith.constant 0 : i32
    %c0_i32_0 = arith.constant 0 : i32
    %c0_i32_1 = arith.constant 0 : i32
    return %c0_i32, %c0_i32_0 : i32, i32
  }
}

module attributes {stable_mosaic.version = 11 : i64} {
  func.func @_conv_bn_act_kernel(%arg0: i32, %arg1: memref<20x1536xbf16, #tpu.memory_space<vmem>>, %arg2: memref<1536x512xbf16, #tpu.memory_space<vmem>>, %arg3: memref<1x512xf32, #tpu.memory_space<vmem>>, %arg4: memref<1x512xf32, #tpu.memory_space<vmem>>, %arg5: memref<1x512xf32, #tpu.memory_space<vmem>>, %arg6: memref<20x512xbf16, #tpu.memory_space<vmem>>) attributes {dimension_semantics = [#tpu.dimension_semantics<arbitrary>], iteration_bounds = array<i64: 1>, scalar_prefetch = 0 : i64, scratch_operands = 0 : i64, tpu.core_type = #tpu.core_type<tc>, window_params = [{pipeline_mode = #tpu.pipeline_mode<synchronous>, transform_indices = @transform_0, window_bounds = array<i64: 20, 1536>}, {pipeline_mode = #tpu.pipeline_mode<synchronous>, transform_indices = @transform_1, window_bounds = array<i64: 1536, 512>}, {pipeline_mode = #tpu.pipeline_mode<synchronous>, transform_indices = @transform_2, window_bounds = array<i64: 1, 512>}, {pipeline_mode = #tpu.pipeline_mode<synchronous>, transform_indices = @transform_3, window_bounds = array<i64: 1, 512>}, {pipeline_mode = #tpu.pipeline_mode<synchronous>, transform_indices = @transform_4, window_bounds = array<i64: 1, 512>}, {pipeline_mode = #tpu.pipeline_mode<synchronous>, transform_indices = @transform_5, window_bounds = array<i64: 20, 512>}]} {
    %c0 = arith.constant 0 : index
    %c0_0 = arith.constant 0 : index
    %0 = vector.load %arg1[%c0, %c0_0] : memref<20x1536xbf16, #tpu.memory_space<vmem>>, vector<20x1536xbf16>
    %c0_1 = arith.constant 0 : index
    %c0_2 = arith.constant 0 : index
    %1 = vector.load %arg2[%c0_1, %c0_2] : memref<1536x512xbf16, #tpu.memory_space<vmem>>, vector<1536x512xbf16>
    %cst = arith.constant dense<0.000000e+00> : vector<20x512xf32>
    %2 = tpu.matmul %0, %1, %cst {dimension_numbers = #tpu.dot_dimension_numbers<[1], [0], [0], [1], [0, 0, 1, 1], [], []>} : vector<20x1536xbf16>, vector<1536x512xbf16>, vector<20x512xf32> -> vector<20x512xf32>
    %c0_3 = arith.constant 0 : index
    %c0_4 = arith.constant 0 : index
    %3 = vector.load %arg3[%c0_3, %c0_4] : memref<1x512xf32, #tpu.memory_space<vmem>>, vector<1x512xf32>
    %4 = vector.broadcast %3 : vector<1x512xf32> to vector<20x512xf32>
    %5 = arith.addf %2, %4 : vector<20x512xf32>
    %cst_5 = arith.constant dense<0.000000e+00> : vector<512xf32>
    %6 = vector.multi_reduction <add>, %5, %cst_5 [0] : vector<20x512xf32> to vector<512xf32>
    %7 = vector.shape_cast %6 : vector<512xf32> to vector<1x512xf32>
    %cst_6 = arith.constant 5.000000e-02 : f32
    %8 = vector.broadcast %cst_6 : f32 to vector<1x512xf32>
    %9 = arith.mulf %7, %8 : vector<1x512xf32>
    %10 = vector.broadcast %9 : vector<1x512xf32> to vector<20x512xf32>
    %11 = arith.subf %5, %10 : vector<20x512xf32>
    %12 = arith.mulf %11, %11 : vector<20x512xf32>
    %cst_7 = arith.constant dense<0.000000e+00> : vector<512xf32>
    %13 = vector.multi_reduction <add>, %12, %cst_7 [0] : vector<20x512xf32> to vector<512xf32>
    %14 = vector.shape_cast %13 : vector<512xf32> to vector<1x512xf32>
    %cst_8 = arith.constant 5.000000e-02 : f32
    %15 = vector.broadcast %cst_8 : f32 to vector<1x512xf32>
    %16 = arith.mulf %14, %15 : vector<1x512xf32>
    %c0_9 = arith.constant 0 : index
    %c0_10 = arith.constant 0 : index
    %17 = vector.load %arg4[%c0_9, %c0_10] : memref<1x512xf32, #tpu.memory_space<vmem>>, vector<1x512xf32>
    %cst_11 = arith.constant 9.99999974E-6 : f32
    %18 = vector.broadcast %cst_11 : f32 to vector<1x512xf32>
    %19 = arith.addf %16, %18 : vector<1x512xf32>
    %20 = math.rsqrt %19 : vector<1x512xf32>
    %21 = arith.mulf %17, %20 : vector<1x512xf32>
    %22 = vector.broadcast %21 : vector<1x512xf32> to vector<20x512xf32>
    %23 = arith.mulf %11, %22 : vector<20x512xf32>
    %c0_12 = arith.constant 0 : index
    %c0_13 = arith.constant 0 : index
    %24 = vector.load %arg5[%c0_12, %c0_13] : memref<1x512xf32, #tpu.memory_space<vmem>>, vector<1x512xf32>
    %25 = vector.broadcast %24 : vector<1x512xf32> to vector<20x512xf32>
    %26 = arith.addf %23, %25 : vector<20x512xf32>
    %27 = arith.truncf %26 : vector<20x512xf32> to vector<20x512xbf16>
    %c0_14 = arith.constant 0 : index
    %c0_15 = arith.constant 0 : index
    %28 = vector.load %arg6[%c0_14, %c0_15] : memref<20x512xbf16, #tpu.memory_space<vmem>>, vector<20x512xbf16>
    tpu.vector_store %arg6[%c0_14, %c0_15], %27 {strides = array<i32>} : memref<20x512xbf16, #tpu.memory_space<vmem>>, vector<20x512xbf16>,
    return
  }
  func.func @transform_0(%arg0: i32) -> (i32, i32) {
    %c0_i32 = arith.constant 0 : i32
    %c0_i32_0 = arith.constant 0 : i32
    %c0_i32_1 = arith.constant 0 : i32
    return %c0_i32, %c0_i32_0 : i32, i32
  }
  func.func @transform_1(%arg0: i32) -> (i32, i32) {
    %c0_i32 = arith.constant 0 : i32
    %c0_i32_0 = arith.constant 0 : i32
    %c0_i32_1 = arith.constant 0 : i32
    return %c0_i32, %c0_i32_0 : i32, i32
  }
  func.func @transform_2(%arg0: i32) -> (i32, i32) {
    %c0_i32 = arith.constant 0 : i32
    %c0_i32_0 = arith.constant 0 : i32
    %c0_i32_1 = arith.constant 0 : i32
    return %c0_i32, %c0_i32_0 : i32, i32
  }
  func.func @transform_3(%arg0: i32) -> (i32, i32) {
    %c0_i32 = arith.constant 0 : i32
    %c0_i32_0 = arith.constant 0 : i32
    %c0_i32_1 = arith.constant 0 : i32
    return %c0_i32, %c0_i32_0 : i32, i32
  }
  func.func @transform_4(%arg0: i32) -> (i32, i32) {
    %c0_i32 = arith.constant 0 : i32
    %c0_i32_0 = arith.constant 0 : i32
    %c0_i32_1 = arith.constant 0 : i32
    return %c0_i32, %c0_i32_0 : i32, i32
  }
  func.func @transform_5(%arg0: i32) -> (i32, i32) {
    %c0_i32 = arith.constant 0 : i32
    %c0_i32_0 = arith.constant 0 : i32
    %c0_i32_1 = arith.constant 0 : i32
    return %c0_i32, %c0_i32_0 : i32, i32
  }
}

module attributes {stable_mosaic.version = 11 : i64} {
  func.func @_conv_bn_act_kernel(%arg0: i32, %arg1: memref<20x1536xbf16, #tpu.memory_space<vmem>>, %arg2: memref<1536x256xbf16, #tpu.memory_space<vmem>>, %arg3: memref<1x256xf32, #tpu.memory_space<vmem>>, %arg4: memref<1x256xf32, #tpu.memory_space<vmem>>, %arg5: memref<1x256xf32, #tpu.memory_space<vmem>>, %arg6: memref<20x256xbf16, #tpu.memory_space<vmem>>) attributes {dimension_semantics = [#tpu.dimension_semantics<arbitrary>], iteration_bounds = array<i64: 1>, scalar_prefetch = 0 : i64, scratch_operands = 0 : i64, tpu.core_type = #tpu.core_type<tc>, window_params = [{pipeline_mode = #tpu.pipeline_mode<synchronous>, transform_indices = @transform_0, window_bounds = array<i64: 20, 1536>}, {pipeline_mode = #tpu.pipeline_mode<synchronous>, transform_indices = @transform_1, window_bounds = array<i64: 1536, 256>}, {pipeline_mode = #tpu.pipeline_mode<synchronous>, transform_indices = @transform_2, window_bounds = array<i64: 1, 256>}, {pipeline_mode = #tpu.pipeline_mode<synchronous>, transform_indices = @transform_3, window_bounds = array<i64: 1, 256>}, {pipeline_mode = #tpu.pipeline_mode<synchronous>, transform_indices = @transform_4, window_bounds = array<i64: 1, 256>}, {pipeline_mode = #tpu.pipeline_mode<synchronous>, transform_indices = @transform_5, window_bounds = array<i64: 20, 256>}]} {
    %c0 = arith.constant 0 : index
    %c0_0 = arith.constant 0 : index
    %0 = vector.load %arg1[%c0, %c0_0] : memref<20x1536xbf16, #tpu.memory_space<vmem>>, vector<20x1536xbf16>
    %c0_1 = arith.constant 0 : index
    %c0_2 = arith.constant 0 : index
    %1 = vector.load %arg2[%c0_1, %c0_2] : memref<1536x256xbf16, #tpu.memory_space<vmem>>, vector<1536x256xbf16>
    %cst = arith.constant dense<0.000000e+00> : vector<20x256xf32>
    %2 = tpu.matmul %0, %1, %cst {dimension_numbers = #tpu.dot_dimension_numbers<[1], [0], [0], [1], [0, 0, 1, 1], [], []>} : vector<20x1536xbf16>, vector<1536x256xbf16>, vector<20x256xf32> -> vector<20x256xf32>
    %c0_3 = arith.constant 0 : index
    %c0_4 = arith.constant 0 : index
    %3 = vector.load %arg3[%c0_3, %c0_4] : memref<1x256xf32, #tpu.memory_space<vmem>>, vector<1x256xf32>
    %4 = vector.broadcast %3 : vector<1x256xf32> to vector<20x256xf32>
    %5 = arith.addf %2, %4 : vector<20x256xf32>
    %cst_5 = arith.constant dense<0.000000e+00> : vector<256xf32>
    %6 = vector.multi_reduction <add>, %5, %cst_5 [0] : vector<20x256xf32> to vector<256xf32>
    %7 = vector.shape_cast %6 : vector<256xf32> to vector<1x256xf32>
    %cst_6 = arith.constant 5.000000e-02 : f32
    %8 = vector.broadcast %cst_6 : f32 to vector<1x256xf32>
    %9 = arith.mulf %7, %8 : vector<1x256xf32>
    %10 = vector.broadcast %9 : vector<1x256xf32> to vector<20x256xf32>
    %11 = arith.subf %5, %10 : vector<20x256xf32>
    %12 = arith.mulf %11, %11 : vector<20x256xf32>
    %cst_7 = arith.constant dense<0.000000e+00> : vector<256xf32>
    %13 = vector.multi_reduction <add>, %12, %cst_7 [0] : vector<20x256xf32> to vector<256xf32>
    %14 = vector.shape_cast %13 : vector<256xf32> to vector<1x256xf32>
    %cst_8 = arith.constant 5.000000e-02 : f32
    %15 = vector.broadcast %cst_8 : f32 to vector<1x256xf32>
    %16 = arith.mulf %14, %15 : vector<1x256xf32>
    %c0_9 = arith.constant 0 : index
    %c0_10 = arith.constant 0 : index
    %17 = vector.load %arg4[%c0_9, %c0_10] : memref<1x256xf32, #tpu.memory_space<vmem>>, vector<1x256xf32>
    %cst_11 = arith.constant 9.99999974E-6 : f32
    %18 = vector.broadcast %cst_11 : f32 to vector<1x256xf32>
    %19 = arith.addf %16, %18 : vector<1x256xf32>
    %20 = math.rsqrt %19 : vector<1x256xf32>
    %21 = arith.mulf %17, %20 : vector<1x256xf32>
    %22 = vector.broadcast %21 : vector<1x256xf32> to vector<20x256xf32>
    %23 = arith.mulf %11, %22 : vector<20x256xf32>
    %c0_12 = arith.constant 0 : index
    %c0_13 = arith.constant 0 : index
    %24 = vector.load %arg5[%c0_12, %c0_13] : memref<1x256xf32, #tpu.memory_space<vmem>>, vector<1x256xf32>
    %25 = vector.broadcast %24 : vector<1x256xf32> to vector<20x256xf32>
    %26 = arith.addf %23, %25 : vector<20x256xf32>
    %27 = arith.truncf %26 : vector<20x256xf32> to vector<20x256xbf16>
    %c0_14 = arith.constant 0 : index
    %c0_15 = arith.constant 0 : index
    %28 = vector.load %arg6[%c0_14, %c0_15] : memref<20x256xbf16, #tpu.memory_space<vmem>>, vector<20x256xbf16>
    tpu.vector_store %arg6[%c0_14, %c0_15], %27 {strides = array<i32>} : memref<20x256xbf16, #tpu.memory_space<vmem>>, vector<20x256xbf16>,
    return
  }
  func.func @transform_0(%arg0: i32) -> (i32, i32) {
    %c0_i32 = arith.constant 0 : i32
    %c0_i32_0 = arith.constant 0 : i32
    %c0_i32_1 = arith.constant 0 : i32
    return %c0_i32, %c0_i32_0 : i32, i32
  }
  func.func @transform_1(%arg0: i32) -> (i32, i32) {
    %c0_i32 = arith.constant 0 : i32
    %c0_i32_0 = arith.constant 0 : i32
    %c0_i32_1 = arith.constant 0 : i32
    return %c0_i32, %c0_i32_0 : i32, i32
  }
  func.func @transform_2(%arg0: i32) -> (i32, i32) {
    %c0_i32 = arith.constant 0 : i32
    %c0_i32_0 = arith.constant 0 : i32
    %c0_i32_1 = arith.constant 0 : i32
    return %c0_i32, %c0_i32_0 : i32, i32
  }
  func.func @transform_3(%arg0: i32) -> (i32, i32) {
    %c0_i32 = arith.constant 0 : i32
    %c0_i32_0 = arith.constant 0 : i32
    %c0_i32_1 = arith.constant 0 : i32
    return %c0_i32, %c0_i32_0 : i32, i32
  }
  func.func @transform_4(%arg0: i32) -> (i32, i32) {
    %c0_i32 = arith.constant 0 : i32
    %c0_i32_0 = arith.constant 0 : i32
    %c0_i32_1 = arith.constant 0 : i32
    return %c0_i32, %c0_i32_0 : i32, i32
  }
  func.func @transform_5(%arg0: i32) -> (i32, i32) {
    %c0_i32 = arith.constant 0 : i32
    %c0_i32_0 = arith.constant 0 : i32
    %c0_i32_1 = arith.constant 0 : i32
    return %c0_i32, %c0_i32_0 : i32, i32
  }
}

module attributes {stable_mosaic.version = 11 : i64} {
  func.func @_conv_bn_act_kernel(%arg0: i32, %arg1: memref<20x768xbf16, #tpu.memory_space<vmem>>, %arg2: memref<768x256xbf16, #tpu.memory_space<vmem>>, %arg3: memref<1x256xf32, #tpu.memory_space<vmem>>, %arg4: memref<1x256xf32, #tpu.memory_space<vmem>>, %arg5: memref<1x256xf32, #tpu.memory_space<vmem>>, %arg6: memref<20x256xbf16, #tpu.memory_space<vmem>>) attributes {dimension_semantics = [#tpu.dimension_semantics<arbitrary>], iteration_bounds = array<i64: 1>, scalar_prefetch = 0 : i64, scratch_operands = 0 : i64, tpu.core_type = #tpu.core_type<tc>, window_params = [{pipeline_mode = #tpu.pipeline_mode<synchronous>, transform_indices = @transform_0, window_bounds = array<i64: 20, 768>}, {pipeline_mode = #tpu.pipeline_mode<synchronous>, transform_indices = @transform_1, window_bounds = array<i64: 768, 256>}, {pipeline_mode = #tpu.pipeline_mode<synchronous>, transform_indices = @transform_2, window_bounds = array<i64: 1, 256>}, {pipeline_mode = #tpu.pipeline_mode<synchronous>, transform_indices = @transform_3, window_bounds = array<i64: 1, 256>}, {pipeline_mode = #tpu.pipeline_mode<synchronous>, transform_indices = @transform_4, window_bounds = array<i64: 1, 256>}, {pipeline_mode = #tpu.pipeline_mode<synchronous>, transform_indices = @transform_5, window_bounds = array<i64: 20, 256>}]} {
    %c0 = arith.constant 0 : index
    %c0_0 = arith.constant 0 : index
    %0 = vector.load %arg1[%c0, %c0_0] : memref<20x768xbf16, #tpu.memory_space<vmem>>, vector<20x768xbf16>
    %c0_1 = arith.constant 0 : index
    %c0_2 = arith.constant 0 : index
    %1 = vector.load %arg2[%c0_1, %c0_2] : memref<768x256xbf16, #tpu.memory_space<vmem>>, vector<768x256xbf16>
    %cst = arith.constant dense<0.000000e+00> : vector<20x256xf32>
    %2 = tpu.matmul %0, %1, %cst {dimension_numbers = #tpu.dot_dimension_numbers<[1], [0], [0], [1], [0, 0, 1, 1], [], []>} : vector<20x768xbf16>, vector<768x256xbf16>, vector<20x256xf32> -> vector<20x256xf32>
    %c0_3 = arith.constant 0 : index
    %c0_4 = arith.constant 0 : index
    %3 = vector.load %arg3[%c0_3, %c0_4] : memref<1x256xf32, #tpu.memory_space<vmem>>, vector<1x256xf32>
    %4 = vector.broadcast %3 : vector<1x256xf32> to vector<20x256xf32>
    %5 = arith.addf %2, %4 : vector<20x256xf32>
    %cst_5 = arith.constant dense<0.000000e+00> : vector<256xf32>
    %6 = vector.multi_reduction <add>, %5, %cst_5 [0] : vector<20x256xf32> to vector<256xf32>
    %7 = vector.shape_cast %6 : vector<256xf32> to vector<1x256xf32>
    %cst_6 = arith.constant 5.000000e-02 : f32
    %8 = vector.broadcast %cst_6 : f32 to vector<1x256xf32>
    %9 = arith.mulf %7, %8 : vector<1x256xf32>
    %10 = vector.broadcast %9 : vector<1x256xf32> to vector<20x256xf32>
    %11 = arith.subf %5, %10 : vector<20x256xf32>
    %12 = arith.mulf %11, %11 : vector<20x256xf32>
    %cst_7 = arith.constant dense<0.000000e+00> : vector<256xf32>
    %13 = vector.multi_reduction <add>, %12, %cst_7 [0] : vector<20x256xf32> to vector<256xf32>
    %14 = vector.shape_cast %13 : vector<256xf32> to vector<1x256xf32>
    %cst_8 = arith.constant 5.000000e-02 : f32
    %15 = vector.broadcast %cst_8 : f32 to vector<1x256xf32>
    %16 = arith.mulf %14, %15 : vector<1x256xf32>
    %c0_9 = arith.constant 0 : index
    %c0_10 = arith.constant 0 : index
    %17 = vector.load %arg4[%c0_9, %c0_10] : memref<1x256xf32, #tpu.memory_space<vmem>>, vector<1x256xf32>
    %cst_11 = arith.constant 9.99999974E-6 : f32
    %18 = vector.broadcast %cst_11 : f32 to vector<1x256xf32>
    %19 = arith.addf %16, %18 : vector<1x256xf32>
    %20 = math.rsqrt %19 : vector<1x256xf32>
    %21 = arith.mulf %17, %20 : vector<1x256xf32>
    %22 = vector.broadcast %21 : vector<1x256xf32> to vector<20x256xf32>
    %23 = arith.mulf %11, %22 : vector<20x256xf32>
    %c0_12 = arith.constant 0 : index
    %c0_13 = arith.constant 0 : index
    %24 = vector.load %arg5[%c0_12, %c0_13] : memref<1x256xf32, #tpu.memory_space<vmem>>, vector<1x256xf32>
    %25 = vector.broadcast %24 : vector<1x256xf32> to vector<20x256xf32>
    %26 = arith.addf %23, %25 : vector<20x256xf32>
    %27 = arith.truncf %26 : vector<20x256xf32> to vector<20x256xbf16>
    %c0_14 = arith.constant 0 : index
    %c0_15 = arith.constant 0 : index
    %28 = vector.load %arg6[%c0_14, %c0_15] : memref<20x256xbf16, #tpu.memory_space<vmem>>, vector<20x256xbf16>
    tpu.vector_store %arg6[%c0_14, %c0_15], %27 {strides = array<i32>} : memref<20x256xbf16, #tpu.memory_space<vmem>>, vector<20x256xbf16>,
    return
  }
  func.func @transform_0(%arg0: i32) -> (i32, i32) {
    %c0_i32 = arith.constant 0 : i32
    %c0_i32_0 = arith.constant 0 : i32
    %c0_i32_1 = arith.constant 0 : i32
    return %c0_i32, %c0_i32_0 : i32, i32
  }
  func.func @transform_1(%arg0: i32) -> (i32, i32) {
    %c0_i32 = arith.constant 0 : i32
    %c0_i32_0 = arith.constant 0 : i32
    %c0_i32_1 = arith.constant 0 : i32
    return %c0_i32, %c0_i32_0 : i32, i32
  }
  func.func @transform_2(%arg0: i32) -> (i32, i32) {
    %c0_i32 = arith.constant 0 : i32
    %c0_i32_0 = arith.constant 0 : i32
    %c0_i32_1 = arith.constant 0 : i32
    return %c0_i32, %c0_i32_0 : i32, i32
  }
  func.func @transform_3(%arg0: i32) -> (i32, i32) {
    %c0_i32 = arith.constant 0 : i32
    %c0_i32_0 = arith.constant 0 : i32
    %c0_i32_1 = arith.constant 0 : i32
    return %c0_i32, %c0_i32_0 : i32, i32
  }
  func.func @transform_4(%arg0: i32) -> (i32, i32) {
    %c0_i32 = arith.constant 0 : i32
    %c0_i32_0 = arith.constant 0 : i32
    %c0_i32_1 = arith.constant 0 : i32
    return %c0_i32, %c0_i32_0 : i32, i32
  }
  func.func @transform_5(%arg0: i32) -> (i32, i32) {
    %c0_i32 = arith.constant 0 : i32
    %c0_i32_0 = arith.constant 0 : i32
    %c0_i32_1 = arith.constant 0 : i32
    return %c0_i32, %c0_i32_0 : i32, i32
  }
}

module attributes {stable_mosaic.version = 11 : i64} {
  func.func @_matmul_bias_act_kernel(%arg0: i32, %arg1: memref<2x3584xbf16, #tpu.memory_space<vmem>>, %arg2: memref<3584x512xbf16, #tpu.memory_space<vmem>>, %arg3: memref<1x512xf32, #tpu.memory_space<vmem>>, %arg4: memref<2x512xf32, #tpu.memory_space<vmem>>) attributes {dimension_semantics = [#tpu.dimension_semantics<arbitrary>], iteration_bounds = array<i64: 1>, scalar_prefetch = 0 : i64, scratch_operands = 0 : i64, tpu.core_type = #tpu.core_type<tc>, window_params = [{pipeline_mode = #tpu.pipeline_mode<synchronous>, transform_indices = @transform_0, window_bounds = array<i64: 2, 3584>}, {pipeline_mode = #tpu.pipeline_mode<synchronous>, transform_indices = @transform_1, window_bounds = array<i64: 3584, 512>}, {pipeline_mode = #tpu.pipeline_mode<synchronous>, transform_indices = @transform_2, window_bounds = array<i64: 1, 512>}, {pipeline_mode = #tpu.pipeline_mode<synchronous>, transform_indices = @transform_3, window_bounds = array<i64: 2, 512>}]} {
    %c0 = arith.constant 0 : index
    %c0_0 = arith.constant 0 : index
    %0 = vector.load %arg1[%c0, %c0_0] : memref<2x3584xbf16, #tpu.memory_space<vmem>>, vector<2x3584xbf16>
    %c0_1 = arith.constant 0 : index
    %c0_2 = arith.constant 0 : index
    %1 = vector.load %arg2[%c0_1, %c0_2] : memref<3584x512xbf16, #tpu.memory_space<vmem>>, vector<3584x512xbf16>
    %cst = arith.constant dense<0.000000e+00> : vector<2x512xf32>
    %2 = tpu.matmul %0, %1, %cst {dimension_numbers = #tpu.dot_dimension_numbers<[1], [0], [0], [1], [0, 0, 1, 1], [], []>} : vector<2x3584xbf16>, vector<3584x512xbf16>, vector<2x512xf32> -> vector<2x512xf32>
    %c0_3 = arith.constant 0 : index
    %c0_4 = arith.constant 0 : index
    %3 = vector.load %arg3[%c0_3, %c0_4] : memref<1x512xf32, #tpu.memory_space<vmem>>, vector<1x512xf32>
    %4 = vector.broadcast %3 : vector<1x512xf32> to vector<2x512xf32>
    %5 = arith.addf %2, %4 : vector<2x512xf32>
    %cst_5 = arith.constant 0.000000e+00 : f32
    %6 = vector.broadcast %cst_5 : f32 to vector<2x512xf32>
    %7 = arith.maximumf %5, %6 : vector<2x512xf32>
    %c0_6 = arith.constant 0 : index
    %c0_7 = arith.constant 0 : index
    %8 = vector.load %arg4[%c0_6, %c0_7] : memref<2x512xf32, #tpu.memory_space<vmem>>, vector<2x512xf32>
    tpu.vector_store %arg4[%c0_6, %c0_7], %7 {strides = array<i32>} : memref<2x512xf32, #tpu.memory_space<vmem>>, vector<2x512xf32>,
    return
  }
  func.func @transform_0(%arg0: i32) -> (i32, i32) {
    %c0_i32 = arith.constant 0 : i32
    %c0_i32_0 = arith.constant 0 : i32
    %c0_i32_1 = arith.constant 0 : i32
    return %c0_i32, %c0_i32_0 : i32, i32
  }
  func.func @transform_1(%arg0: i32) -> (i32, i32) {
    %c0_i32 = arith.constant 0 : i32
    %c0_i32_0 = arith.constant 0 : i32
    %c0_i32_1 = arith.constant 0 : i32
    return %c0_i32, %c0_i32_0 : i32, i32
  }
  func.func @transform_2(%arg0: i32) -> (i32, i32) {
    %c0_i32 = arith.constant 0 : i32
    %c0_i32_0 = arith.constant 0 : i32
    %c0_i32_1 = arith.constant 0 : i32
    return %c0_i32, %c0_i32_0 : i32, i32
  }
  func.func @transform_3(%arg0: i32) -> (i32, i32) {
    %c0_i32 = arith.constant 0 : i32
    %c0_i32_0 = arith.constant 0 : i32
    %c0_i32_1 = arith.constant 0 : i32
    return %c0_i32, %c0_i32_0 : i32, i32
  }
}

</mosaic_0001>

<bundles_post_ra>
// kernel: df_forward.9
= control target key start
LH: loop header
LB: loop body
LE: loop exit
PB: predicated region body
PF: predicated region fallthrough
CT: control target
= control target key end

     0   :  { %10 = vsyncpa [#allocation3], 0  ;;  %s4055_s0 = inlined_call_operand.vmem [shape: bf16[500,108], index: 0, kind: input, shape index: {}]   ;;  %s4056_s1 = inlined_call_operand.vmem [shape: bf16[108,64], index: 1, kind: input, shape index: {}]   ;;  %s4057_s2 = inlined_call_operand.hbm [shape: f32[1,64], index: 2, kind: input, shape index: {}]   ;;  %s4058_s3 = inlined_call_operand.hbm [shape: f32[1,64], index: 3, kind: input, shape index: {}]   ;;  %s4059_s4 = inlined_call_operand.hbm [shape: f32[1,64], index: 4, kind: input, shape index: {}]   ;;  %s4060_s5 = inlined_call_operand.vmem [shape: bf16[500,64], index: 5, kind: output, shape index: {}]  }
   0x1   :  { %11 = vsyncpa [#allocation5], 0  ;;  %s2095_s18 = smov [#allocation4]   ;;  %s2096_s20 = smov [#allocation2]  }
   0x2   :  { %s32_s19 = sshll.u32 %s2095_s18, 4  ;;  %s22_s21 = sshll.u32 %s2096_s20, 4  ;;  %s33_s19 = int_to_ptr.vmem [resolvable:$true] %s32_s19  ;;  %s23_s21 = int_to_ptr.vmem [resolvable:$true] %s22_s21 }
   0x3   :  { %s2025_s24 = scalar_lea.hbm %s4058_s3, 16 }
   0x4   :  { %p2026_p0 = scmp.ne.s32.totalorder %s4058_s3, %s2025_s24  ;;  %p2029_p1 = scmp.lt.u32.totalorder %s2025_s24, %s4058_s3 }
   0x6   :  { %p2031_p2 = pnand %p2029_p1, %p2026_p0 }
   0x8   :  { %2034 = shalt.err (!%p2031_p2)
}
   0x9   :  { %s2035_s29 = scalar_lea.vmem %s33_s19, 16  ;;  %s2039_s30 = scalar_lea.vmem %s33_s19, 32 }
   0xa   :  { %p2036_p3 = scmp.ne.s32.totalorder %s33_s19, %s2035_s29  ;;  %p2040_p4 = scmp.lt.s32.totalorder %s33_s19, %s33_s19 }
   0xb   :  { %p2041_p5 = scmp.lt.s32.totalorder %s2039_s30, %s2035_s29 }
   0xd   :  { %p2042_p6 = por %p2041_p5, %p2040_p4 }
   0xf   :  { %p2043_p7 = pnand %p2042_p6, %p2036_p3 }
  0x11   :  { %2046 = shalt.err (!%p2043_p7)
}
  0x12   :  { %35 = dma.hbm_to_vmem [thread:$0]  %s4058_s3, 16, %s33_s19, [#allocation5]  }
  0x13   :  { %s2047_s10 = scalar_lea.hbm %s4057_s2, 16 }
  0x14   :  { %p2048_p8 = scmp.ne.s32.totalorder %s4057_s2, %s2047_s10  ;;  %p2051_p9 = scmp.lt.u32.totalorder %s2047_s10, %s4057_s2 }
  0x16   :  { %p2053_p10 = pnand %p2051_p9, %p2048_p8 }
  0x18   :  { %2056 = shalt.err (!%p2053_p10)
}
  0x19   :  { %s2057_s15 = scalar_lea.vmem %s23_s21, 16  ;;  %s2061_s16 = scalar_lea.vmem %s23_s21, 32 }
  0x1a   :  { %p2058_p11 = scmp.ne.s32.totalorder %s23_s21, %s2057_s15  ;;  %p2062_p12 = scmp.lt.s32.totalorder %s23_s21, %s23_s21 }
  0x1b   :  { %p2063_p13 = scmp.lt.s32.totalorder %s2061_s16, %s2057_s15 }
  0x1d   :  { %p2064_p0 = por %p2063_p13, %p2062_p12 }
  0x1f   :  { %p2065_p1 = pnand %p2064_p0, %p2058_p11 }
  0x21   :  { %2068 = shalt.err (!%p2065_p1)
}
  0x22   :  { %25 = dma.hbm_to_vmem [thread:$0]  %s4057_s2, 16, %s23_s21, [#allocation3]  }
  0x23   :  { %s2097_s18 = smov [#allocation6]   ;;  %s2069_s23 = scalar_lea.hbm %s4059_s4, 16 }
  0x24   :  { %s42_s19 = sshll.u32 %s2097_s18, 4  ;;  %p2070_p2 = scmp.ne.s32.totalorder %s4059_s4, %s2069_s23  ;;  %s43_s19 = int_to_ptr.vmem [resolvable:$true] %s42_s19 }
  0x25   :  { %p2073_p3 = scmp.lt.u32.totalorder %s2069_s23, %s4059_s4 }
  0x27   :  { %p2075_p4 = pnand %p2073_p3, %p2070_p2 }
  0x29   :  { %2078 = shalt.err (!%p2075_p4)
}
  0x2a   :  { %s2079_s28 = scalar_lea.vmem %s43_s19, 16  ;;  %s2083_s2 = scalar_lea.vmem %s43_s19, 32 }
  0x2b   :  { %p2080_p5 = scmp.ne.s32.totalorder %s43_s19, %s2079_s28  ;;  %p2084_p6 = scmp.lt.s32.totalorder %s43_s19, %s43_s19 }
  0x2c   :  { %p2085_p7 = scmp.lt.s32.totalorder %s2083_s2, %s2079_s28 }
  0x2e   :  { %p2086_p8 = por %p2085_p7, %p2084_p6 }
  0x30   :  { %p2087_p9 = pnand %p2086_p8, %p2080_p5 }
  0x32   :  { %2090 = shalt.err (!%p2087_p9)
}
  0x33   :  { %45 = dma.hbm_to_vmem [thread:$0]  %s4059_s4, 16, %s43_s19, [#allocation5]  }
  0x34   :  { %2091 = dma.done.wait [#allocation3], 16  }
  0x35   :  { %2092 = vsyncadd [#allocation3], 4294967280 }
  0x36   :  { %2093 = dma.done.wait [#allocation5], 32  }
  0x37   :  { %2094 = vsyncadd [#allocation5], 4294967264  ;;  %v1984_v0 = vld [vmem:[%s4056_s1] sm:$0xff]   ;;  %v1985_v1 = vld [vmem:[%s4056_s1 + $0x8] sm:$0xff]   ;;  %vm339_vm0 = vcmask 883712   ;;  %vm436_vm1 = vcmask 1045504  }
  0x38   :  { %1887 = vmatprep.subr.bf16.mxu0 %v1984_v0  ;;  %1965 = vmatprep.subr.bf16.mxu1 %v1984_v0  ;;  %v1986_v2 = vld [vmem:[%s4056_s1 + $0x10] sm:$0xff]   ;;  %v1991_v3 = vld [vmem:[%s4055_s0] sm:$0xff]   ;;  %v1987_v4 = vld [vmem:[%s4056_s1 + $0x18] sm:$0xff]   ;;  %vm728_vm2 = vcmask 523264   ;;  %vm852_vm3 = vcmask 519168   ;;  %vm1641_vm4 = vcmask 517120  }
  0x39   :  { %1888 = vmatpush3.bf16.msra.mxu0 %v1984_v0  ;;  %1972 = vmatpush3.bf16.msra.mxu1 %v1984_v0  ;;  %v1988_v5 = vld [vmem:[%s4056_s1 + $0x20] sm:$0xff]   ;;  %v1989_v6 = vld [vmem:[%s4056_s1 + $0x28] sm:$0xff]   ;;  %v1990_v7 = vld [vmem:[%s4056_s1 + $0x30] sm:$0x3f]  }
  0x3a   :  { %1889 = vmatprep.subr.bf16.mxu0 %v1985_v1  ;;  %1966 = vmatprep.subr.bf16.mxu1 %v1985_v1  ;;  %v2007_v8 = vld [vmem:[%s4055_s0 + $0x80] sm:$0xff]   ;;  %v438_v9 = vsel %vm436_vm1, %v1990_v7, 0  ;;  %v1992_v10 = vld [vmem:[%s4055_s0 + $0x8] sm:$0xff]   ;;  %v1993_v11 = vld [vmem:[%s4055_s0 + $0x10] sm:$0xff]  }
  0x3b   :  { %1901 = vmatprep.mubr.msk.bf16.mxu0 %vm339_vm0, %v1991_v3  ;;  %1933 = vmatprep.mubr.msk.bf16.mxu1 %vm339_vm0, %v2007_v8  ;;  %v2008_v12 = vld [vmem:[%s4055_s0 + $0x88] sm:$0xff]   ;;  %v2009_v13 = vld [vmem:[%s4055_s0 + $0x90] sm:$0xff]   ;;  %v1994_v14 = vld [vmem:[%s4055_s0 + $0x18] sm:$0xff]  }
  0x3c   :  { %v1995_v15 = vld [vmem:[%s4055_s0 + $0x20] sm:$0xff]   ;;  %v2010_v16 = vld [vmem:[%s4055_s0 + $0x98] sm:$0xff]   ;;  %v1996_v18 = vld [vmem:[%s4055_s0 + $0x28] sm:$0xff]  }
  0x3d   :  { %1890 = vmatpush3.bf16.msra.mxu0 %v1985_v1  ;;  %1973 = vmatpush3.bf16.msra.mxu1 %v1985_v1  ;;  %v2011_v17 = vld [vmem:[%s4055_s0 + $0xa0] sm:$0xff]   ;;  %v2012_v19 = vld [vmem:[%s4055_s0 + $0xa8] sm:$0xff]   ;;  %v1997_v20 = vld [vmem:[%s4055_s0 + $0x30] sm:$0xff]  }
  0x3e   :  { %1891 = vmatprep.subr.bf16.mxu0 %v1986_v2  ;;  %1967 = vmatprep.subr.bf16.mxu1 %v1986_v2  ;;  %v2013_v21 = vld [vmem:[%s4055_s0 + $0xb0] sm:$0xff]   ;;  %v1998_v22 = vld [vmem:[%s4055_s0 + $0x38] sm:$0xff]   ;;  %v1999_v24 = vld [vmem:[%s4055_s0 + $0x40] sm:$0xff]  }
  0x3f   :  { %v2014_v23 = vld [vmem:[%s4055_s0 + $0xb8] sm:$0xff]   ;;  %v2015_v25 = vld [vmem:[%s4055_s0 + $0xc0] sm:$0xff]   ;;  %v2000_v26 = vld [vmem:[%s4055_s0 + $0x48] sm:$0xff]  }
  0x40   :  { %v2016_v27 = vld [vmem:[%s4055_s0 + $0xc8] sm:$0xff]   ;;  %v2001_v28 = vld [vmem:[%s4055_s0 + $0x50] sm:$0xff]   ;;  %v2002_v30 = vld [vmem:[%s4055_s0 + $0x58] sm:$0xff]  }
  0x41   :  { %1892 = vmatpush3.bf16.msra.mxu0 %v1986_v2  ;;  %1974 = vmatpush3.bf16.msra.mxu1 %v1986_v2  ;;  %v2017_v29 = vld [vmem:[%s4055_s0 + $0xd0] sm:$0xff]   ;;  %v2018_v31 = vld [vmem:[%s4055_s0 + $0xd8] sm:$0xff]   ;;  %v2003_v32 = vld [vmem:[%s4055_s0 + $0x60] sm:$0xff]  }
  0x42   :  { %1893 = vmatprep.subr.bf16.mxu0 %v1987_v4  ;;  %1968 = vmatprep.subr.bf16.mxu1 %v1987_v4  ;;  %v2019_v33 = vld [vmem:[%s4055_s0 + $0xe0] sm:$0xff]   ;;  %v2004_v34 = vld [vmem:[%s4055_s0 + $0x68] sm:$0xff]   ;;  %v2005_v36 = vld [vmem:[%s4055_s0 + $0x70] sm:$0xff]  }
  0x43   :  { %v2020_v35 = vld [vmem:[%s4055_s0 + $0xe8] sm:$0xff]   ;;  %v2021_v37 = vld [vmem:[%s4055_s0 + $0xf0] sm:$0xff]   ;;  %v2006_v38 = vld [vmem:[%s4055_s0 + $0x78] sm:$0xff]  }
  0x44   :  { %v2022_v39 = vld [vmem:[%s4055_s0 + $0xf8] ss:$0 sps:$4 sm:$0x33]   ;;  %v2313_v40 = vld [vmem:[#allocation2] ss:$0 sm:$0xff] }
  0x45   :  { %1894 = vmatpush3.bf16.msra.mxu0 %v1987_v4  ;;  %1975 = vmatpush3.bf16.msra.mxu1 %v1987_v4 }
  0x46   :  { %1895 = vmatprep.subr.bf16.mxu0 %v1988_v5  ;;  %1969 = vmatprep.subr.bf16.mxu1 %v1988_v5 }
  0x49   :  { %1896 = vmatpush3.bf16.msra.mxu0 %v1988_v5  ;;  %1976 = vmatpush3.bf16.msra.mxu1 %v1988_v5 }
  0x4a   :  { %1897 = vmatprep.subr.bf16.mxu0 %v1989_v6  ;;  %1970 = vmatprep.subr.bf16.mxu1 %v1989_v6 }
  0x4d   :  { %1898 = vmatpush3.bf16.msra.mxu0 %v1989_v6  ;;  %1977 = vmatpush3.bf16.msra.mxu1 %v1989_v6 }
  0x4e   :  { %1979 = vmatprep.subr.msk.bf16.mxu0 %vm436_vm1, %v1990_v7  ;;  %1980 = vmatprep.subr.msk.bf16.mxu1 %vm436_vm1, %v1990_v7 }
  0x51   :  { %1900 = vmatpush3.bf16.msra.mxu0 %v438_v9  ;;  %1978 = vmatpush3.bf16.msra.mxu1 %v438_v9 }
  0x54   :  { %1902 = vmatmul.mubr.msk.bf16.vlgmr.msra.gmra.mrb[0].mxu0 %vm339_vm0, %v1992_v10  ;;  %1934 = vmatmul.mubr.msk.bf16.vlgmr.msra.gmra.mrb[0].mxu1 %vm339_vm0, %v2008_v12 }
  0x55   :  { %1905 = vmatprep.mubr.msk.bf16.mxu0 %vm339_vm0, %v1993_v11  ;;  %1937 = vmatprep.mubr.msk.bf16.mxu1 %vm339_vm0, %v2009_v13 }
  0x5c   :  { %1906 = vmatmul.mubr.msk.bf16.gmra.mrb[4].mxu0 %vm339_vm0, %v1994_v14  ;;  %1938 = vmatmul.mubr.msk.bf16.gmra.mrb[4].mxu1 %vm339_vm0, %v2010_v16 }
  0x5d   :  { %1909 = vmatprep.mubr.msk.bf16.mxu0 %vm339_vm0, %v1995_v15  ;;  %1941 = vmatprep.mubr.msk.bf16.mxu1 %vm339_vm0, %v2011_v17 }
  0x64   :  { %1910 = vmatmul.mubr.msk.bf16.gmra.mrb[8].mxu0 %vm339_vm0, %v1996_v18  ;;  %1942 = vmatmul.mubr.msk.bf16.gmra.mrb[8].mxu1 %vm339_vm0, %v2012_v19 }
  0x65   :  { %1913 = vmatprep.mubr.msk.bf16.mxu0 %vm339_vm0, %v1997_v20  ;;  %1945 = vmatprep.mubr.msk.bf16.mxu1 %vm339_vm0, %v2013_v21 }
  0x6c   :  { %1914 = vmatmul.mubr.msk.bf16.gmra.mrb[12].mxu0 %vm339_vm0, %v1998_v22  ;;  %1946 = vmatmul.mubr.msk.bf16.gmra.mrb[12].mxu1 %vm339_vm0, %v2014_v23 }
  0x6d   :  { %1917 = vmatprep.mubr.msk.bf16.mxu0 %vm339_vm0, %v1999_v24  ;;  %1949 = vmatprep.mubr.msk.bf16.mxu1 %vm339_vm0, %v2015_v25 }
  0x74   :  { %1918 = vmatmul.mubr.msk.bf16.gmra.mrb[16].mxu0 %vm339_vm0, %v2000_v26  ;;  %1950 = vmatmul.mubr.msk.bf16.gmra.mrb[16].mxu1 %vm339_vm0, %v2016_v27 }
  0x75   :  { %1921 = vmatprep.mubr.msk.bf16.mxu0 %vm339_vm0, %v2001_v28  ;;  %1953 = vmatprep.mubr.msk.bf16.mxu1 %vm339_vm0, %v2017_v29 }
  0x7c   :  { %1922 = vmatmul.mubr.msk.bf16.gmra.mrb[20].mxu0 %vm339_vm0, %v2002_v30  ;;  %1954 = vmatmul.mubr.msk.bf16.gmra.mrb[20].mxu1 %vm339_vm0, %v2018_v31 }
  0x7d   :  { %1925 = vmatprep.mubr.msk.bf16.mxu0 %vm339_vm0, %v2003_v32  ;;  %1957 = vmatprep.mubr.msk.bf16.mxu1 %vm339_vm0, %v2019_v33 }
  0x84   :  { %1926 = vmatmul.mubr.msk.bf16.gmra.mrb[24].mxu0 %vm339_vm0, %v2004_v34  ;;  %1958 = vmatmul.mubr.msk.bf16.gmra.mrb[24].mxu1 %vm339_vm0, %v2020_v35 }
  0x85   :  { %1929 = vmatprep.mubr.msk.bf16.mxu0 %vm339_vm0, %v2005_v36  ;;  %1961 = vmatprep.mubr.msk.bf16.mxu1 %vm339_vm0, %v2021_v37 }
  0x8c   :  { %1930 = vmatmul.mubr.msk.bf16.gmra.mrb[28].mxu0 %vm339_vm0, %v2006_v38  ;;  %1962 = vmatmul.mubr.msk.bf16.gmra.mrb[28].mxu1 %vm339_vm0, %v2022_v39 }
 0x127   :  { %v1903_v41 = vpop.f32.mrb[0].mxu0  ;;  %v1935_v42 = vpop.f32.mrb[0].mxu1 }
 0x128   :  { %v474_v43 = vpop.f32.mrb[1].mxu0  ;;  %v2316_v44 = vadd.f32 %v1935_v42, %v2313_v40  ;;  %v2318_v45 = vpop.f32.mrb[1].mxu1  ;;  %v2327_v52 = vadd.f32 %v1903_v41, %v2313_v40 }
 0x129   :  { %v2321_v46 = vadd.f32 %v2313_v40, %v474_v43  ;;  %v1904_v47 = vpop.f32.mrb[2].mxu0  ;;  %v1936_v48 = vpop.f32.mrb[2].mxu1 }
 0x12a   :  { %v477_v49 = vpop.f32.mrb[3].mxu0  ;;  %v2324_v50 = vadd.f32 %v1936_v48, %v2313_v40  ;;  %v605_v51 = vpop.f32.mrb[3].mxu1  ;;  %v2338_v56 = vadd.f32 %v1904_v47, %v2313_v40  ;;  %v732_v59 = vsel %vm728_vm2, %v2327_v52, 0.0 }
 0x12b   :  { %v2330_v53 = vadd.f32 %v2313_v40, %v477_v49  ;;  %v2333_v54 = vadd.f32 %v2313_v40, %v605_v51  ;;  %v729_v55 = vsel %vm728_vm2, %v2321_v46, 0.0 }
 0x12c   :  { %v734_v2 = vsel %vm728_vm2, %v2338_v56, 0.0 }
 0x12d   :  { %v730_v57 = vsel %vm728_vm2, %v2330_v53, 0.0 }
 0x12e   :  { %v731_v58 = vadd.f32 %v730_v57, %v729_v55 }
 0x12f   :  { %v1907_v60 = vpop.f32.mrb[4].mxu0  ;;  %v1939_v61 = vpop.f32.mrb[4].mxu1 }
 0x130   :  { %v733_v62 = vadd.f32 %v732_v59, %v731_v58  ;;  %v490_v63 = vpop.f32.mrb[5].mxu0  ;;  %v2345_v0 = vadd.f32 %v1939_v61, %v2313_v40  ;;  %v618_v1 = vpop.f32.mrb[5].mxu1  ;;  %v2356_v10 = vadd.f32 %v1907_v60, %v2313_v40 }
 0x131   :  { %v2350_v3 = vadd.f32 %v2313_v40, %v490_v63  ;;  %v1908_v4 = vpop.f32.mrb[6].mxu0  ;;  %v2353_v5 = vadd.f32 %v2313_v40, %v618_v1  ;;  %v1940_v6 = vpop.f32.mrb[6].mxu1 }
 0x132   :  { %v735_v7 = vadd.f32 %v734_v2, %v733_v62  ;;  %v493_v8 = vpop.f32.mrb[7].mxu0  ;;  %v621_v9 = vpop.f32.mrb[7].mxu1  ;;  %v2364_v13 = vadd.f32 %v1940_v6, %v2313_v40  ;;  %v2370_v16 = vadd.f32 %v1908_v4, %v2313_v40  ;;  %v740_v19 = vsel %vm728_vm2, %v2356_v10, 0.0 }
 0x133   :  { %v736_v11 = vsel %vm728_vm2, %v2350_v3, 0.0  ;;  %v2361_v12 = vadd.f32 %v2313_v40, %v493_v8  ;;  %v2367_v15 = vadd.f32 %v2313_v40, %v621_v9 }
 0x134   :  { %v737_v14 = vadd.f32 %v736_v11, %v735_v7  ;;  %v742_v26 = vsel %vm728_vm2, %v2370_v16, 0.0 }
 0x135   :  { %v738_v17 = vsel %vm728_vm2, %v2361_v12, 0.0 }
 0x136   :  { %v739_v18 = vadd.f32 %v738_v17, %v737_v14 }
 0x137   :  { %v1911_v20 = vpop.f32.mrb[8].mxu0  ;;  %v1943_v21 = vpop.f32.mrb[8].mxu1 }
 0x138   :  { %v741_v22 = vadd.f32 %v740_v19, %v739_v18  ;;  %v506_v23 = vpop.f32.mrb[9].mxu0  ;;  %v2377_v24 = vadd.f32 %v1943_v21, %v2313_v40  ;;  %v634_v25 = vpop.f32.mrb[9].mxu1  ;;  %v2388_v34 = vadd.f32 %v1911_v20, %v2313_v40 }
 0x139   :  { %v2382_v27 = vadd.f32 %v2313_v40, %v506_v23  ;;  %v1912_v28 = vpop.f32.mrb[10].mxu0  ;;  %v2385_v29 = vadd.f32 %v2313_v40, %v634_v25  ;;  %v1944_v30 = vpop.f32.mrb[10].mxu1 }
 0x13a   :  { %v743_v31 = vadd.f32 %v742_v26, %v741_v22  ;;  %v509_v32 = vpop.f32.mrb[11].mxu0  ;;  %v637_v33 = vpop.f32.mrb[11].mxu1  ;;  %v2396_v37 = vadd.f32 %v1944_v30, %v2313_v40  ;;  %v2402_v41 = vadd.f32 %v1912_v28, %v2313_v40  ;;  %v748_v47 = vsel %vm728_vm2, %v2388_v34, 0.0 }
 0x13b   :  { %v744_v35 = vsel %vm728_vm2, %v2382_v27, 0.0  ;;  %v2393_v36 = vadd.f32 %v2313_v40, %v509_v32  ;;  %v2399_v39 = vadd.f32 %v2313_v40, %v637_v33 }
 0x13c   :  { %v745_v38 = vadd.f32 %v744_v35, %v743_v31  ;;  %v750_v59 = vsel %vm728_vm2, %v2402_v41, 0.0 }
 0x13d   :  { %v746_v42 = vsel %vm728_vm2, %v2393_v36, 0.0 }
 0x13e   :  { %v747_v43 = vadd.f32 %v746_v42, %v745_v38 }
 0x13f   :  { %v1915_v48 = vpop.f32.mrb[12].mxu0  ;;  %v1947_v49 = vpop.f32.mrb[12].mxu1 }
 0x140   :  { %v749_v51 = vadd.f32 %v748_v47, %v747_v43  ;;  %v522_v55 = vpop.f32.mrb[13].mxu0  ;;  %v2409_v57 = vadd.f32 %v1947_v49, %v2313_v40  ;;  %v650_v58 = vpop.f32.mrb[13].mxu1  ;;  %v2420_v6 = vadd.f32 %v1915_v48, %v2313_v40 }
 0x141   :  { %v2414_v60 = vadd.f32 %v2313_v40, %v522_v55  ;;  %v1916_v61 = vpop.f32.mrb[14].mxu0  ;;  %v2417_v62 = vadd.f32 %v2313_v40, %v650_v58  ;;  %v1948_v63 = vpop.f32.mrb[14].mxu1 }
 0x142   :  { %v751_v1 = vadd.f32 %v750_v59, %v749_v51  ;;  %v525_v2 = vpop.f32.mrb[15].mxu0  ;;  %v653_v4 = vpop.f32.mrb[15].mxu1  ;;  %v2428_v9 = vadd.f32 %v1948_v63, %v2313_v40  ;;  %v2434_v17 = vadd.f32 %v1916_v61, %v2313_v40  ;;  %v756_v20 = vsel %vm728_vm2, %v2420_v6, 0.0 }
 0x143   :  { %v752_v7 = vsel %vm728_vm2, %v2414_v60, 0.0  ;;  %v2425_v8 = vadd.f32 %v2313_v40, %v525_v2  ;;  %v2431_v14 = vadd.f32 %v2313_v40, %v653_v4 }
 0x144   :  { %v753_v11 = vadd.f32 %v752_v7, %v751_v1  ;;  %v758_v30 = vsel %vm728_vm2, %v2434_v17, 0.0 }
 0x145   :  { %v754_v18 = vsel %vm728_vm2, %v2425_v8, 0.0 }
 0x146   :  { %v755_v19 = vadd.f32 %v754_v18, %v753_v11 }
 0x147   :  { %v1919_v21 = vpop.f32.mrb[16].mxu0  ;;  %v1951_v22 = vpop.f32.mrb[16].mxu1 }
 0x148   :  { %v757_v23 = vadd.f32 %v756_v20, %v755_v19  ;;  %v538_v25 = vpop.f32.mrb[17].mxu0  ;;  %v2441_v26 = vadd.f32 %v1951_v22, %v2313_v40  ;;  %v666_v28 = vpop.f32.mrb[17].mxu1  ;;  %v2452_v47 = vadd.f32 %v1919_v21, %v2313_v40 }
 0x149   :  { %v2446_v31 = vadd.f32 %v2313_v40, %v538_v25  ;;  %v1920_v32 = vpop.f32.mrb[18].mxu0  ;;  %v2449_v33 = vadd.f32 %v2313_v40, %v666_v28  ;;  %v1952_v35 = vpop.f32.mrb[18].mxu1 }
 0x14a   :  { %v759_v38 = vadd.f32 %v758_v30, %v757_v23  ;;  %v541_v42 = vpop.f32.mrb[19].mxu0  ;;  %v669_v43 = vpop.f32.mrb[19].mxu1  ;;  %4114 = vst [vmem:[#allocation9_spill] sm:$0xff] %v2452_v47  ;;  %v2460_v51 = vadd.f32 %v1952_v35, %v2313_v40  ;;  %v2466_v59 = vadd.f32 %v1920_v32, %v2313_v40  ;;  %v764_v1 = vsel %vm728_vm2, %v2452_v47, 0.0 }
 0x14b   :  { %v760_v48 = vsel %vm728_vm2, %v2446_v31, 0.0  ;;  %v2457_v49 = vadd.f32 %v2313_v40, %v541_v42  ;;  %v2463_v58 = vadd.f32 %v2313_v40, %v669_v43 }
 0x14c   :  { %v761_v55 = vadd.f32 %v760_v48, %v759_v38  ;;  %4115 = vst [vmem:[#allocation10_spill] sm:$0xff] %v2466_v59  ;;  %v766_v20 = vsel %vm728_vm2, %v2466_v59, 0.0 }
 0x14d   :  { %v762_v61 = vsel %vm728_vm2, %v2457_v49, 0.0 }
 0x14e   :  { %v763_v63 = vadd.f32 %v762_v61, %v761_v55 }
 0x14f   :  { %v1923_v2 = vpop.f32.mrb[20].mxu0  ;;  %v1955_v4 = vpop.f32.mrb[20].mxu1 }
 0x150   :  { %v765_v7 = vadd.f32 %v764_v1, %v763_v63  ;;  %v554_v11 = vpop.f32.mrb[21].mxu0  ;;  %v2473_v18 = vadd.f32 %v1955_v4, %v2313_v40  ;;  %v682_v19 = vpop.f32.mrb[21].mxu1  ;;  %v2484_v35 = vadd.f32 %v1923_v2, %v2313_v40 }
 0x151   :  { %v2478_v21 = vadd.f32 %v2313_v40, %v554_v11  ;;  %v1924_v22 = vpop.f32.mrb[22].mxu0  ;;  %v2481_v23 = vadd.f32 %v2313_v40, %v682_v19  ;;  %v1956_v25 = vpop.f32.mrb[22].mxu1 }
 0x152   :  { %v767_v28 = vadd.f32 %v766_v20, %v765_v7  ;;  %v557_v30 = vpop.f32.mrb[23].mxu0  ;;  %v685_v32 = vpop.f32.mrb[23].mxu1  ;;  %4117 = vst [vmem:[#allocation12_spill] sm:$0xff] %v2484_v35  ;;  %v2492_v43 = vadd.f32 %v1956_v25, %v2313_v40  ;;  %v2498_v61 = vadd.f32 %v1924_v22, %v2313_v40  ;;  %v772_v2 = vsel %vm728_vm2, %v2484_v35, 0.0 }
 0x153   :  { %4116 = vst [vmem:[#allocation11_spill] sm:$0xff] %v2478_v21  ;;  %v768_v38 = vsel %vm728_vm2, %v2478_v21, 0.0  ;;  %v2489_v42 = vadd.f32 %v2313_v40, %v557_v30  ;;  %v2495_v55 = vadd.f32 %v2313_v40, %v685_v32 }
 0x154   :  { %v769_v48 = vadd.f32 %v768_v38, %v767_v28  ;;  %4119 = vst [vmem:[#allocation14_spill] sm:$0xff] %v2498_v61  ;;  %v774_v28 = vsel %vm728_vm2, %v2498_v61, 0.0 }
 0x155   :  { %4118 = vst [vmem:[#allocation13_spill] sm:$0xff] %v2489_v42  ;;  %v770_v63 = vsel %vm728_vm2, %v2489_v42, 0.0 }
 0x156   :  { %v771_v1 = vadd.f32 %v770_v63, %v769_v48 }
 0x157   :  { %v1927_v4 = vpop.f32.mrb[24].mxu0  ;;  %v1959_v7 = vpop.f32.mrb[24].mxu1 }
 0x158   :  { %v773_v11 = vadd.f32 %v772_v2, %v771_v1  ;;  %v570_v19 = vpop.f32.mrb[25].mxu0  ;;  %v2505_v20 = vadd.f32 %v1959_v7, %v2313_v40  ;;  %v698_v25 = vpop.f32.mrb[25].mxu1  ;;  %v2516_v1 = vadd.f32 %v1927_v4, %v2313_v40 }
 0x159   :  { %v2510_v22 = vadd.f32 %v2313_v40, %v570_v19  ;;  %v1928_v30 = vpop.f32.mrb[26].mxu0  ;;  %v2513_v32 = vadd.f32 %v2313_v40, %v698_v25  ;;  %v1960_v38 = vpop.f32.mrb[26].mxu1 }
 0x15a   :  { %4120 = vst [vmem:[#allocation15_spill] sm:$0xff] %v2505_v20  ;;  %v775_v48 = vadd.f32 %v774_v28, %v773_v11  ;;  %v573_v63 = vpop.f32.mrb[27].mxu0  ;;  %v701_v35 = vpop.f32.mrb[27].mxu1  ;;  %4122 = vst [vmem:[#allocation17_spill] sm:$0xff] %v2516_v1  ;;  %v2524_v19 = vadd.f32 %v1960_v38, %v2313_v40  ;;  %v2530_v11 = vadd.f32 %v1928_v30, %v2313_v40 }
 0x15b   :  { %4121 = vst [vmem:[#allocation16_spill] sm:$0xff] %v2510_v22  ;;  %v776_v2 = vsel %vm728_vm2, %v2510_v22, 0.0  ;;  %v2521_v7 = vadd.f32 %v2313_v40, %v573_v63  ;;  %v2527_v25 = vadd.f32 %v2313_v40, %v701_v35  ;;  %v780_v22 = vsel %vm728_vm2, %v2516_v1, 0.0 }
 0x15c   :  { %4124 = vst [vmem:[#allocation19_spill] sm:$0xff] %v2524_v19  ;;  %v777_v61 = vadd.f32 %v776_v2, %v775_v48  ;;  %4125 = vst [vmem:[#allocation20_spill] sm:$0xff] %v2530_v11  ;;  %v782_v35 = vsel %vm728_vm2, %v2530_v11, 0.0 }
 0x15d   :  { %4123 = vst [vmem:[#allocation18_spill] sm:$0xff] %v2521_v7  ;;  %v778_v4 = vsel %vm728_vm2, %v2521_v7, 0.0 }
 0x15e   :  { %v779_v28 = vadd.f32 %v778_v4, %v777_v61 }
 0x15f   :  { %v1931_v42 = vpop.f32.mrb[28].mxu0  ;;  %v1963_v63 = vpop.f32.mrb[28].mxu1 }
 0x160   :  { %v781_v21 = vadd.f32 %v780_v22, %v779_v28  ;;  %v586_v59 = vpop.f32.mrb[29].mxu0  ;;  %v2537_v38 = vadd.f32 %v1963_v63, %v2313_v40  ;;  %v714_v48 = vpop.f32.mrb[29].mxu1  ;;  %v2548_v22 = vadd.f32 %v1931_v42, %v2313_v40  ;;  %v2565_v42 = vadd.f32 %v2313_v40, %v2318_v45 }
 0x161   :  { %v2542_v30 = vadd.f32 %v2313_v40, %v586_v59  ;;  %v1932_v2 = vpop.f32.mrb[30].mxu0  ;;  %v2545_v61 = vadd.f32 %v2313_v40, %v714_v48  ;;  %v1964_v4 = vpop.f32.mrb[30].mxu1 }
 0x162   :  { %v783_v1 = vadd.f32 %v782_v35, %v781_v21  ;;  %v589_v7 = vpop.f32.mrb[31].mxu0  ;;  %v717_v47 = vpop.f32.mrb[31].mxu1  ;;  %v2559_v48 = vadd.f32 %v1932_v2, %v2313_v40  ;;  %v788_v4 = vsel %vm728_vm2, %v2548_v22, 0.0 }
 0x163   :  { %4126 = vst [vmem:[#allocation21_spill] sm:$0xff] %v2542_v30  ;;  %v784_v28 = vsel %vm728_vm2, %v2542_v30, 0.0  ;;  %v2553_v63 = vadd.f32 %v2313_v40, %v589_v7  ;;  %v2556_v59 = vadd.f32 %v2313_v40, %v717_v47  ;;  %v796_v40 = vsel %vm728_vm2, %v2316_v44, 0.0 }
 0x164   :  { %v785_v11 = vadd.f32 %v784_v28, %v783_v1  ;;  %v790_v47 = vsel %vm728_vm2, %v2559_v48, 0.0  ;;  %v792_v1 = vsel %vm728_vm2, %v2565_v42, 0.0 }
 0x165   :  { %4127 = vst [vmem:[#allocation22_spill] sm:$0xff] %v2553_v63  ;;  %v786_v21 = vsel %vm728_vm2, %v2553_v63, 0.0  ;;  %v794_v63 = vsel %vm728_vm2, %v2333_v54, 0.0 }
 0x166   :  { %v787_v35 = vadd.f32 %v786_v21, %v785_v11  ;;  %v798_v11 = vsel %vm728_vm2, %v2324_v50, 0.0  ;;  %v800_v21 = vsel %vm728_vm2, %v2353_v5, 0.0 }
 0x168   :  { %v789_v7 = vadd.f32 %v788_v4, %v787_v35 }
 0x16a   :  { %v791_v2 = vadd.f32 %v790_v47, %v789_v7  ;;  %v802_v7 = vsel %vm728_vm2, %v2367_v15, 0.0 }
 0x16c   :  { %v793_v28 = vadd.f32 %v792_v1, %v791_v2  ;;  %v804_v1 = vsel %vm728_vm2, %v2345_v0, 0.0  ;;  %v806_v2 = vsel %vm728_vm2, %v2364_v13, 0.0 }
 0x16e   :  { %v795_v30 = vadd.f32 %v794_v63, %v793_v28 }
 0x170   :  { %v797_v45 = vadd.f32 %v796_v40, %v795_v30  ;;  %v808_v30 = vsel %vm728_vm2, %v2385_v29, 0.0 }
 0x172   :  { %v799_v35 = vadd.f32 %v798_v11, %v797_v45  ;;  %v810_v45 = vsel %vm728_vm2, %v2399_v39, 0.0 }
 0x174   :  { %v801_v4 = vadd.f32 %v800_v21, %v799_v35  ;;  %v812_v21 = vsel %vm728_vm2, %v2377_v24, 0.0 }
 0x176   :  { %v803_v47 = vadd.f32 %v802_v7, %v801_v4  ;;  %v814_v4 = vsel %vm728_vm2, %v2396_v37, 0.0  ;;  %v816_v7 = vsel %vm728_vm2, %v2417_v62, 0.0 }
 0x178   :  { %v805_v63 = vadd.f32 %v804_v1, %v803_v47 }
 0x17a   :  { %v807_v28 = vadd.f32 %v806_v2, %v805_v63  ;;  %v818_v63 = vsel %vm728_vm2, %v2431_v14, 0.0 }
 0x17c   :  { %v809_v40 = vadd.f32 %v808_v30, %v807_v28  ;;  %v820_v30 = vsel %vm728_vm2, %v2409_v57, 0.0 }
 0x17e   :  { %v811_v11 = vadd.f32 %v810_v45, %v809_v40  ;;  %v822_v40 = vsel %vm728_vm2, %v2428_v9, 0.0  ;;  %v824_v45 = vsel %vm728_vm2, %v2449_v33, 0.0 }
 0x180   :  { %v813_v35 = vadd.f32 %v812_v21, %v811_v11 }
 0x182   :  { %v815_v47 = vadd.f32 %v814_v4, %v813_v35  ;;  %v826_v35 = vsel %vm728_vm2, %v2463_v58, 0.0 }
 0x184   :  { %v817_v1 = vadd.f32 %v816_v7, %v815_v47  ;;  %v828_v7 = vsel %vm728_vm2, %v2441_v26, 0.0 }
 0x186   :  { %v819_v2 = vadd.f32 %v818_v63, %v817_v1  ;;  %v830_v1 = vsel %vm728_vm2, %v2460_v51, 0.0  ;;  %v832_v63 = vsel %vm728_vm2, %v2481_v23, 0.0 }
 0x188   :  { %v821_v28 = vadd.f32 %v820_v30, %v819_v2 }
 0x18a   :  { %v823_v11 = vadd.f32 %v822_v40, %v821_v28  ;;  %v834_v28 = vsel %vm728_vm2, %v2495_v55, 0.0 }
 0x18c   :  { %v825_v21 = vadd.f32 %v824_v45, %v823_v11  ;;  %v836_v45 = vsel %vm728_vm2, %v2473_v18, 0.0 }
 0x18e   :  { %v827_v4 = vadd.f32 %v826_v35, %v825_v21  ;;  %v838_v21 = vsel %vm728_vm2, %v2492_v43, 0.0  ;;  %v840_v35 = vsel %vm728_vm2, %v2513_v32, 0.0 }
 0x190   :  { %v829_v47 = vadd.f32 %v828_v7, %v827_v4 }
 0x192   :  { %v831_v2 = vadd.f32 %v830_v1, %v829_v47  ;;  %v842_v47 = vsel %vm728_vm2, %v2527_v25, 0.0 }
 0x194   :  { %v833_v30 = vadd.f32 %v832_v63, %v831_v2  ;;  %v844_v63 = vsel %vm728_vm2, %v2505_v20, 0.0 }
 0x196   :  { %v835_v40 = vadd.f32 %v834_v28, %v833_v30  ;;  %v846_v30 = vsel %vm728_vm2, %v2524_v19, 0.0 }
 0x198   :  { %v837_v11 = vadd.f32 %v836_v45, %v835_v40  ;;  %v848_v40 = vsel %vm728_vm2, %v2545_v61, 0.0 }
 0x19a   :  { %v839_v4 = vadd.f32 %v838_v21, %v837_v11  ;;  %v850_v11 = vsel %vm728_vm2, %v2556_v59, 0.0 }
 0x19c   :  { %v841_v7 = vadd.f32 %v840_v35, %v839_v4  ;;  %v853_v35 = vsel %vm852_vm3, %v2537_v38, 0.0 }
 0x19e   :  { %v843_v1 = vadd.f32 %v842_v47, %v841_v7 }
 0x1a0   :  { %v845_v2 = vadd.f32 %v844_v63, %v843_v1 }
 0x1a2   :  { %v847_v28 = vadd.f32 %v846_v30, %v845_v2 }
 0x1a4   :  { %v849_v45 = vadd.f32 %v848_v40, %v847_v28 }
 0x1a6   :  { %v851_v21 = vadd.f32 %v850_v11, %v849_v45 }
 0x1a8   :  { %v854_v4 = vadd.f32 %v853_v35, %v851_v21 }
 0x1aa   :  { %v855_v7 = vrot.slane %v854_v4, 4 }
 0x1ac   :  { %v856_v47 = vadd.f32 %v855_v7, %v854_v4 }
 0x1ae   :  { %v857_v1 = vrot.slane %v856_v47, 2 }
 0x1b0   :  { %v858_v63 = vadd.f32 %v857_v1, %v856_v47 }
 0x1b2   :  { %v859_v20 = vrot.slane %v858_v63, 1 }
 0x1b4   :  { %v860_v19 = vadd.f32 %v859_v20, %v858_v63 }
 0x1b6   :  { %v2633_v2 = vmul.f32 0.002, %v860_v19 }
 0x1b8   :  { %v2637_v30 = vsub.f32 %v2321_v46, %v2633_v2  ;;  %v2641_v28 = vsub.f32 %v2330_v53, %v2633_v2  ;;  %v2645_v40 = vsub.f32 %v2327_v52, %v2633_v2  ;;  %v2649_v45 = vsub.f32 %v2338_v56, %v2633_v2 }
 0x1b9   :  { %v2657_v46 = vsub.f32 %v2350_v3, %v2633_v2  ;;  %v2663_v52 = vsub.f32 %v2361_v12, %v2633_v2  ;;  %v2671_v4 = vsub.f32 %v2356_v10, %v2633_v2  ;;  %v2678_v12 = vsub.f32 %v2370_v16, %v2633_v2 }
 0x1ba   :  { %v925_v20 = vmul.f32 %v2637_v30, %v2637_v30  ;;  %v926_v19 = vmul.f32 %v2641_v28, %v2641_v28  ;;  %v927_v53 = vmul.f32 %v2645_v40, %v2645_v40  ;;  %v928_v56 = vmul.f32 %v2649_v45, %v2649_v45 }
 0x1bb   :  { %v929_v3 = vmul.f32 %v2657_v46, %v2657_v46  ;;  %v930_v1 = vmul.f32 %v2663_v52, %v2663_v52  ;;  %v2685_v10 = vsub.f32 %v2382_v27, %v2633_v2  ;;  %v2692_v16 = vsub.f32 %v2393_v36, %v2633_v2 }
 0x1bc   :  { %v988_v11 = vsel %vm728_vm2, %v925_v20, 0.0  ;;  %v989_v21 = vsel %vm728_vm2, %v926_v19, 0.0  ;;  %v991_v7 = vsel %vm728_vm2, %v927_v53, 0.0  ;;  %v993_v63 = vsel %vm728_vm2, %v928_v56, 0.0 }
 0x1bd   :  { %v990_v35 = vadd.f32 %v989_v21, %v988_v11  ;;  %v931_v19 = vmul.f32 %v2671_v4, %v2671_v4  ;;  %v995_v53 = vsel %vm728_vm2, %v929_v3, 0.0  ;;  %v932_v21 = vmul.f32 %v2678_v12, %v2678_v12 }
 0x1be   :  { %v997_v56 = vsel %vm728_vm2, %v930_v1, 0.0  ;;  %v2699_v27 = vsub.f32 %v2388_v34, %v2633_v2  ;;  %v2706_v36 = vsub.f32 %v2402_v41, %v2633_v2  ;;  %v2713_v34 = vsub.f32 %v2414_v60, %v2633_v2 }
 0x1bf   :  { %v992_v47 = vadd.f32 %v991_v7, %v990_v35  ;;  %v933_v7 = vmul.f32 %v2685_v10, %v2685_v10  ;;  %v999_v3 = vsel %vm728_vm2, %v931_v19, 0.0  ;;  %v1001_v1 = vsel %vm728_vm2, %v932_v21, 0.0 }
 0x1c0   :  { %v2720_v41 = vsub.f32 %v2425_v8, %v2633_v2  ;;  %v2727_v60 = vsub.f32 %v2420_v6, %v2633_v2  ;;  %v2734_v8 = vsub.f32 %v2434_v17, %v2633_v2  ;;  %v2741_v6 = vsub.f32 %v2446_v31, %v2633_v2 }
 0x1c1   :  { %v994_v20 = vadd.f32 %v993_v63, %v992_v47  ;;  %v934_v63 = vmul.f32 %v2692_v16, %v2692_v16  ;;  %v1003_v19 = vsel %vm728_vm2, %v933_v7, 0.0  ;;  %v2748_v17 = vsub.f32 %v2457_v49, %v2633_v2 }
 0x1c2   :  { %4128 = vst [vmem:[#allocation23_spill] sm:$0xff] %v2741_v6 }
 0x1c3   :  { %v996_v11 = vadd.f32 %v995_v53, %v994_v20  ;;  %v935_v53 = vmul.f32 %v2699_v27, %v2699_v27  ;;  %v1005_v21 = vsel %vm728_vm2, %v934_v63, 0.0  ;;  %4129 = vst [vmem:[#allocation24_spill] sm:$0xff] %v2748_v17 }
 0x1c5   :  { %v998_v35 = vadd.f32 %v997_v56, %v996_v11  ;;  %v936_v56 = vmul.f32 %v2706_v36, %v2706_v36  ;;  %v1007_v7 = vsel %vm728_vm2, %v935_v53, 0.0 }
 0x1c7   :  { %v1000_v47 = vadd.f32 %v999_v3, %v998_v35  ;;  %v937_v3 = vmul.f32 %v2713_v34, %v2713_v34  ;;  %v1009_v63 = vsel %vm728_vm2, %v936_v56, 0.0 }
 0x1c9   :  { %v1002_v20 = vadd.f32 %v1001_v1, %v1000_v47  ;;  %v938_v1 = vmul.f32 %v2720_v41, %v2720_v41  ;;  %v1011_v53 = vsel %vm728_vm2, %v937_v3, 0.0 }
 0x1cb   :  { %v1004_v11 = vadd.f32 %v1003_v19, %v1002_v20  ;;  %v939_v19 = vmul.f32 %v2727_v60, %v2727_v60  ;;  %v1013_v56 = vsel %vm728_vm2, %v938_v1, 0.0 }
 0x1cd   :  { %v1006_v35 = vadd.f32 %v1005_v21, %v1004_v11  ;;  %v940_v21 = vmul.f32 %v2734_v8, %v2734_v8  ;;  %v1015_v3 = vsel %vm728_vm2, %v939_v19, 0.0 }
 0x1cf   :  { %v1008_v47 = vadd.f32 %v1007_v7, %v1006_v35  ;;  %v4130_v7 = vld [vmem:[#allocation9_spill] sm:$0xff]  ;;  %v1017_v1 = vsel %vm728_vm2, %v940_v21, 0.0 }
 0x1d0   :  { %v2755_v31 = vsub.f32 %v4130_v7, %v2633_v2 }
 0x1d1   :  { %v1010_v20 = vadd.f32 %v1009_v63, %v1008_v47  ;;  %v941_v47 = vmul.f32 %v2741_v6, %v2741_v6 }
 0x1d2   :  { %4131 = vst [vmem:[#allocation9_spill] sm:$0xff] %v2755_v31  ;;  %v943_v6 = vmul.f32 %v2755_v31, %v2755_v31 }
 0x1d3   :  { %v1012_v11 = vadd.f32 %v1011_v53, %v1010_v20  ;;  %v4132_v20 = vld [vmem:[#allocation10_spill] sm:$0xff]  ;;  %v942_v53 = vmul.f32 %v2748_v17, %v2748_v17  ;;  %v1019_v19 = vsel %vm728_vm2, %v941_v47, 0.0 }
 0x1d4   :  { %v2762_v49 = vsub.f32 %v4132_v20, %v2633_v2  ;;  %v1023_v47 = vsel %vm728_vm2, %v943_v6, 0.0 }
 0x1d5   :  { %v1014_v35 = vadd.f32 %v1013_v56, %v1012_v11  ;;  %v4134_v56 = vld [vmem:[#allocation11_spill] sm:$0xff]  ;;  %v1021_v21 = vsel %vm728_vm2, %v942_v53, 0.0 }
 0x1d6   :  { %4133 = vst [vmem:[#allocation10_spill] sm:$0xff] %v2762_v49  ;;  %v2769_v7 = vsub.f32 %v4134_v56, %v2633_v2  ;;  %v944_v17 = vmul.f32 %v2762_v49, %v2762_v49 }
 0x1d7   :  { %v1016_v63 = vadd.f32 %v1015_v3, %v1014_v35  ;;  %v4136_v3 = vld [vmem:[#allocation13_spill] sm:$0xff] }
 0x1d8   :  { %4135 = vst [vmem:[#allocation11_spill] sm:$0xff] %v2769_v7  ;;  %v2776_v20 = vsub.f32 %v4136_v3, %v2633_v2  ;;  %v945_v31 = vmul.f32 %v2769_v7, %v2769_v7  ;;  %v1025_v53 = vsel %vm728_vm2, %v944_v17, 0.0 }
 0x1d9   :  { %v1018_v11 = vadd.f32 %v1017_v1, %v1016_v63  ;;  %v4138_v1 = vld [vmem:[#allocation12_spill] sm:$0xff] }
 0x1da   :  { %4137 = vst [vmem:[#allocation13_spill] sm:$0xff] %v2776_v20  ;;  %v2783_v56 = vsub.f32 %v4138_v1, %v2633_v2  ;;  %v946_v49 = vmul.f32 %v2776_v20, %v2776_v20  ;;  %v1027_v6 = vsel %vm728_vm2, %v945_v31, 0.0 }
 0x1db   :  { %v1020_v35 = vadd.f32 %v1019_v19, %v1018_v11  ;;  %v4140_v19 = vld [vmem:[#allocation14_spill] sm:$0xff] }
 0x1dc   :  { %4139 = vst [vmem:[#allocation12_spill] sm:$0xff] %v2783_v56  ;;  %v2790_v3 = vsub.f32 %v4140_v19, %v2633_v2  ;;  %v947_v7 = vmul.f32 %v2783_v56, %v2783_v56  ;;  %v1029_v17 = vsel %vm728_vm2, %v946_v49, 0.0 }
 0x1dd   :  { %v1022_v63 = vadd.f32 %v1021_v21, %v1020_v35  ;;  %v4142_v21 = vld [vmem:[#allocation16_spill] sm:$0xff] }
 0x1de   :  { %4141 = vst [vmem:[#allocation14_spill] sm:$0xff] %v2790_v3  ;;  %v2797_v1 = vsub.f32 %v4142_v21, %v2633_v2  ;;  %v948_v20 = vmul.f32 %v2790_v3, %v2790_v3  ;;  %v1031_v31 = vsel %vm728_vm2, %v947_v7, 0.0 }
 0x1df   :  { %v1024_v11 = vadd.f32 %v1023_v47, %v1022_v63  ;;  %v4144_v47 = vld [vmem:[#allocation18_spill] sm:$0xff] }
 0x1e0   :  { %4143 = vst [vmem:[#allocation16_spill] sm:$0xff] %v2797_v1  ;;  %v2804_v19 = vsub.f32 %v4144_v47, %v2633_v2  ;;  %v949_v56 = vmul.f32 %v2797_v1, %v2797_v1  ;;  %v1033_v49 = vsel %vm728_vm2, %v948_v20, 0.0 }
 0x1e1   :  { %v1026_v35 = vadd.f32 %v1025_v53, %v1024_v11  ;;  %v4146_v53 = vld [vmem:[#allocation17_spill] sm:$0xff] }
 0x1e2   :  { %4145 = vst [vmem:[#allocation18_spill] sm:$0xff] %v2804_v19  ;;  %v2811_v21 = vsub.f32 %v4146_v53, %v2633_v2  ;;  %v950_v3 = vmul.f32 %v2804_v19, %v2804_v19  ;;  %v1035_v7 = vsel %vm728_vm2, %v949_v56, 0.0 }
 0x1e3   :  { %v1028_v63 = vadd.f32 %v1027_v6, %v1026_v35  ;;  %v4147_v6 = vld [vmem:[#allocation20_spill] sm:$0xff] }
 0x1e4   :  { %v2818_v47 = vsub.f32 %v4147_v6, %v2633_v2  ;;  %v951_v1 = vmul.f32 %v2811_v21, %v2811_v21  ;;  %v1037_v20 = vsel %vm728_vm2, %v950_v3, 0.0 }
 0x1e5   :  { %v1030_v11 = vadd.f32 %v1029_v17, %v1028_v63  ;;  %v4148_v17 = vld [vmem:[#allocation21_spill] sm:$0xff] }
 0x1e6   :  { %v2825_v53 = vsub.f32 %v4148_v17, %v2633_v2  ;;  %v952_v19 = vmul.f32 %v2818_v47, %v2818_v47  ;;  %v1039_v56 = vsel %vm728_vm2, %v951_v1, 0.0 }
 0x1e7   :  { %v1032_v35 = vadd.f32 %v1031_v31, %v1030_v11  ;;  %v4149_v31 = vld [vmem:[#allocation22_spill] sm:$0xff] }
 0x1e8   :  { %v2832_v6 = vsub.f32 %v4149_v31, %v2633_v2  ;;  %v953_v17 = vmul.f32 %v2825_v53, %v2825_v53  ;;  %v1041_v3 = vsel %vm728_vm2, %v952_v19, 0.0 }
 0x1e9   :  { %v1034_v63 = vadd.f32 %v1033_v49, %v1032_v35  ;;  %v2839_v49 = vsub.f32 %v2548_v22, %v2633_v2  ;;  %v2853_v22 = vsub.f32 %v2565_v42, %v2633_v2  ;;  %v2867_v42 = vsub.f32 %v2316_v44, %v2633_v2 }
 0x1ea   :  { %v954_v31 = vmul.f32 %v2832_v6, %v2832_v6  ;;  %v1043_v1 = vsel %vm728_vm2, %v953_v17, 0.0  ;;  %v2881_v44 = vsub.f32 %v2353_v5, %v2633_v2  ;;  %v2895_v5 = vsub.f32 %v2345_v0, %v2633_v2 }
 0x1eb   :  { %v1036_v11 = vadd.f32 %v1035_v7, %v1034_v63  ;;  %v2846_v7 = vsub.f32 %v2559_v48, %v2633_v2  ;;  %v2860_v48 = vsub.f32 %v2333_v54, %v2633_v2  ;;  %v2874_v54 = vsub.f32 %v2324_v50, %v2633_v2 }
 0x1ec   :  { %v1045_v19 = vsel %vm728_vm2, %v954_v31, 0.0  ;;  %v2888_v50 = vsub.f32 %v2367_v15, %v2633_v2  ;;  %v2902_v15 = vsub.f32 %v2364_v13, %v2633_v2  ;;  %v2909_v0 = vsub.f32 %v2385_v29, %v2633_v2 }
 0x1ed   :  { %v1038_v35 = vadd.f32 %v1037_v20, %v1036_v11  ;;  %v955_v20 = vmul.f32 %v2839_v49, %v2839_v49  ;;  %v2916_v13 = vsub.f32 %v2399_v39, %v2633_v2  ;;  %v2923_v29 = vsub.f32 %v2377_v24, %v2633_v2 }
 0x1ee   :  { %v2930_v39 = vsub.f32 %v2396_v37, %v2633_v2  ;;  %v2937_v24 = vsub.f32 %v2417_v62, %v2633_v2  ;;  %v2944_v37 = vsub.f32 %v2431_v14, %v2633_v2  ;;  %v2951_v62 = vsub.f32 %v2409_v57, %v2633_v2 }
 0x1ef   :  { %v1040_v63 = vadd.f32 %v1039_v56, %v1038_v35  ;;  %v956_v56 = vmul.f32 %v2846_v7, %v2846_v7  ;;  %v1047_v17 = vsel %vm728_vm2, %v955_v20, 0.0  ;;  %v2958_v14 = vsub.f32 %v2428_v9, %v2633_v2 }
 0x1f0   :  { %v2965_v57 = vsub.f32 %v2449_v33, %v2633_v2  ;;  %v2972_v9 = vsub.f32 %v2463_v58, %v2633_v2  ;;  %v2979_v33 = vsub.f32 %v2441_v26, %v2633_v2  ;;  %v2986_v58 = vsub.f32 %v2460_v51, %v2633_v2 }
 0x1f1   :  { %v1042_v11 = vadd.f32 %v1041_v3, %v1040_v63  ;;  %v957_v3 = vmul.f32 %v2853_v22, %v2853_v22  ;;  %v1049_v31 = vsel %vm728_vm2, %v956_v56, 0.0  ;;  %v2993_v26 = vsub.f32 %v2481_v23, %v2633_v2 }
 0x1f2   :  { %v3000_v51 = vsub.f32 %v2495_v55, %v2633_v2  ;;  %v3007_v23 = vsub.f32 %v2473_v18, %v2633_v2  ;;  %v3014_v55 = vsub.f32 %v2492_v43, %v2633_v2  ;;  %v3021_v18 = vsub.f32 %v2513_v32, %v2633_v2 }
 0x1f3   :  { %v1044_v35 = vadd.f32 %v1043_v1, %v1042_v11  ;;  %v958_v1 = vmul.f32 %v2860_v48, %v2860_v48  ;;  %v1051_v20 = vsel %vm728_vm2, %v957_v3, 0.0  ;;  %v3028_v43 = vsub.f32 %v2527_v25, %v2633_v2 }
 0x1f4   :  { %4150 = vst [vmem:[#allocation17_spill] sm:$0xff] %v3000_v51  ;;  %4151 = vst [vmem:[#allocation20_spill] sm:$0xff] %v3007_v23 }
 0x1f5   :  { %v1046_v63 = vadd.f32 %v1045_v19, %v1044_v35  ;;  %v959_v19 = vmul.f32 %v2867_v42, %v2867_v42  ;;  %v1053_v56 = vsel %vm728_vm2, %v958_v1, 0.0  ;;  %4152 = vst [vmem:[#allocation21_spill] sm:$0xff] %v3014_v55  ;;  %4153 = vst [vmem:[#allocation22_spill] sm:$0xff] %v3021_v18 }
 0x1f6   :  { %4154 = vst [vmem:[#allocation25_spill] sm:$0xff] %v3028_v43 }
 0x1f7   :  { %v1048_v11 = vadd.f32 %v1047_v17, %v1046_v63  ;;  %v960_v17 = vmul.f32 %v2874_v54, %v2874_v54  ;;  %v1055_v3 = vsel %vm728_vm2, %v959_v19, 0.0 }
 0x1f9   :  { %v1050_v35 = vadd.f32 %v1049_v31, %v1048_v11  ;;  %v961_v31 = vmul.f32 %v2881_v44, %v2881_v44  ;;  %v1057_v1 = vsel %vm728_vm2, %v960_v17, 0.0 }
 0x1fb   :  { %v1052_v63 = vadd.f32 %v1051_v20, %v1050_v35  ;;  %v962_v20 = vmul.f32 %v2888_v50, %v2888_v50  ;;  %v1059_v19 = vsel %vm728_vm2, %v961_v31, 0.0 }
 0x1fd   :  { %v1054_v11 = vadd.f32 %v1053_v56, %v1052_v63  ;;  %v963_v56 = vmul.f32 %v2895_v5, %v2895_v5  ;;  %v1061_v17 = vsel %vm728_vm2, %v962_v20, 0.0 }
 0x1ff   :  { %v1056_v35 = vadd.f32 %v1055_v3, %v1054_v11  ;;  %v964_v3 = vmul.f32 %v2902_v15, %v2902_v15  ;;  %v1063_v31 = vsel %vm728_vm2, %v963_v56, 0.0 }
 0x201   :  { %v1058_v63 = vadd.f32 %v1057_v1, %v1056_v35  ;;  %v965_v1 = vmul.f32 %v2909_v0, %v2909_v0  ;;  %v1065_v20 = vsel %vm728_vm2, %v964_v3, 0.0 }
 0x203   :  { %v1060_v11 = vadd.f32 %v1059_v19, %v1058_v63  ;;  %v966_v19 = vmul.f32 %v2916_v13, %v2916_v13  ;;  %v1067_v56 = vsel %vm728_vm2, %v965_v1, 0.0 }
 0x205   :  { %v1062_v35 = vadd.f32 %v1061_v17, %v1060_v11  ;;  %v967_v17 = vmul.f32 %v2923_v29, %v2923_v29  ;;  %v1069_v3 = vsel %vm728_vm2, %v966_v19, 0.0 }
 0x207   :  { %v1064_v63 = vadd.f32 %v1063_v31, %v1062_v35  ;;  %v968_v31 = vmul.f32 %v2930_v39, %v2930_v39  ;;  %v1071_v1 = vsel %vm728_vm2, %v967_v17, 0.0 }
 0x209   :  { %v1066_v11 = vadd.f32 %v1065_v20, %v1064_v63  ;;  %v969_v20 = vmul.f32 %v2937_v24, %v2937_v24  ;;  %v1073_v19 = vsel %vm728_vm2, %v968_v31, 0.0 }
 0x20b   :  { %v1068_v35 = vadd.f32 %v1067_v56, %v1066_v11  ;;  %v970_v56 = vmul.f32 %v2944_v37, %v2944_v37  ;;  %v1075_v17 = vsel %vm728_vm2, %v969_v20, 0.0 }
 0x20d   :  { %v1070_v63 = vadd.f32 %v1069_v3, %v1068_v35  ;;  %v971_v3 = vmul.f32 %v2951_v62, %v2951_v62  ;;  %v1077_v31 = vsel %vm728_vm2, %v970_v56, 0.0 }
 0x20f   :  { %v1072_v11 = vadd.f32 %v1071_v1, %v1070_v63  ;;  %v972_v1 = vmul.f32 %v2958_v14, %v2958_v14  ;;  %v1079_v20 = vsel %vm728_vm2, %v971_v3, 0.0 }
 0x211   :  { %v1074_v35 = vadd.f32 %v1073_v19, %v1072_v11  ;;  %v973_v19 = vmul.f32 %v2965_v57, %v2965_v57  ;;  %v1081_v56 = vsel %vm728_vm2, %v972_v1, 0.0 }
 0x213   :  { %v1076_v63 = vadd.f32 %v1075_v17, %v1074_v35  ;;  %v974_v17 = vmul.f32 %v2972_v9, %v2972_v9  ;;  %v1083_v3 = vsel %vm728_vm2, %v973_v19, 0.0 }
 0x215   :  { %v1078_v11 = vadd.f32 %v1077_v31, %v1076_v63  ;;  %v975_v31 = vmul.f32 %v2979_v33, %v2979_v33  ;;  %v1085_v1 = vsel %vm728_vm2, %v974_v17, 0.0 }
 0x217   :  { %v1080_v35 = vadd.f32 %v1079_v20, %v1078_v11  ;;  %v976_v20 = vmul.f32 %v2986_v58, %v2986_v58  ;;  %v1087_v19 = vsel %vm728_vm2, %v975_v31, 0.0 }
 0x219   :  { %v1082_v63 = vadd.f32 %v1081_v56, %v1080_v35  ;;  %v977_v56 = vmul.f32 %v2993_v26, %v2993_v26  ;;  %v1089_v17 = vsel %vm728_vm2, %v976_v20, 0.0 }
 0x21b   :  { %v1084_v11 = vadd.f32 %v1083_v3, %v1082_v63  ;;  %v978_v3 = vmul.f32 %v3000_v51, %v3000_v51  ;;  %v1091_v31 = vsel %vm728_vm2, %v977_v56, 0.0  ;;  %v1120_v51 = vld [vmem:[#allocation4] sm:$0x1] }
 0x21d   :  { %v1086_v35 = vadd.f32 %v1085_v1, %v1084_v11  ;;  %v979_v1 = vmul.f32 %v3007_v23, %v3007_v23  ;;  %v1093_v20 = vsel %vm728_vm2, %v978_v3, 0.0  ;;  %v981_v23 = vmul.f32 %v3021_v18, %v3021_v18 }
 0x21f   :  { %v1088_v63 = vadd.f32 %v1087_v19, %v1086_v35  ;;  %v980_v19 = vmul.f32 %v3014_v55, %v3014_v55  ;;  %v1095_v56 = vsel %vm728_vm2, %v979_v1, 0.0  ;;  %v982_v55 = vmul.f32 %v3028_v43, %v3028_v43 }
 0x220   :  { %v1099_v1 = vsel %vm728_vm2, %v981_v23, 0.0 }
 0x221   :  { %v1090_v11 = vadd.f32 %v1089_v17, %v1088_v63  ;;  %v4155_v17 = vld [vmem:[#allocation15_spill] sm:$0xff]  ;;  %v1097_v3 = vsel %vm728_vm2, %v980_v19, 0.0  ;;  %v1101_v19 = vsel %vm728_vm2, %v982_v55, 0.0 }
 0x222   :  { %v3035_v32 = vsub.f32 %v4155_v17, %v2633_v2 }
 0x223   :  { %v1092_v35 = vadd.f32 %v1091_v31, %v1090_v11  ;;  %v4157_v31 = vld [vmem:[#allocation19_spill] sm:$0xff] }
 0x224   :  { %4156 = vst [vmem:[#allocation15_spill] sm:$0xff] %v3035_v32  ;;  %v3042_v25 = vsub.f32 %v4157_v31, %v2633_v2  ;;  %v983_v17 = vmul.f32 %v3035_v32, %v3035_v32 }
 0x225   :  { %v1094_v63 = vadd.f32 %v1093_v20, %v1092_v35  ;;  %v3049_v20 = vsub.f32 %v2545_v61, %v2633_v2  ;;  %v3063_v61 = vsub.f32 %v2537_v38, %v2633_v2 }
 0x226   :  { %4158 = vst [vmem:[#allocation19_spill] sm:$0xff] %v3042_v25  ;;  %v984_v31 = vmul.f32 %v3042_v25, %v3042_v25  ;;  %v1103_v23 = vsel %vm728_vm2, %v983_v17, 0.0 }
 0x227   :  { %v1096_v11 = vadd.f32 %v1095_v56, %v1094_v63  ;;  %4159 = vst [vmem:[#allocation26_spill] sm:$0xff] %v3049_v20  ;;  %v3056_v56 = vsub.f32 %v2556_v59, %v2633_v2  ;;  %4161 = vst [vmem:[#allocation28_spill] sm:$0xff] %v3063_v61  ;;  %v987_v55 = vmul.f32 %v3063_v61, %v3063_v61 }
 0x229   :  { %v1098_v35 = vadd.f32 %v1097_v3, %v1096_v11  ;;  %4160 = vst [vmem:[#allocation27_spill] sm:$0xff] %v3056_v56  ;;  %v985_v3 = vmul.f32 %v3049_v20, %v3049_v20  ;;  %v986_v59 = vmul.f32 %v3056_v56, %v3056_v56  ;;  %v1111_v20 = vsel %vm852_vm3, %v987_v55, 0.0  ;;  %v4164_v55 = vld [vmem:[#allocation9_spill] sm:$0xff] }
 0x22b   :  { %v1100_v63 = vadd.f32 %v1099_v1, %v1098_v35  ;;  %v1105_v1 = vsel %vm728_vm2, %v984_v31, 0.0  ;;  %v1109_v38 = vsel %vm728_vm2, %v986_v59, 0.0 }
 0x22d   :  { %v1102_v11 = vadd.f32 %v1101_v19, %v1100_v63  ;;  %v1107_v63 = vsel %vm728_vm2, %v985_v3, 0.0 }
 0x22f   :  { %v1104_v35 = vadd.f32 %v1103_v23, %v1102_v11 }
 0x231   :  { %v1106_v32 = vadd.f32 %v1105_v1, %v1104_v35  ;;  %v1125_v1 = vlaneseq }
 0x233   :  { %v1108_v19 = vadd.f32 %v1107_v63, %v1106_v32  ;;  %v1126_v61 = vshrl.u32 %v1125_v1, 7  ;;  %v4170_v1 = vld [vmem:[#allocation16_spill] sm:$0xff] }
 0x235   :  { %v1110_v2 = vadd.f32 %v1109_v38, %v1108_v19  ;;  %v1127_v3 = vsub.s32 0, %v1126_v61  ;;  %v4163_v61 = vld [vmem:[#allocation24_spill] sm:$0xff]  ;;  %v4165_v19 = vld [vmem:[#allocation10_spill] sm:$0xff]  ;;  %v4166_v38 = vld [vmem:[#allocation11_spill] sm:$0xff] }
 0x237   :  { %v1112_v25 = vadd.f32 %v1111_v20, %v1110_v2  ;;  %v4167_v2 = vld [vmem:[#allocation13_spill] sm:$0xff] }
 0x239   :  { %v1113_v17 = vrot.slane %v1112_v25, 4 }
 0x23b   :  { %v1114_v11 = vadd.f32 %v1113_v17, %v1112_v25 }
 0x23d   :  { %v1115_v23 = vrot.slane %v1114_v11, 2 }
 0x23f   :  { %v1116_v43 = vadd.f32 %v1115_v23, %v1114_v11  ;;  %v4168_v11 = vld [vmem:[#allocation12_spill] sm:$0xff] }
 0x241   :  { %v1117_v56 = vrot.slane %v1116_v43, 1 }
 0x243   :  { %v1118_v18 = vadd.f32 %v1117_v56, %v1116_v43  ;;  %v4162_v56 = vld [vmem:[#allocation23_spill] sm:$0xff] }
 0x245   :  { %v1119_v31 = vmul.f32 0.002, %v1118_v18 }
 0x247   :  { %v1121_v35 = vadd.f32 1e-05, %v1119_v31  ;;  %v4169_v31 = vld [vmem:[#allocation14_spill] sm:$0xff] }
 0x249   :  { %2023 = vrsqrt.f32 %v1121_v35 }
 0x253   :  { %v2024_v32 = vpop.eup %2023 }
 0x254   :  { %v1123_v63 = vmul.f32 %v2024_v32, %v1120_v51  ;;  %v4171_v32 = vld [vmem:[#allocation18_spill] sm:$0xff] }
 0x256   :  { %v3076_v59 = vrot.slane %v1123_v63, %v1127_v3 }
 0x258   :  { %v3080_v20 = vmul.f32 %v3076_v59, %v2637_v30  ;;  %v3084_v25 = vmul.f32 %v3076_v59, %v2641_v28  ;;  %v3088_v18 = vmul.f32 %v3076_v59, %v2645_v40  ;;  %v3092_v43 = vmul.f32 %v3076_v59, %v2649_v45 }
 0x259   :  { %v3096_v51 = vmul.f32 %v3076_v59, %v2657_v46  ;;  %v3100_v30 = vmul.f32 %v3076_v59, %v2663_v52  ;;  %v3104_v28 = vmul.f32 %v3076_v59, %v2671_v4  ;;  %v3108_v40 = vmul.f32 %v3076_v59, %v2678_v12 }
 0x25a   :  { %v3112_v45 = vmul.f32 %v3076_v59, %v2685_v10  ;;  %v3116_v46 = vmul.f32 %v3076_v59, %v2692_v16  ;;  %v3120_v52 = vmul.f32 %v3076_v59, %v2699_v27  ;;  %v3124_v4 = vmul.f32 %v3076_v59, %v2706_v36 }
 0x25b   :  { %v3128_v12 = vmul.f32 %v3076_v59, %v2713_v34  ;;  %v3132_v10 = vmul.f32 %v3076_v59, %v2720_v41  ;;  %v3136_v16 = vmul.f32 %v3076_v59, %v2727_v60  ;;  %v3140_v27 = vmul.f32 %v3076_v59, %v2734_v8 }
 0x25c   :  { %v3144_v36 = vmul.f32 %v3076_v59, %v4162_v56  ;;  %v3148_v34 = vmul.f32 %v3076_v59, %v4163_v61  ;;  %v3152_v41 = vmul.f32 %v3076_v59, %v4164_v55  ;;  %v3156_v60 = vmul.f32 %v3076_v59, %v4165_v19 }
 0x25d   :  { %v3160_v8 = vmul.f32 %v3076_v59, %v4166_v38  ;;  %v3164_v17 = vmul.f32 %v3076_v59, %v4167_v2  ;;  %v3168_v23 = vmul.f32 %v3076_v59, %v4168_v11  ;;  %v3172_v35 = vmul.f32 %v3076_v59, %v4169_v31  ;;  %v3286_v2 = vld [vmem:[#allocation6] ss:$0 sm:$0xff] }
 0x25e   :  { %v3176_v3 = vmul.f32 %v3076_v59, %v4170_v1  ;;  %v3180_v63 = vmul.f32 %v3076_v59, %v4171_v32  ;;  %v3184_v56 = vmul.f32 %v3076_v59, %v2811_v21  ;;  %v3188_v61 = vmul.f32 %v3076_v59, %v2818_v47 }
 0x25f   :  { %v3192_v55 = vmul.f32 %v3076_v59, %v2825_v53  ;;  %v3196_v19 = vmul.f32 %v3076_v59, %v2832_v6  ;;  %v3200_v38 = vmul.f32 %v3076_v59, %v2839_v49  ;;  %v3204_v21 = vmul.f32 %v3076_v59, %v2846_v7 }
 0x260   :  { %v3208_v47 = vmul.f32 %v3076_v59, %v2853_v22  ;;  %v3212_v53 = vmul.f32 %v3076_v59, %v2860_v48  ;;  %v3216_v6 = vmul.f32 %v3076_v59, %v2867_v42  ;;  %v3220_v49 = vmul.f32 %v3076_v59, %v2874_v54 }
 0x261   :  { %v3224_v7 = vmul.f32 %v3076_v59, %v2881_v44  ;;  %v3228_v22 = vmul.f32 %v3076_v59, %v2888_v50  ;;  %v3232_v48 = vmul.f32 %v3076_v59, %v2895_v5  ;;  %v3236_v42 = vmul.f32 %v3076_v59, %v2902_v15 }
 0x262   :  { %v3240_v54 = vmul.f32 %v3076_v59, %v2909_v0  ;;  %v3244_v44 = vmul.f32 %v3076_v59, %v2916_v13  ;;  %v3248_v50 = vmul.f32 %v3076_v59, %v2923_v29  ;;  %v3252_v5 = vmul.f32 %v3076_v59, %v2930_v39 }
 0x263   :  { %v3256_v15 = vmul.f32 %v3076_v59, %v2937_v24  ;;  %v3260_v0 = vmul.f32 %v3076_v59, %v2944_v37  ;;  %v3264_v13 = vmul.f32 %v3076_v59, %v2951_v62  ;;  %v3268_v29 = vmul.f32 %v3076_v59, %v2958_v14 }
 0x264   :  { %v3272_v39 = vmul.f32 %v3076_v59, %v2965_v57  ;;  %v3276_v24 = vmul.f32 %v3076_v59, %v2972_v9  ;;  %v3280_v37 = vmul.f32 %v3076_v59, %v2979_v33  ;;  %v3284_v62 = vmul.f32 %v3076_v59, %v2986_v58  ;;  %v4174_v57 = vld [vmem:[#allocation17_spill] sm:$0xff]  ;;  %v4176_v9 = vld [vmem:[#allocation20_spill] sm:$0xff]  ;;  %v4180_v58 = vld [vmem:[#allocation22_spill] sm:$0xff] }
 0x265   :  { %v3290_v14 = vmul.f32 %v3076_v59, %v2993_v26  ;;  %v3294_v11 = vmul.f32 %v3076_v59, %v4174_v57  ;;  %v3298_v31 = vmul.f32 %v3076_v59, %v4176_v9  ;;  %v4178_v33 = vld [vmem:[#allocation21_spill] sm:$0xff]  ;;  %v3306_v32 = vmul.f32 %v3076_v59, %v4180_v58 }
 0x266   :  { %4172 = vst [vmem:[#allocation23_spill] sm:$0xff] %v3284_v62  ;;  %v3302_v1 = vmul.f32 %v3076_v59, %v4178_v33  ;;  %v4182_v62 = vld [vmem:[#allocation25_spill] sm:$0xff] }
 0x267   :  { %4173 = vst [vmem:[#allocation24_spill] sm:$0xff] %v3290_v14  ;;  %4175 = vst [vmem:[#allocation9_spill] sm:$0xff] %v3294_v11  ;;  %v3310_v26 = vmul.f32 %v3076_v59, %v4182_v62  ;;  %v4183_v14 = vld [vmem:[#allocation15_spill] sm:$0xff] }
 0x268   :  { %4177 = vst [vmem:[#allocation10_spill] sm:$0xff] %v3298_v31  ;;  %4179 = vst [vmem:[#allocation11_spill] sm:$0xff] %v3302_v1  ;;  %v3314_v57 = vmul.f32 %v3076_v59, %v4183_v14  ;;  %v4184_v11 = vld [vmem:[#allocation19_spill] sm:$0xff]  ;;  %v4185_v31 = vld [vmem:[#allocation26_spill] sm:$0xff]  ;;  %v3334_v14 = vadd.f32 %v3286_v2, %v3080_v20  ;;  %v3354_v20 = vadd.f32 %v3286_v2, %v3100_v30 }
 0x269   :  { %4181 = vst [vmem:[#allocation13_spill] sm:$0xff] %v3306_v32  ;;  %v3318_v9 = vmul.f32 %v3076_v59, %v4184_v11  ;;  %v3322_v33 = vmul.f32 %v3076_v59, %v4185_v31  ;;  %v4186_v1 = vld [vmem:[#allocation27_spill] sm:$0xff]  ;;  %v4187_v32 = vld [vmem:[#allocation28_spill] sm:$0xff]  ;;  %v3338_v11 = vadd.f32 %v3286_v2, %v3084_v25  ;;  %v3342_v31 = vadd.f32 %v3286_v2, %v3088_v18 }
 0x26a   :  { %v3326_v58 = vmul.f32 %v3076_v59, %v4186_v1  ;;  %v3330_v62 = vmul.f32 %v3076_v59, %v4187_v32  ;;  %v3346_v1 = vadd.f32 %v3286_v2, %v3092_v43  ;;  %v3350_v59 = vadd.f32 %v3286_v2, %v3096_v51 }
 0x26b   :  { %v3358_v25 = vadd.f32 %v3286_v2, %v3104_v28  ;;  %v3362_v18 = vadd.f32 %v3286_v2, %v3108_v40  ;;  %v3366_v43 = vadd.f32 %v3286_v2, %v3112_v45  ;;  %v3370_v51 = vadd.f32 %v3286_v2, %v3116_v46 }
 0x26c   :  { %v3374_v30 = vadd.f32 %v3286_v2, %v3120_v52  ;;  %v3378_v28 = vadd.f32 %v3286_v2, %v3124_v4  ;;  %v3382_v40 = vadd.f32 %v3286_v2, %v3128_v12  ;;  %v3386_v45 = vadd.f32 %v3286_v2, %v3132_v10 }
 0x26d   :  { %v3390_v46 = vadd.f32 %v3286_v2, %v3136_v16  ;;  %v3394_v52 = vadd.f32 %v3286_v2, %v3140_v27  ;;  %v3398_v4 = vadd.f32 %v3286_v2, %v3144_v36  ;;  %v3402_v12 = vadd.f32 %v3286_v2, %v3148_v34  ;;  %v4197_v32 = vld [vmem:[#allocation23_spill] sm:$0xff] }
 0x26e   :  { %v3406_v10 = vadd.f32 %v3286_v2, %v3152_v41  ;;  %v3410_v16 = vadd.f32 %v3286_v2, %v3156_v60  ;;  %v3414_v27 = vadd.f32 %v3286_v2, %v3160_v8  ;;  %v3418_v36 = vadd.f32 %v3286_v2, %v3164_v17 }
 0x26f   :  { %v3422_v34 = vadd.f32 %v3286_v2, %v3168_v23  ;;  %v3426_v41 = vadd.f32 %v3286_v2, %v3172_v35  ;;  %v3430_v60 = vadd.f32 %v3286_v2, %v3176_v3  ;;  %v3434_v8 = vadd.f32 %v3286_v2, %v3180_v63 }
 0x270   :  { %v3438_v17 = vadd.f32 %v3286_v2, %v3184_v56  ;;  %v3442_v23 = vadd.f32 %v3286_v2, %v3188_v61  ;;  %v3446_v35 = vadd.f32 %v3286_v2, %v3192_v55  ;;  %v3450_v3 = vadd.f32 %v3286_v2, %v3196_v19 }
 0x271   :  { %v3454_v63 = vadd.f32 %v3286_v2, %v3200_v38  ;;  %v3458_v56 = vadd.f32 %v3286_v2, %v3204_v21  ;;  %v3462_v61 = vadd.f32 %v3286_v2, %v3208_v47  ;;  %v3466_v55 = vadd.f32 %v3286_v2, %v3212_v53 }
 0x272   :  { %v3470_v19 = vadd.f32 %v3286_v2, %v3216_v6  ;;  %v3474_v38 = vadd.f32 %v3286_v2, %v3220_v49  ;;  %v3478_v21 = vadd.f32 %v3286_v2, %v3224_v7  ;;  %v3482_v47 = vadd.f32 %v3286_v2, %v3228_v22 }
 0x273   :  { %v3486_v53 = vadd.f32 %v3286_v2, %v3232_v48  ;;  %v3490_v6 = vadd.f32 %v3286_v2, %v3236_v42  ;;  %v3494_v49 = vadd.f32 %v3286_v2, %v3240_v54  ;;  %v3498_v7 = vadd.f32 %v3286_v2, %v3244_v44 }
 0x274   :  { %4188 = vst [vmem:[#allocation12_spill] sm:$0xff] %v3478_v21  ;;  %4189 = vst [vmem:[#allocation14_spill] sm:$0xff] %v3482_v47  ;;  %v3502_v22 = vadd.f32 %v3286_v2, %v3248_v50  ;;  %v3506_v48 = vadd.f32 %v3286_v2, %v3252_v5  ;;  %v3510_v42 = vadd.f32 %v3286_v2, %v3256_v15 }
 0x275   :  { %4190 = vst [vmem:[#allocation16_spill] sm:$0xff] %v3486_v53  ;;  %4191 = vst [vmem:[#allocation18_spill] sm:$0xff] %v3490_v6  ;;  %v3514_v54 = vadd.f32 %v3286_v2, %v3260_v0  ;;  %v3518_v44 = vadd.f32 %v3286_v2, %v3264_v13  ;;  %v3522_v50 = vadd.f32 %v3286_v2, %v3268_v29 }
 0x276   :  { %v3526_v5 = vadd.f32 %v3286_v2, %v3272_v39  ;;  %v3530_v15 = vadd.f32 %v3286_v2, %v3276_v24  ;;  %v3534_v0 = vadd.f32 %v3286_v2, %v3280_v37  ;;  %v3538_v13 = vadd.f32 %v3286_v2, %v4197_v32 }
 0x277   :  { %4192 = vst [vmem:[#allocation17_spill] sm:$0xff] %v3518_v44  ;;  %4193 = vst [vmem:[#allocation20_spill] sm:$0xff] %v3522_v50  ;;  %v4198_v44 = vld [vmem:[#allocation24_spill] sm:$0xff]  ;;  %v4200_v50 = vld [vmem:[#allocation9_spill] sm:$0xff] }
 0x278   :  { %4194 = vst [vmem:[#allocation21_spill] sm:$0xff] %v3526_v5  ;;  %4195 = vst [vmem:[#allocation22_spill] sm:$0xff] %v3530_v15  ;;  %v3542_v29 = vadd.f32 %v3286_v2, %v4198_v44  ;;  %v3546_v39 = vadd.f32 %v3286_v2, %v4200_v50  ;;  %v4202_v5 = vld [vmem:[#allocation10_spill] sm:$0xff]  ;;  %v4204_v15 = vld [vmem:[#allocation11_spill] sm:$0xff]  ;;  %v3562_v44 = vadd.f32 %v3286_v2, %v3310_v26 }
 0x279   :  { %4196 = vst [vmem:[#allocation25_spill] sm:$0xff] %v3534_v0  ;;  %v3550_v24 = vadd.f32 %v3286_v2, %v4202_v5  ;;  %v3554_v37 = vadd.f32 %v3286_v2, %v4204_v15  ;;  %v4206_v0 = vld [vmem:[#allocation13_spill] sm:$0xff]  ;;  %v3566_v50 = vadd.f32 %v3286_v2, %v3314_v57  ;;  %v3570_v5 = vadd.f32 %v3286_v2, %v3318_v9 }
 0x27a   :  { %4199 = vst [vmem:[#allocation15_spill] sm:$0xff] %v3542_v29  ;;  %4201 = vst [vmem:[#allocation19_spill] sm:$0xff] %v3546_v39  ;;  %v3558_v32 = vadd.f32 %v3286_v2, %v4206_v0  ;;  %v3574_v15 = vadd.f32 %v3286_v2, %v3322_v33  ;;  %v3578_v0 = vadd.f32 %v3286_v2, %v3326_v58  ;;  %v1264_v57 = vmax.f32 %v3338_v11, 0.0 }
 0x27b   :  { %4203 = vst [vmem:[#allocation26_spill] sm:$0xff] %v3550_v24  ;;  %4205 = vst [vmem:[#allocation27_spill] sm:$0xff] %v3554_v37  ;;  %v3582_v26 = vadd.f32 %v3286_v2, %v3330_v62  ;;  %v1266_v9 = vmax.f32 %v3346_v1, 0.0  ;;  %v1268_v33 = vmax.f32 %v3354_v20, 0.0  ;;  %v1270_v58 = vmax.f32 %v3362_v18, 0.0 }
 0x27c   :  { %4207 = vst [vmem:[#allocation28_spill] sm:$0xff] %v3558_v32  ;;  %4208 = vst [vmem:[#allocation23_spill] sm:$0xff] %v3562_v44  ;;  %v1263_v44 = vmax.f32 %v3334_v14, 0.0  ;;  %v1272_v2 = vmax.f32 %v3370_v51, 0.0  ;;  %v1273_v62 = vmax.f32 %v3374_v30, 0.0 }
 0x27d   :  { %4209 = vst [vmem:[#allocation24_spill] sm:$0xff] %v3566_v50  ;;  %4210 = vst [vmem:[#allocation9_spill] sm:$0xff] %v3570_v5  ;;  %v1265_v50 = vmax.f32 %v3342_v31, 0.0  ;;  %v1267_v5 = vmax.f32 %v3350_v59, 0.0  ;;  %v1325_v11 = vmax.f32 %v3582_v26, 0.0  ;;  %v1786_v31 = vpack.c.bf16 %v1264_v57, %v1264_v57 }
 0x27e   :  { %4211 = vst [vmem:[#allocation10_spill] sm:$0xff] %v3574_v15  ;;  %4212 = vst [vmem:[#allocation11_spill] sm:$0xff] %v3578_v0  ;;  %v1269_v15 = vmax.f32 %v3358_v25, 0.0  ;;  %v1271_v0 = vmax.f32 %v3366_v43, 0.0  ;;  %v1785_v29 = vpack.c.bf16 %v1263_v44, %v1263_v44  ;;  %v1788_v1 = vpack.c.bf16 %v1266_v9, %v1266_v9 }
 0x27f   :  { %v1787_v39 = vpack.c.bf16 %v1265_v50, %v1265_v50  ;;  %v1789_v24 = vpack.c.bf16 %v1267_v5, %v1267_v5  ;;  %v1790_v59 = vpack.c.bf16 %v1268_v33, %v1268_v33  ;;  %v1792_v20 = vpack.c.bf16 %v1270_v58, %v1270_v58  ;;  %1580 = vst.msk [vmem:[%s4060_s5 + $0x4] sm:$0xf] %vm852_vm3, %v1786_v31 }
 0x280   :  { %v1791_v37 = vpack.c.bf16 %v1269_v15, %v1269_v15  ;;  %v1793_v32 = vpack.c.bf16 %v1271_v0, %v1271_v0  ;;  %v1794_v25 = vpack.c.bf16 %v1272_v2, %v1272_v2  ;;  %v1795_v14 = vpack.c.bf16 %v1273_v62, %v1273_v62  ;;  %1579 = vst.msk [vmem:[%s4060_s5] sm:$0xf] %vm852_vm3, %v1785_v29 }
 0x281   :  { %1581 = vst.msk [vmem:[%s4060_s5 + $0x8] sm:$0xf] %vm852_vm3, %v1787_v39  ;;  %v4223_v44 = vmax.f32 %v3378_v28, 0.0  ;;  %v4224_v5 = vmax.f32 %v3382_v40, 0.0  ;;  %v4225_v29 = vmax.f32 %v3386_v45, 0.0  ;;  %v4226_v57 = vmax.f32 %v3390_v46, 0.0 }
 0x282   :  { %1582 = vst.msk [vmem:[%s4060_s5 + $0xc] sm:$0xf] %vm852_vm3, %v1788_v1  ;;  %1583 = vst.msk [vmem:[%s4060_s5 + $0x10] sm:$0xf] %vm852_vm3, %v1789_v24  ;;  %v4227_v28 = vmax.f32 %v3394_v52, 0.0  ;;  %v4228_v45 = vmax.f32 %v3398_v4, 0.0 }
 0x283   :  { %v1796_v50 = vpack.c.bf16 %v4223_v44, %v4223_v44  ;;  %v1797_v15 = vpack.c.bf16 %v4224_v5, %v4224_v5  ;;  %v1798_v0 = vpack.c.bf16 %v4225_v29, %v4225_v29  ;;  %v1799_v9 = vpack.c.bf16 %v4226_v57, %v4226_v57  ;;  %1584 = vst.msk [vmem:[%s4060_s5 + $0x14] sm:$0xf] %vm852_vm3, %v1790_v59 }
 0x284   :  { %v4219_v21 = vld [vmem:[#allocation24_spill] sm:$0xff]  ;;  %v4220_v47 = vld [vmem:[#allocation9_spill] sm:$0xff]  ;;  %1585 = vst.msk [vmem:[%s4060_s5 + $0x18] sm:$0xf] %vm852_vm3, %v1791_v37  ;;  %v1800_v40 = vpack.c.bf16 %v4227_v28, %v4227_v28  ;;  %v1801_v46 = vpack.c.bf16 %v4228_v45, %v4228_v45  ;;  %v4229_v39 = vmax.f32 %v3402_v12, 0.0  ;;  %v4230_v33 = vmax.f32 %v3406_v10, 0.0 }
 0x285   :  { %v1321_v18 = vmax.f32 %v4219_v21, 0.0  ;;  %v1322_v43 = vmax.f32 %v4220_v47, 0.0  ;;  %v4221_v53 = vld [vmem:[#allocation10_spill] sm:$0xff]  ;;  %v4222_v6 = vld [vmem:[#allocation11_spill] sm:$0xff]  ;;  %1586 = vst.msk [vmem:[%s4060_s5 + $0x1c] sm:$0xf] %vm852_vm3, %v1792_v20 }
 0x286   :  { %v1323_v51 = vmax.f32 %v4221_v53, 0.0  ;;  %v1324_v30 = vmax.f32 %v4222_v6, 0.0  ;;  %v1802_v24 = vpack.c.bf16 %v4229_v39, %v4229_v39  ;;  %v1803_v58 = vpack.c.bf16 %v4230_v33, %v4230_v33  ;;  %1587 = vst.msk [vmem:[%s4060_s5 + $0x20] sm:$0xf] %vm852_vm3, %v1793_v32  ;;  %1588 = vst.msk [vmem:[%s4060_s5 + $0x24] sm:$0xf] %vm852_vm3, %v1794_v25 }
 0x287   :  { %1589 = vst.msk [vmem:[%s4060_s5 + $0x28] sm:$0xf] %vm852_vm3, %v1795_v14  ;;  %v4231_v52 = vmax.f32 %v3410_v16, 0.0  ;;  %v4232_v12 = vmax.f32 %v3414_v27, 0.0  ;;  %v4233_v37 = vmax.f32 %v3418_v36, 0.0  ;;  %v4234_v2 = vmax.f32 %v3422_v34, 0.0 }
 0x288   :  { %1590 = vst.msk [vmem:[%s4060_s5 + $0x2c] sm:$0xf] %vm852_vm3, %v1796_v50  ;;  %1591 = vst.msk [vmem:[%s4060_s5 + $0x30] sm:$0xf] %vm852_vm3, %v1797_v15  ;;  %v4235_v16 = vmax.f32 %v3426_v41, 0.0  ;;  %v4236_v36 = vmax.f32 %v3430_v60, 0.0  ;;  %v1844_v21 = vpack.c.bf16 %v1322_v43, %v1322_v43 }
 0x289   :  { %v1804_v4 = vpack.c.bf16 %v4231_v52, %v4231_v52  ;;  %v1805_v10 = vpack.c.bf16 %v4232_v12, %v4232_v12  ;;  %v1806_v32 = vpack.c.bf16 %v4233_v37, %v4233_v37  ;;  %v1807_v62 = vpack.c.bf16 %v4234_v2, %v4234_v2  ;;  %1592 = vst.msk [vmem:[%s4060_s5 + $0x34] sm:$0xf] %vm852_vm3, %v1798_v0  ;;  %v4252_v45 = vld [vmem:[#allocation16_spill] sm:$0xff] }
 0x28a   :  { %1593 = vst.msk [vmem:[%s4060_s5 + $0x38] sm:$0xf] %vm852_vm3, %v1799_v9  ;;  %v1808_v27 = vpack.c.bf16 %v4235_v16, %v4235_v16  ;;  %v1809_v34 = vpack.c.bf16 %v4236_v36, %v4236_v36  ;;  %v4237_v14 = vmax.f32 %v3434_v8, 0.0  ;;  %v4238_v1 = vmax.f32 %v3438_v17, 0.0  ;;  %1594 = vst.msk [vmem:[%s4060_s5 + $0x3c] sm:$0xf] %vm852_vm3, %v1800_v40 }
 0x28b   :  { %1595 = vst.msk [vmem:[%s4060_s5 + $0x40] sm:$0xf] %vm852_vm3, %v1801_v46  ;;  %1596 = vst.msk [vmem:[%s4060_s5 + $0x44] sm:$0xf] %vm852_vm3, %v1802_v24  ;;  %v4239_v41 = vmax.f32 %v3442_v23, 0.0  ;;  %v4240_v8 = vmax.f32 %v3446_v35, 0.0 }
 0x28c   :  { %v1810_v31 = vpack.c.bf16 %v4237_v14, %v4237_v14  ;;  %v1811_v59 = vpack.c.bf16 %v4238_v1, %v4238_v1  ;;  %1597 = vst.msk [vmem:[%s4060_s5 + $0x48] sm:$0xf] %vm852_vm3, %v1803_v58  ;;  %v4241_v20 = vmax.f32 %v3450_v3, 0.0  ;;  %v4242_v44 = vmax.f32 %v3454_v63, 0.0  ;;  %1598 = vst.msk [vmem:[%s4060_s5 + $0x4c] sm:$0xf] %vm852_vm3, %v1804_v4 }
 0x28d   :  { %v1812_v60 = vpack.c.bf16 %v4239_v41, %v4239_v41  ;;  %v1813_v17 = vpack.c.bf16 %v4240_v8, %v4240_v8  ;;  %1599 = vst.msk [vmem:[%s4060_s5 + $0x50] sm:$0xf] %vm852_vm3, %v1805_v10  ;;  %1600 = vst.msk [vmem:[%s4060_s5 + $0x54] sm:$0xf] %vm852_vm3, %v1806_v32  ;;  %v4243_v23 = vmax.f32 %v3458_v56, 0.0  ;;  %v4244_v3 = vmax.f32 %v3462_v61, 0.0 }
 0x28e   :  { %v1814_v25 = vpack.c.bf16 %v4241_v20, %v4241_v20  ;;  %v1815_v50 = vpack.c.bf16 %v4242_v44, %v4242_v44  ;;  %1601 = vst.msk [vmem:[%s4060_s5 + $0x58] sm:$0xf] %vm852_vm3, %v1807_v62  ;;  %v4245_v5 = vmax.f32 %v3466_v55, 0.0  ;;  %v4246_v29 = vmax.f32 %v3470_v19, 0.0  ;;  %1602 = vst.msk [vmem:[%s4060_s5 + $0x5c] sm:$0xf] %vm852_vm3, %v1808_v27 }
 0x28f   :  { %v1816_v35 = vpack.c.bf16 %v4243_v23, %v4243_v23  ;;  %v1817_v63 = vpack.c.bf16 %v4244_v3, %v4244_v3  ;;  %1603 = vst.msk [vmem:[%s4060_s5 + $0x60] sm:$0xf] %vm852_vm3, %v1809_v34  ;;  %1604 = vst.msk [vmem:[%s4060_s5 + $0x64] sm:$0xf] %vm852_vm3, %v1810_v31  ;;  %v4247_v56 = vmax.f32 %v3474_v38, 0.0  ;;  %v4248_v55 = vld [vmem:[#allocation12_spill] sm:$0xff] }
 0x290   :  { %v1818_v15 = vpack.c.bf16 %v4245_v5, %v4245_v5  ;;  %v1819_v0 = vpack.c.bf16 %v4246_v29, %v4246_v29  ;;  %1605 = vst.msk [vmem:[%s4060_s5 + $0x68] sm:$0xf] %vm852_vm3, %v1811_v59  ;;  %v4249_v19 = vmax.f32 %v4248_v55, 0.0  ;;  %v4250_v9 = vld [vmem:[#allocation14_spill] sm:$0xff]  ;;  %v4253_v46 = vmax.f32 %v4252_v45, 0.0  ;;  %v4262_v16 = vld [vmem:[#allocation17_spill] sm:$0xff] }
 0x291   :  { %v1820_v61 = vpack.c.bf16 %v4247_v56, %v4247_v56  ;;  %v4251_v28 = vmax.f32 %v4250_v9, 0.0  ;;  %1606 = vst.msk [vmem:[%s4060_s5 + $0x6c] sm:$0xf] %vm852_vm3, %v1812_v60  ;;  %1607 = vst.msk [vmem:[%s4060_s5 + $0x70] sm:$0xf] %vm852_vm3, %v1813_v17  ;;  %v4254_v38 = vld [vmem:[#allocation18_spill] sm:$0xff]  ;;  %v1846_v45 = vpack.c.bf16 %v1324_v30, %v1324_v30 }
 0x292   :  { %v1821_v57 = vpack.c.bf16 %v4249_v19, %v4249_v19  ;;  %v1823_v39 = vpack.c.bf16 %v4253_v46, %v4253_v46  ;;  %1608 = vst.msk [vmem:[%s4060_s5 + $0x74] sm:$0xf] %vm852_vm3, %v1814_v25  ;;  %1609 = vst.msk [vmem:[%s4060_s5 + $0x78] sm:$0xf] %vm852_vm3, %v1815_v50  ;;  %v4255_v24 = vmax.f32 %v4254_v38, 0.0  ;;  %v4256_v58 = vmax.f32 %v3494_v49, 0.0 }
 0x293   :  { %v1822_v40 = vpack.c.bf16 %v4251_v28, %v4251_v28  ;;  %v4257_v4 = vmax.f32 %v3498_v7, 0.0  ;;  %v4258_v10 = vmax.f32 %v3502_v22, 0.0  ;;  %1610 = vst.msk [vmem:[%s4060_s5 + $0x7c] sm:$0xf] %vm852_vm3, %v1816_v35  ;;  %1611 = vst.msk [vmem:[%s4060_s5 + $0x80] sm:$0xf] %vm852_vm3, %v1817_v63  ;;  %v1847_v46 = vpack.c.bf16 %v1325_v11, %v1325_v11 }
 0x294   :  { %v1824_v33 = vpack.c.bf16 %v4255_v24, %v4255_v24  ;;  %v1825_v52 = vpack.c.bf16 %v4256_v58, %v4256_v58  ;;  %1612 = vst.msk [vmem:[%s4060_s5 + $0x84] sm:$0xf] %vm852_vm3, %v1818_v15  ;;  %1613 = vst.msk [vmem:[%s4060_s5 + $0x88] sm:$0xf] %vm852_vm3, %v1819_v0  ;;  %v4259_v49 = vmax.f32 %v3506_v48, 0.0  ;;  %v4260_v22 = vmax.f32 %v3510_v42, 0.0 }
 0x295   :  { %v1826_v12 = vpack.c.bf16 %v4257_v4, %v4257_v4  ;;  %v1827_v37 = vpack.c.bf16 %v4258_v10, %v4258_v10  ;;  %v4261_v2 = vmax.f32 %v3514_v54, 0.0  ;;  %v4263_v27 = vmax.f32 %v4262_v16, 0.0  ;;  %1614 = vst.msk [vmem:[%s4060_s5 + $0x8c] sm:$0xf] %vm852_vm3, %v1820_v61  ;;  %1615 = vst.msk [vmem:[%s4060_s5 + $0x90] sm:$0xf] %vm852_vm3, %v1821_v57 }
 0x296   :  { %v1828_v7 = vpack.c.bf16 %v4259_v49, %v4259_v49  ;;  %v1829_v32 = vpack.c.bf16 %v4260_v22, %v4260_v22  ;;  %1616 = vst.msk [vmem:[%s4060_s5 + $0x94] sm:$0xf] %vm852_vm3, %v1822_v40  ;;  %1617 = vst.msk [vmem:[%s4060_s5 + $0x98] sm:$0xf] %vm852_vm3, %v1823_v39  ;;  %v4264_v48 = vld [vmem:[#allocation20_spill] sm:$0xff]  ;;  %v4266_v34 = vld [vmem:[#allocation21_spill] sm:$0xff]  ;;  %v1843_v40 = vpack.c.bf16 %v1321_v18, %v1321_v18 }
 0x297   :  { %v1830_v62 = vpack.c.bf16 %v4261_v2, %v4261_v2  ;;  %v1831_v36 = vpack.c.bf16 %v4263_v27, %v4263_v27  ;;  %v4265_v42 = vmax.f32 %v4264_v48, 0.0  ;;  %v4267_v14 = vmax.f32 %v4266_v34, 0.0  ;;  %v4268_v1 = vld [vmem:[#allocation22_spill] sm:$0xff]  ;;  %v4270_v60 = vld [vmem:[#allocation25_spill] sm:$0xff]  ;;  %1618 = vst.msk [vmem:[%s4060_s5 + $0x9c] sm:$0xf] %vm852_vm3, %v1824_v33 }
 0x298   :  { %v4269_v59 = vmax.f32 %v4268_v1, 0.0  ;;  %v4271_v8 = vmax.f32 %v4270_v60, 0.0  ;;  %1619 = vst.msk [vmem:[%s4060_s5 + $0xa0] sm:$0xf] %vm852_vm3, %v1825_v52  ;;  %1620 = vst.msk [vmem:[%s4060_s5 + $0xa4] sm:$0xf] %vm852_vm3, %v1826_v12  ;;  %v1845_v18 = vpack.c.bf16 %v1323_v51, %v1323_v51 }
 0x299   :  { %v1832_v54 = vpack.c.bf16 %v4265_v42, %v4265_v42  ;;  %v1833_v31 = vpack.c.bf16 %v4267_v14, %v4267_v14  ;;  %1621 = vst.msk [vmem:[%s4060_s5 + $0xa8] sm:$0xf] %vm852_vm3, %v1827_v37  ;;  %v4272_v20 = vmax.f32 %v3538_v13, 0.0  ;;  %v4273_v44 = vld [vmem:[#allocation15_spill] sm:$0xff]  ;;  %v4277_v5 = vld [vmem:[#allocation26_spill] sm:$0xff]  ;;  %v4281_v61 = vld [vmem:[#allocation28_spill] sm:$0xff] }
 0x29a   :  { %v1834_v41 = vpack.c.bf16 %v4269_v59, %v4269_v59  ;;  %v1835_v17 = vpack.c.bf16 %v4271_v8, %v4271_v8  ;;  %v4274_v50 = vmax.f32 %v4273_v44, 0.0  ;;  %v4275_v35 = vld [vmem:[#allocation19_spill] sm:$0xff]  ;;  %v4278_v15 = vmax.f32 %v4277_v5, 0.0  ;;  %1622 = vst.msk [vmem:[%s4060_s5 + $0xac] sm:$0xf] %vm852_vm3, %v1828_v7 }
 0x29b   :  { %v1836_v25 = vpack.c.bf16 %v4272_v20, %v4272_v20  ;;  %v4276_v3 = vmax.f32 %v4275_v35, 0.0  ;;  %1623 = vst.msk [vmem:[%s4060_s5 + $0xb0] sm:$0xf] %vm852_vm3, %v1829_v32  ;;  %1624 = vst.msk [vmem:[%s4060_s5 + $0xb4] sm:$0xf] %vm852_vm3, %v1830_v62  ;;  %v4279_v13 = vld [vmem:[#allocation27_spill] sm:$0xff] }
 0x29c   :  { %v1837_v23 = vpack.c.bf16 %v4274_v50, %v4274_v50  ;;  %v1839_v29 = vpack.c.bf16 %v4278_v15, %v4278_v15  ;;  %1625 = vst.msk [vmem:[%s4060_s5 + $0xb8] sm:$0xf] %vm852_vm3, %v1831_v36  ;;  %v4280_v0 = vmax.f32 %v4279_v13, 0.0  ;;  %v4282_v55 = vmax.f32 %v4281_v61, 0.0  ;;  %v4283_v57 = vld [vmem:[#allocation23_spill] sm:$0xff] }
 0x29d   :  { %v1838_v63 = vpack.c.bf16 %v4276_v3, %v4276_v3  ;;  %v4284_v9 = vmax.f32 %v4283_v57, 0.0  ;;  %1626 = vst.msk [vmem:[%s4060_s5 + $0xbc] sm:$0xf] %vm852_vm3, %v1832_v54  ;;  %1627 = vst.msk [vmem:[%s4060_s5 + $0xc0] sm:$0xf] %vm852_vm3, %v1833_v31 }
 0x29e   :  { %v1840_v56 = vpack.c.bf16 %v4280_v0, %v4280_v0  ;;  %v1841_v19 = vpack.c.bf16 %v4282_v55, %v4282_v55  ;;  %1628 = vst.msk [vmem:[%s4060_s5 + $0xc4] sm:$0xf] %vm852_vm3, %v1834_v41  ;;  %1629 = vst.msk [vmem:[%s4060_s5 + $0xc8] sm:$0xf] %vm852_vm3, %v1835_v17 }
 0x29f   :  { %v1842_v28 = vpack.c.bf16 %v4284_v9, %v4284_v9  ;;  %1630 = vst.msk [vmem:[%s4060_s5 + $0xcc] sm:$0xf] %vm852_vm3, %v1836_v25  ;;  %1631 = vst.msk [vmem:[%s4060_s5 + $0xd0] sm:$0xf] %vm852_vm3, %v1837_v23 }
 0x2a0   :  { %1632 = vst.msk [vmem:[%s4060_s5 + $0xd4] sm:$0xf] %vm852_vm3, %v1838_v63  ;;  %1633 = vst.msk [vmem:[%s4060_s5 + $0xd8] sm:$0xf] %vm852_vm3, %v1839_v29 }
 0x2a1   :  { %1634 = vst.msk [vmem:[%s4060_s5 + $0xdc] sm:$0xf] %vm852_vm3, %v1840_v56  ;;  %1635 = vst.msk [vmem:[%s4060_s5 + $0xe0] sm:$0xf] %vm852_vm3, %v1841_v19 }
 0x2a2   :  { %1636 = vst.msk [vmem:[%s4060_s5 + $0xe4] sm:$0xf] %vm852_vm3, %v1842_v28  ;;  %1637 = vst.msk [vmem:[%s4060_s5 + $0xe8] sm:$0xf] %vm852_vm3, %v1843_v40 }
 0x2a3   :  { %1638 = vst.msk [vmem:[%s4060_s5 + $0xec] sm:$0xf] %vm852_vm3, %v1844_v21  ;;  %1639 = vst.msk [vmem:[%s4060_s5 + $0xf0] sm:$0xf] %vm852_vm3, %v1845_v18 }
 0x2a4   :  { %1640 = vst.msk [vmem:[%s4060_s5 + $0xf4] sm:$0xf] %vm852_vm3, %v1846_v45 }
 0x2a5   :  { %1642 = vst.msk [vmem:[%s4060_s5 + $0xf8] sm:$0x3] %vm1641_vm4, %v1847_v46 }
 0x2a6   :  { %1647 = vsyncpa [#allocation3], 1 }
 0x2a7   :  { %1648 = vsyncpa [#allocation5], 1 }

// kernel: df_forward.10
= control target key start
LH: loop header
LB: loop body
LE: loop exit
PB: predicated region body
PF: predicated region fallthrough
CT: control target
= control target key end

     0   :  { %vm340_vm0 = vcmask 523264   ;;  %vm588_vm1 = vcmask 517120   ;;  %vm797_vm2 = vcmask 519168   ;;  %vm813_vm3 = vcmask 516096   ;;  %s1492_s1 = inlined_call_operand.vmem [shape: bf16[320,64], index: 1, kind: input, shape index: {}]   ;;  %s1493_s0 = inlined_call_operand.vmem [shape: bf16[122,320], index: 0, kind: input, shape index: {}]   ;;  %s1494_s2 = inlined_call_operand.vmem [shape: f32[1,64], index: 2, kind: input, shape index: {}]   ;;  %s1495_s3 = inlined_call_operand.vmem [shape: f32[1,64], index: 3, kind: input, shape index: {}]   ;;  %s1496_s4 = inlined_call_operand.vmem [shape: f32[1,64], index: 4, kind: input, shape index: {}]   ;;  %s1497_s5 = inlined_call_operand.vmem [shape: bf16[122,64], index: 5, kind: output, shape index: {}]  }
   0x1   :  { %v1021_v0 = vld [vmem:[%s1492_s1 + $0x40] sm:$0xff]   ;;  %v1023_v2 = vld [vmem:[%s1492_s1 + $0x48] sm:$0xff]   ;;  %v1025_v4 = vld [vmem:[%s1492_s1 + $0x50] sm:$0xff]  }
   0x2   :  { %v1022_v1 = vld [vmem:[%s1492_s1] sm:$0xff]   ;;  %905 = vmatprep.subr.bf16.mxu0 %v1021_v0  ;;  %1005 = vmatprep.subr.bf16.mxu1 %v1021_v0  ;;  %v1024_v3 = vld [vmem:[%s1492_s1 + $0x8] sm:$0xff]   ;;  %v1026_v5 = vld [vmem:[%s1492_s1 + $0x10] sm:$0xff]  }
   0x3   :  { %906 = vmatpush3.bf16.msra.mxu0 %v1022_v1  ;;  %1013 = vmatpush3.bf16.msra.mxu1 %v1022_v1  ;;  %v1027_v6 = vld [vmem:[%s1492_s1 + $0x58] sm:$0xff]   ;;  %v1029_v8 = vld [vmem:[%s1492_s1 + $0x60] sm:$0xff]   ;;  %v1031_v10 = vld [vmem:[%s1492_s1 + $0x68] sm:$0xff]  }
   0x4   :  { %907 = vmatprep.subr.bf16.mxu0 %v1023_v2  ;;  %1006 = vmatprep.subr.bf16.mxu1 %v1023_v2  ;;  %v1028_v7 = vld [vmem:[%s1492_s1 + $0x18] sm:$0xff]   ;;  %v1030_v9 = vld [vmem:[%s1492_s1 + $0x20] sm:$0xff]   ;;  %v1032_v13 = vld [vmem:[%s1492_s1 + $0x28] sm:$0xff]  }
   0x5   :  { %v1039_v11 = vld [vmem:[%s1493_s0 + $0x4] ss:$12 sps:$4 sm:$0xff]   ;;  %v1042_v12 = vld [vmem:[%s1493_s0 + $0x94] ss:$12 sps:$4 sm:$0xff]   ;;  %v1035_v16 = vld [vmem:[%s1492_s1 + $0x78] sm:$0xff]  }
   0x6   :  { %v1033_v14 = vld [vmem:[%s1492_s1 + $0x70] sm:$0xff]   ;;  %397 = vmatprep.mubr.bf16.mxu0 %v1039_v11  ;;  %445 = vmatprep.mubr.bf16.mxu1 %v1042_v12  ;;  %v1036_v17 = vld [vmem:[%s1492_s1 + $0x38] sm:$0xff]   ;;  %v1043_v18 = vld [vmem:[%s1492_s1 + $0x80] sm:$0xff]  }
   0x7   :  { %908 = vmatpush3.bf16.msra.mxu0 %v1024_v3  ;;  %1014 = vmatpush3.bf16.msra.mxu1 %v1024_v3  ;;  %v1034_v15 = vld [vmem:[%s1492_s1 + $0x30] sm:$0xff]   ;;  %v1037_v19 = vld [vmem:[%s1493_s0] ss:$12 sps:$4 sm:$0xff]   ;;  %v1045_v22 = vld [vmem:[%s1493_s0 + $0x1c] ss:$12 sps:$4 sm:$0xff]  }
   0x8   :  { %909 = vmatprep.subr.bf16.mxu0 %v1025_v4  ;;  %1007 = vmatprep.subr.bf16.mxu1 %v1025_v4  ;;  %v1040_v20 = vld [vmem:[%s1493_s0 + $0x90] ss:$12 sps:$4 sm:$0xff]   ;;  %v1044_v21 = vld [vmem:[%s1492_s1 + $0x88] sm:$0xff]   ;;  %v1049_v25 = vld [vmem:[%s1493_s0 + $0x18] ss:$12 sps:$4 sm:$0xff]  }
   0x9   :  { %v1047_v23 = vld [vmem:[%s1493_s0 + $0xac] ss:$12 sps:$4 sm:$0x1f]   ;;  %v1051_v24 = vld [vmem:[%s1492_s1 + $0x90] sm:$0xff]   ;;  %v1068_v40 = vld [vmem:[%s1493_s0 + $0x7c] ss:$12 sps:$4 sm:$0xff]  }
   0xa   :  { %v1050_v26 = vld [vmem:[%s1493_s0 + $0xa8] ss:$12 sps:$4 sm:$0x1f]   ;;  %v1052_v28 = vld [vmem:[%s1492_s1 + $0x98] sm:$0xff]   ;;  %v1057_v31 = vld [vmem:[%s1493_s0 + $0x20] ss:$12 sps:$4 sm:$0xff]  }
   0xb   :  { %910 = vmatpush3.bf16.msra.mxu0 %v1026_v5  ;;  %1015 = vmatpush3.bf16.msra.mxu1 %v1026_v5  ;;  %v1053_v27 = vld [vmem:[%s1493_s0 + $0x34] ss:$12 sps:$4 sm:$0xff]   ;;  %v1056_v30 = vld [vmem:[%s1493_s0 + $0x30] ss:$12 sps:$4 sm:$0xff]   ;;  %v1058_v32 = vld [vmem:[%s1493_s0 + $0x4c] ss:$12 sps:$4 sm:$0xff]  }
   0xc   :  { %911 = vmatprep.subr.bf16.mxu0 %v1027_v6  ;;  %1008 = vmatprep.subr.bf16.mxu1 %v1027_v6  ;;  %v1055_v29 = vld [vmem:[%s1493_s0 + $0x8] ss:$12 sps:$4 sm:$0xff]   ;;  %v1060_v33 = vld [vmem:[%s1493_s0 + $0x38] ss:$12 sps:$4 sm:$0xff]   ;;  %v1062_v35 = vld [vmem:[%s1493_s0 + $0x50] ss:$12 sps:$4 sm:$0xff]  }
   0xd   :  { %v1061_v34 = vld [vmem:[%s1493_s0 + $0x48] ss:$12 sps:$4 sm:$0xff]   ;;  %v1063_v36 = vld [vmem:[%s1493_s0 + $0x64] ss:$12 sps:$4 sm:$0xff]   ;;  %v1066_v38 = vld [vmem:[%s1493_s0 + $0x60] ss:$12 sps:$4 sm:$0xff]  }
   0xe   :  { %v1065_v37 = vld [vmem:[%s1493_s0 + $0x68] ss:$12 sps:$4 sm:$0xff]   ;;  %v1067_v39 = vld [vmem:[%s1493_s0 + $0x80] ss:$12 sps:$4 sm:$0xff]   ;;  %v1070_v41 = vld [vmem:[%s1493_s0 + $0x98] ss:$12 sps:$4 sm:$0xff]  }
   0xf   :  { %912 = vmatpush3.bf16.msra.mxu0 %v1028_v7  ;;  %1016 = vmatpush3.bf16.msra.mxu1 %v1028_v7  ;;  %v1071_v42 = vld [vmem:[%s1493_s0 + $0x78] ss:$12 sps:$4 sm:$0xff]   ;;  %v1072_v43 = vld [vmem:[%s1493_s0 + $0xb0] ss:$12 sps:$4 sm:$0x1f]  }
  0x10   :  { %913 = vmatprep.subr.bf16.mxu0 %v1029_v8  ;;  %1009 = vmatprep.subr.bf16.mxu1 %v1029_v8  ;;  %v1256_v4 = vld [vmem:[%s1494_s2] ss:$0 sm:$0xff] }
  0x13   :  { %914 = vmatpush3.bf16.msra.mxu0 %v1030_v9  ;;  %1017 = vmatpush3.bf16.msra.mxu1 %v1030_v9 }
  0x14   :  { %915 = vmatprep.subr.bf16.mxu0 %v1031_v10  ;;  %1010 = vmatprep.subr.bf16.mxu1 %v1031_v10 }
  0x17   :  { %916 = vmatpush3.bf16.msra.mxu0 %v1032_v13  ;;  %1018 = vmatpush3.bf16.msra.mxu1 %v1032_v13 }
  0x18   :  { %917 = vmatprep.subr.bf16.mxu0 %v1033_v14  ;;  %1011 = vmatprep.subr.bf16.mxu1 %v1033_v14 }
  0x1b   :  { %918 = vmatpush3.bf16.msra.mxu0 %v1034_v15  ;;  %1019 = vmatpush3.bf16.msra.mxu1 %v1034_v15 }
  0x1c   :  { %919 = vmatprep.subr.bf16.mxu0 %v1035_v16  ;;  %1012 = vmatprep.subr.bf16.mxu1 %v1035_v16 }
  0x1f   :  { %920 = vmatpush3.bf16.msra.mxu0 %v1036_v17  ;;  %1020 = vmatpush3.bf16.msra.mxu1 %v1036_v17 }
  0x20   :  { %981 = vmatprep.subr.bf16.mxu1 %v1043_v18 }
  0x22   :  { %398 = vmatmul.mubr.bf16.vlgmr.msra.gmra.mrb[0].mxu0 %v1037_v19  ;;  %446 = vmatmul.mubr.bf16.vlgmr.msra.gmra.mrb[0].mxu1 %v1040_v20 }
  0x23   :  { %982 = vmatpush3.bf16.msra.mxu1 %v1043_v18  ;;  %405 = vmatprep.mubr.bf16.mxu0 %v1045_v22 }
  0x24   :  { %983 = vmatprep.subr.bf16.mxu1 %v1044_v21  ;;  %453 = vmatprep.mubr.bf16.mxu1 %v1047_v23 }
  0x27   :  { %984 = vmatpush3.bf16.msra.mxu1 %v1044_v21 }
  0x28   :  { %985 = vmatprep.subr.bf16.mxu1 %v1051_v24 }
  0x2a   :  { %406 = vmatmul.mubr.bf16.gmra.mrb[4].mxu0 %v1049_v25  ;;  %454 = vmatmul.mubr.bf16.gmra.mrb[4].mxu1 %v1050_v26 }
  0x2b   :  { %986 = vmatpush3.bf16.msra.mxu1 %v1051_v24  ;;  %413 = vmatprep.mubr.bf16.mxu0 %v1053_v27 }
  0x2c   :  { %987 = vmatprep.subr.bf16.mxu1 %v1052_v28  ;;  %989 = vmatprep.mubr.msk.bf16.mxu1 %vm340_vm0, %v1055_v29 }
  0x2f   :  { %988 = vmatpush3.bf16.msra.mxu1 %v1052_v28 }
  0x32   :  { %414 = vmatmul.mubr.bf16.gmra.mrb[8].mxu0 %v1056_v30  ;;  %990 = vmatmul.mubr.msk.bf16.vlgmr.msra.gmra.mrb[8].mxu1 %vm340_vm0, %v1057_v31 }
  0x33   :  { %421 = vmatprep.mubr.bf16.mxu0 %v1058_v32  ;;  %993 = vmatprep.mubr.msk.bf16.mxu1 %vm340_vm0, %v1060_v33 }
  0x3a   :  { %422 = vmatmul.mubr.bf16.gmra.mrb[12].mxu0 %v1061_v34  ;;  %994 = vmatmul.mubr.msk.bf16.gmra.mrb[12].mxu1 %vm340_vm0, %v1062_v35 }
  0x3b   :  { %429 = vmatprep.mubr.bf16.mxu0 %v1063_v36  ;;  %997 = vmatprep.mubr.msk.bf16.mxu1 %vm340_vm0, %v1065_v37 }
  0x42   :  { %430 = vmatmul.mubr.bf16.gmra.mrb[16].mxu0 %v1066_v38  ;;  %998 = vmatmul.mubr.msk.bf16.gmra.mrb[16].mxu1 %vm340_vm0, %v1067_v39 }
  0x43   :  { %437 = vmatprep.mubr.bf16.mxu0 %v1068_v40  ;;  %1001 = vmatprep.mubr.msk.bf16.mxu1 %vm340_vm0, %v1070_v41 }
  0x4a   :  { %438 = vmatmul.mubr.bf16.gmra.mrb[20].mxu0 %v1071_v42  ;;  %1002 = vmatmul.mubr.msk.bf16.gmra.mrb[20].mxu1 %vm340_vm0, %v1072_v43 }
  0xf5   :  { %v921_v44 = vpop.f32.mrb[0].mxu0  ;;  %v957_v45 = vpop.f32.mrb[0].mxu1 }
  0xf6   :  { %v922_v46 = vpop.f32.mrb[1].mxu0  ;;  %v958_v47 = vpop.f32.mrb[1].mxu1 }
  0xf7   :  { %v923_v48 = vadd.f32 %v922_v46, %v921_v44  ;;  %v924_v49 = vpop.f32.mrb[2].mxu0  ;;  %v1245_v50 = vadd.f32 %v958_v47, %v957_v45  ;;  %v960_v51 = vpop.f32.mrb[2].mxu1 }
  0xf8   :  { %v925_v52 = vpop.f32.mrb[3].mxu0  ;;  %v961_v53 = vpop.f32.mrb[3].mxu1 }
  0xf9   :  { %v926_v54 = vadd.f32 %v925_v52, %v924_v49  ;;  %v1247_v55 = vadd.f32 %v961_v53, %v960_v51  ;;  %v400_v8 = vadd.f32 %v923_v48, %v1256_v4 }
  0xfb   :  { %v403_v17 = vadd.f32 %v926_v54, %v1256_v4 }
  0xfd   :  { %v927_v56 = vpop.f32.mrb[4].mxu0  ;;  %v963_v57 = vpop.f32.mrb[4].mxu1 }
  0xfe   :  { %v928_v58 = vpop.f32.mrb[5].mxu0  ;;  %v964_v59 = vpop.f32.mrb[5].mxu1 }
  0xff   :  { %v929_v60 = vadd.f32 %v928_v58, %v927_v56  ;;  %v930_v61 = vpop.f32.mrb[6].mxu0  ;;  %v1249_v62 = vadd.f32 %v964_v59, %v963_v57  ;;  %v966_v63 = vpop.f32.mrb[6].mxu1 }
 0x100   :  { %v931_v0 = vpop.f32.mrb[7].mxu0  ;;  %v967_v1 = vpop.f32.mrb[7].mxu1 }
 0x101   :  { %v932_v2 = vadd.f32 %v931_v0, %v930_v61  ;;  %v1251_v3 = vadd.f32 %v967_v1, %v966_v63  ;;  %v408_v5 = vadd.f32 %v929_v60, %v1256_v4 }
 0x103   :  { %v411_v12 = vadd.f32 %v932_v2, %v1256_v4 }
 0x105   :  { %v933_v6 = vpop.f32.mrb[8].mxu0  ;;  %v991_v7 = vpop.f32.mrb[8].mxu1 }
 0x106   :  { %v1260_v9 = vadd.f32 %v991_v7, %v408_v5  ;;  %v934_v10 = vpop.f32.mrb[9].mxu0  ;;  %v496_v11 = vpop.f32.mrb[9].mxu1 }
 0x107   :  { %v935_v13 = vadd.f32 %v934_v10, %v933_v6  ;;  %v1263_v14 = vadd.f32 %v496_v11, %v400_v8  ;;  %v936_v15 = vpop.f32.mrb[10].mxu0  ;;  %v992_v16 = vpop.f32.mrb[10].mxu1  ;;  %v456_v11 = vadd.f32 %v1249_v62, %v1256_v4 }
 0x108   :  { %v1266_v18 = vadd.f32 %v992_v16, %v411_v12  ;;  %v937_v19 = vpop.f32.mrb[11].mxu0  ;;  %v499_v20 = vpop.f32.mrb[11].mxu1  ;;  %v562_v26 = vsel %vm340_vm0, %v1260_v9, 0.0 }
 0x109   :  { %v938_v21 = vadd.f32 %v937_v19, %v936_v15  ;;  %v1268_v22 = vadd.f32 %v499_v20, %v403_v17  ;;  %v559_v23 = vsel %vm340_vm0, %v1263_v14, 0.0  ;;  %v416_v29 = vadd.f32 %v935_v13, %v1256_v4 }
 0x10a   :  { %v564_v33 = vsel %vm340_vm0, %v1266_v18, 0.0  ;;  %v448_v17 = vadd.f32 %v1245_v50, %v1256_v4 }
 0x10b   :  { %v560_v24 = vsel %vm340_vm0, %v1268_v22, 0.0  ;;  %v419_v38 = vadd.f32 %v938_v21, %v1256_v4 }
 0x10c   :  { %v561_v25 = vadd.f32 %v560_v24, %v559_v23  ;;  %v459_v24 = vadd.f32 %v1251_v3, %v1256_v4 }
 0x10d   :  { %v939_v27 = vpop.f32.mrb[12].mxu0  ;;  %v995_v28 = vpop.f32.mrb[12].mxu1 }
 0x10e   :  { %v563_v30 = vadd.f32 %v562_v26, %v561_v25  ;;  %v940_v31 = vpop.f32.mrb[13].mxu0  ;;  %v512_v32 = vpop.f32.mrb[13].mxu1 }
 0x10f   :  { %v941_v34 = vadd.f32 %v940_v31, %v939_v27  ;;  %v1279_v35 = vadd.f32 %v512_v32, %v416_v29  ;;  %v942_v36 = vpop.f32.mrb[14].mxu0  ;;  %v996_v37 = vpop.f32.mrb[14].mxu1  ;;  %v451_v29 = vadd.f32 %v1247_v55, %v1256_v4 }
 0x110   :  { %v565_v39 = vadd.f32 %v564_v33, %v563_v30  ;;  %v943_v40 = vpop.f32.mrb[15].mxu0  ;;  %v515_v41 = vpop.f32.mrb[15].mxu1 }
 0x111   :  { %v424_v42 = vadd.f32 %v941_v34, %v1256_v4  ;;  %v566_v43 = vsel %vm340_vm0, %v1279_v35, 0.0  ;;  %v944_v44 = vadd.f32 %v943_v40, %v942_v36  ;;  %v1285_v45 = vadd.f32 %v515_v41, %v419_v38 }
 0x112   :  { %v567_v46 = vadd.f32 %v566_v43, %v565_v39 }
 0x113   :  { %v1287_v47 = vadd.f32 %v995_v28, %v424_v42  ;;  %v427_v48 = vadd.f32 %v944_v44, %v1256_v4  ;;  %v568_v49 = vsel %vm340_vm0, %v1285_v45, 0.0 }
 0x114   :  { %v569_v51 = vadd.f32 %v568_v49, %v567_v46 }
 0x115   :  { %v1292_v52 = vadd.f32 %v996_v37, %v427_v48  ;;  %v570_v53 = vsel %vm340_vm0, %v1287_v47, 0.0  ;;  %v945_v54 = vpop.f32.mrb[16].mxu0  ;;  %v999_v56 = vpop.f32.mrb[16].mxu1 }
 0x116   :  { %v571_v57 = vadd.f32 %v570_v53, %v569_v51  ;;  %v946_v58 = vpop.f32.mrb[17].mxu0  ;;  %v528_v59 = vpop.f32.mrb[17].mxu1 }
 0x117   :  { %v947_v60 = vadd.f32 %v946_v58, %v945_v54  ;;  %v948_v61 = vpop.f32.mrb[18].mxu0  ;;  %v572_v63 = vsel %vm340_vm0, %v1292_v52, 0.0  ;;  %v1000_v0 = vpop.f32.mrb[18].mxu1 }
 0x118   :  { %v949_v1 = vpop.f32.mrb[19].mxu0  ;;  %v573_v2 = vadd.f32 %v572_v63, %v571_v57  ;;  %v531_v5 = vpop.f32.mrb[19].mxu1 }
 0x119   :  { %v950_v6 = vadd.f32 %v949_v1, %v948_v61  ;;  %v432_v7 = vadd.f32 %v947_v60, %v1256_v4 }
 0x11b   :  { %v529_v8 = vadd.f32 %v528_v59, %v432_v7  ;;  %v435_v10 = vadd.f32 %v950_v6, %v1256_v4 }
 0x11d   :  { %v574_v12 = vsel %vm340_vm0, %v529_v8, 0.0  ;;  %v532_v13 = vadd.f32 %v531_v5, %v435_v10  ;;  %v951_v15 = vpop.f32.mrb[20].mxu0  ;;  %v1003_v16 = vpop.f32.mrb[20].mxu1 }
 0x11e   :  { %v575_v19 = vadd.f32 %v574_v12, %v573_v2  ;;  %v553_v20 = vadd.f32 %v1003_v16, %v456_v11  ;;  %v952_v21 = vpop.f32.mrb[21].mxu0  ;;  %v544_v23 = vpop.f32.mrb[21].mxu1 }
 0x11f   :  { %v576_v25 = vsel %vm340_vm0, %v532_v13, 0.0  ;;  %v953_v26 = vadd.f32 %v952_v21, %v951_v15  ;;  %v545_v27 = vadd.f32 %v544_v23, %v448_v17  ;;  %v954_v62 = vpop.f32.mrb[22].mxu0  ;;  %v1004_v28 = vpop.f32.mrb[22].mxu1 }
 0x120   :  { %v577_v30 = vadd.f32 %v576_v25, %v575_v19  ;;  %v556_v31 = vadd.f32 %v1004_v28, %v459_v24  ;;  %v955_v32 = vpop.f32.mrb[23].mxu0  ;;  %v547_v50 = vpop.f32.mrb[23].mxu1  ;;  %v586_v48 = vsel %vm340_vm0, %v553_v20, 0.0 }
 0x121   :  { %v440_v33 = vadd.f32 %v953_v26, %v1256_v4  ;;  %v956_v34 = vadd.f32 %v955_v32, %v954_v62  ;;  %v548_v36 = vadd.f32 %v547_v50, %v451_v29  ;;  %v582_v55 = vsel %vm340_vm0, %v545_v27, 0.0 }
 0x122   :  { %v589_v51 = vsel %vm588_vm1, %v556_v31, 0.0 }
 0x123   :  { %v537_v37 = vadd.f32 %v999_v56, %v440_v33  ;;  %v443_v3 = vadd.f32 %v956_v34, %v1256_v4  ;;  %v584_v44 = vsel %vm340_vm0, %v548_v36, 0.0 }
 0x125   :  { %v578_v38 = vsel %vm340_vm0, %v537_v37, 0.0  ;;  %v540_v39 = vadd.f32 %v1000_v0, %v443_v3 }
 0x126   :  { %v579_v40 = vadd.f32 %v578_v38, %v577_v30 }
 0x127   :  { %v580_v41 = vsel %vm340_vm0, %v540_v39, 0.0 }
 0x128   :  { %v581_v42 = vadd.f32 %v580_v41, %v579_v40 }
 0x12a   :  { %v583_v43 = vadd.f32 %v582_v55, %v581_v42 }
 0x12c   :  { %v585_v46 = vadd.f32 %v584_v44, %v583_v43 }
 0x12e   :  { %v587_v49 = vadd.f32 %v586_v48, %v585_v46 }
 0x130   :  { %v590_v4 = vadd.f32 %v589_v51, %v587_v49 }
 0x132   :  { %v591_v53 = vrot.slane %v590_v4, 4 }
 0x134   :  { %v592_v54 = vadd.f32 %v591_v53, %v590_v4 }
 0x136   :  { %v593_v56 = vrot.slane %v592_v54, 2 }
 0x138   :  { %v594_v57 = vadd.f32 %v593_v56, %v592_v54 }
 0x13a   :  { %v595_v58 = vrot.slane %v594_v57, 1 }
 0x13c   :  { %v596_v59 = vadd.f32 %v595_v58, %v594_v57 }
 0x13e   :  { %v597_v60 = vmul.f32 0.008196721, %v596_v59 }
 0x140   :  { %v1319_v61 = vsub.f32 %v1263_v14, %v597_v60  ;;  %v1322_v63 = vsub.f32 %v1268_v22, %v597_v60  ;;  %v1325_v0 = vsub.f32 %v1260_v9, %v597_v60  ;;  %v1328_v1 = vsub.f32 %v1266_v18, %v597_v60 }
 0x141   :  { %v1331_v2 = vsub.f32 %v1279_v35, %v597_v60  ;;  %v1334_v5 = vsub.f32 %v1285_v45, %v597_v60  ;;  %v1337_v6 = vsub.f32 %v1287_v47, %v597_v60  ;;  %v1340_v14 = vsub.f32 %v1292_v52, %v597_v60 }
 0x142   :  { %v1342_v22 = vsub.f32 %v529_v8, %v597_v60  ;;  %v1344_v7 = vsub.f32 %v532_v13, %v597_v60  ;;  %v1346_v9 = vsub.f32 %v537_v37, %v597_v60  ;;  %v1348_v18 = vsub.f32 %v540_v39, %v597_v60 }
 0x143   :  { %v1350_v10 = vsub.f32 %v545_v27, %v597_v60  ;;  %v1352_v35 = vsub.f32 %v548_v36, %v597_v60  ;;  %v1354_v45 = vsub.f32 %v553_v20, %v597_v60  ;;  %v1356_v11 = vsub.f32 %v556_v31, %v597_v60 }
 0x144   :  { %v614_v47 = vmul.f32 %v1319_v61, %v1319_v61  ;;  %v615_v52 = vmul.f32 %v1322_v63, %v1322_v63  ;;  %v616_v8 = vmul.f32 %v1325_v0, %v1325_v0  ;;  %v617_v12 = vmul.f32 %v1328_v1, %v1328_v1 }
 0x145   :  { %v618_v17 = vmul.f32 %v1331_v2, %v1331_v2  ;;  %v619_v21 = vmul.f32 %v1334_v5, %v1334_v5  ;;  %v620_v25 = vmul.f32 %v1337_v6, %v1337_v6  ;;  %v621_v62 = vmul.f32 %v1340_v14, %v1340_v14 }
 0x146   :  { %v630_v13 = vsel %vm340_vm0, %v614_v47, 0.0  ;;  %v631_v15 = vsel %vm340_vm0, %v615_v52, 0.0  ;;  %v633_v19 = vsel %vm340_vm0, %v616_v8, 0.0  ;;  %v635_v23 = vsel %vm340_vm0, %v617_v12, 0.0 }
 0x147   :  { %v632_v16 = vadd.f32 %v631_v15, %v630_v13  ;;  %v637_v26 = vsel %vm340_vm0, %v618_v17, 0.0  ;;  %v639_v28 = vsel %vm340_vm0, %v619_v21, 0.0  ;;  %v622_v30 = vmul.f32 %v1342_v22, %v1342_v22 }
 0x148   :  { %v641_v31 = vsel %vm340_vm0, %v620_v25, 0.0  ;;  %v623_v50 = vmul.f32 %v1344_v7, %v1344_v7  ;;  %v643_v33 = vsel %vm340_vm0, %v621_v62, 0.0  ;;  %v624_v36 = vmul.f32 %v1346_v9, %v1346_v9 }
 0x149   :  { %v634_v20 = vadd.f32 %v633_v19, %v632_v16  ;;  %v645_v37 = vsel %vm340_vm0, %v622_v30, 0.0  ;;  %v625_v38 = vmul.f32 %v1348_v18, %v1348_v18  ;;  %v626_v41 = vmul.f32 %v1350_v10, %v1350_v10 }
 0x14a   :  { %v647_v39 = vsel %vm340_vm0, %v623_v50, 0.0  ;;  %v649_v42 = vsel %vm340_vm0, %v624_v36, 0.0  ;;  %v627_v43 = vmul.f32 %v1352_v35, %v1352_v35  ;;  %v628_v48 = vmul.f32 %v1354_v45, %v1354_v45  ;;  %v872_v50 = vld [vmem:[%s1496_s4] ss:$0 sm:$0xff] }
 0x14b   :  { %v636_v24 = vadd.f32 %v635_v23, %v634_v20  ;;  %v651_v44 = vsel %vm340_vm0, %v625_v38, 0.0  ;;  %v653_v49 = vsel %vm340_vm0, %v626_v41, 0.0  ;;  %v629_v4 = vmul.f32 %v1356_v11, %v1356_v11  ;;  %v668_v20 = vld [vmem:[%s1495_s3] sm:$0x1] }
 0x14c   :  { %v655_v53 = vsel %vm340_vm0, %v627_v43, 0.0  ;;  %v657_v56 = vsel %vm340_vm0, %v628_v48, 0.0  ;;  %v673_v17 = vlaneseq }
 0x14d   :  { %v638_v27 = vadd.f32 %v637_v26, %v636_v24  ;;  %v659_v58 = vsel %vm588_vm1, %v629_v4, 0.0 }
 0x14e   :  { %v674_v19 = vshrl.u32 %v673_v17, 7 }
 0x14f   :  { %v640_v29 = vadd.f32 %v639_v28, %v638_v27 }
 0x150   :  { %v675_v21 = vsub.s32 0, %v674_v19 }
 0x151   :  { %v642_v32 = vadd.f32 %v641_v31, %v640_v29 }
 0x153   :  { %v644_v34 = vadd.f32 %v643_v33, %v642_v32 }
 0x155   :  { %v646_v3 = vadd.f32 %v645_v37, %v644_v34 }
 0x157   :  { %v648_v40 = vadd.f32 %v647_v39, %v646_v3 }
 0x159   :  { %v650_v55 = vadd.f32 %v649_v42, %v648_v40 }
 0x15b   :  { %v652_v46 = vadd.f32 %v651_v44, %v650_v55 }
 0x15d   :  { %v654_v51 = vadd.f32 %v653_v49, %v652_v46 }
 0x15f   :  { %v656_v54 = vadd.f32 %v655_v53, %v654_v51 }
 0x161   :  { %v658_v57 = vadd.f32 %v657_v56, %v656_v54 }
 0x163   :  { %v660_v59 = vadd.f32 %v659_v58, %v658_v57 }
 0x165   :  { %v661_v60 = vrot.slane %v660_v59, 4 }
 0x167   :  { %v662_v47 = vadd.f32 %v661_v60, %v660_v59 }
 0x169   :  { %v663_v52 = vrot.slane %v662_v47, 2 }
 0x16b   :  { %v664_v8 = vadd.f32 %v663_v52, %v662_v47 }
 0x16d   :  { %v665_v12 = vrot.slane %v664_v8, 1 }
 0x16f   :  { %v666_v13 = vadd.f32 %v665_v12, %v664_v8 }
 0x171   :  { %v667_v15 = vmul.f32 0.008196721, %v666_v13 }
 0x173   :  { %v669_v16 = vadd.f32 1e-05, %v667_v15 }
 0x175   :  { %1073 = vrsqrt.f32 %v669_v16 }
 0x17f   :  { %v1074_v23 = vpop.eup %1073 }
 0x180   :  { %v671_v24 = vmul.f32 %v1074_v23, %v668_v20 }
 0x182   :  { %v676_v25 = vrot.slane %v671_v24, %v675_v21 }
 0x184   :  { %v678_v26 = vmul.f32 %v676_v25, %v1319_v61  ;;  %v679_v27 = vmul.f32 %v676_v25, %v1322_v63  ;;  %v680_v62 = vmul.f32 %v676_v25, %v1325_v0  ;;  %v681_v28 = vmul.f32 %v676_v25, %v1328_v1 }
 0x185   :  { %v682_v29 = vmul.f32 %v676_v25, %v1331_v2  ;;  %v683_v30 = vmul.f32 %v676_v25, %v1334_v5  ;;  %v684_v31 = vmul.f32 %v676_v25, %v1337_v6  ;;  %v685_v32 = vmul.f32 %v676_v25, %v1340_v14 }
 0x186   :  { %v686_v61 = vmul.f32 %v676_v25, %v1342_v22  ;;  %v687_v63 = vmul.f32 %v676_v25, %v1344_v7  ;;  %v688_v0 = vmul.f32 %v676_v25, %v1346_v9  ;;  %v689_v1 = vmul.f32 %v676_v25, %v1348_v18 }
 0x187   :  { %v690_v2 = vmul.f32 %v676_v25, %v1350_v10  ;;  %v691_v5 = vmul.f32 %v676_v25, %v1352_v35  ;;  %v692_v6 = vmul.f32 %v676_v25, %v1354_v45  ;;  %v693_v14 = vmul.f32 %v676_v25, %v1356_v11 }
 0x188   :  { %v701_v33 = vadd.f32 %v872_v50, %v678_v26  ;;  %v702_v34 = vadd.f32 %v872_v50, %v679_v27  ;;  %v703_v36 = vadd.f32 %v872_v50, %v680_v62  ;;  %v704_v37 = vadd.f32 %v872_v50, %v681_v28 }
 0x189   :  { %v705_v22 = vadd.f32 %v872_v50, %v682_v29  ;;  %v706_v3 = vadd.f32 %v872_v50, %v683_v30  ;;  %v707_v7 = vadd.f32 %v872_v50, %v684_v31  ;;  %v708_v38 = vadd.f32 %v872_v50, %v685_v32 }
 0x18a   :  { %v709_v9 = vadd.f32 %v872_v50, %v686_v61  ;;  %v710_v39 = vadd.f32 %v872_v50, %v687_v63  ;;  %v711_v18 = vadd.f32 %v872_v50, %v688_v0  ;;  %v712_v40 = vadd.f32 %v872_v50, %v689_v1 }
 0x18b   :  { %v713_v10 = vadd.f32 %v872_v50, %v690_v2  ;;  %v714_v35 = vadd.f32 %v872_v50, %v691_v5  ;;  %v715_v41 = vadd.f32 %v872_v50, %v692_v6  ;;  %v716_v45 = vadd.f32 %v872_v50, %v693_v14 }
 0x18c   :  { %v717_v42 = vmax.f32 %v701_v33, 0.0  ;;  %v718_v11 = vmax.f32 %v702_v34, 0.0  ;;  %v719_v55 = vmax.f32 %v703_v36, 0.0  ;;  %v720_v43 = vmax.f32 %v704_v37, 0.0 }
 0x18d   :  { %v721_v44 = vmax.f32 %v705_v22, 0.0  ;;  %v722_v46 = vmax.f32 %v706_v3, 0.0  ;;  %v723_v48 = vmax.f32 %v707_v7, 0.0  ;;  %v724_v49 = vmax.f32 %v708_v38, 0.0 }
 0x18e   :  { %v725_v51 = vmax.f32 %v709_v9, 0.0  ;;  %v726_v4 = vmax.f32 %v710_v39, 0.0  ;;  %v727_v53 = vmax.f32 %v711_v18, 0.0  ;;  %v728_v54 = vmax.f32 %v712_v40, 0.0 }
 0x18f   :  { %v729_v56 = vmax.f32 %v713_v10, 0.0  ;;  %v730_v57 = vmax.f32 %v714_v35, 0.0  ;;  %v731_v58 = vmax.f32 %v715_v41, 0.0  ;;  %v732_v59 = vmax.f32 %v716_v45, 0.0 }
 0x190   :  { %v889_v60 = vpack.c.bf16 %v717_v42, %v717_v42  ;;  %v890_v47 = vpack.c.bf16 %v718_v11, %v718_v11  ;;  %v891_v52 = vpack.c.bf16 %v719_v55, %v719_v55  ;;  %v892_v8 = vpack.c.bf16 %v720_v43, %v720_v43 }
 0x191   :  { %v893_v12 = vpack.c.bf16 %v721_v44, %v721_v44  ;;  %v894_v13 = vpack.c.bf16 %v722_v46, %v722_v46  ;;  %v895_v15 = vpack.c.bf16 %v723_v48, %v723_v48  ;;  %v896_v16 = vpack.c.bf16 %v724_v49, %v724_v49 }
 0x192   :  { %v897_v17 = vpack.c.bf16 %v725_v51, %v725_v51  ;;  %v898_v19 = vpack.c.bf16 %v726_v4, %v726_v4  ;;  %v899_v20 = vpack.c.bf16 %v727_v53, %v727_v53  ;;  %v900_v21 = vpack.c.bf16 %v728_v54, %v728_v54  ;;  %798 = vst.msk [vmem:[%s1497_s5] sm:$0xf] %vm797_vm2, %v889_v60 }
 0x193   :  { %799 = vst.msk [vmem:[%s1497_s5 + $0x4] sm:$0xf] %vm797_vm2, %v890_v47  ;;  %800 = vst.msk [vmem:[%s1497_s5 + $0x8] sm:$0xf] %vm797_vm2, %v891_v52  ;;  %v901_v23 = vpack.c.bf16 %v729_v56, %v729_v56  ;;  %v902_v24 = vpack.c.bf16 %v730_v57, %v730_v57  ;;  %v903_v25 = vpack.c.bf16 %v731_v58, %v731_v58 }
 0x194   :  { %801 = vst.msk [vmem:[%s1497_s5 + $0xc] sm:$0xf] %vm797_vm2, %v892_v8  ;;  %v904_v26 = vpack.c.bf16 %v732_v59, %v732_v59  ;;  %802 = vst.msk [vmem:[%s1497_s5 + $0x10] sm:$0xf] %vm797_vm2, %v893_v12 }
 0x195   :  { %803 = vst.msk [vmem:[%s1497_s5 + $0x14] sm:$0xf] %vm797_vm2, %v894_v13  ;;  %804 = vst.msk [vmem:[%s1497_s5 + $0x18] sm:$0xf] %vm797_vm2, %v895_v15 }
 0x196   :  { %805 = vst.msk [vmem:[%s1497_s5 + $0x1c] sm:$0xf] %vm797_vm2, %v896_v16  ;;  %806 = vst.msk [vmem:[%s1497_s5 + $0x20] sm:$0xf] %vm797_vm2, %v897_v17 }
 0x197   :  { %807 = vst.msk [vmem:[%s1497_s5 + $0x24] sm:$0xf] %vm797_vm2, %v898_v19  ;;  %808 = vst.msk [vmem:[%s1497_s5 + $0x28] sm:$0xf] %vm797_vm2, %v899_v20 }
 0x198   :  { %809 = vst.msk [vmem:[%s1497_s5 + $0x2c] sm:$0xf] %vm797_vm2, %v900_v21  ;;  %810 = vst.msk [vmem:[%s1497_s5 + $0x30] sm:$0xf] %vm797_vm2, %v901_v23 }
 0x199   :  { %811 = vst.msk [vmem:[%s1497_s5 + $0x34] sm:$0xf] %vm797_vm2, %v902_v24  ;;  %812 = vst.msk [vmem:[%s1497_s5 + $0x38] sm:$0xf] %vm797_vm2, %v903_v25 }
 0x19a   :  { %814 = vst.msk [vmem:[%s1497_s5 + $0x3c] sm:$0x1] %vm813_vm3, %v904_v26 }

// kernel: df_forward.11
= control target key start
LH: loop header
LB: loop body
LE: loop exit
PB: predicated region body
PF: predicated region fallthrough
CT: control target
= control target key end

     0   :  { %vm264_vm0 = vcmask 523264   ;;  %vm420_vm1 = vcmask 521216   ;;  %vm541_vm2 = vcmask 519168   ;;  %vm549_vm3 = vcmask 518144   ;;  %s898_s1 = inlined_call_operand.vmem [shape: bf16[320,64], index: 1, kind: input, shape index: {}]   ;;  %s899_s0 = inlined_call_operand.vmem [shape: bf16[62,320], index: 0, kind: input, shape index: {}]   ;;  %s900_s2 = inlined_call_operand.vmem [shape: f32[1,64], index: 2, kind: input, shape index: {}]   ;;  %s901_s3 = inlined_call_operand.vmem [shape: f32[1,64], index: 3, kind: input, shape index: {}]   ;;  %s902_s4 = inlined_call_operand.vmem [shape: f32[1,64], index: 4, kind: input, shape index: {}]   ;;  %s903_s5 = inlined_call_operand.vmem [shape: bf16[62,64], index: 5, kind: output, shape index: {}]  }
   0x1   :  { %v673_v0 = vld [vmem:[%s898_s1 + $0x40] sm:$0xff]   ;;  %v675_v2 = vld [vmem:[%s898_s1 + $0x48] sm:$0xff]   ;;  %v677_v4 = vld [vmem:[%s898_s1 + $0x50] sm:$0xff]  }
   0x2   :  { %v674_v1 = vld [vmem:[%s898_s1] sm:$0xff]   ;;  %609 = vmatprep.subr.bf16.mxu0 %v673_v0  ;;  %v676_v3 = vld [vmem:[%s898_s1 + $0x8] sm:$0xff]   ;;  %v678_v5 = vld [vmem:[%s898_s1 + $0x10] sm:$0xff]  }
   0x3   :  { %610 = vmatpush3.bf16.msra.mxu0 %v674_v1  ;;  %v679_v6 = vld [vmem:[%s898_s1 + $0x58] sm:$0xff]   ;;  %v684_v8 = vld [vmem:[%s898_s1 + $0x80] sm:$0xff]   ;;  %v687_v10 = vld [vmem:[%s898_s1 + $0x88] sm:$0xff]  }
   0x4   :  { %611 = vmatprep.subr.bf16.mxu0 %v675_v2  ;;  %v680_v7 = vld [vmem:[%s898_s1 + $0x18] sm:$0xff]   ;;  %v681_v9 = vld [vmem:[%s898_s1 + $0x60] sm:$0xff]   ;;  %657 = vmatprep.subr.bf16.mxu1 %v684_v8  ;;  %v683_v12 = vld [vmem:[%s898_s1 + $0x68] sm:$0xff]  }
   0x5   :  { %658 = vmatpush3.bf16.msra.mxu1 %v684_v8  ;;  %v682_v11 = vld [vmem:[%s898_s1 + $0x20] sm:$0xff]   ;;  %v690_v13 = vld [vmem:[%s898_s1 + $0x90] sm:$0xff]   ;;  %v685_v14 = vld [vmem:[%s898_s1 + $0x28] sm:$0xff]  }
   0x6   :  { %659 = vmatprep.subr.bf16.mxu1 %v687_v10  ;;  %v686_v15 = vld [vmem:[%s898_s1 + $0x70] sm:$0xff]   ;;  %v695_v17 = vld [vmem:[%s898_s1 + $0x98] sm:$0xff]   ;;  %v697_v22 = vld [vmem:[%s899_s0 + $0x20] ss:$12 sps:$4 sm:$0xff]  }
   0x7   :  { %612 = vmatpush3.bf16.msra.mxu0 %v676_v3  ;;  %v694_v16 = vld [vmem:[%s899_s0 + $0x4] ss:$12 sps:$4 sm:$0xff]   ;;  %v696_v18 = vld [vmem:[%s899_s0 + $0x8] ss:$12 sps:$4 sm:$0xff]   ;;  %v689_v20 = vld [vmem:[%s898_s1 + $0x78] sm:$0xff]  }
   0x8   :  { %613 = vmatprep.subr.bf16.mxu0 %v677_v4  ;;  %309 = vmatprep.mubr.bf16.mxu0 %v694_v16  ;;  %v688_v19 = vld [vmem:[%s898_s1 + $0x30] sm:$0xff]   ;;  %v691_v21 = vld [vmem:[%s898_s1 + $0x38] sm:$0xff]   ;;  %v692_v24 = vld [vmem:[%s899_s0] ss:$12 sps:$4 sm:$0xff]  }
   0x9   :  { %660 = vmatpush3.bf16.msra.mxu1 %v687_v10  ;;  %665 = vmatprep.mubr.msk.bf16.mxu1 %vm264_vm0, %v696_v18  ;;  %v704_v23 = vld [vmem:[%s899_s0 + $0x38] ss:$12 sps:$4 sm:$0xff]   ;;  %v698_v25 = vld [vmem:[%s899_s0 + $0x1c] ss:$12 sps:$4 sm:$0xff]   ;;  %v701_v28 = vld [vmem:[%s899_s0 + $0x34] ss:$12 sps:$4 sm:$0xff]  }
   0xa   :  { %661 = vmatprep.subr.bf16.mxu1 %v690_v13  ;;  %v705_v26 = vld [vmem:[%s899_s0 + $0x50] ss:$12 sps:$4 sm:$0x7f]   ;;  %v700_v27 = vld [vmem:[%s899_s0 + $0x18] ss:$12 sps:$4 sm:$0xff]  }
   0xb   :  { %614 = vmatpush3.bf16.msra.mxu0 %v678_v5  ;;  %v703_v29 = vld [vmem:[%s899_s0 + $0x30] ss:$12 sps:$4 sm:$0xff]   ;;  %v706_v30 = vld [vmem:[%s899_s0 + $0x4c] ss:$12 sps:$4 sm:$0x7f]  }
   0xc   :  { %615 = vmatprep.subr.bf16.mxu0 %v679_v6  ;;  %v708_v31 = vld [vmem:[%s899_s0 + $0x48] ss:$12 sps:$4 sm:$0x7f]   ;;  %v555_v38 = vld [vmem:[%s900_s2] ss:$0 sm:$0xff] }
   0xd   :  { %662 = vmatpush3.bf16.msra.mxu1 %v690_v13 }
   0xe   :  { %663 = vmatprep.subr.bf16.mxu1 %v695_v17 }
   0xf   :  { %616 = vmatpush3.bf16.msra.mxu0 %v680_v7 }
  0x10   :  { %617 = vmatprep.subr.bf16.mxu0 %v681_v9 }
  0x11   :  { %664 = vmatpush3.bf16.msra.mxu1 %v695_v17 }
  0x13   :  { %618 = vmatpush3.bf16.msra.mxu0 %v682_v11 }
  0x14   :  { %619 = vmatprep.subr.bf16.mxu0 %v683_v12  ;;  %666 = vmatmul.mubr.msk.bf16.vlgmr.msra.gmra.mrb[0].mxu1 %vm264_vm0, %v697_v22 }
  0x15   :  { %669 = vmatprep.mubr.msk.bf16.mxu1 %vm264_vm0, %v704_v23 }
  0x17   :  { %620 = vmatpush3.bf16.msra.mxu0 %v685_v14 }
  0x18   :  { %621 = vmatprep.subr.bf16.mxu0 %v686_v15 }
  0x1b   :  { %622 = vmatpush3.bf16.msra.mxu0 %v688_v19 }
  0x1c   :  { %623 = vmatprep.subr.bf16.mxu0 %v689_v20  ;;  %670 = vmatmul.mubr.msk.bf16.gmra.mrb[4].mxu1 %vm264_vm0, %v705_v26 }
  0x1f   :  { %624 = vmatpush3.bf16.msra.mxu0 %v691_v21 }
  0x22   :  { %310 = vmatmul.mubr.bf16.vlgmr.msra.gmra.mrb[0].mxu0 %v692_v24 }
  0x23   :  { %317 = vmatprep.mubr.bf16.mxu0 %v698_v25 }
  0x2a   :  { %318 = vmatmul.mubr.bf16.gmra.mrb[4].mxu0 %v700_v27 }
  0x2b   :  { %325 = vmatprep.mubr.bf16.mxu0 %v701_v28 }
  0x32   :  { %326 = vmatmul.mubr.bf16.gmra.mrb[8].mxu0 %v703_v29 }
  0x33   :  { %333 = vmatprep.mubr.bf16.mxu0 %v706_v30 }
  0x3a   :  { %334 = vmatmul.mubr.bf16.gmra.mrb[12].mxu0 %v708_v31 }
  0xe7   :  { %v667_v32 = vpop.f32.mrb[0].mxu1 }
  0xe8   :  { %v376_v33 = vpop.f32.mrb[1].mxu1 }
  0xe9   :  { %v668_v34 = vpop.f32.mrb[2].mxu1 }
  0xea   :  { %v379_v35 = vpop.f32.mrb[3].mxu1 }
  0xef   :  { %v671_v42 = vpop.f32.mrb[4].mxu1 }
  0xf0   :  { %v392_v45 = vpop.f32.mrb[5].mxu1 }
  0xf1   :  { %v672_v46 = vpop.f32.mrb[6].mxu1 }
  0xf2   :  { %v395_v49 = vpop.f32.mrb[7].mxu1 }
  0xf5   :  { %v625_v36 = vpop.f32.mrb[0].mxu0 }
  0xf6   :  { %v626_v37 = vpop.f32.mrb[1].mxu0 }
  0xf7   :  { %v627_v39 = vadd.f32 %v626_v37, %v625_v36  ;;  %v628_v40 = vpop.f32.mrb[2].mxu0 }
  0xf8   :  { %v629_v41 = vpop.f32.mrb[3].mxu0 }
  0xf9   :  { %v630_v43 = vadd.f32 %v629_v41, %v628_v40  ;;  %v312_v44 = vadd.f32 %v627_v39, %v555_v38 }
  0xfb   :  { %v377_v47 = vadd.f32 %v376_v33, %v312_v44  ;;  %v315_v48 = vadd.f32 %v630_v43, %v555_v38 }
  0xfd   :  { %v380_v50 = vadd.f32 %v379_v35, %v315_v48  ;;  %v631_v51 = vpop.f32.mrb[4].mxu0  ;;  %v407_v53 = vsel %vm264_vm0, %v377_v47, 0.0 }
  0xfe   :  { %v632_v52 = vpop.f32.mrb[5].mxu0 }
  0xff   :  { %v408_v54 = vsel %vm264_vm0, %v380_v50, 0.0  ;;  %v633_v55 = vadd.f32 %v632_v52, %v631_v51  ;;  %v634_v56 = vpop.f32.mrb[6].mxu0 }
 0x100   :  { %v409_v57 = vadd.f32 %v408_v54, %v407_v53  ;;  %v635_v58 = vpop.f32.mrb[7].mxu0 }
 0x101   :  { %v320_v59 = vadd.f32 %v633_v55, %v555_v38  ;;  %v636_v60 = vadd.f32 %v635_v58, %v634_v56 }
 0x103   :  { %v385_v61 = vadd.f32 %v667_v32, %v320_v59  ;;  %v323_v62 = vadd.f32 %v636_v60, %v555_v38 }
 0x105   :  { %v410_v63 = vsel %vm264_vm0, %v385_v61, 0.0  ;;  %v388_v0 = vadd.f32 %v668_v34, %v323_v62  ;;  %v637_v1 = vpop.f32.mrb[8].mxu0 }
 0x106   :  { %v638_v2 = vpop.f32.mrb[9].mxu0  ;;  %v411_v3 = vadd.f32 %v410_v63, %v409_v57 }
 0x107   :  { %v639_v4 = vadd.f32 %v638_v2, %v637_v1  ;;  %v640_v5 = vpop.f32.mrb[10].mxu0  ;;  %v412_v6 = vsel %vm264_vm0, %v388_v0, 0.0 }
 0x108   :  { %v641_v7 = vpop.f32.mrb[11].mxu0  ;;  %v413_v8 = vadd.f32 %v412_v6, %v411_v3 }
 0x109   :  { %v642_v9 = vadd.f32 %v641_v7, %v640_v5  ;;  %v328_v10 = vadd.f32 %v639_v4, %v555_v38 }
 0x10b   :  { %v393_v11 = vadd.f32 %v392_v45, %v328_v10  ;;  %v331_v12 = vadd.f32 %v642_v9, %v555_v38 }
 0x10d   :  { %v414_v13 = vsel %vm264_vm0, %v393_v11, 0.0  ;;  %v396_v14 = vadd.f32 %v395_v49, %v331_v12  ;;  %v643_v15 = vpop.f32.mrb[12].mxu0 }
 0x10e   :  { %v415_v16 = vadd.f32 %v414_v13, %v413_v8  ;;  %v644_v17 = vpop.f32.mrb[13].mxu0 }
 0x10f   :  { %v416_v18 = vsel %vm264_vm0, %v396_v14, 0.0  ;;  %v645_v19 = vadd.f32 %v644_v17, %v643_v15  ;;  %v646_v20 = vpop.f32.mrb[14].mxu0 }
 0x110   :  { %v417_v21 = vadd.f32 %v416_v18, %v415_v16  ;;  %v647_v22 = vpop.f32.mrb[15].mxu0  ;;  %v468_v16 = vld [vmem:[%s901_s3] sm:$0x1] }
 0x111   :  { %v336_v23 = vadd.f32 %v645_v19, %v555_v38  ;;  %v648_v24 = vadd.f32 %v647_v22, %v646_v20 }
 0x113   :  { %v401_v25 = vadd.f32 %v671_v42, %v336_v23  ;;  %v339_v26 = vadd.f32 %v648_v24, %v555_v38 }
 0x115   :  { %v418_v27 = vsel %vm264_vm0, %v401_v25, 0.0  ;;  %v404_v28 = vadd.f32 %v672_v46, %v339_v26 }
 0x116   :  { %v419_v29 = vadd.f32 %v418_v27, %v417_v21  ;;  %v592_v21 = vld [vmem:[%s902_s4] ss:$0 sm:$0xff] }
 0x117   :  { %v421_v30 = vsel %vm420_vm1, %v404_v28, 0.0 }
 0x118   :  { %v422_v31 = vadd.f32 %v421_v30, %v419_v29 }
 0x11a   :  { %v423_v32 = vrot.slane %v422_v31, 4 }
 0x11c   :  { %v424_v33 = vadd.f32 %v423_v32, %v422_v31 }
 0x11e   :  { %v425_v34 = vrot.slane %v424_v33, 2 }
 0x120   :  { %v426_v35 = vadd.f32 %v425_v34, %v424_v33 }
 0x122   :  { %v427_v36 = vrot.slane %v426_v35, 1 }
 0x124   :  { %v428_v37 = vadd.f32 %v427_v36, %v426_v35 }
 0x126   :  { %v429_v39 = vmul.f32 0.016129032, %v428_v37 }
 0x128   :  { %v430_v40 = vsub.f32 %v377_v47, %v429_v39  ;;  %v431_v41 = vsub.f32 %v380_v50, %v429_v39  ;;  %v432_v43 = vsub.f32 %v385_v61, %v429_v39  ;;  %v433_v42 = vsub.f32 %v388_v0, %v429_v39 }
 0x129   :  { %v434_v38 = vsub.f32 %v393_v11, %v429_v39  ;;  %v435_v44 = vsub.f32 %v396_v14, %v429_v39  ;;  %v436_v45 = vsub.f32 %v401_v25, %v429_v39  ;;  %v437_v48 = vsub.f32 %v404_v28, %v429_v39 }
 0x12a   :  { %v438_v46 = vmul.f32 %v430_v40, %v430_v40  ;;  %v439_v49 = vmul.f32 %v431_v41, %v431_v41  ;;  %v440_v51 = vmul.f32 %v432_v43, %v432_v43  ;;  %v441_v52 = vmul.f32 %v433_v42, %v433_v42 }
 0x12b   :  { %v442_v56 = vmul.f32 %v434_v38, %v434_v38  ;;  %v443_v50 = vmul.f32 %v435_v44, %v435_v44  ;;  %v444_v60 = vmul.f32 %v436_v45, %v436_v45  ;;  %v445_v63 = vmul.f32 %v437_v48, %v437_v48 }
 0x12c   :  { %v446_v53 = vsel %vm264_vm0, %v438_v46, 0.0  ;;  %v447_v54 = vsel %vm264_vm0, %v439_v49, 0.0  ;;  %v449_v57 = vsel %vm264_vm0, %v440_v51, 0.0  ;;  %v451_v58 = vsel %vm264_vm0, %v441_v52, 0.0 }
 0x12d   :  { %v448_v55 = vadd.f32 %v447_v54, %v446_v53  ;;  %v453_v61 = vsel %vm264_vm0, %v442_v56, 0.0  ;;  %v455_v0 = vsel %vm264_vm0, %v443_v50, 0.0  ;;  %v457_v2 = vsel %vm264_vm0, %v444_v60, 0.0 }
 0x12e   :  { %v459_v4 = vsel %vm420_vm1, %v445_v63, 0.0  ;;  %v473_v14 = vlaneseq }
 0x12f   :  { %v450_v47 = vadd.f32 %v449_v57, %v448_v55 }
 0x130   :  { %v474_v15 = vshrl.u32 %v473_v14, 7 }
 0x131   :  { %v452_v59 = vadd.f32 %v451_v58, %v450_v47 }
 0x132   :  { %v475_v17 = vsub.s32 0, %v474_v15 }
 0x133   :  { %v454_v62 = vadd.f32 %v453_v61, %v452_v59 }
 0x135   :  { %v456_v1 = vadd.f32 %v455_v0, %v454_v62 }
 0x137   :  { %v458_v3 = vadd.f32 %v457_v2, %v456_v1 }
 0x139   :  { %v460_v5 = vadd.f32 %v459_v4, %v458_v3 }
 0x13b   :  { %v461_v6 = vrot.slane %v460_v5, 4 }
 0x13d   :  { %v462_v7 = vadd.f32 %v461_v6, %v460_v5 }
 0x13f   :  { %v463_v8 = vrot.slane %v462_v7, 2 }
 0x141   :  { %v464_v9 = vadd.f32 %v463_v8, %v462_v7 }
 0x143   :  { %v465_v10 = vrot.slane %v464_v9, 1 }
 0x145   :  { %v466_v11 = vadd.f32 %v465_v10, %v464_v9 }
 0x147   :  { %v467_v12 = vmul.f32 0.016129032, %v466_v11 }
 0x149   :  { %v469_v13 = vadd.f32 1e-05, %v467_v12 }
 0x14b   :  { %709 = vrsqrt.f32 %v469_v13 }
 0x155   :  { %v710_v18 = vpop.eup %709 }
 0x156   :  { %v471_v19 = vmul.f32 %v710_v18, %v468_v16 }
 0x158   :  { %v476_v20 = vrot.slane %v471_v19, %v475_v17 }
 0x15a   :  { %v478_v22 = vmul.f32 %v476_v20, %v430_v40  ;;  %v479_v23 = vmul.f32 %v476_v20, %v431_v41  ;;  %v480_v24 = vmul.f32 %v476_v20, %v432_v43  ;;  %v481_v25 = vmul.f32 %v476_v20, %v433_v42 }
 0x15b   :  { %v482_v26 = vmul.f32 %v476_v20, %v434_v38  ;;  %v483_v27 = vmul.f32 %v476_v20, %v435_v44  ;;  %v484_v28 = vmul.f32 %v476_v20, %v436_v45  ;;  %v485_v29 = vmul.f32 %v476_v20, %v437_v48 }
 0x15c   :  { %v493_v30 = vadd.f32 %v592_v21, %v478_v22  ;;  %v494_v31 = vadd.f32 %v592_v21, %v479_v23  ;;  %v495_v32 = vadd.f32 %v592_v21, %v480_v24  ;;  %v496_v33 = vadd.f32 %v592_v21, %v481_v25 }
 0x15d   :  { %v497_v34 = vadd.f32 %v592_v21, %v482_v26  ;;  %v498_v35 = vadd.f32 %v592_v21, %v483_v27  ;;  %v499_v36 = vadd.f32 %v592_v21, %v484_v28  ;;  %v500_v37 = vadd.f32 %v592_v21, %v485_v29 }
 0x15e   :  { %v501_v39 = vmax.f32 %v493_v30, 0.0  ;;  %v502_v46 = vmax.f32 %v494_v31, 0.0  ;;  %v503_v49 = vmax.f32 %v495_v32, 0.0  ;;  %v504_v51 = vmax.f32 %v496_v33, 0.0 }
 0x15f   :  { %v505_v40 = vmax.f32 %v497_v34, 0.0  ;;  %v506_v41 = vmax.f32 %v498_v35, 0.0  ;;  %v507_v43 = vmax.f32 %v499_v36, 0.0  ;;  %v508_v42 = vmax.f32 %v500_v37, 0.0 }
 0x160   :  { %v601_v38 = vpack.c.bf16 %v501_v39, %v501_v39  ;;  %v602_v44 = vpack.c.bf16 %v502_v46, %v502_v46  ;;  %v603_v45 = vpack.c.bf16 %v503_v49, %v503_v49  ;;  %v604_v48 = vpack.c.bf16 %v504_v51, %v504_v51 }
 0x161   :  { %v605_v52 = vpack.c.bf16 %v505_v40, %v505_v40  ;;  %v606_v53 = vpack.c.bf16 %v506_v41, %v506_v41  ;;  %v607_v54 = vpack.c.bf16 %v507_v43, %v507_v43  ;;  %v608_v55 = vpack.c.bf16 %v508_v42, %v508_v42 }
 0x162   :  { %542 = vst.msk [vmem:[%s903_s5] sm:$0xf] %vm541_vm2, %v601_v38  ;;  %543 = vst.msk [vmem:[%s903_s5 + $0x4] sm:$0xf] %vm541_vm2, %v602_v44 }
 0x163   :  { %544 = vst.msk [vmem:[%s903_s5 + $0x8] sm:$0xf] %vm541_vm2, %v603_v45  ;;  %545 = vst.msk [vmem:[%s903_s5 + $0xc] sm:$0xf] %vm541_vm2, %v604_v48 }
 0x164   :  { %546 = vst.msk [vmem:[%s903_s5 + $0x10] sm:$0xf] %vm541_vm2, %v605_v52  ;;  %547 = vst.msk [vmem:[%s903_s5 + $0x14] sm:$0xf] %vm541_vm2, %v606_v53 }
 0x165   :  { %548 = vst.msk [vmem:[%s903_s5 + $0x18] sm:$0xf] %vm541_vm2, %v607_v54 }
 0x166   :  { %550 = vst.msk [vmem:[%s903_s5 + $0x1c] sm:$0x7] %vm549_vm3, %v608_v55 }

// kernel: df_forward.12
= control target key start
LH: loop header
LB: loop body
LE: loop exit
PB: predicated region body
PF: predicated region fallthrough
CT: control target
= control target key end

     0   :  { %v365_v0 = vmov 0   ;;  %vm146_vm0 = vcmask 523264   ;;  %vm283_vm1 = vcmask 519168   ;;  %s499_s1 = inlined_call_operand.vmem [shape: bf16[192,64], index: 1, kind: input, shape index: {}]   ;;  %s500_s0 = inlined_call_operand.vmem [shape: bf16[32,192], index: 0, kind: input, shape index: {}]   ;;  %s501_s2 = inlined_call_operand.vmem [shape: f32[1,64], index: 2, kind: input, shape index: {}]   ;;  %s502_s3 = inlined_call_operand.vmem [shape: f32[1,64], index: 3, kind: input, shape index: {}]   ;;  %s503_s4 = inlined_call_operand.vmem [shape: f32[1,64], index: 4, kind: input, shape index: {}]   ;;  %s504_s5 = inlined_call_operand.vmem [shape: bf16[32,64], index: 5, kind: output, shape index: {}]  }
   0x1   :  { %153 = vmatprep.subr.bf16.mxu0 %v365_v0  ;;  %320 = vmatprep.subr.bf16.mxu1 %v365_v0  ;;  %v345_v1 = vld [vmem:[%s499_s1] sm:$0xff]   ;;  %v346_v2 = vld [vmem:[%s499_s1 + $0x8] sm:$0xff]   ;;  %v347_v3 = vld [vmem:[%s499_s1 + $0x10] sm:$0xff]  }
   0x2   :  { %154 = vmatpush1.bf16.msra.mxu0 %v345_v1  ;;  %332 = vmatpush1.bf16.msra.mxu1 %v345_v1  ;;  %v348_v4 = vld [vmem:[%s499_s1 + $0x18] sm:$0xff]   ;;  %v359_v5 = vld [vmem:[%s500_s0 + $0x4] ss:$8 sps:$4 sm:$0xff]   ;;  %v351_v9 = vld [vmem:[%s499_s1 + $0x30] sm:$0xff]  }
   0x3   :  { %155 = vmatprep.subr.bf16.mxu0 %v365_v0  ;;  %321 = vmatprep.subr.bf16.mxu1 %v365_v0  ;;  %v349_v6 = vld [vmem:[%s499_s1 + $0x20] sm:$0xff]   ;;  %v362_v7 = vld [vmem:[%s500_s0 + $0x14] ss:$8 sps:$4 sm:$0xff]   ;;  %v350_v8 = vld [vmem:[%s499_s1 + $0x28] sm:$0xff]  }
   0x4   :  { %309 = vmatprep.mubr.msk.bf16.mxu0 %vm146_vm0, %v359_v5  ;;  %310 = vmatprep.mubr.msk.bf16.mxu1 %vm146_vm0, %v362_v7  ;;  %v352_v10 = vld [vmem:[%s499_s1 + $0x38] sm:$0xff]   ;;  %v353_v11 = vld [vmem:[%s499_s1 + $0x40] sm:$0xff]   ;;  %v354_v12 = vld [vmem:[%s499_s1 + $0x48] sm:$0xff]  }
   0x5   :  { %v355_v13 = vld [vmem:[%s499_s1 + $0x50] sm:$0xff]   ;;  %v356_v14 = vld [vmem:[%s499_s1 + $0x58] sm:$0xff]   ;;  %v357_v15 = vld [vmem:[%s500_s0] ss:$8 sps:$4 sm:$0xff]  }
   0x6   :  { %156 = vmatpush1.bf16.msra.mxu0 %v346_v2  ;;  %333 = vmatpush1.bf16.msra.mxu1 %v346_v2  ;;  %v360_v16 = vld [vmem:[%s500_s0 + $0x10] ss:$8 sps:$4 sm:$0xff]   ;;  %v292_v17 = vld [vmem:[%s501_s2] ss:$0 sm:$0xff] }
   0x7   :  { %157 = vmatprep.subr.bf16.mxu0 %v365_v0  ;;  %322 = vmatprep.subr.bf16.mxu1 %v365_v0  ;;  %v238_v5 = vld [vmem:[%s502_s3] sm:$0x1] }
   0xa   :  { %158 = vmatpush1.bf16.msra.mxu0 %v347_v3  ;;  %334 = vmatpush1.bf16.msra.mxu1 %v347_v3  ;;  %v243_v3 = vlaneseq }
   0xb   :  { %159 = vmatprep.subr.bf16.mxu0 %v365_v0  ;;  %323 = vmatprep.subr.bf16.mxu1 %v365_v0 }
   0xe   :  { %160 = vmatpush1.bf16.msra.mxu0 %v348_v4  ;;  %335 = vmatpush1.bf16.msra.mxu1 %v348_v4  ;;  %v244_v4 = vshrl.u32 %v243_v3, 7 }
   0xf   :  { %161 = vmatprep.subr.bf16.mxu0 %v365_v0  ;;  %324 = vmatprep.subr.bf16.mxu1 %v365_v0 }
  0x12   :  { %162 = vmatpush1.bf16.msra.mxu0 %v349_v6  ;;  %336 = vmatpush1.bf16.msra.mxu1 %v349_v6  ;;  %v245_v6 = vsub.s32 0, %v244_v4 }
  0x13   :  { %163 = vmatprep.subr.bf16.mxu0 %v365_v0  ;;  %325 = vmatprep.subr.bf16.mxu1 %v365_v0 }
  0x16   :  { %164 = vmatpush1.bf16.msra.mxu0 %v350_v8  ;;  %337 = vmatpush1.bf16.msra.mxu1 %v350_v8 }
  0x17   :  { %165 = vmatprep.subr.bf16.mxu0 %v365_v0  ;;  %326 = vmatprep.subr.bf16.mxu1 %v365_v0 }
  0x1a   :  { %166 = vmatpush1.bf16.msra.mxu0 %v351_v9  ;;  %338 = vmatpush1.bf16.msra.mxu1 %v351_v9 }
  0x1b   :  { %167 = vmatprep.subr.bf16.mxu0 %v365_v0  ;;  %327 = vmatprep.subr.bf16.mxu1 %v365_v0 }
  0x1e   :  { %168 = vmatpush1.bf16.msra.mxu0 %v352_v10  ;;  %339 = vmatpush1.bf16.msra.mxu1 %v352_v10  ;;  %v311_v10 = vld [vmem:[%s503_s4] ss:$0 sm:$0xff] }
  0x1f   :  { %169 = vmatprep.subr.bf16.mxu0 %v365_v0  ;;  %328 = vmatprep.subr.bf16.mxu1 %v365_v0 }
  0x22   :  { %170 = vmatpush1.bf16.msra.mxu0 %v353_v11  ;;  %340 = vmatpush1.bf16.msra.mxu1 %v353_v11 }
  0x23   :  { %171 = vmatprep.subr.bf16.mxu0 %v365_v0  ;;  %329 = vmatprep.subr.bf16.mxu1 %v365_v0 }
  0x26   :  { %172 = vmatpush1.bf16.msra.mxu0 %v354_v12  ;;  %341 = vmatpush1.bf16.msra.mxu1 %v354_v12 }
  0x27   :  { %173 = vmatprep.subr.bf16.mxu0 %v365_v0  ;;  %330 = vmatprep.subr.bf16.mxu1 %v365_v0 }
  0x2a   :  { %174 = vmatpush1.bf16.msra.mxu0 %v355_v13  ;;  %342 = vmatpush1.bf16.msra.mxu1 %v355_v13 }
  0x2b   :  { %175 = vmatprep.subr.bf16.mxu0 %v365_v0  ;;  %331 = vmatprep.subr.bf16.mxu1 %v365_v0 }
  0x2e   :  { %176 = vmatpush1.bf16.msra.mxu0 %v356_v14  ;;  %343 = vmatpush1.bf16.msra.mxu1 %v356_v14 }
  0x31   :  { %186 = vmatmul.mubr.bf16.vlgmr.msra.gmra.mrb[0].mxu0 %v357_v15  ;;  %194 = vmatmul.mubr.bf16.vlgmr.msra.gmra.mrb[0].mxu1 %v360_v16 }
 0x104   :  { %v187_v18 = vpop.f32.mrb[0].mxu0  ;;  %v195_v19 = vpop.f32.mrb[0].mxu1 }
 0x105   :  { %v188_v20 = vadd.f32 %v292_v17, %v187_v18  ;;  %v189_v21 = vpop.f32.mrb[1].mxu0  ;;  %v196_v22 = vadd.f32 %v292_v17, %v195_v19  ;;  %v197_v23 = vpop.f32.mrb[1].mxu1 }
 0x106   :  { %v190_v24 = vpop.f32.mrb[2].mxu0  ;;  %v198_v25 = vpop.f32.mrb[2].mxu1 }
 0x107   :  { %v191_v26 = vadd.f32 %v292_v17, %v190_v24  ;;  %v192_v27 = vpop.f32.mrb[3].mxu0  ;;  %v200_v28 = vpop.f32.mrb[3].mxu1  ;;  %v202_v29 = vsel %vm146_vm0, %v188_v20, 0.0  ;;  %v205_v30 = vsel %vm146_vm0, %v196_v22, 0.0  ;;  %v199_v32 = vadd.f32 %v292_v17, %v198_v25 }
 0x109   :  { %v203_v31 = vsel %vm146_vm0, %v191_v26, 0.0  ;;  %v207_v35 = vsel %vm146_vm0, %v199_v32, 0.0 }
 0x10a   :  { %v204_v33 = vadd.f32 %v203_v31, %v202_v29 }
 0x10c   :  { %v206_v34 = vadd.f32 %v205_v30, %v204_v33 }
 0x10e   :  { %v208_v36 = vadd.f32 %v207_v35, %v206_v34 }
 0x110   :  { %v209_v37 = vrot.slane %v208_v36, 4 }
 0x112   :  { %v210_v38 = vadd.f32 %v209_v37, %v208_v36 }
 0x114   :  { %v211_v39 = vrot.slane %v210_v38, 2 }
 0x116   :  { %v212_v40 = vadd.f32 %v211_v39, %v210_v38 }
 0x118   :  { %v213_v41 = vrot.slane %v212_v40, 1 }
 0x11a   :  { %v214_v42 = vadd.f32 %v213_v41, %v212_v40 }
 0x11c   :  { %v215_v43 = vmul.f32 0.03125, %v214_v42 }
 0x11e   :  { %v216_v44 = vsub.f32 %v188_v20, %v215_v43  ;;  %v217_v45 = vsub.f32 %v191_v26, %v215_v43  ;;  %v218_v46 = vsub.f32 %v196_v22, %v215_v43  ;;  %v219_v47 = vsub.f32 %v199_v32, %v215_v43 }
 0x120   :  { %v220_v48 = vmul.f32 %v216_v44, %v216_v44  ;;  %v221_v49 = vmul.f32 %v217_v45, %v217_v45  ;;  %v222_v50 = vmul.f32 %v218_v46, %v218_v46  ;;  %v223_v51 = vmul.f32 %v219_v47, %v219_v47 }
 0x122   :  { %v224_v52 = vsel %vm146_vm0, %v220_v48, 0.0  ;;  %v225_v53 = vsel %vm146_vm0, %v221_v49, 0.0  ;;  %v227_v55 = vsel %vm146_vm0, %v222_v50, 0.0  ;;  %v229_v57 = vsel %vm146_vm0, %v223_v51, 0.0 }
 0x123   :  { %v226_v54 = vadd.f32 %v225_v53, %v224_v52 }
 0x125   :  { %v228_v56 = vadd.f32 %v227_v55, %v226_v54 }
 0x127   :  { %v230_v58 = vadd.f32 %v229_v57, %v228_v56 }
 0x129   :  { %v231_v59 = vrot.slane %v230_v58, 4 }
 0x12b   :  { %v232_v60 = vadd.f32 %v231_v59, %v230_v58 }
 0x12d   :  { %v233_v61 = vrot.slane %v232_v60, 2 }
 0x12f   :  { %v234_v62 = vadd.f32 %v233_v61, %v232_v60 }
 0x131   :  { %v235_v63 = vrot.slane %v234_v62, 1 }
 0x133   :  { %v236_v0 = vadd.f32 %v235_v63, %v234_v62 }
 0x135   :  { %v237_v1 = vmul.f32 0.03125, %v236_v0 }
 0x137   :  { %v239_v2 = vadd.f32 1e-05, %v237_v1 }
 0x139   :  { %363 = vrsqrt.f32 %v239_v2 }
 0x143   :  { %v364_v7 = vpop.eup %363 }
 0x144   :  { %v241_v8 = vmul.f32 %v364_v7, %v238_v5 }
 0x146   :  { %v246_v9 = vrot.slane %v241_v8, %v245_v6 }
 0x148   :  { %v248_v11 = vmul.f32 %v246_v9, %v216_v44  ;;  %v249_v12 = vmul.f32 %v246_v9, %v217_v45  ;;  %v250_v13 = vmul.f32 %v246_v9, %v218_v46  ;;  %v251_v14 = vmul.f32 %v246_v9, %v219_v47 }
 0x14a   :  { %v259_v15 = vadd.f32 %v311_v10, %v248_v11  ;;  %v260_v16 = vadd.f32 %v311_v10, %v249_v12  ;;  %v261_v17 = vadd.f32 %v311_v10, %v250_v13  ;;  %v262_v18 = vadd.f32 %v311_v10, %v251_v14 }
 0x14c   :  { %v263_v19 = vmax.f32 %v259_v15, 0.0  ;;  %v264_v20 = vmax.f32 %v260_v16, 0.0  ;;  %v265_v21 = vmax.f32 %v261_v17, 0.0  ;;  %v266_v22 = vmax.f32 %v262_v18, 0.0 }
 0x14e   :  { %v316_v23 = vpack.c.bf16 %v263_v19, %v263_v19  ;;  %v317_v24 = vpack.c.bf16 %v264_v20, %v264_v20  ;;  %v318_v25 = vpack.c.bf16 %v265_v21, %v265_v21  ;;  %v319_v26 = vpack.c.bf16 %v266_v22, %v266_v22 }
 0x150   :  { %284 = vst.msk [vmem:[%s504_s5] sm:$0xf] %vm283_vm1, %v316_v23  ;;  %285 = vst.msk [vmem:[%s504_s5 + $0x4] sm:$0xf] %vm283_vm1, %v317_v24 }
 0x151   :  { %286 = vst.msk [vmem:[%s504_s5 + $0x8] sm:$0xf] %vm283_vm1, %v318_v25  ;;  %287 = vst.msk [vmem:[%s504_s5 + $0xc] sm:$0xf] %vm283_vm1, %v319_v26 }

// kernel: df_forward.15
= control target key start
LH: loop header
LB: loop body
LE: loop exit
PB: predicated region body
PF: predicated region fallthrough
CT: control target
= control target key end

     0   :  { %vm1611_vm0 = vcmask 1043456   ;;  %s3036_s1 = inlined_call_operand.vmem [shape: bf16[1536,256], index: 1, kind: input, shape index: {}]   ;;  %s3037_s0 = inlined_call_operand.vmem [shape: bf16[20,1536], index: 0, kind: input, shape index: {}]   ;;  %s3038_s2 = inlined_call_operand.vmem [shape: f32[1,256], index: 2, kind: input, shape index: {}]   ;;  %s3039_s3 = inlined_call_operand.vmem [shape: f32[1,256], index: 3, kind: input, shape index: {}]   ;;  %s3040_s4 = inlined_call_operand.vmem [shape: f32[1,256], index: 4, kind: input, shape index: {}]   ;;  %s3041_s5 = inlined_call_operand.vmem [shape: bf16[20,256], index: 5, kind: output, shape index: {}]  }
   0x1   :  { %v2016_v0 = vld [vmem:[%s3036_s1 + $0x4] ss:$8 sps:$4 sm:$0xff]   ;;  %v2020_v2 = vld [vmem:[%s3036_s1] ss:$8 sps:$4 sm:$0xff]   ;;  %v2022_v4 = vld [vmem:[%s3036_s1 + $0x14] ss:$8 sps:$4 sm:$0xff]  }
   0x2   :  { %v2018_v1 = vld [vmem:[%s3036_s1 + $0x304] ss:$8 sps:$4 sm:$0xff]   ;;  %1304 = vmatprep.subr.bf16.mxu1 %v2016_v0  ;;  %v2021_v3 = vld [vmem:[%s3036_s1 + $0x300] ss:$8 sps:$4 sm:$0xff]   ;;  %v2024_v5 = vld [vmem:[%s3036_s1 + $0x314] ss:$8 sps:$4 sm:$0xff]  }
   0x3   :  { %1457 = vmatprep.subr.bf16.mxu0 %v2018_v1  ;;  %1305 = vmatpush1.bf16.msra.mxu1 %v2020_v2  ;;  %v2026_v6 = vld [vmem:[%s3036_s1 + $0x10] ss:$8 sps:$4 sm:$0xff]   ;;  %v2028_v8 = vld [vmem:[%s3036_s1 + $0x24] ss:$8 sps:$4 sm:$0xff]   ;;  %v2032_v10 = vld [vmem:[%s3036_s1 + $0x20] ss:$8 sps:$4 sm:$0xff]  }
   0x4   :  { %1458 = vmatpush1.bf16.msra.mxu0 %v2021_v3  ;;  %1306 = vmatprep.subr.bf16.mxu1 %v2022_v4  ;;  %v2027_v7 = vld [vmem:[%s3036_s1 + $0x310] ss:$8 sps:$4 sm:$0xff]   ;;  %v2030_v9 = vld [vmem:[%s3036_s1 + $0x324] ss:$8 sps:$4 sm:$0xff]   ;;  %v2033_v11 = vld [vmem:[%s3036_s1 + $0x320] ss:$8 sps:$4 sm:$0xff]  }
   0x5   :  { %1459 = vmatprep.subr.bf16.mxu0 %v2024_v5  ;;  %v2034_v12 = vld [vmem:[%s3036_s1 + $0x34] ss:$8 sps:$4 sm:$0xff]   ;;  %v2038_v14 = vld [vmem:[%s3036_s1 + $0x30] ss:$8 sps:$4 sm:$0xff]   ;;  %v2040_v16 = vld [vmem:[%s3036_s1 + $0x44] ss:$8 sps:$4 sm:$0xff]  }
   0x6   :  { %v2036_v13 = vld [vmem:[%s3036_s1 + $0x334] ss:$8 sps:$4 sm:$0xff]   ;;  %v2039_v15 = vld [vmem:[%s3036_s1 + $0x330] ss:$8 sps:$4 sm:$0xff]   ;;  %v2042_v17 = vld [vmem:[%s3036_s1 + $0x344] ss:$8 sps:$4 sm:$0xff]  }
   0x7   :  { %1307 = vmatpush1.bf16.msra.mxu1 %v2026_v6  ;;  %v2044_v18 = vld [vmem:[%s3036_s1 + $0x40] ss:$8 sps:$4 sm:$0xff]   ;;  %v2046_v20 = vld [vmem:[%s3036_s1 + $0x54] ss:$8 sps:$4 sm:$0xff]   ;;  %v2050_v22 = vld [vmem:[%s3036_s1 + $0x50] ss:$8 sps:$4 sm:$0xff]  }
   0x8   :  { %1460 = vmatpush1.bf16.msra.mxu0 %v2027_v7  ;;  %1308 = vmatprep.subr.bf16.mxu1 %v2028_v8  ;;  %v2045_v19 = vld [vmem:[%s3036_s1 + $0x340] ss:$8 sps:$4 sm:$0xff]   ;;  %v2048_v21 = vld [vmem:[%s3036_s1 + $0x354] ss:$8 sps:$4 sm:$0xff]   ;;  %v2051_v23 = vld [vmem:[%s3036_s1 + $0x350] ss:$8 sps:$4 sm:$0xff]  }
   0x9   :  { %1461 = vmatprep.subr.bf16.mxu0 %v2030_v9  ;;  %v2052_v24 = vld [vmem:[%s3036_s1 + $0x64] ss:$8 sps:$4 sm:$0xff]   ;;  %v2056_v26 = vld [vmem:[%s3036_s1 + $0x60] ss:$8 sps:$4 sm:$0xff]   ;;  %v2058_v28 = vld [vmem:[%s3036_s1 + $0x74] ss:$8 sps:$4 sm:$0xff]  }
   0xa   :  { %v2054_v25 = vld [vmem:[%s3036_s1 + $0x364] ss:$8 sps:$4 sm:$0xff]   ;;  %v2057_v27 = vld [vmem:[%s3036_s1 + $0x360] ss:$8 sps:$4 sm:$0xff]   ;;  %v2060_v29 = vld [vmem:[%s3036_s1 + $0x374] ss:$8 sps:$4 sm:$0xff]  }
   0xb   :  { %1309 = vmatpush1.bf16.msra.mxu1 %v2032_v10  ;;  %v2062_v30 = vld [vmem:[%s3036_s1 + $0x70] ss:$8 sps:$4 sm:$0xff]   ;;  %v2064_v32 = vld [vmem:[%s3036_s1 + $0x84] ss:$8 sps:$4 sm:$0xff]   ;;  %v2068_v34 = vld [vmem:[%s3036_s1 + $0x80] ss:$8 sps:$4 sm:$0xff]  }
   0xc   :  { %1462 = vmatpush1.bf16.msra.mxu0 %v2033_v11  ;;  %1310 = vmatprep.subr.bf16.mxu1 %v2034_v12  ;;  %v2063_v31 = vld [vmem:[%s3036_s1 + $0x370] ss:$8 sps:$4 sm:$0xff]   ;;  %v2066_v33 = vld [vmem:[%s3036_s1 + $0x384] ss:$8 sps:$4 sm:$0xff]   ;;  %v2069_v35 = vld [vmem:[%s3036_s1 + $0x380] ss:$8 sps:$4 sm:$0xff]  }
   0xd   :  { %1463 = vmatprep.subr.bf16.mxu0 %v2036_v13  ;;  %v2070_v36 = vld [vmem:[%s3036_s1 + $0x94] ss:$8 sps:$4 sm:$0xff]   ;;  %v2074_v38 = vld [vmem:[%s3036_s1 + $0x90] ss:$8 sps:$4 sm:$0xff]   ;;  %v2076_v40 = vld [vmem:[%s3036_s1 + $0xa4] ss:$8 sps:$4 sm:$0xff]  }
   0xe   :  { %v2072_v37 = vld [vmem:[%s3036_s1 + $0x394] ss:$8 sps:$4 sm:$0xff]   ;;  %v2075_v39 = vld [vmem:[%s3036_s1 + $0x390] ss:$8 sps:$4 sm:$0xff]   ;;  %v2078_v41 = vld [vmem:[%s3036_s1 + $0x3a4] ss:$8 sps:$4 sm:$0xff]  }
   0xf   :  { %1311 = vmatpush1.bf16.msra.mxu1 %v2038_v14  ;;  %v2080_v42 = vld [vmem:[%s3036_s1 + $0xa0] ss:$8 sps:$4 sm:$0xff]   ;;  %v2082_v44 = vld [vmem:[%s3036_s1 + $0xb4] ss:$8 sps:$4 sm:$0xff]   ;;  %v2086_v46 = vld [vmem:[%s3036_s1 + $0xb0] ss:$8 sps:$4 sm:$0xff]  }
  0x10   :  { %1464 = vmatpush1.bf16.msra.mxu0 %v2039_v15  ;;  %1312 = vmatprep.subr.bf16.mxu1 %v2040_v16  ;;  %v2081_v43 = vld [vmem:[%s3036_s1 + $0x3a0] ss:$8 sps:$4 sm:$0xff]   ;;  %v2084_v45 = vld [vmem:[%s3036_s1 + $0x3b4] ss:$8 sps:$4 sm:$0xff]   ;;  %v2087_v47 = vld [vmem:[%s3036_s1 + $0x3b0] ss:$8 sps:$4 sm:$0xff]  }
  0x11   :  { %1465 = vmatprep.subr.bf16.mxu0 %v2042_v17  ;;  %v2114_v48 = vld [vmem:[%s3037_s0 + $0x4] ss:$48 sps:$4 sm:$0xff]   ;;  %v2120_v51 = vld [vmem:[%s3037_s0 + $0x1c] ss:$48 sps:$4 sm:$0xff]   ;;  %v2092_v52 = vld [vmem:[%s3036_s1 + $0xc0] ss:$8 sps:$4 sm:$0xff]  }
  0x12   :  { %v2088_v49 = vld [vmem:[%s3036_s1 + $0xc4] ss:$8 sps:$4 sm:$0xff]   ;;  %1336 = vmatprep.mubr.bf16.mxu1 %v2114_v48  ;;  %v2093_v53 = vld [vmem:[%s3036_s1 + $0x3c0] ss:$8 sps:$4 sm:$0xff]   ;;  %v2094_v54 = vld [vmem:[%s3036_s1 + $0xd4] ss:$8 sps:$4 sm:$0xff]   ;;  %1489 = vmatprep.mubr.bf16.mxu0 %v2120_v51 }
  0x13   :  { %1313 = vmatpush1.bf16.msra.mxu1 %v2044_v18  ;;  %v2090_v50 = vld [vmem:[%s3036_s1 + $0x3c4] ss:$8 sps:$4 sm:$0xff]   ;;  %v2096_v55 = vld [vmem:[%s3036_s1 + $0x3d4] ss:$8 sps:$4 sm:$0xff]   ;;  %v2098_v56 = vld [vmem:[%s3036_s1 + $0xd0] ss:$8 sps:$4 sm:$0xff]  }
  0x14   :  { %1466 = vmatpush1.bf16.msra.mxu0 %v2045_v19  ;;  %1314 = vmatprep.subr.bf16.mxu1 %v2046_v20  ;;  %v2099_v57 = vld [vmem:[%s3036_s1 + $0x3d0] ss:$8 sps:$4 sm:$0xff]   ;;  %v2100_v58 = vld [vmem:[%s3036_s1 + $0xe4] ss:$8 sps:$4 sm:$0xff]   ;;  %v2104_v60 = vld [vmem:[%s3036_s1 + $0xe0] ss:$8 sps:$4 sm:$0xff]  }
  0x15   :  { %1467 = vmatprep.subr.bf16.mxu0 %v2048_v21  ;;  %v2102_v59 = vld [vmem:[%s3036_s1 + $0x3e4] ss:$8 sps:$4 sm:$0xff]   ;;  %v2105_v61 = vld [vmem:[%s3036_s1 + $0x3e0] ss:$8 sps:$4 sm:$0xff]   ;;  %v2106_v62 = vld [vmem:[%s3036_s1 + $0xf4] ss:$8 sps:$4 sm:$0xff]  }
  0x16   :  { %v2108_v63 = vld [vmem:[%s3036_s1 + $0x3f4] ss:$8 sps:$4 sm:$0xff]   ;;  %v2110_v0 = vld [vmem:[%s3036_s1 + $0xf0] ss:$8 sps:$4 sm:$0xff]   ;;  %v2117_v2 = vld [vmem:[%s3036_s1 + $0x104] ss:$8 sps:$4 sm:$0xff]  }
  0x17   :  { %1315 = vmatpush1.bf16.msra.mxu1 %v2050_v22  ;;  %v2111_v1 = vld [vmem:[%s3036_s1 + $0x3f0] ss:$8 sps:$4 sm:$0xff]   ;;  %v2123_v3 = vld [vmem:[%s3036_s1 + $0x404] ss:$8 sps:$4 sm:$0xff]   ;;  %v2115_v5 = vld [vmem:[%s3036_s1 + $0x100] ss:$8 sps:$4 sm:$0xff]  }
  0x18   :  { %1468 = vmatpush1.bf16.msra.mxu0 %v2051_v23  ;;  %1316 = vmatprep.subr.bf16.mxu1 %v2052_v24  ;;  %v2112_v4 = vld [vmem:[%s3037_s0] ss:$48 sps:$4 sm:$0xff]   ;;  %v2118_v6 = vld [vmem:[%s3037_s0 + $0x18] ss:$48 sps:$4 sm:$0xff]   ;;  %v2126_v8 = vld [vmem:[%s3036_s1 + $0x114] ss:$8 sps:$4 sm:$0xff]  }
  0x19   :  { %1469 = vmatprep.subr.bf16.mxu0 %v2054_v25  ;;  %v2121_v7 = vld [vmem:[%s3036_s1 + $0x400] ss:$8 sps:$4 sm:$0xff]   ;;  %v2129_v9 = vld [vmem:[%s3036_s1 + $0x414] ss:$8 sps:$4 sm:$0xff]   ;;  %v2124_v10 = vld [vmem:[%s3036_s1 + $0x110] ss:$8 sps:$4 sm:$0xff]  }
  0x1a   :  { %v2127_v11 = vld [vmem:[%s3036_s1 + $0x410] ss:$8 sps:$4 sm:$0xff]   ;;  %v2132_v12 = vld [vmem:[%s3036_s1 + $0x124] ss:$8 sps:$4 sm:$0xff]   ;;  %v2130_v14 = vld [vmem:[%s3036_s1 + $0x120] ss:$8 sps:$4 sm:$0xff]  }
  0x1b   :  { %1317 = vmatpush1.bf16.msra.mxu1 %v2056_v26  ;;  %v2135_v13 = vld [vmem:[%s3036_s1 + $0x424] ss:$8 sps:$4 sm:$0xff]   ;;  %v2133_v15 = vld [vmem:[%s3036_s1 + $0x420] ss:$8 sps:$4 sm:$0xff]   ;;  %v2138_v16 = vld [vmem:[%s3036_s1 + $0x134] ss:$8 sps:$4 sm:$0xff]  }
  0x1c   :  { %1470 = vmatpush1.bf16.msra.mxu0 %v2057_v27  ;;  %1318 = vmatprep.subr.bf16.mxu1 %v2058_v28  ;;  %v2141_v17 = vld [vmem:[%s3036_s1 + $0x434] ss:$8 sps:$4 sm:$0xff]   ;;  %v2136_v18 = vld [vmem:[%s3036_s1 + $0x130] ss:$8 sps:$4 sm:$0xff]   ;;  %v2144_v20 = vld [vmem:[%s3036_s1 + $0x144] ss:$8 sps:$4 sm:$0xff]  }
  0x1d   :  { %1471 = vmatprep.subr.bf16.mxu0 %v2060_v29  ;;  %v2139_v19 = vld [vmem:[%s3036_s1 + $0x430] ss:$8 sps:$4 sm:$0xff]   ;;  %v2147_v21 = vld [vmem:[%s3036_s1 + $0x444] ss:$8 sps:$4 sm:$0xff]   ;;  %v2142_v22 = vld [vmem:[%s3036_s1 + $0x140] ss:$8 sps:$4 sm:$0xff]  }
  0x1e   :  { %v2145_v23 = vld [vmem:[%s3036_s1 + $0x440] ss:$8 sps:$4 sm:$0xff]   ;;  %v2150_v24 = vld [vmem:[%s3036_s1 + $0x154] ss:$8 sps:$4 sm:$0xff]   ;;  %v2148_v27 = vld [vmem:[%s3036_s1 + $0x150] ss:$8 sps:$4 sm:$0xff]  }
  0x1f   :  { %1319 = vmatpush1.bf16.msra.mxu1 %v2062_v30  ;;  %v2153_v25 = vld [vmem:[%s3036_s1 + $0x454] ss:$8 sps:$4 sm:$0xff]   ;;  %v32_v26 = vld [vmem:[%s3037_s0 + $0x60] sm:$0x33]  ;;  %v2151_v30 = vld [vmem:[%s3036_s1 + $0x450] ss:$8 sps:$4 sm:$0xff]  }
  0x20   :  { %1472 = vmatpush1.bf16.msra.mxu0 %v2063_v31  ;;  %1320 = vmatprep.subr.bf16.mxu1 %v2064_v32  ;;  %v1762_v28 = vcombine.high %v32_v26, %v32_v26  ;;  %v1761_v29 = vcombine.low %v32_v26, %v32_v26  ;;  %v35_v31 = vld [vmem:[%s3037_s0 + $0x78] sm:$0x33]  ;;  %v2156_v32 = vld [vmem:[%s3036_s1 + $0x164] ss:$8 sps:$4 sm:$0xff]  }
  0x21   :  { %1473 = vmatprep.subr.bf16.mxu0 %v2066_v33  ;;  %v2159_v33 = vld [vmem:[%s3036_s1 + $0x464] ss:$8 sps:$4 sm:$0xff]   ;;  %v2174_v48 = vld [vmem:[%s3036_s1 + $0x194] ss:$8 sps:$4 sm:$0xff]   ;;  %v2175_v51 = vld [vmem:[%s3036_s1 + $0x490] ss:$8 sps:$4 sm:$0xff]  }
  0x22   :  { %v2238_v26 = vld [vmem:[%s3036_s1 + $0x224] ss:$8 sps:$4 sm:$0xff]  }
  0x23   :  { %1321 = vmatpush1.bf16.msra.mxu1 %v2068_v34  ;;  %v1768_v34 = vcombine.high %v35_v31, %v35_v31 }
  0x24   :  { %1474 = vmatpush1.bf16.msra.mxu0 %v2069_v35  ;;  %1322 = vmatprep.subr.bf16.mxu1 %v2070_v36  ;;  %v1767_v35 = vcombine.low %v35_v31, %v35_v31  ;;  %v2154_v36 = vld [vmem:[%s3036_s1 + $0x160] ss:$8 sps:$4 sm:$0xff]  }
  0x25   :  { %1475 = vmatprep.subr.bf16.mxu0 %v2072_v37  ;;  %v2157_v37 = vld [vmem:[%s3036_s1 + $0x460] ss:$8 sps:$4 sm:$0xff]  }
  0x26   :  { %v2239_v31 = vld [vmem:[%s3036_s1 + $0x520] ss:$8 sps:$4 sm:$0xff]  }
  0x27   :  { %1323 = vmatpush1.bf16.msra.mxu1 %v2074_v38  ;;  %v2162_v38 = vld [vmem:[%s3036_s1 + $0x174] ss:$8 sps:$4 sm:$0xff]  }
  0x28   :  { %1476 = vmatpush1.bf16.msra.mxu0 %v2075_v39  ;;  %1324 = vmatprep.subr.bf16.mxu1 %v2076_v40  ;;  %v2165_v39 = vld [vmem:[%s3036_s1 + $0x474] ss:$8 sps:$4 sm:$0xff]  }
  0x29   :  { %1477 = vmatprep.subr.bf16.mxu0 %v2078_v41  ;;  %v2220_v40 = vld [vmem:[%s3037_s0 + $0xc] ss:$48 sps:$4 sm:$0xff]   ;;  %v2160_v41 = vld [vmem:[%s3036_s1 + $0x170] ss:$8 sps:$4 sm:$0xff]  }
  0x2b   :  { %1325 = vmatpush1.bf16.msra.mxu1 %v2080_v42  ;;  %v2163_v42 = vld [vmem:[%s3036_s1 + $0x470] ss:$8 sps:$4 sm:$0xff]  }
  0x2c   :  { %1478 = vmatpush1.bf16.msra.mxu0 %v2081_v43  ;;  %1326 = vmatprep.subr.bf16.mxu1 %v2082_v44  ;;  %v2226_v43 = vld [vmem:[%s3037_s0 + $0x24] ss:$48 sps:$4 sm:$0xff]  }
  0x2d   :  { %1479 = vmatprep.subr.bf16.mxu0 %v2084_v45  ;;  %v2168_v44 = vld [vmem:[%s3036_s1 + $0x184] ss:$8 sps:$4 sm:$0xff]  }
  0x2e   :  { %v2171_v45 = vld [vmem:[%s3036_s1 + $0x484] ss:$8 sps:$4 sm:$0xff]  }
  0x2f   :  { %1327 = vmatpush1.bf16.msra.mxu1 %v2086_v46  ;;  %v2166_v46 = vld [vmem:[%s3036_s1 + $0x180] ss:$8 sps:$4 sm:$0xff]  }
  0x30   :  { %1480 = vmatpush1.bf16.msra.mxu0 %v2087_v47  ;;  %1328 = vmatprep.subr.bf16.mxu1 %v2088_v49  ;;  %v2169_v47 = vld [vmem:[%s3036_s1 + $0x480] ss:$8 sps:$4 sm:$0xff]   ;;  %v2177_v49 = vld [vmem:[%s3036_s1 + $0x494] ss:$8 sps:$4 sm:$0xff]  }
  0x31   :  { %1481 = vmatprep.subr.bf16.mxu0 %v2090_v50  ;;  %v2172_v50 = vld [vmem:[%s3036_s1 + $0x190] ss:$8 sps:$4 sm:$0xff]  }
  0x33   :  { %1329 = vmatpush1.bf16.msra.mxu1 %v2092_v52  ;;  %v2180_v52 = vld [vmem:[%s3036_s1 + $0x1a4] ss:$8 sps:$4 sm:$0xff]  }
  0x34   :  { %1482 = vmatpush1.bf16.msra.mxu0 %v2093_v53  ;;  %1330 = vmatprep.subr.bf16.mxu1 %v2094_v54  ;;  %v2183_v53 = vld [vmem:[%s3036_s1 + $0x4a4] ss:$8 sps:$4 sm:$0xff]   ;;  %v2178_v54 = vld [vmem:[%s3036_s1 + $0x1a0] ss:$8 sps:$4 sm:$0xff]  }
  0x35   :  { %1483 = vmatprep.subr.bf16.mxu0 %v2096_v55  ;;  %v2181_v55 = vld [vmem:[%s3036_s1 + $0x4a0] ss:$8 sps:$4 sm:$0xff]  }
  0x37   :  { %1331 = vmatpush1.bf16.msra.mxu1 %v2098_v56  ;;  %v2186_v56 = vld [vmem:[%s3036_s1 + $0x1b4] ss:$8 sps:$4 sm:$0xff]  }
  0x38   :  { %1484 = vmatpush1.bf16.msra.mxu0 %v2099_v57  ;;  %1332 = vmatprep.subr.bf16.mxu1 %v2100_v58  ;;  %v2189_v57 = vld [vmem:[%s3036_s1 + $0x4b4] ss:$8 sps:$4 sm:$0xff]   ;;  %v2184_v58 = vld [vmem:[%s3036_s1 + $0x1b0] ss:$8 sps:$4 sm:$0xff]  }
  0x39   :  { %1485 = vmatprep.subr.bf16.mxu0 %v2102_v59  ;;  %v2187_v59 = vld [vmem:[%s3036_s1 + $0x4b0] ss:$8 sps:$4 sm:$0xff]  }
  0x3b   :  { %1333 = vmatpush1.bf16.msra.mxu1 %v2104_v60  ;;  %v2192_v60 = vld [vmem:[%s3036_s1 + $0x1c4] ss:$8 sps:$4 sm:$0xff]  }
  0x3c   :  { %1486 = vmatpush1.bf16.msra.mxu0 %v2105_v61  ;;  %1334 = vmatprep.subr.bf16.mxu1 %v2106_v62  ;;  %v2195_v61 = vld [vmem:[%s3036_s1 + $0x4c4] ss:$8 sps:$4 sm:$0xff]   ;;  %v2190_v62 = vld [vmem:[%s3036_s1 + $0x1c0] ss:$8 sps:$4 sm:$0xff]  }
  0x3d   :  { %1487 = vmatprep.subr.bf16.mxu0 %v2108_v63  ;;  %v2193_v63 = vld [vmem:[%s3036_s1 + $0x4c0] ss:$8 sps:$4 sm:$0xff]  }
  0x3f   :  { %1335 = vmatpush1.bf16.msra.mxu1 %v2110_v0  ;;  %v2198_v0 = vld [vmem:[%s3036_s1 + $0x1d4] ss:$8 sps:$4 sm:$0xff]  }
  0x40   :  { %1488 = vmatpush1.bf16.msra.mxu0 %v2111_v1  ;;  %1355 = vmatprep.subr.bf16.mxu1 %v2117_v2  ;;  %v2201_v1 = vld [vmem:[%s3036_s1 + $0x4d4] ss:$8 sps:$4 sm:$0xff]   ;;  %v2196_v2 = vld [vmem:[%s3036_s1 + $0x1d0] ss:$8 sps:$4 sm:$0xff]  }
  0x41   :  { %1508 = vmatprep.subr.bf16.mxu0 %v2123_v3  ;;  %v2199_v3 = vld [vmem:[%s3036_s1 + $0x4d0] ss:$8 sps:$4 sm:$0xff]  }
  0x42   :  { %1337 = vmatmul.mubr.bf16.vlgmr.msra.gmra.mrb[0].mxu1 %v2112_v4  ;;  %v2205_v4 = vld [vmem:[%s3036_s1 + $0x1e4] ss:$8 sps:$4 sm:$0xff]  }
  0x43   :  { %1490 = vmatmul.mubr.bf16.vlgmr.msra.gmra.mrb[0].mxu0 %v2118_v6  ;;  %1356 = vmatpush1.bf16.msra.mxu1 %v2115_v5  ;;  %v2209_v5 = vld [vmem:[%s3036_s1 + $0x4e4] ss:$8 sps:$4 sm:$0xff]   ;;  %v2203_v6 = vld [vmem:[%s3036_s1 + $0x1e0] ss:$8 sps:$4 sm:$0xff]  }
  0x44   :  { %1509 = vmatpush1.bf16.msra.mxu0 %v2121_v7  ;;  %1357 = vmatprep.subr.bf16.mxu1 %v2126_v8  ;;  %v2207_v7 = vld [vmem:[%s3036_s1 + $0x4e0] ss:$8 sps:$4 sm:$0xff]   ;;  %v2214_v8 = vld [vmem:[%s3036_s1 + $0x1f4] ss:$8 sps:$4 sm:$0xff]  }
  0x45   :  { %1510 = vmatprep.subr.bf16.mxu0 %v2129_v9  ;;  %1346 = vmatprep.mubr.bf16.mxu1 %v1762_v28  ;;  %v2217_v9 = vld [vmem:[%s3036_s1 + $0x4f4] ss:$8 sps:$4 sm:$0xff]   ;;  %v2236_v28 = vld [vmem:[%s3036_s1 + $0x220] ss:$8 sps:$4 sm:$0xff]  }
  0x46   :  { %1499 = vmatprep.mubr.bf16.mxu0 %v1768_v34  ;;  %v2326_v34 = vld [vmem:[%s3037_s0 + $0x14] ss:$48 sps:$4 sm:$0xff]  }
  0x47   :  { %1358 = vmatpush1.bf16.msra.mxu1 %v2124_v10  ;;  %v2212_v10 = vld [vmem:[%s3036_s1 + $0x1f0] ss:$8 sps:$4 sm:$0xff]  }
  0x48   :  { %1511 = vmatpush1.bf16.msra.mxu0 %v2127_v11  ;;  %1359 = vmatprep.subr.bf16.mxu1 %v2132_v12  ;;  %v2215_v11 = vld [vmem:[%s3036_s1 + $0x4f0] ss:$8 sps:$4 sm:$0xff]  }
  0x49   :  { %1512 = vmatprep.subr.bf16.mxu0 %v2135_v13  ;;  %v2218_v12 = vld [vmem:[%s3037_s0 + $0x8] ss:$48 sps:$4 sm:$0xff]   ;;  %v2223_v13 = vld [vmem:[%s3036_s1 + $0x204] ss:$8 sps:$4 sm:$0xff]  }
  0x4a   :  { %1347 = vmatmul.mubr.bf16.gmra.mrb[4].mxu1 %v1761_v29 }
  0x4b   :  { %1360 = vmatpush1.bf16.msra.mxu1 %v2130_v14  ;;  %1500 = vmatmul.mubr.bf16.gmra.mrb[4].mxu0 %v1767_v35  ;;  %v2229_v14 = vld [vmem:[%s3036_s1 + $0x504] ss:$8 sps:$4 sm:$0xff]  }
  0x4c   :  { %1513 = vmatpush1.bf16.msra.mxu0 %v2133_v15  ;;  %1361 = vmatprep.subr.bf16.mxu1 %v2138_v16  ;;  %v2221_v15 = vld [vmem:[%s3036_s1 + $0x200] ss:$8 sps:$4 sm:$0xff]   ;;  %v2329_v35 = vld [vmem:[%s3037_s0 + $0x2c] ss:$48 sps:$4 sm:$0xff]  }
  0x4d   :  { %1514 = vmatprep.subr.bf16.mxu0 %v2141_v17  ;;  %1387 = vmatprep.mubr.bf16.mxu1 %v2220_v40  ;;  %v2224_v16 = vld [vmem:[%s3037_s0 + $0x20] ss:$48 sps:$4 sm:$0xff]  }
  0x4e   :  { %1540 = vmatprep.mubr.bf16.mxu0 %v2226_v43  ;;  %v2227_v17 = vld [vmem:[%s3036_s1 + $0x500] ss:$8 sps:$4 sm:$0xff]   ;;  %v2259_v43 = vld [vmem:[%s3036_s1 + $0x554] ss:$8 sps:$4 sm:$0xff]  }
  0x4f   :  { %1362 = vmatpush1.bf16.msra.mxu1 %v2136_v18  ;;  %v2232_v18 = vld [vmem:[%s3036_s1 + $0x214] ss:$8 sps:$4 sm:$0xff]   ;;  %v2248_v40 = vld [vmem:[%s3036_s1 + $0x240] ss:$8 sps:$4 sm:$0xff]  }
  0x50   :  { %1515 = vmatpush1.bf16.msra.mxu0 %v2139_v19  ;;  %1363 = vmatprep.subr.bf16.mxu1 %v2144_v20  ;;  %v2235_v19 = vld [vmem:[%s3036_s1 + $0x514] ss:$8 sps:$4 sm:$0xff]   ;;  %v33_v20 = vld [vmem:[%s3037_s0 + $0x68] sm:$0x33] }
  0x51   :  { %1516 = vmatprep.subr.bf16.mxu0 %v2147_v21  ;;  %v36_v21 = vld [vmem:[%s3037_s0 + $0x80] sm:$0x33]  ;;  %v1763_v29 = vcombine.low %v33_v20, %v33_v20 }
  0x53   :  { %1364 = vmatpush1.bf16.msra.mxu1 %v2142_v22  ;;  %v1764_v22 = vcombine.high %v33_v20, %v33_v20  ;;  %v2318_v20 = vld [vmem:[%s3036_s1 + $0x2f0] ss:$8 sps:$4 sm:$0xff]  }
  0x54   :  { %1517 = vmatpush1.bf16.msra.mxu0 %v2145_v23  ;;  %1365 = vmatprep.subr.bf16.mxu1 %v2150_v24  ;;  %v1770_v23 = vcombine.high %v36_v21, %v36_v21  ;;  %v2230_v24 = vld [vmem:[%s3036_s1 + $0x210] ss:$8 sps:$4 sm:$0xff]  }
  0x55   :  { %1518 = vmatprep.subr.bf16.mxu0 %v2153_v25  ;;  %v2233_v25 = vld [vmem:[%s3036_s1 + $0x510] ss:$8 sps:$4 sm:$0xff]  }
  0x57   :  { %1366 = vmatpush1.bf16.msra.mxu1 %v2148_v27  ;;  %v2241_v27 = vld [vmem:[%s3036_s1 + $0x524] ss:$8 sps:$4 sm:$0xff]  }
  0x58   :  { %1519 = vmatpush1.bf16.msra.mxu0 %v2151_v30  ;;  %1367 = vmatprep.subr.bf16.mxu1 %v2156_v32  ;;  %v1769_v30 = vcombine.low %v36_v21, %v36_v21  ;;  %v2244_v32 = vld [vmem:[%s3036_s1 + $0x234] ss:$8 sps:$4 sm:$0xff]   ;;  %v2321_v21 = vld [vmem:[%s3036_s1 + $0x5f0] ss:$8 sps:$4 sm:$0xff]  }
  0x59   :  { %1520 = vmatprep.subr.bf16.mxu0 %v2159_v33  ;;  %v2247_v33 = vld [vmem:[%s3036_s1 + $0x534] ss:$8 sps:$4 sm:$0xff]  }
  0x5b   :  { %1368 = vmatpush1.bf16.msra.mxu1 %v2154_v36  ;;  %v2242_v36 = vld [vmem:[%s3036_s1 + $0x230] ss:$8 sps:$4 sm:$0xff]  }
  0x5c   :  { %1521 = vmatpush1.bf16.msra.mxu0 %v2157_v37  ;;  %1369 = vmatprep.subr.bf16.mxu1 %v2162_v38  ;;  %v2245_v37 = vld [vmem:[%s3036_s1 + $0x530] ss:$8 sps:$4 sm:$0xff]   ;;  %v2250_v38 = vld [vmem:[%s3036_s1 + $0x244] ss:$8 sps:$4 sm:$0xff]  }
  0x5d   :  { %1522 = vmatprep.subr.bf16.mxu0 %v2165_v39  ;;  %v2253_v39 = vld [vmem:[%s3036_s1 + $0x544] ss:$8 sps:$4 sm:$0xff]  }
  0x5f   :  { %1370 = vmatpush1.bf16.msra.mxu1 %v2160_v41  ;;  %v2251_v41 = vld [vmem:[%s3036_s1 + $0x540] ss:$8 sps:$4 sm:$0xff]  }
  0x60   :  { %1523 = vmatpush1.bf16.msra.mxu0 %v2163_v42  ;;  %1371 = vmatprep.subr.bf16.mxu1 %v2168_v44  ;;  %v2256_v42 = vld [vmem:[%s3036_s1 + $0x254] ss:$8 sps:$4 sm:$0xff]   ;;  %v2254_v44 = vld [vmem:[%s3036_s1 + $0x250] ss:$8 sps:$4 sm:$0xff]  }
  0x61   :  { %1524 = vmatprep.subr.bf16.mxu0 %v2171_v45  ;;  %v2257_v45 = vld [vmem:[%s3036_s1 + $0x550] ss:$8 sps:$4 sm:$0xff]  }
  0x63   :  { %1372 = vmatpush1.bf16.msra.mxu1 %v2166_v46  ;;  %v2262_v46 = vld [vmem:[%s3036_s1 + $0x264] ss:$8 sps:$4 sm:$0xff]  }
  0x64   :  { %1525 = vmatpush1.bf16.msra.mxu0 %v2169_v47  ;;  %1373 = vmatprep.subr.bf16.mxu1 %v2174_v48  ;;  %v2265_v47 = vld [vmem:[%s3036_s1 + $0x564] ss:$8 sps:$4 sm:$0xff]   ;;  %v2260_v48 = vld [vmem:[%s3036_s1 + $0x260] ss:$8 sps:$4 sm:$0xff]  }
  0x65   :  { %1526 = vmatprep.subr.bf16.mxu0 %v2177_v49  ;;  %v2263_v49 = vld [vmem:[%s3036_s1 + $0x560] ss:$8 sps:$4 sm:$0xff]  }
  0x67   :  { %1374 = vmatpush1.bf16.msra.mxu1 %v2172_v50  ;;  %v2268_v50 = vld [vmem:[%s3036_s1 + $0x274] ss:$8 sps:$4 sm:$0xff]  }
  0x68   :  { %1527 = vmatpush1.bf16.msra.mxu0 %v2175_v51  ;;  %1375 = vmatprep.subr.bf16.mxu1 %v2180_v52  ;;  %v2271_v51 = vld [vmem:[%s3036_s1 + $0x574] ss:$8 sps:$4 sm:$0xff]   ;;  %v2266_v52 = vld [vmem:[%s3036_s1 + $0x270] ss:$8 sps:$4 sm:$0xff]  }
  0x69   :  { %1528 = vmatprep.subr.bf16.mxu0 %v2183_v53  ;;  %v2269_v53 = vld [vmem:[%s3036_s1 + $0x570] ss:$8 sps:$4 sm:$0xff]  }
  0x6b   :  { %1376 = vmatpush1.bf16.msra.mxu1 %v2178_v54  ;;  %v2274_v54 = vld [vmem:[%s3036_s1 + $0x284] ss:$8 sps:$4 sm:$0xff]  }
  0x6c   :  { %1529 = vmatpush1.bf16.msra.mxu0 %v2181_v55  ;;  %1377 = vmatprep.subr.bf16.mxu1 %v2186_v56  ;;  %v2277_v55 = vld [vmem:[%s3036_s1 + $0x584] ss:$8 sps:$4 sm:$0xff]   ;;  %v2272_v56 = vld [vmem:[%s3036_s1 + $0x280] ss:$8 sps:$4 sm:$0xff]  }
  0x6d   :  { %1530 = vmatprep.subr.bf16.mxu0 %v2189_v57  ;;  %v2275_v57 = vld [vmem:[%s3036_s1 + $0x580] ss:$8 sps:$4 sm:$0xff]  }
  0x6f   :  { %1378 = vmatpush1.bf16.msra.mxu1 %v2184_v58  ;;  %v2280_v58 = vld [vmem:[%s3036_s1 + $0x294] ss:$8 sps:$4 sm:$0xff]  }
  0x70   :  { %1531 = vmatpush1.bf16.msra.mxu0 %v2187_v59  ;;  %1379 = vmatprep.subr.bf16.mxu1 %v2192_v60  ;;  %v2283_v59 = vld [vmem:[%s3036_s1 + $0x594] ss:$8 sps:$4 sm:$0xff]   ;;  %v2278_v60 = vld [vmem:[%s3036_s1 + $0x290] ss:$8 sps:$4 sm:$0xff]  }
  0x71   :  { %1532 = vmatprep.subr.bf16.mxu0 %v2195_v61  ;;  %v2281_v61 = vld [vmem:[%s3036_s1 + $0x590] ss:$8 sps:$4 sm:$0xff]  }
  0x73   :  { %1380 = vmatpush1.bf16.msra.mxu1 %v2190_v62  ;;  %v2286_v62 = vld [vmem:[%s3036_s1 + $0x2a4] ss:$8 sps:$4 sm:$0xff]  }
  0x74   :  { %1533 = vmatpush1.bf16.msra.mxu0 %v2193_v63  ;;  %1381 = vmatprep.subr.bf16.mxu1 %v2198_v0  ;;  %v2289_v63 = vld [vmem:[%s3036_s1 + $0x5a4] ss:$8 sps:$4 sm:$0xff]   ;;  %v2284_v0 = vld [vmem:[%s3036_s1 + $0x2a0] ss:$8 sps:$4 sm:$0xff]  }
  0x75   :  { %1534 = vmatprep.subr.bf16.mxu0 %v2201_v1  ;;  %v2287_v1 = vld [vmem:[%s3036_s1 + $0x5a0] ss:$8 sps:$4 sm:$0xff]  }
  0x77   :  { %1382 = vmatpush1.bf16.msra.mxu1 %v2196_v2  ;;  %v2292_v2 = vld [vmem:[%s3036_s1 + $0x2b4] ss:$8 sps:$4 sm:$0xff]  }
  0x78   :  { %1535 = vmatpush1.bf16.msra.mxu0 %v2199_v3  ;;  %1383 = vmatprep.subr.bf16.mxu1 %v2205_v4  ;;  %v2295_v3 = vld [vmem:[%s3036_s1 + $0x5b4] ss:$8 sps:$4 sm:$0xff]   ;;  %v2290_v4 = vld [vmem:[%s3036_s1 + $0x2b0] ss:$8 sps:$4 sm:$0xff]  }
  0x79   :  { %1536 = vmatprep.subr.bf16.mxu0 %v2209_v5  ;;  %v2293_v5 = vld [vmem:[%s3036_s1 + $0x5b0] ss:$8 sps:$4 sm:$0xff]  }
  0x7b   :  { %1384 = vmatpush1.bf16.msra.mxu1 %v2203_v6  ;;  %v2298_v6 = vld [vmem:[%s3036_s1 + $0x2c4] ss:$8 sps:$4 sm:$0xff]  }
  0x7c   :  { %1537 = vmatpush1.bf16.msra.mxu0 %v2207_v7  ;;  %1385 = vmatprep.subr.bf16.mxu1 %v2214_v8  ;;  %v2301_v7 = vld [vmem:[%s3036_s1 + $0x5c4] ss:$8 sps:$4 sm:$0xff]   ;;  %v2296_v8 = vld [vmem:[%s3036_s1 + $0x2c0] ss:$8 sps:$4 sm:$0xff]  }
  0x7d   :  { %1538 = vmatprep.subr.bf16.mxu0 %v2217_v9  ;;  %v2299_v9 = vld [vmem:[%s3036_s1 + $0x5c0] ss:$8 sps:$4 sm:$0xff]  }
  0x7f   :  { %1386 = vmatpush1.bf16.msra.mxu1 %v2212_v10  ;;  %v2304_v10 = vld [vmem:[%s3036_s1 + $0x2d4] ss:$8 sps:$4 sm:$0xff]  }
  0x80   :  { %1539 = vmatpush1.bf16.msra.mxu0 %v2215_v11  ;;  %1406 = vmatprep.subr.bf16.mxu1 %v2223_v13  ;;  %v2307_v11 = vld [vmem:[%s3036_s1 + $0x5d4] ss:$8 sps:$4 sm:$0xff]   ;;  %v2305_v13 = vld [vmem:[%s3036_s1 + $0x5d0] ss:$8 sps:$4 sm:$0xff]  }
  0x81   :  { %1559 = vmatprep.subr.bf16.mxu0 %v2229_v14  ;;  %v2313_v14 = vld [vmem:[%s3036_s1 + $0x2e4] ss:$8 sps:$4 sm:$0xff]  }
  0x82   :  { %1388 = vmatmul.mubr.bf16.vlgmr.msra.gmra.mrb[0].mxu1 %v2218_v12  ;;  %v2302_v12 = vld [vmem:[%s3036_s1 + $0x2d0] ss:$8 sps:$4 sm:$0xff]  }
  0x83   :  { %1541 = vmatmul.mubr.bf16.vlgmr.msra.gmra.mrb[0].mxu0 %v2224_v16  ;;  %1407 = vmatpush1.bf16.msra.mxu1 %v2221_v15  ;;  %v2317_v15 = vld [vmem:[%s3036_s1 + $0x5e4] ss:$8 sps:$4 sm:$0xff]   ;;  %v2311_v16 = vld [vmem:[%s3036_s1 + $0x2e0] ss:$8 sps:$4 sm:$0xff]  }
  0x84   :  { %1560 = vmatpush1.bf16.msra.mxu0 %v2227_v17  ;;  %1408 = vmatprep.subr.bf16.mxu1 %v2232_v18  ;;  %v2315_v17 = vld [vmem:[%s3036_s1 + $0x5e0] ss:$8 sps:$4 sm:$0xff]   ;;  %v2320_v18 = vld [vmem:[%s3036_s1 + $0x2f4] ss:$8 sps:$4 sm:$0xff]  }
  0x85   :  { %1561 = vmatprep.subr.bf16.mxu0 %v2235_v19  ;;  %1397 = vmatprep.mubr.bf16.mxu1 %v1764_v22  ;;  %v2323_v19 = vld [vmem:[%s3036_s1 + $0x5f4] ss:$8 sps:$4 sm:$0xff]  }
  0x86   :  { %1550 = vmatprep.mubr.bf16.mxu0 %v1770_v23  ;;  %v34_v22 = vld [vmem:[%s3037_s0 + $0x70] sm:$0x33]  ;;  %v37_v23 = vld [vmem:[%s3037_s0 + $0x88] sm:$0x33] }
  0x87   :  { %1409 = vmatpush1.bf16.msra.mxu1 %v2230_v24  ;;  %v2324_v24 = vld [vmem:[%s3037_s0 + $0x10] ss:$48 sps:$4 sm:$0xff]  }
  0x88   :  { %1562 = vmatpush1.bf16.msra.mxu0 %v2233_v25  ;;  %1410 = vmatprep.subr.bf16.mxu1 %v2238_v26  ;;  %v2327_v25 = vld [vmem:[%s3037_s0 + $0x28] ss:$48 sps:$4 sm:$0xff]   ;;  %v1766_v26 = vcombine.high %v34_v22, %v34_v22 }
  0x89   :  { %1563 = vmatprep.subr.bf16.mxu0 %v2241_v27  ;;  %v1772_v27 = vcombine.high %v37_v23, %v37_v23 }
  0x8a   :  { %1398 = vmatmul.mubr.bf16.gmra.mrb[4].mxu1 %v1763_v29  ;;  %v1771_v29 = vcombine.low %v37_v23, %v37_v23 }
  0x8b   :  { %1551 = vmatmul.mubr.bf16.gmra.mrb[4].mxu0 %v1769_v30  ;;  %1411 = vmatpush1.bf16.msra.mxu1 %v2236_v28  ;;  %v1765_v28 = vcombine.low %v34_v22, %v34_v22  ;;  %v232_v30 = vlaneseq }
  0x8c   :  { %1564 = vmatpush1.bf16.msra.mxu0 %v2239_v31  ;;  %1412 = vmatprep.subr.bf16.mxu1 %v2244_v32 }
  0x8d   :  { %1565 = vmatprep.subr.bf16.mxu0 %v2247_v33  ;;  %1438 = vmatprep.mubr.bf16.mxu1 %v2326_v34  ;;  %v2999_v31 = vshrl.u32 %v232_v30, 7  ;;  %v230_v33 = vld [vmem:[%s3038_s2] sm:$0x3] }
  0x8e   :  { %1591 = vmatprep.mubr.bf16.mxu0 %v2329_v35 }
  0x8f   :  { %1413 = vmatpush1.bf16.msra.mxu1 %v2242_v36  ;;  %v3002_v32 = vsub.s32 0, %v2999_v31  ;;  %v3008_v34 = vsub.s32 1, %v2999_v31 }
  0x90   :  { %1566 = vmatpush1.bf16.msra.mxu0 %v2245_v37  ;;  %1414 = vmatprep.subr.bf16.mxu1 %v2250_v38 }
  0x91   :  { %1567 = vmatprep.subr.bf16.mxu0 %v2253_v39  ;;  %v235_v35 = vrot.slane %v230_v33, %v3002_v32  ;;  %v239_v36 = vrot.slane %v230_v33, %v3008_v34 }
  0x93   :  { %1415 = vmatpush1.bf16.msra.mxu1 %v2248_v40 }
  0x94   :  { %1568 = vmatpush1.bf16.msra.mxu0 %v2251_v41  ;;  %1416 = vmatprep.subr.bf16.mxu1 %v2256_v42 }
  0x95   :  { %1569 = vmatprep.subr.bf16.mxu0 %v2259_v43 }
  0x97   :  { %1417 = vmatpush1.bf16.msra.mxu1 %v2254_v44 }
  0x98   :  { %1570 = vmatpush1.bf16.msra.mxu0 %v2257_v45  ;;  %1418 = vmatprep.subr.bf16.mxu1 %v2262_v46 }
  0x99   :  { %1571 = vmatprep.subr.bf16.mxu0 %v2265_v47 }
  0x9b   :  { %1419 = vmatpush1.bf16.msra.mxu1 %v2260_v48 }
  0x9c   :  { %1572 = vmatpush1.bf16.msra.mxu0 %v2263_v49  ;;  %1420 = vmatprep.subr.bf16.mxu1 %v2268_v50 }
  0x9d   :  { %1573 = vmatprep.subr.bf16.mxu0 %v2271_v51 }
  0x9f   :  { %1421 = vmatpush1.bf16.msra.mxu1 %v2266_v52 }
  0xa0   :  { %1574 = vmatpush1.bf16.msra.mxu0 %v2269_v53  ;;  %1422 = vmatprep.subr.bf16.mxu1 %v2274_v54 }
  0xa1   :  { %1575 = vmatprep.subr.bf16.mxu0 %v2277_v55 }
  0xa3   :  { %1423 = vmatpush1.bf16.msra.mxu1 %v2272_v56 }
  0xa4   :  { %1576 = vmatpush1.bf16.msra.mxu0 %v2275_v57  ;;  %1424 = vmatprep.subr.bf16.mxu1 %v2280_v58 }
  0xa5   :  { %1577 = vmatprep.subr.bf16.mxu0 %v2283_v59 }
  0xa7   :  { %1425 = vmatpush1.bf16.msra.mxu1 %v2278_v60 }
  0xa8   :  { %1578 = vmatpush1.bf16.msra.mxu0 %v2281_v61  ;;  %1426 = vmatprep.subr.bf16.mxu1 %v2286_v62 }
  0xa9   :  { %1579 = vmatprep.subr.bf16.mxu0 %v2289_v63 }
  0xab   :  { %1427 = vmatpush1.bf16.msra.mxu1 %v2284_v0 }
  0xac   :  { %1580 = vmatpush1.bf16.msra.mxu0 %v2287_v1  ;;  %1428 = vmatprep.subr.bf16.mxu1 %v2292_v2 }
  0xad   :  { %1581 = vmatprep.subr.bf16.mxu0 %v2295_v3 }
  0xaf   :  { %1429 = vmatpush1.bf16.msra.mxu1 %v2290_v4 }
  0xb0   :  { %1582 = vmatpush1.bf16.msra.mxu0 %v2293_v5  ;;  %1430 = vmatprep.subr.bf16.mxu1 %v2298_v6 }
  0xb1   :  { %1583 = vmatprep.subr.bf16.mxu0 %v2301_v7 }
  0xb3   :  { %1431 = vmatpush1.bf16.msra.mxu1 %v2296_v8 }
  0xb4   :  { %1584 = vmatpush1.bf16.msra.mxu0 %v2299_v9  ;;  %1432 = vmatprep.subr.bf16.mxu1 %v2304_v10 }
  0xb5   :  { %1585 = vmatprep.subr.bf16.mxu0 %v2307_v11 }
  0xb7   :  { %1433 = vmatpush1.bf16.msra.mxu1 %v2302_v12 }
  0xb8   :  { %1586 = vmatpush1.bf16.msra.mxu0 %v2305_v13  ;;  %1434 = vmatprep.subr.bf16.mxu1 %v2313_v14 }
  0xb9   :  { %1587 = vmatprep.subr.bf16.mxu0 %v2317_v15 }
  0xbb   :  { %1435 = vmatpush1.bf16.msra.mxu1 %v2311_v16 }
  0xbc   :  { %1588 = vmatpush1.bf16.msra.mxu0 %v2315_v17  ;;  %1436 = vmatprep.subr.bf16.mxu1 %v2320_v18 }
  0xbd   :  { %1589 = vmatprep.subr.bf16.mxu0 %v2323_v19 }
  0xbf   :  { %1437 = vmatpush1.bf16.msra.mxu1 %v2318_v20 }
  0xc0   :  { %1590 = vmatpush1.bf16.msra.mxu0 %v2321_v21 }
  0xc2   :  { %1439 = vmatmul.mubr.bf16.vlgmr.msra.gmra.mrb[0].mxu1 %v2324_v24 }
  0xc3   :  { %1592 = vmatmul.mubr.bf16.vlgmr.msra.gmra.mrb[0].mxu0 %v2327_v25  ;;  %1448 = vmatprep.mubr.bf16.mxu1 %v1766_v26 }
  0xc4   :  { %1601 = vmatprep.mubr.bf16.mxu0 %v1772_v27 }
  0xca   :  { %1449 = vmatmul.mubr.bf16.gmra.mrb[4].mxu1 %v1765_v28 }
  0xcb   :  { %1602 = vmatmul.mubr.bf16.gmra.mrb[4].mxu0 %v1771_v29 }
 0x195   :  { %v1440_v37 = vpop.f32.mrb[0].mxu1 }
 0x196   :  { %v1593_v38 = vpop.f32.mrb[0].mxu0  ;;  %v1971_v39 = vadd.f32 %v1440_v37, %v235_v35  ;;  %v1442_v40 = vpop.f32.mrb[1].mxu1 }
 0x197   :  { %v1595_v41 = vpop.f32.mrb[1].mxu0  ;;  %v1973_v42 = vadd.f32 %v1442_v40, %v239_v36  ;;  %v1444_v43 = vpop.f32.mrb[2].mxu1 }
 0x198   :  { %v1597_v44 = vpop.f32.mrb[2].mxu0  ;;  %v1972_v45 = vadd.f32 %v1971_v39, %v1593_v38  ;;  %v1975_v46 = vadd.f32 %v1444_v43, %v235_v35  ;;  %v1446_v47 = vpop.f32.mrb[3].mxu1 }
 0x199   :  { %v1599_v48 = vpop.f32.mrb[3].mxu0  ;;  %v1974_v49 = vadd.f32 %v1973_v42, %v1595_v41  ;;  %v1977_v50 = vadd.f32 %v1446_v47, %v239_v36 }
 0x19a   :  { %v1976_v51 = vadd.f32 %v1975_v46, %v1597_v44 }
 0x19b   :  { %v1978_v52 = vadd.f32 %v1977_v50, %v1599_v48 }
 0x19c   :  { %v1610_v53 = vadd.f32 %v1976_v51, %v1972_v45 }
 0x19d   :  { %v1620_v54 = vadd.f32 %v1978_v52, %v1974_v49  ;;  %v1450_v55 = vpop.f32.mrb[4].mxu1 }
 0x19e   :  { %v1603_v56 = vpop.f32.mrb[4].mxu0  ;;  %v1979_v57 = vadd.f32 %v1450_v55, %v235_v35  ;;  %v1452_v58 = vpop.f32.mrb[5].mxu1 }
 0x19f   :  { %v1605_v59 = vpop.f32.mrb[5].mxu0  ;;  %v1981_v60 = vadd.f32 %v1452_v58, %v239_v36  ;;  %v1454_v61 = vpop.f32.mrb[6].mxu1  ;;  %v2338_v58 = vmov 1966171168  }
 0x1a0   :  { %v1607_v62 = vpop.f32.mrb[6].mxu0  ;;  %v1980_v63 = vadd.f32 %v1979_v57, %v1603_v56  ;;  %v1455_v0 = vpop.f32.mrb[7].mxu1 }
 0x1a1   :  { %v1608_v1 = vpop.f32.mrb[7].mxu0  ;;  %v1982_v2 = vadd.f32 %v1981_v60, %v1605_v59  ;;  %v1672_v59 = vunpack.c.l.s4 %v2338_v58 }
 0x1a2   :  { %v1612_v3 = vsel %vm1611_vm0, %v1980_v63, 0.0 }
 0x1a3   :  { %v1613_v4 = vadd.f32 %v1612_v3, %v1610_v53  ;;  %v1621_v5 = vsel %vm1611_vm0, %v1982_v2, 0.0  ;;  %v1673_v60 = vunpack.c.0.s8 %v1672_v59 }
 0x1a4   :  { %v1622_v6 = vadd.f32 %v1621_v5, %v1620_v54 }
 0x1a5   :  { %v1614_v7 = vrot.slane %v1613_v4, 4  ;;  %v1676_v62 = vsub.s32 %v1673_v60, %v2999_v31 }
 0x1a6   :  { %v1623_v8 = vrot.slane %v1622_v6, 4 }
 0x1a7   :  { %v1615_v9 = vadd.f32 %v1614_v7, %v1613_v4  ;;  %v1704_v4 = vld [vmem:[%s3040_s4] sm:$0x3] }
 0x1a8   :  { %v1624_v10 = vadd.f32 %v1623_v8, %v1622_v6  ;;  %v1709_v8 = vrot.slane %v1704_v4, %v3002_v32  ;;  %v1713_v31 = vrot.slane %v1704_v4, %v3008_v34 }
 0x1a9   :  { %v1616_v11 = vrot.slane %v1615_v9, 2 }
 0x1aa   :  { %v1625_v12 = vrot.slane %v1624_v10, 2 }
 0x1ab   :  { %v1617_v13 = vadd.f32 %v1616_v11, %v1615_v9 }
 0x1ac   :  { %v1626_v14 = vadd.f32 %v1625_v12, %v1624_v10 }
 0x1ad   :  { %v1618_v15 = vrot.slane %v1617_v13, 1 }
 0x1ae   :  { %v1627_v16 = vrot.slane %v1626_v14, 1 }
 0x1af   :  { %v1619_v17 = vadd.f32 %v1618_v15, %v1617_v13 }
 0x1b0   :  { %v1628_v18 = vadd.f32 %v1627_v16, %v1626_v14 }
 0x1b1   :  { %v1629_v19 = vmul.f32 0.05, %v1619_v17 }
 0x1b2   :  { %v1630_v20 = vmul.f32 0.05, %v1628_v18 }
 0x1b3   :  { %v1631_v21 = vsub.f32 %v1972_v45, %v1629_v19  ;;  %v1633_v22 = vsub.f32 %v1976_v51, %v1629_v19  ;;  %v1635_v23 = vsub.f32 %v1980_v63, %v1629_v19 }
 0x1b4   :  { %v1632_v24 = vsub.f32 %v1974_v49, %v1630_v20  ;;  %v1634_v25 = vsub.f32 %v1978_v52, %v1630_v20  ;;  %v1636_v26 = vsub.f32 %v1982_v2, %v1630_v20  ;;  %v1663_v2 = vld [vmem:[%s3039_s3] sm:$0x3] }
 0x1b5   :  { %v1637_v27 = vmul.f32 %v1631_v21, %v1631_v21  ;;  %v1639_v28 = vmul.f32 %v1633_v22, %v1633_v22  ;;  %v1641_v29 = vmul.f32 %v1635_v23, %v1635_v23 }
 0x1b6   :  { %v1638_v30 = vmul.f32 %v1632_v24, %v1632_v24  ;;  %v1640_v33 = vmul.f32 %v1634_v25, %v1634_v25  ;;  %v1642_v35 = vmul.f32 %v1636_v26, %v1636_v26 }
 0x1b7   :  { %v1643_v36 = vadd.f32 %v1639_v28, %v1637_v27  ;;  %v1644_v37 = vsel %vm1611_vm0, %v1641_v29, 0.0 }
 0x1b8   :  { %v1652_v38 = vadd.f32 %v1640_v33, %v1638_v30  ;;  %v1653_v39 = vsel %vm1611_vm0, %v1642_v35, 0.0 }
 0x1b9   :  { %v1645_v40 = vadd.f32 %v1644_v37, %v1643_v36 }
 0x1ba   :  { %v1654_v41 = vadd.f32 %v1653_v39, %v1652_v38 }
 0x1bb   :  { %v1646_v42 = vrot.slane %v1645_v40, 4 }
 0x1bc   :  { %v1655_v43 = vrot.slane %v1654_v41, 4 }
 0x1bd   :  { %v1647_v44 = vadd.f32 %v1646_v42, %v1645_v40 }
 0x1be   :  { %v1656_v45 = vadd.f32 %v1655_v43, %v1654_v41 }
 0x1bf   :  { %v1648_v46 = vrot.slane %v1647_v44, 2 }
 0x1c0   :  { %v1657_v47 = vrot.slane %v1656_v45, 2 }
 0x1c1   :  { %v1649_v48 = vadd.f32 %v1648_v46, %v1647_v44 }
 0x1c2   :  { %v1658_v49 = vadd.f32 %v1657_v47, %v1656_v45 }
 0x1c3   :  { %v1650_v50 = vrot.slane %v1649_v48, 1 }
 0x1c4   :  { %v1659_v51 = vrot.slane %v1658_v49, 1 }
 0x1c5   :  { %v1651_v52 = vadd.f32 %v1650_v50, %v1649_v48 }
 0x1c6   :  { %v1660_v53 = vadd.f32 %v1659_v51, %v1658_v49 }
 0x1c7   :  { %v1661_v54 = vmul.f32 0.05, %v1651_v52 }
 0x1c8   :  { %v1662_v55 = vmul.f32 0.05, %v1660_v53 }
 0x1c9   :  { %v1664_v56 = vadd.f32 1e-05, %v1661_v54 }
 0x1ca   :  { %v1665_v57 = vadd.f32 1e-05, %v1662_v55 }
 0x1cb   :  { %2334 = vrsqrt.f32 %v1664_v56 }
 0x1cc   :  { %2336 = vrsqrt.f32 %v1665_v57 }
 0x1d5   :  { %v2335_v61 = vpop.eup %2334 }
 0x1d6   :  { %v2337_v63 = vpop.eup %2336 }
 0x1d7   :  { %v1670_v0 = vcombine.low %v2335_v61, %v2337_v63 }
 0x1d9   :  { %v1677_v1 = vrot.slane %v1670_v0, %v1676_v62 }
 0x1db   :  { %v1684_v3 = vrot.slane %v1677_v1, %v1676_v62 }
 0x1dd   :  { %v1686_v5 = vmul.f32 %v1684_v3, %v1663_v2 }
 0x1df   :  { %v1691_v6 = vrot.slane %v1686_v5, %v3002_v32  ;;  %v1695_v7 = vrot.slane %v1686_v5, %v3008_v34 }
 0x1e1   :  { %v1698_v9 = vmul.f32 %v1691_v6, %v1631_v21  ;;  %v1699_v10 = vmul.f32 %v1695_v7, %v1632_v24  ;;  %v1700_v11 = vmul.f32 %v1691_v6, %v1633_v22  ;;  %v1701_v12 = vmul.f32 %v1695_v7, %v1634_v25 }
 0x1e2   :  { %v1702_v13 = vmul.f32 %v1691_v6, %v1635_v23  ;;  %v1703_v14 = vmul.f32 %v1695_v7, %v1636_v26 }
 0x1e3   :  { %v1716_v15 = vadd.f32 %v1709_v8, %v1698_v9  ;;  %v1717_v16 = vadd.f32 %v1713_v31, %v1699_v10  ;;  %v1718_v17 = vadd.f32 %v1709_v8, %v1700_v11  ;;  %v1719_v18 = vadd.f32 %v1713_v31, %v1701_v12 }
 0x1e4   :  { %v1720_v19 = vadd.f32 %v1709_v8, %v1702_v13  ;;  %v1721_v20 = vadd.f32 %v1713_v31, %v1703_v14 }
 0x1e5   :  { %v1968_v27 = vpack.c.bf16 %v1717_v16, %v1716_v15  ;;  %v1969_v28 = vpack.c.bf16 %v1719_v18, %v1718_v17 }
 0x1e6   :  { %v1970_v29 = vpack.c.bf16 %v1721_v20, %v1720_v19 }
 0x1e7   :  { %1742 = vst [vmem:[%s3041_s5] sm:$0xff] %v1968_v27  ;;  %1743 = vst [vmem:[%s3041_s5 + $0x8] sm:$0xff] %v1969_v28 }
 0x1e8   :  { %1744 = vst [vmem:[%s3041_s5 + $0x10] sm:$0x33] %v1970_v29 }

// kernel: df_forward.16
= control target key start
LH: loop header
LB: loop body
LE: loop exit
PB: predicated region body
PF: predicated region fallthrough
CT: control target
= control target key end

     0   :  { %vm822_vm0 = vcmask 1043456   ;;  %s1677_s1 = inlined_call_operand.vmem [shape: bf16[768,256], index: 1, kind: input, shape index: {}]   ;;  %s1678_s0 = inlined_call_operand.vmem [shape: bf16[20,768], index: 0, kind: input, shape index: {}]   ;;  %s1679_s2 = inlined_call_operand.vmem [shape: f32[1,256], index: 2, kind: input, shape index: {}]   ;;  %s1680_s3 = inlined_call_operand.vmem [shape: f32[1,256], index: 3, kind: input, shape index: {}]   ;;  %s1681_s4 = inlined_call_operand.vmem [shape: f32[1,256], index: 4, kind: input, shape index: {}]   ;;  %s1682_s5 = inlined_call_operand.vmem [shape: bf16[20,256], index: 5, kind: output, shape index: {}]  }
   0x1   :  { %v1125_v0 = vld [vmem:[%s1677_s1 + $0x4] ss:$8 sps:$4 sm:$0xff]   ;;  %v1129_v2 = vld [vmem:[%s1677_s1] ss:$8 sps:$4 sm:$0xff]   ;;  %v1131_v4 = vld [vmem:[%s1677_s1 + $0x14] ss:$8 sps:$4 sm:$0xff]  }
   0x2   :  { %v1127_v1 = vld [vmem:[%s1677_s1 + $0x104] ss:$8 sps:$4 sm:$0xff]   ;;  %668 = vmatprep.subr.bf16.mxu1 %v1125_v0  ;;  %v1130_v3 = vld [vmem:[%s1677_s1 + $0x100] ss:$8 sps:$4 sm:$0xff]   ;;  %v1133_v5 = vld [vmem:[%s1677_s1 + $0x114] ss:$8 sps:$4 sm:$0xff]  }
   0x3   :  { %719 = vmatprep.subr.bf16.mxu0 %v1127_v1  ;;  %669 = vmatpush1.bf16.msra.mxu1 %v1129_v2  ;;  %v1135_v6 = vld [vmem:[%s1677_s1 + $0x10] ss:$8 sps:$4 sm:$0xff]   ;;  %v1137_v8 = vld [vmem:[%s1677_s1 + $0x24] ss:$8 sps:$4 sm:$0xff]   ;;  %v1141_v10 = vld [vmem:[%s1677_s1 + $0x20] ss:$8 sps:$4 sm:$0xff]  }
   0x4   :  { %720 = vmatpush1.bf16.msra.mxu0 %v1130_v3  ;;  %670 = vmatprep.subr.bf16.mxu1 %v1131_v4  ;;  %v1136_v7 = vld [vmem:[%s1677_s1 + $0x110] ss:$8 sps:$4 sm:$0xff]   ;;  %v1139_v9 = vld [vmem:[%s1677_s1 + $0x124] ss:$8 sps:$4 sm:$0xff]   ;;  %v1142_v11 = vld [vmem:[%s1677_s1 + $0x120] ss:$8 sps:$4 sm:$0xff]  }
   0x5   :  { %721 = vmatprep.subr.bf16.mxu0 %v1133_v5  ;;  %v1143_v12 = vld [vmem:[%s1677_s1 + $0x34] ss:$8 sps:$4 sm:$0xff]   ;;  %v1147_v14 = vld [vmem:[%s1677_s1 + $0x30] ss:$8 sps:$4 sm:$0xff]   ;;  %v1149_v16 = vld [vmem:[%s1677_s1 + $0x44] ss:$8 sps:$4 sm:$0xff]  }
   0x6   :  { %v1145_v13 = vld [vmem:[%s1677_s1 + $0x134] ss:$8 sps:$4 sm:$0xff]   ;;  %v1148_v15 = vld [vmem:[%s1677_s1 + $0x130] ss:$8 sps:$4 sm:$0xff]   ;;  %v1151_v17 = vld [vmem:[%s1677_s1 + $0x144] ss:$8 sps:$4 sm:$0xff]  }
   0x7   :  { %671 = vmatpush1.bf16.msra.mxu1 %v1135_v6  ;;  %v1153_v18 = vld [vmem:[%s1677_s1 + $0x40] ss:$8 sps:$4 sm:$0xff]   ;;  %v1155_v20 = vld [vmem:[%s1677_s1 + $0x54] ss:$8 sps:$4 sm:$0xff]   ;;  %v1159_v22 = vld [vmem:[%s1677_s1 + $0x50] ss:$8 sps:$4 sm:$0xff]  }
   0x8   :  { %722 = vmatpush1.bf16.msra.mxu0 %v1136_v7  ;;  %672 = vmatprep.subr.bf16.mxu1 %v1137_v8  ;;  %v1154_v19 = vld [vmem:[%s1677_s1 + $0x140] ss:$8 sps:$4 sm:$0xff]   ;;  %v1157_v21 = vld [vmem:[%s1677_s1 + $0x154] ss:$8 sps:$4 sm:$0xff]   ;;  %v1160_v23 = vld [vmem:[%s1677_s1 + $0x150] ss:$8 sps:$4 sm:$0xff]  }
   0x9   :  { %723 = vmatprep.subr.bf16.mxu0 %v1139_v9  ;;  %v1161_v24 = vld [vmem:[%s1677_s1 + $0x64] ss:$8 sps:$4 sm:$0xff]   ;;  %v1165_v26 = vld [vmem:[%s1677_s1 + $0x60] ss:$8 sps:$4 sm:$0xff]   ;;  %v1167_v28 = vld [vmem:[%s1677_s1 + $0x74] ss:$8 sps:$4 sm:$0xff]  }
   0xa   :  { %v1163_v25 = vld [vmem:[%s1677_s1 + $0x164] ss:$8 sps:$4 sm:$0xff]   ;;  %v1166_v27 = vld [vmem:[%s1677_s1 + $0x160] ss:$8 sps:$4 sm:$0xff]   ;;  %v1169_v29 = vld [vmem:[%s1677_s1 + $0x174] ss:$8 sps:$4 sm:$0xff]  }
   0xb   :  { %673 = vmatpush1.bf16.msra.mxu1 %v1141_v10  ;;  %v1171_v30 = vld [vmem:[%s1677_s1 + $0x70] ss:$8 sps:$4 sm:$0xff]   ;;  %v1173_v32 = vld [vmem:[%s1677_s1 + $0x84] ss:$8 sps:$4 sm:$0xff]   ;;  %v1177_v34 = vld [vmem:[%s1677_s1 + $0x80] ss:$8 sps:$4 sm:$0xff]  }
   0xc   :  { %724 = vmatpush1.bf16.msra.mxu0 %v1142_v11  ;;  %674 = vmatprep.subr.bf16.mxu1 %v1143_v12  ;;  %v1172_v31 = vld [vmem:[%s1677_s1 + $0x170] ss:$8 sps:$4 sm:$0xff]   ;;  %v1175_v33 = vld [vmem:[%s1677_s1 + $0x184] ss:$8 sps:$4 sm:$0xff]   ;;  %v1178_v35 = vld [vmem:[%s1677_s1 + $0x180] ss:$8 sps:$4 sm:$0xff]  }
   0xd   :  { %725 = vmatprep.subr.bf16.mxu0 %v1145_v13  ;;  %v1179_v36 = vld [vmem:[%s1677_s1 + $0x94] ss:$8 sps:$4 sm:$0xff]   ;;  %v1183_v38 = vld [vmem:[%s1677_s1 + $0x90] ss:$8 sps:$4 sm:$0xff]   ;;  %v1185_v40 = vld [vmem:[%s1677_s1 + $0xa4] ss:$8 sps:$4 sm:$0xff]  }
   0xe   :  { %v1181_v37 = vld [vmem:[%s1677_s1 + $0x194] ss:$8 sps:$4 sm:$0xff]   ;;  %v1184_v39 = vld [vmem:[%s1677_s1 + $0x190] ss:$8 sps:$4 sm:$0xff]   ;;  %v1187_v41 = vld [vmem:[%s1677_s1 + $0x1a4] ss:$8 sps:$4 sm:$0xff]  }
   0xf   :  { %675 = vmatpush1.bf16.msra.mxu1 %v1147_v14  ;;  %v1189_v42 = vld [vmem:[%s1677_s1 + $0xa0] ss:$8 sps:$4 sm:$0xff]   ;;  %v1191_v44 = vld [vmem:[%s1677_s1 + $0xb4] ss:$8 sps:$4 sm:$0xff]   ;;  %v1195_v46 = vld [vmem:[%s1677_s1 + $0xb0] ss:$8 sps:$4 sm:$0xff]  }
  0x10   :  { %726 = vmatpush1.bf16.msra.mxu0 %v1148_v15  ;;  %676 = vmatprep.subr.bf16.mxu1 %v1149_v16  ;;  %v1190_v43 = vld [vmem:[%s1677_s1 + $0x1a0] ss:$8 sps:$4 sm:$0xff]   ;;  %v1193_v45 = vld [vmem:[%s1677_s1 + $0x1b4] ss:$8 sps:$4 sm:$0xff]   ;;  %v1196_v47 = vld [vmem:[%s1677_s1 + $0x1b0] ss:$8 sps:$4 sm:$0xff]  }
  0x11   :  { %727 = vmatprep.subr.bf16.mxu0 %v1151_v17  ;;  %v1197_v48 = vld [vmem:[%s1677_s1 + $0xc4] ss:$8 sps:$4 sm:$0xff]   ;;  %v1201_v52 = vld [vmem:[%s1677_s1 + $0xc0] ss:$8 sps:$4 sm:$0xff]   ;;  %v1203_v54 = vld [vmem:[%s1677_s1 + $0xd4] ss:$8 sps:$4 sm:$0xff]  }
  0x12   :  { %v1223_v49 = vld [vmem:[%s1678_s0 + $0x4] ss:$24 sps:$4 sm:$0xff]   ;;  %v1202_v53 = vld [vmem:[%s1677_s1 + $0x1c0] ss:$8 sps:$4 sm:$0xff]   ;;  %v1207_v56 = vld [vmem:[%s1677_s1 + $0xd0] ss:$8 sps:$4 sm:$0xff]  }
  0x13   :  { %677 = vmatpush1.bf16.msra.mxu1 %v1153_v18  ;;  %v1199_v50 = vld [vmem:[%s1677_s1 + $0x1c4] ss:$8 sps:$4 sm:$0xff]   ;;  %700 = vmatprep.mubr.bf16.mxu1 %v1223_v49  ;;  %v1205_v55 = vld [vmem:[%s1677_s1 + $0x1d4] ss:$8 sps:$4 sm:$0xff]   ;;  %v1208_v57 = vld [vmem:[%s1677_s1 + $0x1d0] ss:$8 sps:$4 sm:$0xff]  }
  0x14   :  { %728 = vmatpush1.bf16.msra.mxu0 %v1154_v19  ;;  %678 = vmatprep.subr.bf16.mxu1 %v1155_v20  ;;  %v1226_v51 = vld [vmem:[%s1678_s0 + $0xc] ss:$24 sps:$4 sm:$0xff]   ;;  %v1213_v60 = vld [vmem:[%s1677_s1 + $0xe0] ss:$8 sps:$4 sm:$0xff]   ;;  %v1215_v62 = vld [vmem:[%s1677_s1 + $0xf4] ss:$8 sps:$4 sm:$0xff]  }
  0x15   :  { %729 = vmatprep.subr.bf16.mxu0 %v1157_v21  ;;  %751 = vmatprep.mubr.bf16.mxu0 %v1226_v51  ;;  %v1209_v58 = vld [vmem:[%s1677_s1 + $0xe4] ss:$8 sps:$4 sm:$0xff]   ;;  %v1214_v61 = vld [vmem:[%s1677_s1 + $0x1e0] ss:$8 sps:$4 sm:$0xff]   ;;  %v1217_v63 = vld [vmem:[%s1677_s1 + $0x1f4] ss:$8 sps:$4 sm:$0xff]  }
  0x16   :  { %v1211_v59 = vld [vmem:[%s1677_s1 + $0x1e4] ss:$8 sps:$4 sm:$0xff]   ;;  %v1219_v0 = vld [vmem:[%s1677_s1 + $0xf0] ss:$8 sps:$4 sm:$0xff]   ;;  %v1224_v4 = vld [vmem:[%s1678_s0 + $0x8] ss:$24 sps:$4 sm:$0xff]  }
  0x17   :  { %679 = vmatpush1.bf16.msra.mxu1 %v1159_v22  ;;  %v1220_v1 = vld [vmem:[%s1677_s1 + $0x1f0] ss:$8 sps:$4 sm:$0xff]   ;;  %v1229_v2 = vld [vmem:[%s1677_s1 + $0x204] ss:$8 sps:$4 sm:$0xff]   ;;  %v1227_v7 = vld [vmem:[%s1677_s1 + $0x200] ss:$8 sps:$4 sm:$0xff]  }
  0x18   :  { %730 = vmatpush1.bf16.msra.mxu0 %v1160_v23  ;;  %680 = vmatprep.subr.bf16.mxu1 %v1161_v24  ;;  %v1221_v3 = vld [vmem:[%s1678_s0] ss:$24 sps:$4 sm:$0xff]   ;;  %v26_v5 = vld [vmem:[%s1678_s0 + $0x30] sm:$0x33]  ;;  %v1235_v12 = vld [vmem:[%s1677_s1 + $0x224] ss:$8 sps:$4 sm:$0xff]  }
  0x19   :  { %731 = vmatprep.subr.bf16.mxu0 %v1163_v25  ;;  %v27_v6 = vld [vmem:[%s1678_s0 + $0x38] sm:$0x33]  ;;  %v967_v9 = vcombine.high %v26_v5, %v26_v5  ;;  %v966_v13 = vcombine.low %v26_v5, %v26_v5  ;;  %v1547_v15 = vld [vmem:[%s1678_s0 + $0x40] sm:$0x33]  ;;  %v1281_v18 = vld [vmem:[%s1678_s0 + $0x14] ss:$24 sps:$4 sm:$0xff]  }
  0x1a   :  { %v1232_v8 = vld [vmem:[%s1677_s1 + $0x214] ss:$8 sps:$4 sm:$0xff]   ;;  %v969_v10 = vcombine.high %v27_v6, %v27_v6  ;;  %v1230_v11 = vld [vmem:[%s1677_s1 + $0x210] ss:$8 sps:$4 sm:$0xff]   ;;  %v968_v14 = vcombine.low %v27_v6, %v27_v6  ;;  %v1233_v16 = vld [vmem:[%s1677_s1 + $0x220] ss:$8 sps:$4 sm:$0xff]   ;;  %v971_v19 = vcombine.high %v1547_v15, %v1547_v15 }
  0x1b   :  { %681 = vmatpush1.bf16.msra.mxu1 %v1165_v26  ;;  %v1238_v17 = vld [vmem:[%s1677_s1 + $0x234] ss:$8 sps:$4 sm:$0xff]   ;;  %v1236_v20 = vld [vmem:[%s1677_s1 + $0x230] ss:$8 sps:$4 sm:$0xff]   ;;  %v1241_v21 = vld [vmem:[%s1677_s1 + $0x244] ss:$8 sps:$4 sm:$0xff]  }
  0x1c   :  { %732 = vmatpush1.bf16.msra.mxu0 %v1166_v27  ;;  %682 = vmatprep.subr.bf16.mxu1 %v1167_v28  ;;  %v1239_v22 = vld [vmem:[%s1677_s1 + $0x240] ss:$8 sps:$4 sm:$0xff]   ;;  %v1244_v23 = vld [vmem:[%s1677_s1 + $0x254] ss:$8 sps:$4 sm:$0xff]   ;;  %v1242_v24 = vld [vmem:[%s1677_s1 + $0x250] ss:$8 sps:$4 sm:$0xff]  }
  0x1d   :  { %733 = vmatprep.subr.bf16.mxu0 %v1169_v29  ;;  %v1247_v25 = vld [vmem:[%s1677_s1 + $0x264] ss:$8 sps:$4 sm:$0xff]   ;;  %v1245_v26 = vld [vmem:[%s1677_s1 + $0x260] ss:$8 sps:$4 sm:$0xff]   ;;  %v1250_v27 = vld [vmem:[%s1677_s1 + $0x274] ss:$8 sps:$4 sm:$0xff]  }
  0x1e   :  { %v1248_v28 = vld [vmem:[%s1677_s1 + $0x270] ss:$8 sps:$4 sm:$0xff]   ;;  %v1253_v29 = vld [vmem:[%s1677_s1 + $0x284] ss:$8 sps:$4 sm:$0xff]  }
  0x1f   :  { %683 = vmatpush1.bf16.msra.mxu1 %v1171_v30  ;;  %v1251_v30 = vld [vmem:[%s1677_s1 + $0x280] ss:$8 sps:$4 sm:$0xff]  }
  0x20   :  { %734 = vmatpush1.bf16.msra.mxu0 %v1172_v31  ;;  %684 = vmatprep.subr.bf16.mxu1 %v1173_v32  ;;  %v1256_v31 = vld [vmem:[%s1677_s1 + $0x294] ss:$8 sps:$4 sm:$0xff]   ;;  %v1254_v32 = vld [vmem:[%s1677_s1 + $0x290] ss:$8 sps:$4 sm:$0xff]  }
  0x21   :  { %735 = vmatprep.subr.bf16.mxu0 %v1175_v33  ;;  %v1259_v33 = vld [vmem:[%s1677_s1 + $0x2a4] ss:$8 sps:$4 sm:$0xff]  }
  0x23   :  { %685 = vmatpush1.bf16.msra.mxu1 %v1177_v34  ;;  %v1257_v34 = vld [vmem:[%s1677_s1 + $0x2a0] ss:$8 sps:$4 sm:$0xff]  }
  0x24   :  { %736 = vmatpush1.bf16.msra.mxu0 %v1178_v35  ;;  %686 = vmatprep.subr.bf16.mxu1 %v1179_v36  ;;  %v1262_v35 = vld [vmem:[%s1677_s1 + $0x2b4] ss:$8 sps:$4 sm:$0xff]   ;;  %v1260_v36 = vld [vmem:[%s1677_s1 + $0x2b0] ss:$8 sps:$4 sm:$0xff]  }
  0x25   :  { %737 = vmatprep.subr.bf16.mxu0 %v1181_v37  ;;  %v1265_v37 = vld [vmem:[%s1677_s1 + $0x2c4] ss:$8 sps:$4 sm:$0xff]  }
  0x27   :  { %687 = vmatpush1.bf16.msra.mxu1 %v1183_v38  ;;  %v1263_v38 = vld [vmem:[%s1677_s1 + $0x2c0] ss:$8 sps:$4 sm:$0xff]  }
  0x28   :  { %738 = vmatpush1.bf16.msra.mxu0 %v1184_v39  ;;  %688 = vmatprep.subr.bf16.mxu1 %v1185_v40  ;;  %v1270_v39 = vld [vmem:[%s1677_s1 + $0x2d4] ss:$8 sps:$4 sm:$0xff]   ;;  %v1268_v40 = vld [vmem:[%s1677_s1 + $0x2d0] ss:$8 sps:$4 sm:$0xff]  }
  0x29   :  { %739 = vmatprep.subr.bf16.mxu0 %v1187_v41  ;;  %v1275_v41 = vld [vmem:[%s1677_s1 + $0x2e4] ss:$8 sps:$4 sm:$0xff]  }
  0x2b   :  { %689 = vmatpush1.bf16.msra.mxu1 %v1189_v42  ;;  %v1273_v42 = vld [vmem:[%s1677_s1 + $0x2e0] ss:$8 sps:$4 sm:$0xff]  }
  0x2c   :  { %740 = vmatpush1.bf16.msra.mxu0 %v1190_v43  ;;  %690 = vmatprep.subr.bf16.mxu1 %v1191_v44  ;;  %v1278_v43 = vld [vmem:[%s1677_s1 + $0x2f4] ss:$8 sps:$4 sm:$0xff]   ;;  %v1276_v44 = vld [vmem:[%s1677_s1 + $0x2f0] ss:$8 sps:$4 sm:$0xff]  }
  0x2d   :  { %741 = vmatprep.subr.bf16.mxu0 %v1193_v45  ;;  %v1279_v45 = vld [vmem:[%s1678_s0 + $0x10] ss:$24 sps:$4 sm:$0xff]  }
  0x2f   :  { %691 = vmatpush1.bf16.msra.mxu1 %v1195_v46  ;;  %v970_v46 = vcombine.low %v1547_v15, %v1547_v15 }
  0x30   :  { %742 = vmatpush1.bf16.msra.mxu0 %v1196_v47  ;;  %692 = vmatprep.subr.bf16.mxu1 %v1197_v48  ;;  %v127_v47 = vlaneseq }
  0x31   :  { %743 = vmatprep.subr.bf16.mxu0 %v1199_v50 }
  0x32   :  { %v1640_v48 = vshrl.u32 %v127_v47, 7 }
  0x33   :  { %693 = vmatpush1.bf16.msra.mxu1 %v1201_v52 }
  0x34   :  { %744 = vmatpush1.bf16.msra.mxu0 %v1202_v53  ;;  %694 = vmatprep.subr.bf16.mxu1 %v1203_v54  ;;  %v1643_v52 = vsub.s32 0, %v1640_v48  ;;  %v125_v54 = vld [vmem:[%s1679_s2] sm:$0x3] }
  0x35   :  { %745 = vmatprep.subr.bf16.mxu0 %v1205_v55  ;;  %v1649_v55 = vsub.s32 1, %v1640_v48 }
  0x37   :  { %695 = vmatpush1.bf16.msra.mxu1 %v1207_v56  ;;  %v130_v56 = vrot.slane %v125_v54, %v1643_v52 }
  0x38   :  { %746 = vmatpush1.bf16.msra.mxu0 %v1208_v57  ;;  %696 = vmatprep.subr.bf16.mxu1 %v1209_v58  ;;  %v134_v57 = vrot.slane %v125_v54, %v1649_v55 }
  0x39   :  { %747 = vmatprep.subr.bf16.mxu0 %v1211_v59 }
  0x3b   :  { %697 = vmatpush1.bf16.msra.mxu1 %v1213_v60 }
  0x3c   :  { %748 = vmatpush1.bf16.msra.mxu0 %v1214_v61  ;;  %698 = vmatprep.subr.bf16.mxu1 %v1215_v62 }
  0x3d   :  { %749 = vmatprep.subr.bf16.mxu0 %v1217_v63 }
  0x3f   :  { %699 = vmatpush1.bf16.msra.mxu1 %v1219_v0 }
  0x40   :  { %750 = vmatpush1.bf16.msra.mxu0 %v1220_v1  ;;  %1074 = vmatprep.subr.bf16.mxu1 %v1229_v2 }
  0x41   :  { %770 = vmatprep.subr.bf16.mxu0 %v1229_v2 }
  0x42   :  { %701 = vmatmul.mubr.bf16.vlgmr.msra.gmra.mrb[0].mxu1 %v1221_v3 }
  0x43   :  { %752 = vmatmul.mubr.bf16.vlgmr.msra.gmra.mrb[0].mxu0 %v1224_v4  ;;  %1090 = vmatpush1.bf16.msra.mxu1 %v1227_v7 }
  0x44   :  { %771 = vmatpush1.bf16.msra.mxu0 %v1227_v7  ;;  %1075 = vmatprep.subr.bf16.mxu1 %v1232_v8 }
  0x45   :  { %772 = vmatprep.subr.bf16.mxu0 %v1232_v8  ;;  %710 = vmatprep.mubr.bf16.mxu1 %v967_v9 }
  0x46   :  { %761 = vmatprep.mubr.bf16.mxu0 %v969_v10 }
  0x47   :  { %1091 = vmatpush1.bf16.msra.mxu1 %v1230_v11 }
  0x48   :  { %773 = vmatpush1.bf16.msra.mxu0 %v1230_v11  ;;  %1076 = vmatprep.subr.bf16.mxu1 %v1235_v12 }
  0x49   :  { %774 = vmatprep.subr.bf16.mxu0 %v1235_v12 }
  0x4a   :  { %711 = vmatmul.mubr.bf16.gmra.mrb[4].mxu1 %v966_v13 }
  0x4b   :  { %762 = vmatmul.mubr.bf16.gmra.mrb[4].mxu0 %v968_v14  ;;  %1092 = vmatpush1.bf16.msra.mxu1 %v1233_v16 }
  0x4c   :  { %775 = vmatpush1.bf16.msra.mxu0 %v1233_v16  ;;  %1077 = vmatprep.subr.bf16.mxu1 %v1238_v17 }
  0x4d   :  { %776 = vmatprep.subr.bf16.mxu0 %v1238_v17  ;;  %802 = vmatprep.mubr.bf16.mxu0 %v1281_v18 }
  0x4e   :  { %812 = vmatprep.mubr.bf16.mxu1 %v971_v19 }
  0x4f   :  { %1093 = vmatpush1.bf16.msra.mxu1 %v1236_v20 }
  0x50   :  { %777 = vmatpush1.bf16.msra.mxu0 %v1236_v20  ;;  %1078 = vmatprep.subr.bf16.mxu1 %v1241_v21 }
  0x51   :  { %778 = vmatprep.subr.bf16.mxu0 %v1241_v21 }
  0x53   :  { %1094 = vmatpush1.bf16.msra.mxu1 %v1239_v22 }
  0x54   :  { %779 = vmatpush1.bf16.msra.mxu0 %v1239_v22  ;;  %1079 = vmatprep.subr.bf16.mxu1 %v1244_v23 }
  0x55   :  { %780 = vmatprep.subr.bf16.mxu0 %v1244_v23 }
  0x57   :  { %1095 = vmatpush1.bf16.msra.mxu1 %v1242_v24 }
  0x58   :  { %781 = vmatpush1.bf16.msra.mxu0 %v1242_v24  ;;  %1080 = vmatprep.subr.bf16.mxu1 %v1247_v25 }
  0x59   :  { %782 = vmatprep.subr.bf16.mxu0 %v1247_v25 }
  0x5b   :  { %1096 = vmatpush1.bf16.msra.mxu1 %v1245_v26 }
  0x5c   :  { %783 = vmatpush1.bf16.msra.mxu0 %v1245_v26  ;;  %1081 = vmatprep.subr.bf16.mxu1 %v1250_v27 }
  0x5d   :  { %784 = vmatprep.subr.bf16.mxu0 %v1250_v27 }
  0x5f   :  { %1097 = vmatpush1.bf16.msra.mxu1 %v1248_v28 }
  0x60   :  { %785 = vmatpush1.bf16.msra.mxu0 %v1248_v28  ;;  %1082 = vmatprep.subr.bf16.mxu1 %v1253_v29 }
  0x61   :  { %786 = vmatprep.subr.bf16.mxu0 %v1253_v29 }
  0x63   :  { %1098 = vmatpush1.bf16.msra.mxu1 %v1251_v30 }
  0x64   :  { %787 = vmatpush1.bf16.msra.mxu0 %v1251_v30  ;;  %1083 = vmatprep.subr.bf16.mxu1 %v1256_v31 }
  0x65   :  { %788 = vmatprep.subr.bf16.mxu0 %v1256_v31 }
  0x67   :  { %1099 = vmatpush1.bf16.msra.mxu1 %v1254_v32 }
  0x68   :  { %789 = vmatpush1.bf16.msra.mxu0 %v1254_v32  ;;  %1084 = vmatprep.subr.bf16.mxu1 %v1259_v33 }
  0x69   :  { %790 = vmatprep.subr.bf16.mxu0 %v1259_v33 }
  0x6b   :  { %1100 = vmatpush1.bf16.msra.mxu1 %v1257_v34 }
  0x6c   :  { %791 = vmatpush1.bf16.msra.mxu0 %v1257_v34  ;;  %1085 = vmatprep.subr.bf16.mxu1 %v1262_v35 }
  0x6d   :  { %792 = vmatprep.subr.bf16.mxu0 %v1262_v35 }
  0x6f   :  { %1101 = vmatpush1.bf16.msra.mxu1 %v1260_v36 }
  0x70   :  { %793 = vmatpush1.bf16.msra.mxu0 %v1260_v36  ;;  %1086 = vmatprep.subr.bf16.mxu1 %v1265_v37 }
  0x71   :  { %794 = vmatprep.subr.bf16.mxu0 %v1265_v37 }
  0x73   :  { %1102 = vmatpush1.bf16.msra.mxu1 %v1263_v38 }
  0x74   :  { %795 = vmatpush1.bf16.msra.mxu0 %v1263_v38  ;;  %1087 = vmatprep.subr.bf16.mxu1 %v1270_v39 }
  0x75   :  { %796 = vmatprep.subr.bf16.mxu0 %v1270_v39 }
  0x77   :  { %1103 = vmatpush1.bf16.msra.mxu1 %v1268_v40 }
  0x78   :  { %797 = vmatpush1.bf16.msra.mxu0 %v1268_v40  ;;  %1088 = vmatprep.subr.bf16.mxu1 %v1275_v41 }
  0x79   :  { %798 = vmatprep.subr.bf16.mxu0 %v1275_v41 }
  0x7b   :  { %1104 = vmatpush1.bf16.msra.mxu1 %v1273_v42 }
  0x7c   :  { %799 = vmatpush1.bf16.msra.mxu0 %v1273_v42  ;;  %1089 = vmatprep.subr.bf16.mxu1 %v1278_v43 }
  0x7d   :  { %800 = vmatprep.subr.bf16.mxu0 %v1278_v43 }
  0x7f   :  { %1105 = vmatpush1.bf16.msra.mxu1 %v1276_v44 }
  0x80   :  { %801 = vmatpush1.bf16.msra.mxu0 %v1276_v44 }
  0x82   :  { %813 = vmatmul.mubr.bf16.vlgmr.msra.gmra.mrb[8].mxu1 %v970_v46 }
  0x83   :  { %803 = vmatmul.mubr.bf16.vlgmr.msra.gmra.mrb[0].mxu0 %v1279_v45 }
 0x115   :  { %v702_v49 = vpop.f32.mrb[0].mxu1 }
 0x116   :  { %v704_v50 = vpop.f32.mrb[1].mxu1  ;;  %v703_v6 = vadd.f32 %v702_v49, %v130_v56 }
 0x117   :  { %v706_v51 = vpop.f32.mrb[2].mxu1  ;;  %v705_v7 = vadd.f32 %v704_v50, %v134_v57 }
 0x118   :  { %v708_v53 = vpop.f32.mrb[3].mxu1  ;;  %v707_v10 = vadd.f32 %v706_v51, %v130_v56 }
 0x119   :  { %v709_v15 = vadd.f32 %v708_v53, %v134_v57 }
 0x11d   :  { %v712_v58 = vpop.f32.mrb[4].mxu1 }
 0x11e   :  { %v763_v59 = vpop.f32.mrb[4].mxu0  ;;  %v713_v60 = vadd.f32 %v712_v58, %v130_v56  ;;  %v714_v61 = vpop.f32.mrb[5].mxu1 }
 0x11f   :  { %v765_v62 = vpop.f32.mrb[5].mxu0  ;;  %v715_v63 = vadd.f32 %v714_v61, %v134_v57  ;;  %v716_v1 = vpop.f32.mrb[6].mxu1 }
 0x120   :  { %v767_v0 = vpop.f32.mrb[6].mxu0  ;;  %v764_v2 = vadd.f32 %v763_v59, %v713_v60  ;;  %v717_v4 = vpop.f32.mrb[7].mxu1 }
 0x121   :  { %v768_v3 = vpop.f32.mrb[7].mxu0  ;;  %v766_v5 = vadd.f32 %v765_v62, %v715_v63 }
 0x155   :  { %v814_v9 = vpop.f32.mrb[8].mxu1 }
 0x156   :  { %v804_v8 = vpop.f32.mrb[0].mxu0  ;;  %v815_v12 = vadd.f32 %v814_v9, %v764_v2  ;;  %v816_v14 = vpop.f32.mrb[9].mxu1 }
 0x157   :  { %v1107_v11 = vadd.f32 %v804_v8, %v703_v6  ;;  %v806_v13 = vpop.f32.mrb[1].mxu0  ;;  %v817_v17 = vadd.f32 %v816_v14, %v766_v5  ;;  %v818_v19 = vpop.f32.mrb[10].mxu1 }
 0x158   :  { %v1109_v16 = vadd.f32 %v806_v13, %v705_v7  ;;  %v808_v18 = vpop.f32.mrb[2].mxu0  ;;  %v819_v22 = vpop.f32.mrb[11].mxu1  ;;  %v823_v25 = vsel %vm822_vm0, %v815_v12, 0.0 }
 0x159   :  { %v1111_v20 = vadd.f32 %v808_v18, %v707_v10  ;;  %v810_v21 = vpop.f32.mrb[3].mxu0  ;;  %v832_v27 = vsel %vm822_vm0, %v817_v17, 0.0 }
 0x15a   :  { %v1113_v23 = vadd.f32 %v810_v21, %v709_v15 }
 0x15b   :  { %v821_v24 = vadd.f32 %v1111_v20, %v1107_v11 }
 0x15c   :  { %v831_v26 = vadd.f32 %v1113_v23, %v1109_v16 }
 0x15d   :  { %v824_v28 = vadd.f32 %v823_v25, %v821_v24  ;;  %v874_v25 = vld [vmem:[%s1680_s3] sm:$0x3] }
 0x15e   :  { %v833_v29 = vadd.f32 %v832_v27, %v831_v26  ;;  %v915_v27 = vld [vmem:[%s1681_s4] sm:$0x3] }
 0x15f   :  { %v825_v30 = vrot.slane %v824_v28, 4 }
 0x160   :  { %v834_v31 = vrot.slane %v833_v29, 4 }
 0x161   :  { %v826_v32 = vadd.f32 %v825_v30, %v824_v28 }
 0x162   :  { %v835_v33 = vadd.f32 %v834_v31, %v833_v29  ;;  %v920_v31 = vrot.slane %v915_v27, %v1643_v52 }
 0x163   :  { %v827_v34 = vrot.slane %v826_v32, 2 }
 0x164   :  { %v836_v35 = vrot.slane %v835_v33, 2 }
 0x165   :  { %v828_v36 = vadd.f32 %v827_v34, %v826_v32 }
 0x166   :  { %v837_v37 = vadd.f32 %v836_v35, %v835_v33 }
 0x167   :  { %v829_v38 = vrot.slane %v828_v36, 1 }
 0x168   :  { %v838_v39 = vrot.slane %v837_v37, 1 }
 0x169   :  { %v830_v40 = vadd.f32 %v829_v38, %v828_v36 }
 0x16a   :  { %v839_v41 = vadd.f32 %v838_v39, %v837_v37 }
 0x16b   :  { %v840_v42 = vmul.f32 0.05, %v830_v40 }
 0x16c   :  { %v841_v43 = vmul.f32 0.05, %v839_v41 }
 0x16d   :  { %v842_v44 = vsub.f32 %v1107_v11, %v840_v42  ;;  %v844_v45 = vsub.f32 %v1111_v20, %v840_v42  ;;  %v846_v46 = vsub.f32 %v815_v12, %v840_v42 }
 0x16e   :  { %v843_v47 = vsub.f32 %v1109_v16, %v841_v43  ;;  %v845_v49 = vsub.f32 %v1113_v23, %v841_v43  ;;  %v847_v50 = vsub.f32 %v817_v17, %v841_v43  ;;  %v1288_v17 = vmov 1966171168  }
 0x16f   :  { %v848_v51 = vmul.f32 %v842_v44, %v842_v44  ;;  %v850_v53 = vmul.f32 %v844_v45, %v844_v45  ;;  %v852_v54 = vmul.f32 %v846_v46, %v846_v46  ;;  %v883_v18 = vunpack.c.l.s4 %v1288_v17 }
 0x170   :  { %v849_v56 = vmul.f32 %v843_v47, %v843_v47  ;;  %v851_v57 = vmul.f32 %v845_v49, %v845_v49  ;;  %v853_v58 = vmul.f32 %v847_v50, %v847_v50 }
 0x171   :  { %v854_v59 = vadd.f32 %v850_v53, %v848_v51  ;;  %v855_v60 = vsel %vm822_vm0, %v852_v54, 0.0  ;;  %v884_v19 = vunpack.c.0.s8 %v883_v18 }
 0x172   :  { %v863_v61 = vadd.f32 %v851_v57, %v849_v56  ;;  %v864_v62 = vsel %vm822_vm0, %v853_v58, 0.0 }
 0x173   :  { %v856_v63 = vadd.f32 %v855_v60, %v854_v59  ;;  %v887_v21 = vsub.s32 %v884_v19, %v1640_v48  ;;  %v924_v48 = vrot.slane %v915_v27, %v1649_v55 }
 0x174   :  { %v865_v0 = vadd.f32 %v864_v62, %v863_v61 }
 0x175   :  { %v857_v1 = vrot.slane %v856_v63, 4 }
 0x176   :  { %v866_v2 = vrot.slane %v865_v0, 4 }
 0x177   :  { %v858_v3 = vadd.f32 %v857_v1, %v856_v63 }
 0x178   :  { %v867_v4 = vadd.f32 %v866_v2, %v865_v0 }
 0x179   :  { %v859_v5 = vrot.slane %v858_v3, 2 }
 0x17a   :  { %v868_v6 = vrot.slane %v867_v4, 2 }
 0x17b   :  { %v860_v7 = vadd.f32 %v859_v5, %v858_v3 }
 0x17c   :  { %v869_v8 = vadd.f32 %v868_v6, %v867_v4 }
 0x17d   :  { %v861_v9 = vrot.slane %v860_v7, 1 }
 0x17e   :  { %v870_v10 = vrot.slane %v869_v8, 1 }
 0x17f   :  { %v862_v11 = vadd.f32 %v861_v9, %v860_v7 }
 0x180   :  { %v871_v12 = vadd.f32 %v870_v10, %v869_v8 }
 0x181   :  { %v872_v13 = vmul.f32 0.05, %v862_v11 }
 0x182   :  { %v873_v14 = vmul.f32 0.05, %v871_v12 }
 0x183   :  { %v875_v15 = vadd.f32 1e-05, %v872_v13 }
 0x184   :  { %v876_v16 = vadd.f32 1e-05, %v873_v14 }
 0x185   :  { %1284 = vrsqrt.f32 %v875_v15 }
 0x186   :  { %1286 = vrsqrt.f32 %v876_v16 }
 0x18f   :  { %v1285_v20 = vpop.eup %1284 }
 0x190   :  { %v1287_v22 = vpop.eup %1286 }
 0x191   :  { %v881_v23 = vcombine.low %v1285_v20, %v1287_v22 }
 0x193   :  { %v888_v24 = vrot.slane %v881_v23, %v887_v21 }
 0x195   :  { %v895_v26 = vrot.slane %v888_v24, %v887_v21 }
 0x197   :  { %v897_v28 = vmul.f32 %v895_v26, %v874_v25 }
 0x199   :  { %v902_v29 = vrot.slane %v897_v28, %v1643_v52  ;;  %v906_v30 = vrot.slane %v897_v28, %v1649_v55 }
 0x19b   :  { %v909_v32 = vmul.f32 %v902_v29, %v842_v44  ;;  %v910_v33 = vmul.f32 %v906_v30, %v843_v47  ;;  %v911_v34 = vmul.f32 %v902_v29, %v844_v45  ;;  %v912_v35 = vmul.f32 %v906_v30, %v845_v49 }
 0x19c   :  { %v913_v36 = vmul.f32 %v902_v29, %v846_v46  ;;  %v914_v37 = vmul.f32 %v906_v30, %v847_v50 }
 0x19d   :  { %v927_v38 = vadd.f32 %v920_v31, %v909_v32  ;;  %v928_v39 = vadd.f32 %v924_v48, %v910_v33  ;;  %v929_v40 = vadd.f32 %v920_v31, %v911_v34  ;;  %v930_v41 = vadd.f32 %v924_v48, %v912_v35 }
 0x19e   :  { %v931_v42 = vadd.f32 %v920_v31, %v913_v36  ;;  %v932_v43 = vadd.f32 %v924_v48, %v914_v37 }
 0x19f   :  { %v1071_v51 = vpack.c.bf16 %v928_v39, %v927_v38  ;;  %v1072_v53 = vpack.c.bf16 %v930_v41, %v929_v40 }
 0x1a0   :  { %v1073_v54 = vpack.c.bf16 %v932_v43, %v931_v42 }
 0x1a1   :  { %953 = vst [vmem:[%s1682_s5] sm:$0xff] %v1071_v51  ;;  %954 = vst [vmem:[%s1682_s5 + $0x8] sm:$0xff] %v1072_v53 }
 0x1a2   :  { %955 = vst [vmem:[%s1682_s5 + $0x10] sm:$0x33] %v1073_v54 }

// kernel: df_forward.13
= control target key start
LH: loop header
LB: loop body
LE: loop exit
PB: predicated region body
PF: predicated region fallthrough
CT: control target
= control target key end

     0   :  { %vm3079_vm0 = vcmask 1043456   ;;  %s5853_s1 = inlined_call_operand.vmem [shape: bf16[1536,512], index: 1, kind: input, shape index: {}]   ;;  %s5854_s0 = inlined_call_operand.vmem [shape: bf16[20,1536], index: 0, kind: input, shape index: {}]   ;;  %s5855_s2 = inlined_call_operand.vmem [shape: f32[1,512], index: 2, kind: input, shape index: {}]   ;;  %s5856_s3 = inlined_call_operand.vmem [shape: f32[1,512], index: 3, kind: input, shape index: {}]   ;;  %s5857_s4 = inlined_call_operand.vmem [shape: f32[1,512], index: 4, kind: input, shape index: {}]   ;;  %s5858_s5 = inlined_call_operand.vmem [shape: bf16[20,512], index: 5, kind: output, shape index: {}]  }
   0x1   :  { %v3852_v0 = vld [vmem:[%s5853_s1 + $0x4] ss:$16 sps:$4 sm:$0xff]   ;;  %v3854_v1 = vld [vmem:[%s5853_s1 + $0xc] ss:$16 sps:$4 sm:$0xff]   ;;  %v3856_v2 = vld [vmem:[%s5853_s1] ss:$16 sps:$4 sm:$0xff]  }
   0x2   :  { %2466 = vmatprep.subr.bf16.mxu0 %v3852_v0  ;;  %v3857_v3 = vld [vmem:[%s5853_s1 + $0x8] ss:$16 sps:$4 sm:$0xff]   ;;  %2772 = vmatprep.subr.bf16.mxu1 %v3854_v1  ;;  %v3858_v4 = vld [vmem:[%s5853_s1 + $0x24] ss:$16 sps:$4 sm:$0xff]   ;;  %v3860_v5 = vld [vmem:[%s5853_s1 + $0x2c] ss:$16 sps:$4 sm:$0xff]  }
   0x3   :  { %2467 = vmatpush1.bf16.msra.mxu0 %v3856_v2  ;;  %2773 = vmatpush1.bf16.msra.mxu1 %v3857_v3  ;;  %v3862_v6 = vld [vmem:[%s5853_s1 + $0x20] ss:$16 sps:$4 sm:$0xff]   ;;  %v3863_v7 = vld [vmem:[%s5853_s1 + $0x28] ss:$16 sps:$4 sm:$0xff]   ;;  %v3864_v8 = vld [vmem:[%s5853_s1 + $0x44] ss:$16 sps:$4 sm:$0xff]  }
   0x4   :  { %2468 = vmatprep.subr.bf16.mxu0 %v3858_v4  ;;  %2774 = vmatprep.subr.bf16.mxu1 %v3860_v5  ;;  %v3866_v9 = vld [vmem:[%s5853_s1 + $0x4c] ss:$16 sps:$4 sm:$0xff]   ;;  %v3868_v10 = vld [vmem:[%s5853_s1 + $0x40] ss:$16 sps:$4 sm:$0xff]   ;;  %v3869_v11 = vld [vmem:[%s5853_s1 + $0x48] ss:$16 sps:$4 sm:$0xff]  }
   0x5   :  { %v3870_v12 = vld [vmem:[%s5853_s1 + $0x64] ss:$16 sps:$4 sm:$0xff]   ;;  %v3872_v13 = vld [vmem:[%s5853_s1 + $0x6c] ss:$16 sps:$4 sm:$0xff]   ;;  %v3874_v14 = vld [vmem:[%s5853_s1 + $0x60] ss:$16 sps:$4 sm:$0xff]  }
   0x6   :  { %v3875_v15 = vld [vmem:[%s5853_s1 + $0x68] ss:$16 sps:$4 sm:$0xff]   ;;  %v3876_v16 = vld [vmem:[%s5853_s1 + $0x84] ss:$16 sps:$4 sm:$0xff]   ;;  %v3878_v17 = vld [vmem:[%s5853_s1 + $0x8c] ss:$16 sps:$4 sm:$0xff]  }
   0x7   :  { %2469 = vmatpush1.bf16.msra.mxu0 %v3862_v6  ;;  %2775 = vmatpush1.bf16.msra.mxu1 %v3863_v7  ;;  %v3880_v18 = vld [vmem:[%s5853_s1 + $0x80] ss:$16 sps:$4 sm:$0xff]   ;;  %v3881_v19 = vld [vmem:[%s5853_s1 + $0x88] ss:$16 sps:$4 sm:$0xff]   ;;  %v3882_v20 = vld [vmem:[%s5853_s1 + $0xa4] ss:$16 sps:$4 sm:$0xff]  }
   0x8   :  { %2470 = vmatprep.subr.bf16.mxu0 %v3864_v8  ;;  %2776 = vmatprep.subr.bf16.mxu1 %v3866_v9  ;;  %v3884_v21 = vld [vmem:[%s5853_s1 + $0xac] ss:$16 sps:$4 sm:$0xff]   ;;  %v3886_v22 = vld [vmem:[%s5853_s1 + $0xa0] ss:$16 sps:$4 sm:$0xff]   ;;  %v3887_v23 = vld [vmem:[%s5853_s1 + $0xa8] ss:$16 sps:$4 sm:$0xff]  }
   0x9   :  { %v3888_v24 = vld [vmem:[%s5853_s1 + $0xc4] ss:$16 sps:$4 sm:$0xff]   ;;  %v3890_v25 = vld [vmem:[%s5853_s1 + $0xcc] ss:$16 sps:$4 sm:$0xff]   ;;  %v3892_v26 = vld [vmem:[%s5853_s1 + $0xc0] ss:$16 sps:$4 sm:$0xff]  }
   0xa   :  { %v3893_v27 = vld [vmem:[%s5853_s1 + $0xc8] ss:$16 sps:$4 sm:$0xff]   ;;  %v3894_v28 = vld [vmem:[%s5853_s1 + $0xe4] ss:$16 sps:$4 sm:$0xff]   ;;  %v3896_v29 = vld [vmem:[%s5853_s1 + $0xec] ss:$16 sps:$4 sm:$0xff]  }
   0xb   :  { %2471 = vmatpush1.bf16.msra.mxu0 %v3868_v10  ;;  %2777 = vmatpush1.bf16.msra.mxu1 %v3869_v11  ;;  %v3898_v30 = vld [vmem:[%s5853_s1 + $0xe0] ss:$16 sps:$4 sm:$0xff]   ;;  %v3899_v31 = vld [vmem:[%s5853_s1 + $0xe8] ss:$16 sps:$4 sm:$0xff]   ;;  %v3900_v32 = vld [vmem:[%s5853_s1 + $0x104] ss:$16 sps:$4 sm:$0xff]  }
   0xc   :  { %2472 = vmatprep.subr.bf16.mxu0 %v3870_v12  ;;  %2778 = vmatprep.subr.bf16.mxu1 %v3872_v13  ;;  %v3902_v33 = vld [vmem:[%s5853_s1 + $0x10c] ss:$16 sps:$4 sm:$0xff]   ;;  %v3904_v34 = vld [vmem:[%s5853_s1 + $0x100] ss:$16 sps:$4 sm:$0xff]   ;;  %v3905_v35 = vld [vmem:[%s5853_s1 + $0x108] ss:$16 sps:$4 sm:$0xff]  }
   0xd   :  { %v3906_v36 = vld [vmem:[%s5853_s1 + $0x124] ss:$16 sps:$4 sm:$0xff]   ;;  %v3908_v37 = vld [vmem:[%s5853_s1 + $0x12c] ss:$16 sps:$4 sm:$0xff]   ;;  %v3910_v38 = vld [vmem:[%s5853_s1 + $0x120] ss:$16 sps:$4 sm:$0xff]  }
   0xe   :  { %v3911_v39 = vld [vmem:[%s5853_s1 + $0x128] ss:$16 sps:$4 sm:$0xff]   ;;  %v3912_v40 = vld [vmem:[%s5853_s1 + $0x144] ss:$16 sps:$4 sm:$0xff]   ;;  %v3914_v41 = vld [vmem:[%s5853_s1 + $0x14c] ss:$16 sps:$4 sm:$0xff]  }
   0xf   :  { %2473 = vmatpush1.bf16.msra.mxu0 %v3874_v14  ;;  %2779 = vmatpush1.bf16.msra.mxu1 %v3875_v15  ;;  %v3916_v42 = vld [vmem:[%s5853_s1 + $0x140] ss:$16 sps:$4 sm:$0xff]   ;;  %v3917_v43 = vld [vmem:[%s5853_s1 + $0x148] ss:$16 sps:$4 sm:$0xff]   ;;  %v3918_v44 = vld [vmem:[%s5853_s1 + $0x164] ss:$16 sps:$4 sm:$0xff]  }
  0x10   :  { %2474 = vmatprep.subr.bf16.mxu0 %v3876_v16  ;;  %2780 = vmatprep.subr.bf16.mxu1 %v3878_v17  ;;  %v3920_v45 = vld [vmem:[%s5853_s1 + $0x16c] ss:$16 sps:$4 sm:$0xff]   ;;  %v3922_v46 = vld [vmem:[%s5853_s1 + $0x160] ss:$16 sps:$4 sm:$0xff]   ;;  %v3923_v47 = vld [vmem:[%s5853_s1 + $0x168] ss:$16 sps:$4 sm:$0xff]  }
  0x11   :  { %v3950_v48 = vld [vmem:[%s5854_s0 + $0x4] ss:$48 sps:$4 sm:$0xff]   ;;  %v3926_v50 = vld [vmem:[%s5853_s1 + $0x18c] ss:$16 sps:$4 sm:$0xff]   ;;  %v3928_v51 = vld [vmem:[%s5853_s1 + $0x180] ss:$16 sps:$4 sm:$0xff]  }
  0x12   :  { %v3924_v49 = vld [vmem:[%s5853_s1 + $0x184] ss:$16 sps:$4 sm:$0xff]   ;;  %2498 = vmatprep.mubr.bf16.mxu0 %v3950_v48  ;;  %2804 = vmatprep.mubr.bf16.mxu1 %v3950_v48  ;;  %v3929_v52 = vld [vmem:[%s5853_s1 + $0x188] ss:$16 sps:$4 sm:$0xff]   ;;  %v3932_v54 = vld [vmem:[%s5853_s1 + $0x1ac] ss:$16 sps:$4 sm:$0xff]  }
  0x13   :  { %2475 = vmatpush1.bf16.msra.mxu0 %v3880_v18  ;;  %2781 = vmatpush1.bf16.msra.mxu1 %v3881_v19  ;;  %v3930_v53 = vld [vmem:[%s5853_s1 + $0x1a4] ss:$16 sps:$4 sm:$0xff]   ;;  %v3934_v55 = vld [vmem:[%s5853_s1 + $0x1a0] ss:$16 sps:$4 sm:$0xff]   ;;  %v3935_v56 = vld [vmem:[%s5853_s1 + $0x1a8] ss:$16 sps:$4 sm:$0xff]  }
  0x14   :  { %2476 = vmatprep.subr.bf16.mxu0 %v3882_v20  ;;  %2782 = vmatprep.subr.bf16.mxu1 %v3884_v21  ;;  %v3936_v57 = vld [vmem:[%s5853_s1 + $0x1c4] ss:$16 sps:$4 sm:$0xff]   ;;  %v3938_v58 = vld [vmem:[%s5853_s1 + $0x1cc] ss:$16 sps:$4 sm:$0xff]   ;;  %v3940_v59 = vld [vmem:[%s5853_s1 + $0x1c0] ss:$16 sps:$4 sm:$0xff]  }
  0x15   :  { %v3941_v60 = vld [vmem:[%s5853_s1 + $0x1c8] ss:$16 sps:$4 sm:$0xff]   ;;  %v3942_v61 = vld [vmem:[%s5853_s1 + $0x1e4] ss:$16 sps:$4 sm:$0xff]   ;;  %v3944_v62 = vld [vmem:[%s5853_s1 + $0x1ec] ss:$16 sps:$4 sm:$0xff]  }
  0x16   :  { %v3946_v63 = vld [vmem:[%s5853_s1 + $0x1e0] ss:$16 sps:$4 sm:$0xff]   ;;  %v3947_v0 = vld [vmem:[%s5853_s1 + $0x1e8] ss:$16 sps:$4 sm:$0xff]   ;;  %v3953_v1 = vld [vmem:[%s5853_s1 + $0x204] ss:$16 sps:$4 sm:$0xff]  }
  0x17   :  { %2477 = vmatpush1.bf16.msra.mxu0 %v3886_v22  ;;  %2783 = vmatpush1.bf16.msra.mxu1 %v3887_v23  ;;  %v3956_v2 = vld [vmem:[%s5853_s1 + $0x20c] ss:$16 sps:$4 sm:$0xff]   ;;  %v3948_v3 = vld [vmem:[%s5854_s0] ss:$48 sps:$4 sm:$0xff]   ;;  %v3954_v5 = vld [vmem:[%s5853_s1 + $0x208] ss:$16 sps:$4 sm:$0xff]  }
  0x18   :  { %2478 = vmatprep.subr.bf16.mxu0 %v3888_v24  ;;  %2784 = vmatprep.subr.bf16.mxu1 %v3890_v25  ;;  %v3951_v4 = vld [vmem:[%s5853_s1 + $0x200] ss:$16 sps:$4 sm:$0xff]   ;;  %v3959_v6 = vld [vmem:[%s5853_s1 + $0x224] ss:$16 sps:$4 sm:$0xff]   ;;  %v3962_v7 = vld [vmem:[%s5853_s1 + $0x22c] ss:$16 sps:$4 sm:$0xff]  }
  0x19   :  { %v3957_v8 = vld [vmem:[%s5853_s1 + $0x220] ss:$16 sps:$4 sm:$0xff]   ;;  %v3960_v9 = vld [vmem:[%s5853_s1 + $0x228] ss:$16 sps:$4 sm:$0xff]   ;;  %v3965_v10 = vld [vmem:[%s5853_s1 + $0x244] ss:$16 sps:$4 sm:$0xff]  }
  0x1a   :  { %v3968_v11 = vld [vmem:[%s5853_s1 + $0x24c] ss:$16 sps:$4 sm:$0xff]   ;;  %v3963_v12 = vld [vmem:[%s5853_s1 + $0x240] ss:$16 sps:$4 sm:$0xff]   ;;  %v3966_v13 = vld [vmem:[%s5853_s1 + $0x248] ss:$16 sps:$4 sm:$0xff]  }
  0x1b   :  { %2479 = vmatpush1.bf16.msra.mxu0 %v3892_v26  ;;  %2785 = vmatpush1.bf16.msra.mxu1 %v3893_v27  ;;  %v3971_v14 = vld [vmem:[%s5853_s1 + $0x264] ss:$16 sps:$4 sm:$0xff]   ;;  %v3974_v15 = vld [vmem:[%s5853_s1 + $0x26c] ss:$16 sps:$4 sm:$0xff]   ;;  %v3969_v16 = vld [vmem:[%s5853_s1 + $0x260] ss:$16 sps:$4 sm:$0xff]  }
  0x1c   :  { %2480 = vmatprep.subr.bf16.mxu0 %v3894_v28  ;;  %2786 = vmatprep.subr.bf16.mxu1 %v3896_v29  ;;  %v3972_v17 = vld [vmem:[%s5853_s1 + $0x268] ss:$16 sps:$4 sm:$0xff]   ;;  %v3977_v18 = vld [vmem:[%s5853_s1 + $0x284] ss:$16 sps:$4 sm:$0xff]   ;;  %v3980_v19 = vld [vmem:[%s5853_s1 + $0x28c] ss:$16 sps:$4 sm:$0xff]  }
  0x1d   :  { %v3975_v20 = vld [vmem:[%s5853_s1 + $0x280] ss:$16 sps:$4 sm:$0xff]   ;;  %v3978_v21 = vld [vmem:[%s5853_s1 + $0x288] ss:$16 sps:$4 sm:$0xff]   ;;  %v3983_v22 = vld [vmem:[%s5853_s1 + $0x2a4] ss:$16 sps:$4 sm:$0xff]  }
  0x1e   :  { %v3986_v23 = vld [vmem:[%s5853_s1 + $0x2ac] ss:$16 sps:$4 sm:$0xff]   ;;  %v32_v24 = vld [vmem:[%s5854_s0 + $0x60] sm:$0x33]  ;;  %v3984_v28 = vld [vmem:[%s5853_s1 + $0x2a8] ss:$16 sps:$4 sm:$0xff]  }
  0x1f   :  { %2481 = vmatpush1.bf16.msra.mxu0 %v3898_v30  ;;  %2787 = vmatpush1.bf16.msra.mxu1 %v3899_v31  ;;  %v3352_v25 = vcombine.high %v32_v24, %v32_v24  ;;  %v3981_v26 = vld [vmem:[%s5853_s1 + $0x2a0] ss:$16 sps:$4 sm:$0xff]   ;;  %v3351_v27 = vcombine.low %v32_v24, %v32_v24  ;;  %v3989_v29 = vld [vmem:[%s5853_s1 + $0x2c4] ss:$16 sps:$4 sm:$0xff]   ;;  %v3992_v30 = vld [vmem:[%s5853_s1 + $0x2cc] ss:$16 sps:$4 sm:$0xff]  }
  0x20   :  { %2482 = vmatprep.subr.bf16.mxu0 %v3900_v32  ;;  %2788 = vmatprep.subr.bf16.mxu1 %v3902_v33  ;;  %v3987_v31 = vld [vmem:[%s5853_s1 + $0x2c0] ss:$16 sps:$4 sm:$0xff]   ;;  %v3990_v32 = vld [vmem:[%s5853_s1 + $0x2c8] ss:$16 sps:$4 sm:$0xff]   ;;  %v4051_v33 = vld [vmem:[%s5854_s0 + $0xc] ss:$48 sps:$4 sm:$0xff]  }
  0x21   :  { %v4011_v48 = vld [vmem:[%s5853_s1 + $0x340] ss:$16 sps:$4 sm:$0xff]   ;;  %v4152_v24 = vld [vmem:[%s5854_s0 + $0x14] ss:$48 sps:$4 sm:$0xff]  }
  0x23   :  { %2483 = vmatpush1.bf16.msra.mxu0 %v3904_v34  ;;  %2789 = vmatpush1.bf16.msra.mxu1 %v3905_v35  ;;  %v3995_v34 = vld [vmem:[%s5853_s1 + $0x2e4] ss:$16 sps:$4 sm:$0xff]   ;;  %v3998_v35 = vld [vmem:[%s5853_s1 + $0x2ec] ss:$16 sps:$4 sm:$0xff]  }
  0x24   :  { %2484 = vmatprep.subr.bf16.mxu0 %v3906_v36  ;;  %2790 = vmatprep.subr.bf16.mxu1 %v3908_v37  ;;  %v3993_v36 = vld [vmem:[%s5853_s1 + $0x2e0] ss:$16 sps:$4 sm:$0xff]   ;;  %v3996_v37 = vld [vmem:[%s5853_s1 + $0x2e8] ss:$16 sps:$4 sm:$0xff]  }
  0x27   :  { %2485 = vmatpush1.bf16.msra.mxu0 %v3910_v38  ;;  %2791 = vmatpush1.bf16.msra.mxu1 %v3911_v39  ;;  %v4001_v38 = vld [vmem:[%s5853_s1 + $0x304] ss:$16 sps:$4 sm:$0xff]   ;;  %v4004_v39 = vld [vmem:[%s5853_s1 + $0x30c] ss:$16 sps:$4 sm:$0xff]  }
  0x28   :  { %2486 = vmatprep.subr.bf16.mxu0 %v3912_v40  ;;  %2792 = vmatprep.subr.bf16.mxu1 %v3914_v41  ;;  %v3999_v40 = vld [vmem:[%s5853_s1 + $0x300] ss:$16 sps:$4 sm:$0xff]   ;;  %v4002_v41 = vld [vmem:[%s5853_s1 + $0x308] ss:$16 sps:$4 sm:$0xff]  }
  0x2b   :  { %2487 = vmatpush1.bf16.msra.mxu0 %v3916_v42  ;;  %2793 = vmatpush1.bf16.msra.mxu1 %v3917_v43  ;;  %v4007_v42 = vld [vmem:[%s5853_s1 + $0x324] ss:$16 sps:$4 sm:$0xff]   ;;  %v4010_v43 = vld [vmem:[%s5853_s1 + $0x32c] ss:$16 sps:$4 sm:$0xff]  }
  0x2c   :  { %2488 = vmatprep.subr.bf16.mxu0 %v3918_v44  ;;  %2794 = vmatprep.subr.bf16.mxu1 %v3920_v45  ;;  %v4005_v44 = vld [vmem:[%s5853_s1 + $0x320] ss:$16 sps:$4 sm:$0xff]   ;;  %v4008_v45 = vld [vmem:[%s5853_s1 + $0x328] ss:$16 sps:$4 sm:$0xff]  }
  0x2f   :  { %2489 = vmatpush1.bf16.msra.mxu0 %v3922_v46  ;;  %2795 = vmatpush1.bf16.msra.mxu1 %v3923_v47  ;;  %v4013_v46 = vld [vmem:[%s5853_s1 + $0x344] ss:$16 sps:$4 sm:$0xff]   ;;  %v4016_v47 = vld [vmem:[%s5853_s1 + $0x34c] ss:$16 sps:$4 sm:$0xff]  }
  0x30   :  { %2490 = vmatprep.subr.bf16.mxu0 %v3924_v49  ;;  %2796 = vmatprep.subr.bf16.mxu1 %v3926_v50  ;;  %v4014_v49 = vld [vmem:[%s5853_s1 + $0x348] ss:$16 sps:$4 sm:$0xff]   ;;  %v4019_v50 = vld [vmem:[%s5853_s1 + $0x364] ss:$16 sps:$4 sm:$0xff]  }
  0x33   :  { %2491 = vmatpush1.bf16.msra.mxu0 %v3928_v51  ;;  %2797 = vmatpush1.bf16.msra.mxu1 %v3929_v52  ;;  %v4022_v51 = vld [vmem:[%s5853_s1 + $0x36c] ss:$16 sps:$4 sm:$0xff]   ;;  %v4017_v52 = vld [vmem:[%s5853_s1 + $0x360] ss:$16 sps:$4 sm:$0xff]  }
  0x34   :  { %2492 = vmatprep.subr.bf16.mxu0 %v3930_v53  ;;  %2798 = vmatprep.subr.bf16.mxu1 %v3932_v54  ;;  %v4020_v53 = vld [vmem:[%s5853_s1 + $0x368] ss:$16 sps:$4 sm:$0xff]   ;;  %v4025_v54 = vld [vmem:[%s5853_s1 + $0x384] ss:$16 sps:$4 sm:$0xff]  }
  0x37   :  { %2493 = vmatpush1.bf16.msra.mxu0 %v3934_v55  ;;  %2799 = vmatpush1.bf16.msra.mxu1 %v3935_v56  ;;  %v4028_v55 = vld [vmem:[%s5853_s1 + $0x38c] ss:$16 sps:$4 sm:$0xff]   ;;  %v4023_v56 = vld [vmem:[%s5853_s1 + $0x380] ss:$16 sps:$4 sm:$0xff]  }
  0x38   :  { %2494 = vmatprep.subr.bf16.mxu0 %v3936_v57  ;;  %2800 = vmatprep.subr.bf16.mxu1 %v3938_v58  ;;  %v4026_v57 = vld [vmem:[%s5853_s1 + $0x388] ss:$16 sps:$4 sm:$0xff]   ;;  %v4031_v58 = vld [vmem:[%s5853_s1 + $0x3a4] ss:$16 sps:$4 sm:$0xff]  }
  0x3b   :  { %2495 = vmatpush1.bf16.msra.mxu0 %v3940_v59  ;;  %2801 = vmatpush1.bf16.msra.mxu1 %v3941_v60  ;;  %v4034_v59 = vld [vmem:[%s5853_s1 + $0x3ac] ss:$16 sps:$4 sm:$0xff]   ;;  %v4029_v60 = vld [vmem:[%s5853_s1 + $0x3a0] ss:$16 sps:$4 sm:$0xff]  }
  0x3c   :  { %2496 = vmatprep.subr.bf16.mxu0 %v3942_v61  ;;  %2802 = vmatprep.subr.bf16.mxu1 %v3944_v62  ;;  %v4032_v61 = vld [vmem:[%s5853_s1 + $0x3a8] ss:$16 sps:$4 sm:$0xff]   ;;  %v4038_v62 = vld [vmem:[%s5853_s1 + $0x3c4] ss:$16 sps:$4 sm:$0xff]  }
  0x3f   :  { %2497 = vmatpush1.bf16.msra.mxu0 %v3946_v63  ;;  %2803 = vmatpush1.bf16.msra.mxu1 %v3947_v0  ;;  %v4041_v63 = vld [vmem:[%s5853_s1 + $0x3cc] ss:$16 sps:$4 sm:$0xff]   ;;  %v4036_v0 = vld [vmem:[%s5853_s1 + $0x3c0] ss:$16 sps:$4 sm:$0xff]  }
  0x40   :  { %2517 = vmatprep.subr.bf16.mxu0 %v3953_v1  ;;  %2823 = vmatprep.subr.bf16.mxu1 %v3956_v2  ;;  %v4039_v1 = vld [vmem:[%s5853_s1 + $0x3c8] ss:$16 sps:$4 sm:$0xff]   ;;  %v4045_v2 = vld [vmem:[%s5853_s1 + $0x3e4] ss:$16 sps:$4 sm:$0xff]  }
  0x42   :  { %2499 = vmatmul.mubr.bf16.vlgmr.msra.gmra.mrb[0].mxu0 %v3948_v3  ;;  %2805 = vmatmul.mubr.bf16.vlgmr.msra.gmra.mrb[0].mxu1 %v3948_v3  ;;  %v4048_v3 = vld [vmem:[%s5853_s1 + $0x3ec] ss:$16 sps:$4 sm:$0xff]  }
  0x43   :  { %2518 = vmatpush1.bf16.msra.mxu0 %v3951_v4  ;;  %2824 = vmatpush1.bf16.msra.mxu1 %v3954_v5  ;;  %v4043_v4 = vld [vmem:[%s5853_s1 + $0x3e0] ss:$16 sps:$4 sm:$0xff]   ;;  %v4046_v5 = vld [vmem:[%s5853_s1 + $0x3e8] ss:$16 sps:$4 sm:$0xff]  }
  0x44   :  { %2519 = vmatprep.subr.bf16.mxu0 %v3959_v6  ;;  %2825 = vmatprep.subr.bf16.mxu1 %v3962_v7  ;;  %v4054_v6 = vld [vmem:[%s5853_s1 + $0x404] ss:$16 sps:$4 sm:$0xff]   ;;  %v4057_v7 = vld [vmem:[%s5853_s1 + $0x40c] ss:$16 sps:$4 sm:$0xff]  }
  0x45   :  { %2508 = vmatprep.mubr.bf16.mxu0 %v3352_v25  ;;  %2814 = vmatprep.mubr.bf16.mxu1 %v3352_v25  ;;  %v4070_v25 = vld [vmem:[%s5853_s1 + $0x460] ss:$16 sps:$4 sm:$0xff]  }
  0x47   :  { %2520 = vmatpush1.bf16.msra.mxu0 %v3957_v8  ;;  %2826 = vmatpush1.bf16.msra.mxu1 %v3960_v9  ;;  %v4049_v8 = vld [vmem:[%s5854_s0 + $0x8] ss:$48 sps:$4 sm:$0xff]  }
  0x48   :  { %2521 = vmatprep.subr.bf16.mxu0 %v3965_v10  ;;  %2827 = vmatprep.subr.bf16.mxu1 %v3968_v11  ;;  %v33_v9 = vld [vmem:[%s5854_s0 + $0x68] sm:$0x33]  ;;  %v4052_v10 = vld [vmem:[%s5853_s1 + $0x400] ss:$16 sps:$4 sm:$0xff]  }
  0x49   :  { %v4055_v11 = vld [vmem:[%s5853_s1 + $0x408] ss:$16 sps:$4 sm:$0xff]  }
  0x4a   :  { %2509 = vmatmul.mubr.bf16.gmra.mrb[4].mxu0 %v3351_v27  ;;  %2815 = vmatmul.mubr.bf16.gmra.mrb[4].mxu1 %v3351_v27  ;;  %v4078_v27 = vld [vmem:[%s5853_s1 + $0x484] ss:$16 sps:$4 sm:$0xff]  }
  0x4b   :  { %2522 = vmatpush1.bf16.msra.mxu0 %v3963_v12  ;;  %2828 = vmatpush1.bf16.msra.mxu1 %v3966_v13  ;;  %v4060_v12 = vld [vmem:[%s5853_s1 + $0x424] ss:$16 sps:$4 sm:$0xff]   ;;  %v4063_v13 = vld [vmem:[%s5853_s1 + $0x42c] ss:$16 sps:$4 sm:$0xff]  }
  0x4c   :  { %2523 = vmatprep.subr.bf16.mxu0 %v3971_v14  ;;  %2829 = vmatprep.subr.bf16.mxu1 %v3974_v15  ;;  %v3354_v14 = vcombine.high %v33_v9, %v33_v9  ;;  %v4058_v15 = vld [vmem:[%s5853_s1 + $0x420] ss:$16 sps:$4 sm:$0xff]  }
  0x4d   :  { %2549 = vmatprep.mubr.bf16.mxu0 %v4051_v33  ;;  %2855 = vmatprep.mubr.bf16.mxu1 %v4051_v33  ;;  %v4082_v33 = vld [vmem:[%s5853_s1 + $0x4a0] ss:$16 sps:$4 sm:$0xff]  }
  0x4f   :  { %2524 = vmatpush1.bf16.msra.mxu0 %v3969_v16  ;;  %2830 = vmatpush1.bf16.msra.mxu1 %v3972_v17  ;;  %v4061_v16 = vld [vmem:[%s5853_s1 + $0x428] ss:$16 sps:$4 sm:$0xff]   ;;  %v4066_v17 = vld [vmem:[%s5853_s1 + $0x444] ss:$16 sps:$4 sm:$0xff]  }
  0x50   :  { %2525 = vmatprep.subr.bf16.mxu0 %v3977_v18  ;;  %2831 = vmatprep.subr.bf16.mxu1 %v3980_v19  ;;  %v4069_v18 = vld [vmem:[%s5853_s1 + $0x44c] ss:$16 sps:$4 sm:$0xff]   ;;  %v3353_v19 = vcombine.low %v33_v9, %v33_v9  ;;  %v4144_v9 = vld [vmem:[%s5853_s1 + $0x5e0] ss:$16 sps:$4 sm:$0xff]  }
  0x53   :  { %2526 = vmatpush1.bf16.msra.mxu0 %v3975_v20  ;;  %2832 = vmatpush1.bf16.msra.mxu1 %v3978_v21  ;;  %v4064_v20 = vld [vmem:[%s5853_s1 + $0x440] ss:$16 sps:$4 sm:$0xff]   ;;  %v4067_v21 = vld [vmem:[%s5853_s1 + $0x448] ss:$16 sps:$4 sm:$0xff]  }
  0x54   :  { %2527 = vmatprep.subr.bf16.mxu0 %v3983_v22  ;;  %2833 = vmatprep.subr.bf16.mxu1 %v3986_v23  ;;  %v4072_v22 = vld [vmem:[%s5853_s1 + $0x464] ss:$16 sps:$4 sm:$0xff]   ;;  %v4075_v23 = vld [vmem:[%s5853_s1 + $0x46c] ss:$16 sps:$4 sm:$0xff]  }
  0x57   :  { %2528 = vmatpush1.bf16.msra.mxu0 %v3981_v26  ;;  %2834 = vmatpush1.bf16.msra.mxu1 %v3984_v28  ;;  %v4073_v26 = vld [vmem:[%s5853_s1 + $0x468] ss:$16 sps:$4 sm:$0xff]   ;;  %v4081_v28 = vld [vmem:[%s5853_s1 + $0x48c] ss:$16 sps:$4 sm:$0xff]  }
  0x58   :  { %2529 = vmatprep.subr.bf16.mxu0 %v3989_v29  ;;  %2835 = vmatprep.subr.bf16.mxu1 %v3992_v30  ;;  %v4076_v29 = vld [vmem:[%s5853_s1 + $0x480] ss:$16 sps:$4 sm:$0xff]   ;;  %v4079_v30 = vld [vmem:[%s5853_s1 + $0x488] ss:$16 sps:$4 sm:$0xff]  }
  0x5b   :  { %2530 = vmatpush1.bf16.msra.mxu0 %v3987_v31  ;;  %2836 = vmatpush1.bf16.msra.mxu1 %v3990_v32  ;;  %v4084_v31 = vld [vmem:[%s5853_s1 + $0x4a4] ss:$16 sps:$4 sm:$0xff]   ;;  %v4087_v32 = vld [vmem:[%s5853_s1 + $0x4ac] ss:$16 sps:$4 sm:$0xff]  }
  0x5c   :  { %2531 = vmatprep.subr.bf16.mxu0 %v3995_v34  ;;  %2837 = vmatprep.subr.bf16.mxu1 %v3998_v35  ;;  %v4085_v34 = vld [vmem:[%s5853_s1 + $0x4a8] ss:$16 sps:$4 sm:$0xff]   ;;  %v4090_v35 = vld [vmem:[%s5853_s1 + $0x4c4] ss:$16 sps:$4 sm:$0xff]  }
  0x5f   :  { %2532 = vmatpush1.bf16.msra.mxu0 %v3993_v36  ;;  %2838 = vmatpush1.bf16.msra.mxu1 %v3996_v37  ;;  %v4093_v36 = vld [vmem:[%s5853_s1 + $0x4cc] ss:$16 sps:$4 sm:$0xff]   ;;  %v4088_v37 = vld [vmem:[%s5853_s1 + $0x4c0] ss:$16 sps:$4 sm:$0xff]  }
  0x60   :  { %2533 = vmatprep.subr.bf16.mxu0 %v4001_v38  ;;  %2839 = vmatprep.subr.bf16.mxu1 %v4004_v39  ;;  %v4091_v38 = vld [vmem:[%s5853_s1 + $0x4c8] ss:$16 sps:$4 sm:$0xff]   ;;  %v4096_v39 = vld [vmem:[%s5853_s1 + $0x4e4] ss:$16 sps:$4 sm:$0xff]  }
  0x63   :  { %2534 = vmatpush1.bf16.msra.mxu0 %v3999_v40  ;;  %2840 = vmatpush1.bf16.msra.mxu1 %v4002_v41  ;;  %v4099_v40 = vld [vmem:[%s5853_s1 + $0x4ec] ss:$16 sps:$4 sm:$0xff]   ;;  %v4094_v41 = vld [vmem:[%s5853_s1 + $0x4e0] ss:$16 sps:$4 sm:$0xff]  }
  0x64   :  { %2535 = vmatprep.subr.bf16.mxu0 %v4007_v42  ;;  %2841 = vmatprep.subr.bf16.mxu1 %v4010_v43  ;;  %v4097_v42 = vld [vmem:[%s5853_s1 + $0x4e8] ss:$16 sps:$4 sm:$0xff]   ;;  %v4102_v43 = vld [vmem:[%s5853_s1 + $0x504] ss:$16 sps:$4 sm:$0xff]  }
  0x67   :  { %2536 = vmatpush1.bf16.msra.mxu0 %v4005_v44  ;;  %2842 = vmatpush1.bf16.msra.mxu1 %v4008_v45  ;;  %v4105_v44 = vld [vmem:[%s5853_s1 + $0x50c] ss:$16 sps:$4 sm:$0xff]   ;;  %v4100_v45 = vld [vmem:[%s5853_s1 + $0x500] ss:$16 sps:$4 sm:$0xff]  }
  0x68   :  { %2537 = vmatprep.subr.bf16.mxu0 %v4013_v46  ;;  %2843 = vmatprep.subr.bf16.mxu1 %v4016_v47  ;;  %v4103_v46 = vld [vmem:[%s5853_s1 + $0x508] ss:$16 sps:$4 sm:$0xff]   ;;  %v4108_v47 = vld [vmem:[%s5853_s1 + $0x524] ss:$16 sps:$4 sm:$0xff]  }
  0x6b   :  { %2538 = vmatpush1.bf16.msra.mxu0 %v4011_v48  ;;  %2844 = vmatpush1.bf16.msra.mxu1 %v4014_v49  ;;  %v4111_v48 = vld [vmem:[%s5853_s1 + $0x52c] ss:$16 sps:$4 sm:$0xff]   ;;  %v4106_v49 = vld [vmem:[%s5853_s1 + $0x520] ss:$16 sps:$4 sm:$0xff]  }
  0x6c   :  { %2539 = vmatprep.subr.bf16.mxu0 %v4019_v50  ;;  %2845 = vmatprep.subr.bf16.mxu1 %v4022_v51  ;;  %v4109_v50 = vld [vmem:[%s5853_s1 + $0x528] ss:$16 sps:$4 sm:$0xff]   ;;  %v4114_v51 = vld [vmem:[%s5853_s1 + $0x544] ss:$16 sps:$4 sm:$0xff]  }
  0x6f   :  { %2540 = vmatpush1.bf16.msra.mxu0 %v4017_v52  ;;  %2846 = vmatpush1.bf16.msra.mxu1 %v4020_v53  ;;  %v4117_v52 = vld [vmem:[%s5853_s1 + $0x54c] ss:$16 sps:$4 sm:$0xff]   ;;  %v4112_v53 = vld [vmem:[%s5853_s1 + $0x540] ss:$16 sps:$4 sm:$0xff]  }
  0x70   :  { %2541 = vmatprep.subr.bf16.mxu0 %v4025_v54  ;;  %2847 = vmatprep.subr.bf16.mxu1 %v4028_v55  ;;  %v4115_v54 = vld [vmem:[%s5853_s1 + $0x548] ss:$16 sps:$4 sm:$0xff]   ;;  %v4120_v55 = vld [vmem:[%s5853_s1 + $0x564] ss:$16 sps:$4 sm:$0xff]  }
  0x73   :  { %2542 = vmatpush1.bf16.msra.mxu0 %v4023_v56  ;;  %2848 = vmatpush1.bf16.msra.mxu1 %v4026_v57  ;;  %v4123_v56 = vld [vmem:[%s5853_s1 + $0x56c] ss:$16 sps:$4 sm:$0xff]   ;;  %v4118_v57 = vld [vmem:[%s5853_s1 + $0x560] ss:$16 sps:$4 sm:$0xff]  }
  0x74   :  { %2543 = vmatprep.subr.bf16.mxu0 %v4031_v58  ;;  %2849 = vmatprep.subr.bf16.mxu1 %v4034_v59  ;;  %v4121_v58 = vld [vmem:[%s5853_s1 + $0x568] ss:$16 sps:$4 sm:$0xff]   ;;  %v4126_v59 = vld [vmem:[%s5853_s1 + $0x584] ss:$16 sps:$4 sm:$0xff]  }
  0x77   :  { %2544 = vmatpush1.bf16.msra.mxu0 %v4029_v60  ;;  %2850 = vmatpush1.bf16.msra.mxu1 %v4032_v61  ;;  %v4129_v60 = vld [vmem:[%s5853_s1 + $0x58c] ss:$16 sps:$4 sm:$0xff]   ;;  %v4124_v61 = vld [vmem:[%s5853_s1 + $0x580] ss:$16 sps:$4 sm:$0xff]  }
  0x78   :  { %2545 = vmatprep.subr.bf16.mxu0 %v4038_v62  ;;  %2851 = vmatprep.subr.bf16.mxu1 %v4041_v63  ;;  %v4127_v62 = vld [vmem:[%s5853_s1 + $0x588] ss:$16 sps:$4 sm:$0xff]   ;;  %v4132_v63 = vld [vmem:[%s5853_s1 + $0x5a4] ss:$16 sps:$4 sm:$0xff]  }
  0x7b   :  { %2546 = vmatpush1.bf16.msra.mxu0 %v4036_v0  ;;  %2852 = vmatpush1.bf16.msra.mxu1 %v4039_v1  ;;  %v4135_v0 = vld [vmem:[%s5853_s1 + $0x5ac] ss:$16 sps:$4 sm:$0xff]   ;;  %v4130_v1 = vld [vmem:[%s5853_s1 + $0x5a0] ss:$16 sps:$4 sm:$0xff]  }
  0x7c   :  { %2547 = vmatprep.subr.bf16.mxu0 %v4045_v2  ;;  %2853 = vmatprep.subr.bf16.mxu1 %v4048_v3  ;;  %v4133_v2 = vld [vmem:[%s5853_s1 + $0x5a8] ss:$16 sps:$4 sm:$0xff]   ;;  %v4139_v3 = vld [vmem:[%s5853_s1 + $0x5c4] ss:$16 sps:$4 sm:$0xff]  }
  0x7f   :  { %2548 = vmatpush1.bf16.msra.mxu0 %v4043_v4  ;;  %2854 = vmatpush1.bf16.msra.mxu1 %v4046_v5  ;;  %v4142_v4 = vld [vmem:[%s5853_s1 + $0x5cc] ss:$16 sps:$4 sm:$0xff]   ;;  %v4137_v5 = vld [vmem:[%s5853_s1 + $0x5c0] ss:$16 sps:$4 sm:$0xff]  }
  0x80   :  { %2568 = vmatprep.subr.bf16.mxu0 %v4054_v6  ;;  %2874 = vmatprep.subr.bf16.mxu1 %v4057_v7  ;;  %v4140_v6 = vld [vmem:[%s5853_s1 + $0x5c8] ss:$16 sps:$4 sm:$0xff]   ;;  %v4146_v7 = vld [vmem:[%s5853_s1 + $0x5e4] ss:$16 sps:$4 sm:$0xff]  }
  0x82   :  { %2550 = vmatmul.mubr.bf16.vlgmr.msra.gmra.mrb[0].mxu0 %v4049_v8  ;;  %2856 = vmatmul.mubr.bf16.vlgmr.msra.gmra.mrb[0].mxu1 %v4049_v8  ;;  %v4149_v8 = vld [vmem:[%s5853_s1 + $0x5ec] ss:$16 sps:$4 sm:$0xff]  }
  0x83   :  { %2569 = vmatpush1.bf16.msra.mxu0 %v4052_v10  ;;  %2875 = vmatpush1.bf16.msra.mxu1 %v4055_v11  ;;  %v4147_v10 = vld [vmem:[%s5853_s1 + $0x5e8] ss:$16 sps:$4 sm:$0xff]   ;;  %v4155_v11 = vld [vmem:[%s5853_s1 + $0x604] ss:$16 sps:$4 sm:$0xff]  }
  0x84   :  { %2570 = vmatprep.subr.bf16.mxu0 %v4060_v12  ;;  %2876 = vmatprep.subr.bf16.mxu1 %v4063_v13  ;;  %v4158_v12 = vld [vmem:[%s5853_s1 + $0x60c] ss:$16 sps:$4 sm:$0xff]   ;;  %v4150_v13 = vld [vmem:[%s5854_s0 + $0x10] ss:$48 sps:$4 sm:$0xff]  }
  0x85   :  { %2559 = vmatprep.mubr.bf16.mxu0 %v3354_v14  ;;  %2865 = vmatprep.mubr.bf16.mxu1 %v3354_v14  ;;  %v4153_v14 = vld [vmem:[%s5853_s1 + $0x600] ss:$16 sps:$4 sm:$0xff]  }
  0x87   :  { %2571 = vmatpush1.bf16.msra.mxu0 %v4058_v15  ;;  %2877 = vmatpush1.bf16.msra.mxu1 %v4061_v16  ;;  %v34_v15 = vld [vmem:[%s5854_s0 + $0x70] sm:$0x33]  ;;  %v4156_v16 = vld [vmem:[%s5853_s1 + $0x608] ss:$16 sps:$4 sm:$0xff]  }
  0x88   :  { %2572 = vmatprep.subr.bf16.mxu0 %v4066_v17  ;;  %2878 = vmatprep.subr.bf16.mxu1 %v4069_v18  ;;  %v4161_v17 = vld [vmem:[%s5853_s1 + $0x624] ss:$16 sps:$4 sm:$0xff]   ;;  %v4164_v18 = vld [vmem:[%s5853_s1 + $0x62c] ss:$16 sps:$4 sm:$0xff]  }
  0x8a   :  { %2560 = vmatmul.mubr.bf16.gmra.mrb[4].mxu0 %v3353_v19  ;;  %2866 = vmatmul.mubr.bf16.gmra.mrb[4].mxu1 %v3353_v19  ;;  %v3356_v19 = vcombine.high %v34_v15, %v34_v15 }
  0x8b   :  { %2573 = vmatpush1.bf16.msra.mxu0 %v4064_v20  ;;  %2879 = vmatpush1.bf16.msra.mxu1 %v4067_v21  ;;  %v4159_v20 = vld [vmem:[%s5853_s1 + $0x620] ss:$16 sps:$4 sm:$0xff]   ;;  %v4162_v21 = vld [vmem:[%s5853_s1 + $0x628] ss:$16 sps:$4 sm:$0xff]  }
  0x8c   :  { %2574 = vmatprep.subr.bf16.mxu0 %v4072_v22  ;;  %2880 = vmatprep.subr.bf16.mxu1 %v4075_v23  ;;  %v4167_v22 = vld [vmem:[%s5853_s1 + $0x644] ss:$16 sps:$4 sm:$0xff]   ;;  %v4170_v23 = vld [vmem:[%s5853_s1 + $0x64c] ss:$16 sps:$4 sm:$0xff]  }
  0x8d   :  { %2600 = vmatprep.mubr.bf16.mxu0 %v4152_v24  ;;  %2906 = vmatprep.mubr.bf16.mxu1 %v4152_v24  ;;  %v4165_v24 = vld [vmem:[%s5853_s1 + $0x640] ss:$16 sps:$4 sm:$0xff]  }
  0x8f   :  { %2575 = vmatpush1.bf16.msra.mxu0 %v4070_v25  ;;  %2881 = vmatpush1.bf16.msra.mxu1 %v4073_v26  ;;  %v3355_v25 = vcombine.low %v34_v15, %v34_v15  ;;  %v4168_v26 = vld [vmem:[%s5853_s1 + $0x648] ss:$16 sps:$4 sm:$0xff]  }
  0x90   :  { %2576 = vmatprep.subr.bf16.mxu0 %v4078_v27  ;;  %2882 = vmatprep.subr.bf16.mxu1 %v4081_v28  ;;  %v4173_v27 = vld [vmem:[%s5853_s1 + $0x664] ss:$16 sps:$4 sm:$0xff]   ;;  %v4176_v28 = vld [vmem:[%s5853_s1 + $0x66c] ss:$16 sps:$4 sm:$0xff]   ;;  %v4248_v15 = vld [vmem:[%s5853_s1 + $0x7e8] ss:$16 sps:$4 sm:$0xff]  }
  0x93   :  { %2577 = vmatpush1.bf16.msra.mxu0 %v4076_v29  ;;  %2883 = vmatpush1.bf16.msra.mxu1 %v4079_v30  ;;  %v4253_v29 = vld [vmem:[%s5854_s0 + $0x1c] ss:$48 sps:$4 sm:$0xff]   ;;  %v4171_v30 = vld [vmem:[%s5853_s1 + $0x660] ss:$16 sps:$4 sm:$0xff]  }
  0x94   :  { %2578 = vmatprep.subr.bf16.mxu0 %v4084_v31  ;;  %2884 = vmatprep.subr.bf16.mxu1 %v4087_v32  ;;  %v4174_v31 = vld [vmem:[%s5853_s1 + $0x668] ss:$16 sps:$4 sm:$0xff]   ;;  %v4179_v32 = vld [vmem:[%s5853_s1 + $0x684] ss:$16 sps:$4 sm:$0xff]  }
  0x97   :  { %2579 = vmatpush1.bf16.msra.mxu0 %v4082_v33  ;;  %2885 = vmatpush1.bf16.msra.mxu1 %v4085_v34  ;;  %v4182_v33 = vld [vmem:[%s5853_s1 + $0x68c] ss:$16 sps:$4 sm:$0xff]   ;;  %v4177_v34 = vld [vmem:[%s5853_s1 + $0x680] ss:$16 sps:$4 sm:$0xff]  }
  0x98   :  { %2580 = vmatprep.subr.bf16.mxu0 %v4090_v35  ;;  %2886 = vmatprep.subr.bf16.mxu1 %v4093_v36  ;;  %v4180_v35 = vld [vmem:[%s5853_s1 + $0x688] ss:$16 sps:$4 sm:$0xff]   ;;  %v4185_v36 = vld [vmem:[%s5853_s1 + $0x6a4] ss:$16 sps:$4 sm:$0xff]  }
  0x9b   :  { %2581 = vmatpush1.bf16.msra.mxu0 %v4088_v37  ;;  %2887 = vmatpush1.bf16.msra.mxu1 %v4091_v38  ;;  %v4188_v37 = vld [vmem:[%s5853_s1 + $0x6ac] ss:$16 sps:$4 sm:$0xff]   ;;  %v4183_v38 = vld [vmem:[%s5853_s1 + $0x6a0] ss:$16 sps:$4 sm:$0xff]  }
  0x9c   :  { %2582 = vmatprep.subr.bf16.mxu0 %v4096_v39  ;;  %2888 = vmatprep.subr.bf16.mxu1 %v4099_v40  ;;  %v4186_v39 = vld [vmem:[%s5853_s1 + $0x6a8] ss:$16 sps:$4 sm:$0xff]   ;;  %v4191_v40 = vld [vmem:[%s5853_s1 + $0x6c4] ss:$16 sps:$4 sm:$0xff]  }
  0x9f   :  { %2583 = vmatpush1.bf16.msra.mxu0 %v4094_v41  ;;  %2889 = vmatpush1.bf16.msra.mxu1 %v4097_v42  ;;  %v4194_v41 = vld [vmem:[%s5853_s1 + $0x6cc] ss:$16 sps:$4 sm:$0xff]   ;;  %v4189_v42 = vld [vmem:[%s5853_s1 + $0x6c0] ss:$16 sps:$4 sm:$0xff]  }
  0xa0   :  { %2584 = vmatprep.subr.bf16.mxu0 %v4102_v43  ;;  %2890 = vmatprep.subr.bf16.mxu1 %v4105_v44  ;;  %v4192_v43 = vld [vmem:[%s5853_s1 + $0x6c8] ss:$16 sps:$4 sm:$0xff]   ;;  %v4197_v44 = vld [vmem:[%s5853_s1 + $0x6e4] ss:$16 sps:$4 sm:$0xff]  }
  0xa3   :  { %2585 = vmatpush1.bf16.msra.mxu0 %v4100_v45  ;;  %2891 = vmatpush1.bf16.msra.mxu1 %v4103_v46  ;;  %v4200_v45 = vld [vmem:[%s5853_s1 + $0x6ec] ss:$16 sps:$4 sm:$0xff]   ;;  %v4195_v46 = vld [vmem:[%s5853_s1 + $0x6e0] ss:$16 sps:$4 sm:$0xff]  }
  0xa4   :  { %2586 = vmatprep.subr.bf16.mxu0 %v4108_v47  ;;  %2892 = vmatprep.subr.bf16.mxu1 %v4111_v48  ;;  %v4198_v47 = vld [vmem:[%s5853_s1 + $0x6e8] ss:$16 sps:$4 sm:$0xff]   ;;  %v4203_v48 = vld [vmem:[%s5853_s1 + $0x704] ss:$16 sps:$4 sm:$0xff]  }
  0xa7   :  { %2587 = vmatpush1.bf16.msra.mxu0 %v4106_v49  ;;  %2893 = vmatpush1.bf16.msra.mxu1 %v4109_v50  ;;  %v4206_v49 = vld [vmem:[%s5853_s1 + $0x70c] ss:$16 sps:$4 sm:$0xff]   ;;  %v4201_v50 = vld [vmem:[%s5853_s1 + $0x700] ss:$16 sps:$4 sm:$0xff]  }
  0xa8   :  { %2588 = vmatprep.subr.bf16.mxu0 %v4114_v51  ;;  %2894 = vmatprep.subr.bf16.mxu1 %v4117_v52  ;;  %v4204_v51 = vld [vmem:[%s5853_s1 + $0x708] ss:$16 sps:$4 sm:$0xff]   ;;  %v4209_v52 = vld [vmem:[%s5853_s1 + $0x724] ss:$16 sps:$4 sm:$0xff]  }
  0xab   :  { %2589 = vmatpush1.bf16.msra.mxu0 %v4112_v53  ;;  %2895 = vmatpush1.bf16.msra.mxu1 %v4115_v54  ;;  %v4212_v53 = vld [vmem:[%s5853_s1 + $0x72c] ss:$16 sps:$4 sm:$0xff]   ;;  %v4207_v54 = vld [vmem:[%s5853_s1 + $0x720] ss:$16 sps:$4 sm:$0xff]  }
  0xac   :  { %2590 = vmatprep.subr.bf16.mxu0 %v4120_v55  ;;  %2896 = vmatprep.subr.bf16.mxu1 %v4123_v56  ;;  %v4210_v55 = vld [vmem:[%s5853_s1 + $0x728] ss:$16 sps:$4 sm:$0xff]   ;;  %v4215_v56 = vld [vmem:[%s5853_s1 + $0x744] ss:$16 sps:$4 sm:$0xff]  }
  0xaf   :  { %2591 = vmatpush1.bf16.msra.mxu0 %v4118_v57  ;;  %2897 = vmatpush1.bf16.msra.mxu1 %v4121_v58  ;;  %v4218_v57 = vld [vmem:[%s5853_s1 + $0x74c] ss:$16 sps:$4 sm:$0xff]   ;;  %v4213_v58 = vld [vmem:[%s5853_s1 + $0x740] ss:$16 sps:$4 sm:$0xff]  }
  0xb0   :  { %2592 = vmatprep.subr.bf16.mxu0 %v4126_v59  ;;  %2898 = vmatprep.subr.bf16.mxu1 %v4129_v60  ;;  %v4216_v59 = vld [vmem:[%s5853_s1 + $0x748] ss:$16 sps:$4 sm:$0xff]   ;;  %v4221_v60 = vld [vmem:[%s5853_s1 + $0x764] ss:$16 sps:$4 sm:$0xff]  }
  0xb3   :  { %2593 = vmatpush1.bf16.msra.mxu0 %v4124_v61  ;;  %2899 = vmatpush1.bf16.msra.mxu1 %v4127_v62  ;;  %v4224_v61 = vld [vmem:[%s5853_s1 + $0x76c] ss:$16 sps:$4 sm:$0xff]   ;;  %v4219_v62 = vld [vmem:[%s5853_s1 + $0x760] ss:$16 sps:$4 sm:$0xff]  }
  0xb4   :  { %2594 = vmatprep.subr.bf16.mxu0 %v4132_v63  ;;  %2900 = vmatprep.subr.bf16.mxu1 %v4135_v0  ;;  %v4222_v63 = vld [vmem:[%s5853_s1 + $0x768] ss:$16 sps:$4 sm:$0xff]   ;;  %v4227_v0 = vld [vmem:[%s5853_s1 + $0x784] ss:$16 sps:$4 sm:$0xff]  }
  0xb7   :  { %2595 = vmatpush1.bf16.msra.mxu0 %v4130_v1  ;;  %2901 = vmatpush1.bf16.msra.mxu1 %v4133_v2  ;;  %v4230_v1 = vld [vmem:[%s5853_s1 + $0x78c] ss:$16 sps:$4 sm:$0xff]   ;;  %v4225_v2 = vld [vmem:[%s5853_s1 + $0x780] ss:$16 sps:$4 sm:$0xff]  }
  0xb8   :  { %2596 = vmatprep.subr.bf16.mxu0 %v4139_v3  ;;  %2902 = vmatprep.subr.bf16.mxu1 %v4142_v4  ;;  %v4228_v3 = vld [vmem:[%s5853_s1 + $0x788] ss:$16 sps:$4 sm:$0xff]   ;;  %v4233_v4 = vld [vmem:[%s5853_s1 + $0x7a4] ss:$16 sps:$4 sm:$0xff]  }
  0xbb   :  { %2597 = vmatpush1.bf16.msra.mxu0 %v4137_v5  ;;  %2903 = vmatpush1.bf16.msra.mxu1 %v4140_v6  ;;  %v4236_v5 = vld [vmem:[%s5853_s1 + $0x7ac] ss:$16 sps:$4 sm:$0xff]   ;;  %v4231_v6 = vld [vmem:[%s5853_s1 + $0x7a0] ss:$16 sps:$4 sm:$0xff]  }
  0xbc   :  { %2598 = vmatprep.subr.bf16.mxu0 %v4146_v7  ;;  %2904 = vmatprep.subr.bf16.mxu1 %v4149_v8  ;;  %v4234_v7 = vld [vmem:[%s5853_s1 + $0x7a8] ss:$16 sps:$4 sm:$0xff]   ;;  %v4240_v8 = vld [vmem:[%s5853_s1 + $0x7c4] ss:$16 sps:$4 sm:$0xff]  }
  0xbf   :  { %2599 = vmatpush1.bf16.msra.mxu0 %v4144_v9  ;;  %2905 = vmatpush1.bf16.msra.mxu1 %v4147_v10  ;;  %v4243_v9 = vld [vmem:[%s5853_s1 + $0x7cc] ss:$16 sps:$4 sm:$0xff]   ;;  %v4238_v10 = vld [vmem:[%s5853_s1 + $0x7c0] ss:$16 sps:$4 sm:$0xff]  }
  0xc0   :  { %2619 = vmatprep.subr.bf16.mxu0 %v4155_v11  ;;  %2925 = vmatprep.subr.bf16.mxu1 %v4158_v12  ;;  %v4241_v11 = vld [vmem:[%s5853_s1 + $0x7c8] ss:$16 sps:$4 sm:$0xff]   ;;  %v4247_v12 = vld [vmem:[%s5853_s1 + $0x7e4] ss:$16 sps:$4 sm:$0xff]  }
  0xc2   :  { %2601 = vmatmul.mubr.bf16.vlgmr.msra.gmra.mrb[0].mxu0 %v4150_v13  ;;  %2907 = vmatmul.mubr.bf16.vlgmr.msra.gmra.mrb[0].mxu1 %v4150_v13  ;;  %v4250_v13 = vld [vmem:[%s5853_s1 + $0x7ec] ss:$16 sps:$4 sm:$0xff]  }
  0xc3   :  { %2620 = vmatpush1.bf16.msra.mxu0 %v4153_v14  ;;  %2926 = vmatpush1.bf16.msra.mxu1 %v4156_v16  ;;  %v4245_v14 = vld [vmem:[%s5853_s1 + $0x7e0] ss:$16 sps:$4 sm:$0xff]   ;;  %v4256_v16 = vld [vmem:[%s5853_s1 + $0x804] ss:$16 sps:$4 sm:$0xff]  }
  0xc4   :  { %2621 = vmatprep.subr.bf16.mxu0 %v4161_v17  ;;  %2927 = vmatprep.subr.bf16.mxu1 %v4164_v18  ;;  %v4259_v17 = vld [vmem:[%s5853_s1 + $0x80c] ss:$16 sps:$4 sm:$0xff]   ;;  %v4251_v18 = vld [vmem:[%s5854_s0 + $0x18] ss:$48 sps:$4 sm:$0xff]  }
  0xc5   :  { %2610 = vmatprep.mubr.bf16.mxu0 %v3356_v19  ;;  %2916 = vmatprep.mubr.bf16.mxu1 %v3356_v19  ;;  %v4254_v19 = vld [vmem:[%s5853_s1 + $0x800] ss:$16 sps:$4 sm:$0xff]  }
  0xc7   :  { %2622 = vmatpush1.bf16.msra.mxu0 %v4159_v20  ;;  %2928 = vmatpush1.bf16.msra.mxu1 %v4162_v21  ;;  %v4257_v20 = vld [vmem:[%s5853_s1 + $0x808] ss:$16 sps:$4 sm:$0xff]  }
  0xc8   :  { %2623 = vmatprep.subr.bf16.mxu0 %v4167_v22  ;;  %2929 = vmatprep.subr.bf16.mxu1 %v4170_v23  ;;  %v35_v21 = vld [vmem:[%s5854_s0 + $0x78] sm:$0x33]  ;;  %v4262_v22 = vld [vmem:[%s5853_s1 + $0x824] ss:$16 sps:$4 sm:$0xff]  }
  0xc9   :  { %v4265_v23 = vld [vmem:[%s5853_s1 + $0x82c] ss:$16 sps:$4 sm:$0xff]  }
  0xca   :  { %2611 = vmatmul.mubr.bf16.gmra.mrb[4].mxu0 %v3355_v25  ;;  %2917 = vmatmul.mubr.bf16.gmra.mrb[4].mxu1 %v3355_v25  ;;  %v4260_v25 = vld [vmem:[%s5853_s1 + $0x820] ss:$16 sps:$4 sm:$0xff]  }
  0xcb   :  { %2624 = vmatpush1.bf16.msra.mxu0 %v4165_v24  ;;  %2930 = vmatpush1.bf16.msra.mxu1 %v4168_v26  ;;  %v3358_v24 = vcombine.high %v35_v21, %v35_v21  ;;  %v4263_v26 = vld [vmem:[%s5853_s1 + $0x828] ss:$16 sps:$4 sm:$0xff]  }
  0xcc   :  { %2625 = vmatprep.subr.bf16.mxu0 %v4173_v27  ;;  %2931 = vmatprep.subr.bf16.mxu1 %v4176_v28  ;;  %v4268_v27 = vld [vmem:[%s5853_s1 + $0x844] ss:$16 sps:$4 sm:$0xff]   ;;  %v4271_v28 = vld [vmem:[%s5853_s1 + $0x84c] ss:$16 sps:$4 sm:$0xff]  }
  0xcd   :  { %2651 = vmatprep.mubr.bf16.mxu0 %v4253_v29  ;;  %2957 = vmatprep.mubr.bf16.mxu1 %v4253_v29  ;;  %v4266_v29 = vld [vmem:[%s5853_s1 + $0x840] ss:$16 sps:$4 sm:$0xff]  }
  0xcf   :  { %2626 = vmatpush1.bf16.msra.mxu0 %v4171_v30  ;;  %2932 = vmatpush1.bf16.msra.mxu1 %v4174_v31  ;;  %v3357_v30 = vcombine.low %v35_v21, %v35_v21  ;;  %v4269_v31 = vld [vmem:[%s5853_s1 + $0x848] ss:$16 sps:$4 sm:$0xff]   ;;  %v4357_v21 = vld [vmem:[%s5853_s1 + $0xa04] ss:$16 sps:$4 sm:$0xff]  }
  0xd0   :  { %2627 = vmatprep.subr.bf16.mxu0 %v4179_v32  ;;  %2933 = vmatprep.subr.bf16.mxu1 %v4182_v33  ;;  %v4274_v32 = vld [vmem:[%s5853_s1 + $0x864] ss:$16 sps:$4 sm:$0xff]   ;;  %v4277_v33 = vld [vmem:[%s5853_s1 + $0x86c] ss:$16 sps:$4 sm:$0xff]  }
  0xd3   :  { %2628 = vmatpush1.bf16.msra.mxu0 %v4177_v34  ;;  %2934 = vmatpush1.bf16.msra.mxu1 %v4180_v35  ;;  %v4354_v34 = vld [vmem:[%s5854_s0 + $0x24] ss:$48 sps:$4 sm:$0xff]   ;;  %v4272_v35 = vld [vmem:[%s5853_s1 + $0x860] ss:$16 sps:$4 sm:$0xff]  }
  0xd4   :  { %2629 = vmatprep.subr.bf16.mxu0 %v4185_v36  ;;  %2935 = vmatprep.subr.bf16.mxu1 %v4188_v37  ;;  %v4275_v36 = vld [vmem:[%s5853_s1 + $0x868] ss:$16 sps:$4 sm:$0xff]   ;;  %v4280_v37 = vld [vmem:[%s5853_s1 + $0x884] ss:$16 sps:$4 sm:$0xff]  }
  0xd7   :  { %2630 = vmatpush1.bf16.msra.mxu0 %v4183_v38  ;;  %2936 = vmatpush1.bf16.msra.mxu1 %v4186_v39  ;;  %v4283_v38 = vld [vmem:[%s5853_s1 + $0x88c] ss:$16 sps:$4 sm:$0xff]   ;;  %v4278_v39 = vld [vmem:[%s5853_s1 + $0x880] ss:$16 sps:$4 sm:$0xff]  }
  0xd8   :  { %2631 = vmatprep.subr.bf16.mxu0 %v4191_v40  ;;  %2937 = vmatprep.subr.bf16.mxu1 %v4194_v41  ;;  %v4281_v40 = vld [vmem:[%s5853_s1 + $0x888] ss:$16 sps:$4 sm:$0xff]   ;;  %v4286_v41 = vld [vmem:[%s5853_s1 + $0x8a4] ss:$16 sps:$4 sm:$0xff]  }
  0xdb   :  { %2632 = vmatpush1.bf16.msra.mxu0 %v4189_v42  ;;  %2938 = vmatpush1.bf16.msra.mxu1 %v4192_v43  ;;  %v4289_v42 = vld [vmem:[%s5853_s1 + $0x8ac] ss:$16 sps:$4 sm:$0xff]   ;;  %v4284_v43 = vld [vmem:[%s5853_s1 + $0x8a0] ss:$16 sps:$4 sm:$0xff]  }
  0xdc   :  { %2633 = vmatprep.subr.bf16.mxu0 %v4197_v44  ;;  %2939 = vmatprep.subr.bf16.mxu1 %v4200_v45  ;;  %v4287_v44 = vld [vmem:[%s5853_s1 + $0x8a8] ss:$16 sps:$4 sm:$0xff]   ;;  %v4292_v45 = vld [vmem:[%s5853_s1 + $0x8c4] ss:$16 sps:$4 sm:$0xff]  }
  0xdf   :  { %2634 = vmatpush1.bf16.msra.mxu0 %v4195_v46  ;;  %2940 = vmatpush1.bf16.msra.mxu1 %v4198_v47  ;;  %v4295_v46 = vld [vmem:[%s5853_s1 + $0x8cc] ss:$16 sps:$4 sm:$0xff]   ;;  %v4290_v47 = vld [vmem:[%s5853_s1 + $0x8c0] ss:$16 sps:$4 sm:$0xff]  }
  0xe0   :  { %2635 = vmatprep.subr.bf16.mxu0 %v4203_v48  ;;  %2941 = vmatprep.subr.bf16.mxu1 %v4206_v49  ;;  %v4293_v48 = vld [vmem:[%s5853_s1 + $0x8c8] ss:$16 sps:$4 sm:$0xff]   ;;  %v4298_v49 = vld [vmem:[%s5853_s1 + $0x8e4] ss:$16 sps:$4 sm:$0xff]  }
  0xe3   :  { %2636 = vmatpush1.bf16.msra.mxu0 %v4201_v50  ;;  %2942 = vmatpush1.bf16.msra.mxu1 %v4204_v51  ;;  %v4301_v50 = vld [vmem:[%s5853_s1 + $0x8ec] ss:$16 sps:$4 sm:$0xff]   ;;  %v4296_v51 = vld [vmem:[%s5853_s1 + $0x8e0] ss:$16 sps:$4 sm:$0xff]  }
  0xe4   :  { %2637 = vmatprep.subr.bf16.mxu0 %v4209_v52  ;;  %2943 = vmatprep.subr.bf16.mxu1 %v4212_v53  ;;  %v4299_v52 = vld [vmem:[%s5853_s1 + $0x8e8] ss:$16 sps:$4 sm:$0xff]   ;;  %v4304_v53 = vld [vmem:[%s5853_s1 + $0x904] ss:$16 sps:$4 sm:$0xff]  }
  0xe7   :  { %2638 = vmatpush1.bf16.msra.mxu0 %v4207_v54  ;;  %2944 = vmatpush1.bf16.msra.mxu1 %v4210_v55  ;;  %v4307_v54 = vld [vmem:[%s5853_s1 + $0x90c] ss:$16 sps:$4 sm:$0xff]   ;;  %v4302_v55 = vld [vmem:[%s5853_s1 + $0x900] ss:$16 sps:$4 sm:$0xff]  }
  0xe8   :  { %2639 = vmatprep.subr.bf16.mxu0 %v4215_v56  ;;  %2945 = vmatprep.subr.bf16.mxu1 %v4218_v57  ;;  %v4305_v56 = vld [vmem:[%s5853_s1 + $0x908] ss:$16 sps:$4 sm:$0xff]   ;;  %v4310_v57 = vld [vmem:[%s5853_s1 + $0x924] ss:$16 sps:$4 sm:$0xff]  }
  0xeb   :  { %2640 = vmatpush1.bf16.msra.mxu0 %v4213_v58  ;;  %2946 = vmatpush1.bf16.msra.mxu1 %v4216_v59  ;;  %v4313_v58 = vld [vmem:[%s5853_s1 + $0x92c] ss:$16 sps:$4 sm:$0xff]   ;;  %v4308_v59 = vld [vmem:[%s5853_s1 + $0x920] ss:$16 sps:$4 sm:$0xff]  }
  0xec   :  { %2641 = vmatprep.subr.bf16.mxu0 %v4221_v60  ;;  %2947 = vmatprep.subr.bf16.mxu1 %v4224_v61  ;;  %v4311_v60 = vld [vmem:[%s5853_s1 + $0x928] ss:$16 sps:$4 sm:$0xff]   ;;  %v4316_v61 = vld [vmem:[%s5853_s1 + $0x944] ss:$16 sps:$4 sm:$0xff]  }
  0xef   :  { %2642 = vmatpush1.bf16.msra.mxu0 %v4219_v62  ;;  %2948 = vmatpush1.bf16.msra.mxu1 %v4222_v63  ;;  %v4319_v62 = vld [vmem:[%s5853_s1 + $0x94c] ss:$16 sps:$4 sm:$0xff]   ;;  %v4314_v63 = vld [vmem:[%s5853_s1 + $0x940] ss:$16 sps:$4 sm:$0xff]  }
  0xf0   :  { %2643 = vmatprep.subr.bf16.mxu0 %v4227_v0  ;;  %2949 = vmatprep.subr.bf16.mxu1 %v4230_v1  ;;  %v4317_v0 = vld [vmem:[%s5853_s1 + $0x948] ss:$16 sps:$4 sm:$0xff]   ;;  %v4322_v1 = vld [vmem:[%s5853_s1 + $0x964] ss:$16 sps:$4 sm:$0xff]  }
  0xf3   :  { %2644 = vmatpush1.bf16.msra.mxu0 %v4225_v2  ;;  %2950 = vmatpush1.bf16.msra.mxu1 %v4228_v3  ;;  %v4325_v2 = vld [vmem:[%s5853_s1 + $0x96c] ss:$16 sps:$4 sm:$0xff]   ;;  %v4320_v3 = vld [vmem:[%s5853_s1 + $0x960] ss:$16 sps:$4 sm:$0xff]  }
  0xf4   :  { %2645 = vmatprep.subr.bf16.mxu0 %v4233_v4  ;;  %2951 = vmatprep.subr.bf16.mxu1 %v4236_v5  ;;  %v4323_v4 = vld [vmem:[%s5853_s1 + $0x968] ss:$16 sps:$4 sm:$0xff]   ;;  %v4328_v5 = vld [vmem:[%s5853_s1 + $0x984] ss:$16 sps:$4 sm:$0xff]  }
  0xf7   :  { %2646 = vmatpush1.bf16.msra.mxu0 %v4231_v6  ;;  %2952 = vmatpush1.bf16.msra.mxu1 %v4234_v7  ;;  %v4331_v6 = vld [vmem:[%s5853_s1 + $0x98c] ss:$16 sps:$4 sm:$0xff]   ;;  %v4326_v7 = vld [vmem:[%s5853_s1 + $0x980] ss:$16 sps:$4 sm:$0xff]  }
  0xf8   :  { %2647 = vmatprep.subr.bf16.mxu0 %v4240_v8  ;;  %2953 = vmatprep.subr.bf16.mxu1 %v4243_v9  ;;  %v4329_v8 = vld [vmem:[%s5853_s1 + $0x988] ss:$16 sps:$4 sm:$0xff]   ;;  %v4334_v9 = vld [vmem:[%s5853_s1 + $0x9a4] ss:$16 sps:$4 sm:$0xff]  }
  0xfb   :  { %2648 = vmatpush1.bf16.msra.mxu0 %v4238_v10  ;;  %2954 = vmatpush1.bf16.msra.mxu1 %v4241_v11  ;;  %v4337_v10 = vld [vmem:[%s5853_s1 + $0x9ac] ss:$16 sps:$4 sm:$0xff]   ;;  %v4332_v11 = vld [vmem:[%s5853_s1 + $0x9a0] ss:$16 sps:$4 sm:$0xff]  }
  0xfc   :  { %2649 = vmatprep.subr.bf16.mxu0 %v4247_v12  ;;  %2955 = vmatprep.subr.bf16.mxu1 %v4250_v13  ;;  %v4335_v12 = vld [vmem:[%s5853_s1 + $0x9a8] ss:$16 sps:$4 sm:$0xff]   ;;  %v4341_v13 = vld [vmem:[%s5853_s1 + $0x9c4] ss:$16 sps:$4 sm:$0xff]  }
  0xff   :  { %2650 = vmatpush1.bf16.msra.mxu0 %v4245_v14  ;;  %2956 = vmatpush1.bf16.msra.mxu1 %v4248_v15  ;;  %v4344_v14 = vld [vmem:[%s5853_s1 + $0x9cc] ss:$16 sps:$4 sm:$0xff]   ;;  %v4339_v15 = vld [vmem:[%s5853_s1 + $0x9c0] ss:$16 sps:$4 sm:$0xff]  }
 0x100   :  { %2670 = vmatprep.subr.bf16.mxu0 %v4256_v16  ;;  %2976 = vmatprep.subr.bf16.mxu1 %v4259_v17  ;;  %v4342_v16 = vld [vmem:[%s5853_s1 + $0x9c8] ss:$16 sps:$4 sm:$0xff]   ;;  %v4348_v17 = vld [vmem:[%s5853_s1 + $0x9e4] ss:$16 sps:$4 sm:$0xff]  }
 0x102   :  { %2652 = vmatmul.mubr.bf16.vlgmr.msra.gmra.mrb[0].mxu0 %v4251_v18  ;;  %2958 = vmatmul.mubr.bf16.vlgmr.msra.gmra.mrb[0].mxu1 %v4251_v18  ;;  %v4351_v18 = vld [vmem:[%s5853_s1 + $0x9ec] ss:$16 sps:$4 sm:$0xff]  }
 0x103   :  { %2671 = vmatpush1.bf16.msra.mxu0 %v4254_v19  ;;  %2977 = vmatpush1.bf16.msra.mxu1 %v4257_v20  ;;  %v4346_v19 = vld [vmem:[%s5853_s1 + $0x9e0] ss:$16 sps:$4 sm:$0xff]   ;;  %v4349_v20 = vld [vmem:[%s5853_s1 + $0x9e8] ss:$16 sps:$4 sm:$0xff]  }
 0x104   :  { %2672 = vmatprep.subr.bf16.mxu0 %v4262_v22  ;;  %2978 = vmatprep.subr.bf16.mxu1 %v4265_v23  ;;  %v4360_v22 = vld [vmem:[%s5853_s1 + $0xa0c] ss:$16 sps:$4 sm:$0xff]   ;;  %v4352_v23 = vld [vmem:[%s5854_s0 + $0x20] ss:$48 sps:$4 sm:$0xff]  }
 0x105   :  { %2661 = vmatprep.mubr.bf16.mxu0 %v3358_v24  ;;  %2967 = vmatprep.mubr.bf16.mxu1 %v3358_v24  ;;  %v36_v24 = vld [vmem:[%s5854_s0 + $0x80] sm:$0x33] }
 0x107   :  { %2673 = vmatpush1.bf16.msra.mxu0 %v4260_v25  ;;  %2979 = vmatpush1.bf16.msra.mxu1 %v4263_v26  ;;  %v4355_v25 = vld [vmem:[%s5853_s1 + $0xa00] ss:$16 sps:$4 sm:$0xff]   ;;  %v4358_v26 = vld [vmem:[%s5853_s1 + $0xa08] ss:$16 sps:$4 sm:$0xff]  }
 0x108   :  { %2674 = vmatprep.subr.bf16.mxu0 %v4268_v27  ;;  %2980 = vmatprep.subr.bf16.mxu1 %v4271_v28  ;;  %v4363_v27 = vld [vmem:[%s5853_s1 + $0xa24] ss:$16 sps:$4 sm:$0xff]   ;;  %v4366_v28 = vld [vmem:[%s5853_s1 + $0xa2c] ss:$16 sps:$4 sm:$0xff]  }
 0x10a   :  { %2662 = vmatmul.mubr.bf16.gmra.mrb[4].mxu0 %v3357_v30  ;;  %2968 = vmatmul.mubr.bf16.gmra.mrb[4].mxu1 %v3357_v30  ;;  %v4361_v30 = vld [vmem:[%s5853_s1 + $0xa20] ss:$16 sps:$4 sm:$0xff]  }
 0x10b   :  { %2675 = vmatpush1.bf16.msra.mxu0 %v4266_v29  ;;  %2981 = vmatpush1.bf16.msra.mxu1 %v4269_v31  ;;  %v3360_v29 = vcombine.high %v36_v24, %v36_v24  ;;  %v4364_v31 = vld [vmem:[%s5853_s1 + $0xa28] ss:$16 sps:$4 sm:$0xff]  }
 0x10c   :  { %2676 = vmatprep.subr.bf16.mxu0 %v4274_v32  ;;  %2982 = vmatprep.subr.bf16.mxu1 %v4277_v33  ;;  %v4369_v32 = vld [vmem:[%s5853_s1 + $0xa44] ss:$16 sps:$4 sm:$0xff]   ;;  %v4372_v33 = vld [vmem:[%s5853_s1 + $0xa4c] ss:$16 sps:$4 sm:$0xff]  }
 0x10d   :  { %2702 = vmatprep.mubr.bf16.mxu0 %v4354_v34  ;;  %3008 = vmatprep.mubr.bf16.mxu1 %v4354_v34  ;;  %v3359_v34 = vcombine.low %v36_v24, %v36_v24  ;;  %v4447_v24 = vld [vmem:[%s5853_s1 + $0xbe0] ss:$16 sps:$4 sm:$0xff]  }
 0x10f   :  { %2677 = vmatpush1.bf16.msra.mxu0 %v4272_v35  ;;  %2983 = vmatpush1.bf16.msra.mxu1 %v4275_v36  ;;  %v4367_v35 = vld [vmem:[%s5853_s1 + $0xa40] ss:$16 sps:$4 sm:$0xff]   ;;  %v4370_v36 = vld [vmem:[%s5853_s1 + $0xa48] ss:$16 sps:$4 sm:$0xff]  }
 0x110   :  { %2678 = vmatprep.subr.bf16.mxu0 %v4280_v37  ;;  %2984 = vmatprep.subr.bf16.mxu1 %v4283_v38  ;;  %v4375_v37 = vld [vmem:[%s5853_s1 + $0xa64] ss:$16 sps:$4 sm:$0xff]   ;;  %v4378_v38 = vld [vmem:[%s5853_s1 + $0xa6c] ss:$16 sps:$4 sm:$0xff]  }
 0x113   :  { %2679 = vmatpush1.bf16.msra.mxu0 %v4278_v39  ;;  %2985 = vmatpush1.bf16.msra.mxu1 %v4281_v40  ;;  %v4455_v39 = vld [vmem:[%s5854_s0 + $0x2c] ss:$48 sps:$4 sm:$0xff]   ;;  %v4373_v40 = vld [vmem:[%s5853_s1 + $0xa60] ss:$16 sps:$4 sm:$0xff]  }
 0x114   :  { %2680 = vmatprep.subr.bf16.mxu0 %v4286_v41  ;;  %2986 = vmatprep.subr.bf16.mxu1 %v4289_v42  ;;  %v4376_v41 = vld [vmem:[%s5853_s1 + $0xa68] ss:$16 sps:$4 sm:$0xff]   ;;  %v4381_v42 = vld [vmem:[%s5853_s1 + $0xa84] ss:$16 sps:$4 sm:$0xff]  }
 0x117   :  { %2681 = vmatpush1.bf16.msra.mxu0 %v4284_v43  ;;  %2987 = vmatpush1.bf16.msra.mxu1 %v4287_v44  ;;  %v4384_v43 = vld [vmem:[%s5853_s1 + $0xa8c] ss:$16 sps:$4 sm:$0xff]   ;;  %v4379_v44 = vld [vmem:[%s5853_s1 + $0xa80] ss:$16 sps:$4 sm:$0xff]  }
 0x118   :  { %2682 = vmatprep.subr.bf16.mxu0 %v4292_v45  ;;  %2988 = vmatprep.subr.bf16.mxu1 %v4295_v46  ;;  %v4382_v45 = vld [vmem:[%s5853_s1 + $0xa88] ss:$16 sps:$4 sm:$0xff]   ;;  %v4387_v46 = vld [vmem:[%s5853_s1 + $0xaa4] ss:$16 sps:$4 sm:$0xff]  }
 0x11b   :  { %2683 = vmatpush1.bf16.msra.mxu0 %v4290_v47  ;;  %2989 = vmatpush1.bf16.msra.mxu1 %v4293_v48  ;;  %v4390_v47 = vld [vmem:[%s5853_s1 + $0xaac] ss:$16 sps:$4 sm:$0xff]   ;;  %v4385_v48 = vld [vmem:[%s5853_s1 + $0xaa0] ss:$16 sps:$4 sm:$0xff]  }
 0x11c   :  { %2684 = vmatprep.subr.bf16.mxu0 %v4298_v49  ;;  %2990 = vmatprep.subr.bf16.mxu1 %v4301_v50  ;;  %v4388_v49 = vld [vmem:[%s5853_s1 + $0xaa8] ss:$16 sps:$4 sm:$0xff]   ;;  %v4393_v50 = vld [vmem:[%s5853_s1 + $0xac4] ss:$16 sps:$4 sm:$0xff]  }
 0x11f   :  { %2685 = vmatpush1.bf16.msra.mxu0 %v4296_v51  ;;  %2991 = vmatpush1.bf16.msra.mxu1 %v4299_v52  ;;  %v4396_v51 = vld [vmem:[%s5853_s1 + $0xacc] ss:$16 sps:$4 sm:$0xff]   ;;  %v4391_v52 = vld [vmem:[%s5853_s1 + $0xac0] ss:$16 sps:$4 sm:$0xff]  }
 0x120   :  { %2686 = vmatprep.subr.bf16.mxu0 %v4304_v53  ;;  %2992 = vmatprep.subr.bf16.mxu1 %v4307_v54  ;;  %v4394_v53 = vld [vmem:[%s5853_s1 + $0xac8] ss:$16 sps:$4 sm:$0xff]   ;;  %v4399_v54 = vld [vmem:[%s5853_s1 + $0xae4] ss:$16 sps:$4 sm:$0xff]  }
 0x123   :  { %2687 = vmatpush1.bf16.msra.mxu0 %v4302_v55  ;;  %2993 = vmatpush1.bf16.msra.mxu1 %v4305_v56  ;;  %v4402_v55 = vld [vmem:[%s5853_s1 + $0xaec] ss:$16 sps:$4 sm:$0xff]   ;;  %v4397_v56 = vld [vmem:[%s5853_s1 + $0xae0] ss:$16 sps:$4 sm:$0xff]  }
 0x124   :  { %2688 = vmatprep.subr.bf16.mxu0 %v4310_v57  ;;  %2994 = vmatprep.subr.bf16.mxu1 %v4313_v58  ;;  %v4400_v57 = vld [vmem:[%s5853_s1 + $0xae8] ss:$16 sps:$4 sm:$0xff]   ;;  %v4405_v58 = vld [vmem:[%s5853_s1 + $0xb04] ss:$16 sps:$4 sm:$0xff]  }
 0x127   :  { %2689 = vmatpush1.bf16.msra.mxu0 %v4308_v59  ;;  %2995 = vmatpush1.bf16.msra.mxu1 %v4311_v60  ;;  %v4408_v59 = vld [vmem:[%s5853_s1 + $0xb0c] ss:$16 sps:$4 sm:$0xff]   ;;  %v4403_v60 = vld [vmem:[%s5853_s1 + $0xb00] ss:$16 sps:$4 sm:$0xff]  }
 0x128   :  { %2690 = vmatprep.subr.bf16.mxu0 %v4316_v61  ;;  %2996 = vmatprep.subr.bf16.mxu1 %v4319_v62  ;;  %v4406_v61 = vld [vmem:[%s5853_s1 + $0xb08] ss:$16 sps:$4 sm:$0xff]   ;;  %v4411_v62 = vld [vmem:[%s5853_s1 + $0xb24] ss:$16 sps:$4 sm:$0xff]  }
 0x12b   :  { %2691 = vmatpush1.bf16.msra.mxu0 %v4314_v63  ;;  %2997 = vmatpush1.bf16.msra.mxu1 %v4317_v0  ;;  %v4414_v63 = vld [vmem:[%s5853_s1 + $0xb2c] ss:$16 sps:$4 sm:$0xff]   ;;  %v4409_v0 = vld [vmem:[%s5853_s1 + $0xb20] ss:$16 sps:$4 sm:$0xff]  }
 0x12c   :  { %2692 = vmatprep.subr.bf16.mxu0 %v4322_v1  ;;  %2998 = vmatprep.subr.bf16.mxu1 %v4325_v2  ;;  %v4412_v1 = vld [vmem:[%s5853_s1 + $0xb28] ss:$16 sps:$4 sm:$0xff]   ;;  %v4417_v2 = vld [vmem:[%s5853_s1 + $0xb44] ss:$16 sps:$4 sm:$0xff]  }
 0x12f   :  { %2693 = vmatpush1.bf16.msra.mxu0 %v4320_v3  ;;  %2999 = vmatpush1.bf16.msra.mxu1 %v4323_v4  ;;  %v4420_v3 = vld [vmem:[%s5853_s1 + $0xb4c] ss:$16 sps:$4 sm:$0xff]   ;;  %v4415_v4 = vld [vmem:[%s5853_s1 + $0xb40] ss:$16 sps:$4 sm:$0xff]  }
 0x130   :  { %2694 = vmatprep.subr.bf16.mxu0 %v4328_v5  ;;  %3000 = vmatprep.subr.bf16.mxu1 %v4331_v6  ;;  %v4418_v5 = vld [vmem:[%s5853_s1 + $0xb48] ss:$16 sps:$4 sm:$0xff]   ;;  %v4423_v6 = vld [vmem:[%s5853_s1 + $0xb64] ss:$16 sps:$4 sm:$0xff]  }
 0x133   :  { %2695 = vmatpush1.bf16.msra.mxu0 %v4326_v7  ;;  %3001 = vmatpush1.bf16.msra.mxu1 %v4329_v8  ;;  %v4426_v7 = vld [vmem:[%s5853_s1 + $0xb6c] ss:$16 sps:$4 sm:$0xff]   ;;  %v4421_v8 = vld [vmem:[%s5853_s1 + $0xb60] ss:$16 sps:$4 sm:$0xff]  }
 0x134   :  { %2696 = vmatprep.subr.bf16.mxu0 %v4334_v9  ;;  %3002 = vmatprep.subr.bf16.mxu1 %v4337_v10  ;;  %v4424_v9 = vld [vmem:[%s5853_s1 + $0xb68] ss:$16 sps:$4 sm:$0xff]   ;;  %v4429_v10 = vld [vmem:[%s5853_s1 + $0xb84] ss:$16 sps:$4 sm:$0xff]  }
 0x137   :  { %2697 = vmatpush1.bf16.msra.mxu0 %v4332_v11  ;;  %3003 = vmatpush1.bf16.msra.mxu1 %v4335_v12  ;;  %v4432_v11 = vld [vmem:[%s5853_s1 + $0xb8c] ss:$16 sps:$4 sm:$0xff]   ;;  %v4427_v12 = vld [vmem:[%s5853_s1 + $0xb80] ss:$16 sps:$4 sm:$0xff]  }
 0x138   :  { %2698 = vmatprep.subr.bf16.mxu0 %v4341_v13  ;;  %3004 = vmatprep.subr.bf16.mxu1 %v4344_v14  ;;  %v4430_v13 = vld [vmem:[%s5853_s1 + $0xb88] ss:$16 sps:$4 sm:$0xff]   ;;  %v4435_v14 = vld [vmem:[%s5853_s1 + $0xba4] ss:$16 sps:$4 sm:$0xff]  }
 0x13b   :  { %2699 = vmatpush1.bf16.msra.mxu0 %v4339_v15  ;;  %3005 = vmatpush1.bf16.msra.mxu1 %v4342_v16  ;;  %v4438_v15 = vld [vmem:[%s5853_s1 + $0xbac] ss:$16 sps:$4 sm:$0xff]   ;;  %v4433_v16 = vld [vmem:[%s5853_s1 + $0xba0] ss:$16 sps:$4 sm:$0xff]  }
 0x13c   :  { %2700 = vmatprep.subr.bf16.mxu0 %v4348_v17  ;;  %3006 = vmatprep.subr.bf16.mxu1 %v4351_v18  ;;  %v4436_v17 = vld [vmem:[%s5853_s1 + $0xba8] ss:$16 sps:$4 sm:$0xff]   ;;  %v4443_v18 = vld [vmem:[%s5853_s1 + $0xbc4] ss:$16 sps:$4 sm:$0xff]  }
 0x13f   :  { %2701 = vmatpush1.bf16.msra.mxu0 %v4346_v19  ;;  %3007 = vmatpush1.bf16.msra.mxu1 %v4349_v20  ;;  %v4446_v19 = vld [vmem:[%s5853_s1 + $0xbcc] ss:$16 sps:$4 sm:$0xff]   ;;  %v4441_v20 = vld [vmem:[%s5853_s1 + $0xbc0] ss:$16 sps:$4 sm:$0xff]  }
 0x140   :  { %2721 = vmatprep.subr.bf16.mxu0 %v4357_v21  ;;  %3027 = vmatprep.subr.bf16.mxu1 %v4360_v22  ;;  %v4444_v21 = vld [vmem:[%s5853_s1 + $0xbc8] ss:$16 sps:$4 sm:$0xff]   ;;  %v4449_v22 = vld [vmem:[%s5853_s1 + $0xbe4] ss:$16 sps:$4 sm:$0xff]  }
 0x142   :  { %2703 = vmatmul.mubr.bf16.vlgmr.msra.gmra.mrb[0].mxu0 %v4352_v23  ;;  %3009 = vmatmul.mubr.bf16.vlgmr.msra.gmra.mrb[0].mxu1 %v4352_v23  ;;  %v4452_v23 = vld [vmem:[%s5853_s1 + $0xbec] ss:$16 sps:$4 sm:$0xff]  }
 0x143   :  { %2722 = vmatpush1.bf16.msra.mxu0 %v4355_v25  ;;  %3028 = vmatpush1.bf16.msra.mxu1 %v4358_v26  ;;  %v4450_v25 = vld [vmem:[%s5853_s1 + $0xbe8] ss:$16 sps:$4 sm:$0xff]  }
 0x144   :  { %2723 = vmatprep.subr.bf16.mxu0 %v4363_v27  ;;  %3029 = vmatprep.subr.bf16.mxu1 %v4366_v28  ;;  %v37_v26 = vld [vmem:[%s5854_s0 + $0x88] sm:$0x33] }
 0x145   :  { %2712 = vmatprep.mubr.bf16.mxu0 %v3360_v29  ;;  %3018 = vmatprep.mubr.bf16.mxu1 %v3360_v29  ;;  %v4453_v27 = vld [vmem:[%s5854_s0 + $0x28] ss:$48 sps:$4 sm:$0xff]   ;;  %v3362_v28 = vcombine.high %v37_v26, %v37_v26  ;;  %v3361_v29 = vcombine.low %v37_v26, %v37_v26 }
 0x147   :  { %2724 = vmatpush1.bf16.msra.mxu0 %v4361_v30  ;;  %3030 = vmatpush1.bf16.msra.mxu1 %v4364_v31  ;;  %v424_v30 = vlaneseq }
 0x148   :  { %2725 = vmatprep.subr.bf16.mxu0 %v4369_v32  ;;  %3031 = vmatprep.subr.bf16.mxu1 %v4372_v33 }
 0x149   :  { %v5703_v31 = vshrl.u32 %v424_v30, 7 }
 0x14a   :  { %2713 = vmatmul.mubr.bf16.gmra.mrb[4].mxu0 %v3359_v34  ;;  %3019 = vmatmul.mubr.bf16.gmra.mrb[4].mxu1 %v3359_v34  ;;  %v422_v34 = vld [vmem:[%s5855_s2] sm:$0xf] }
 0x14b   :  { %2726 = vmatpush1.bf16.msra.mxu0 %v4367_v35  ;;  %3032 = vmatpush1.bf16.msra.mxu1 %v4370_v36  ;;  %v5706_v32 = vsub.s32 0, %v5703_v31  ;;  %v5709_v33 = vsub.s32 2, %v5703_v31  ;;  %v5715_v35 = vsub.s32 1, %v5703_v31  ;;  %v5718_v36 = vsub.s32 3, %v5703_v31 }
 0x14c   :  { %2727 = vmatprep.subr.bf16.mxu0 %v4375_v37  ;;  %3033 = vmatprep.subr.bf16.mxu1 %v4378_v38 }
 0x14d   :  { %2753 = vmatprep.mubr.bf16.mxu0 %v4455_v39  ;;  %3059 = vmatprep.mubr.bf16.mxu1 %v4455_v39  ;;  %v427_v37 = vrot.slane %v422_v34, %v5706_v32  ;;  %v435_v38 = vrot.slane %v422_v34, %v5709_v33 }
 0x14f   :  { %2728 = vmatpush1.bf16.msra.mxu0 %v4373_v40  ;;  %3034 = vmatpush1.bf16.msra.mxu1 %v4376_v41  ;;  %v431_v41 = vrot.slane %v422_v34, %v5715_v35 }
 0x150   :  { %2729 = vmatprep.subr.bf16.mxu0 %v4381_v42  ;;  %3035 = vmatprep.subr.bf16.mxu1 %v4384_v43  ;;  %v439_v42 = vrot.slane %v422_v34, %v5718_v36 }
 0x153   :  { %2730 = vmatpush1.bf16.msra.mxu0 %v4379_v44  ;;  %3036 = vmatpush1.bf16.msra.mxu1 %v4382_v45 }
 0x154   :  { %2731 = vmatprep.subr.bf16.mxu0 %v4387_v46  ;;  %3037 = vmatprep.subr.bf16.mxu1 %v4390_v47 }
 0x157   :  { %2732 = vmatpush1.bf16.msra.mxu0 %v4385_v48  ;;  %3038 = vmatpush1.bf16.msra.mxu1 %v4388_v49 }
 0x158   :  { %2733 = vmatprep.subr.bf16.mxu0 %v4393_v50  ;;  %3039 = vmatprep.subr.bf16.mxu1 %v4396_v51 }
 0x15b   :  { %2734 = vmatpush1.bf16.msra.mxu0 %v4391_v52  ;;  %3040 = vmatpush1.bf16.msra.mxu1 %v4394_v53 }
 0x15c   :  { %2735 = vmatprep.subr.bf16.mxu0 %v4399_v54  ;;  %3041 = vmatprep.subr.bf16.mxu1 %v4402_v55 }
 0x15f   :  { %2736 = vmatpush1.bf16.msra.mxu0 %v4397_v56  ;;  %3042 = vmatpush1.bf16.msra.mxu1 %v4400_v57 }
 0x160   :  { %2737 = vmatprep.subr.bf16.mxu0 %v4405_v58  ;;  %3043 = vmatprep.subr.bf16.mxu1 %v4408_v59 }
 0x163   :  { %2738 = vmatpush1.bf16.msra.mxu0 %v4403_v60  ;;  %3044 = vmatpush1.bf16.msra.mxu1 %v4406_v61 }
 0x164   :  { %2739 = vmatprep.subr.bf16.mxu0 %v4411_v62  ;;  %3045 = vmatprep.subr.bf16.mxu1 %v4414_v63 }
 0x167   :  { %2740 = vmatpush1.bf16.msra.mxu0 %v4409_v0  ;;  %3046 = vmatpush1.bf16.msra.mxu1 %v4412_v1 }
 0x168   :  { %2741 = vmatprep.subr.bf16.mxu0 %v4417_v2  ;;  %3047 = vmatprep.subr.bf16.mxu1 %v4420_v3 }
 0x16b   :  { %2742 = vmatpush1.bf16.msra.mxu0 %v4415_v4  ;;  %3048 = vmatpush1.bf16.msra.mxu1 %v4418_v5 }
 0x16c   :  { %2743 = vmatprep.subr.bf16.mxu0 %v4423_v6  ;;  %3049 = vmatprep.subr.bf16.mxu1 %v4426_v7 }
 0x16f   :  { %2744 = vmatpush1.bf16.msra.mxu0 %v4421_v8  ;;  %3050 = vmatpush1.bf16.msra.mxu1 %v4424_v9 }
 0x170   :  { %2745 = vmatprep.subr.bf16.mxu0 %v4429_v10  ;;  %3051 = vmatprep.subr.bf16.mxu1 %v4432_v11 }
 0x173   :  { %2746 = vmatpush1.bf16.msra.mxu0 %v4427_v12  ;;  %3052 = vmatpush1.bf16.msra.mxu1 %v4430_v13 }
 0x174   :  { %2747 = vmatprep.subr.bf16.mxu0 %v4435_v14  ;;  %3053 = vmatprep.subr.bf16.mxu1 %v4438_v15 }
 0x177   :  { %2748 = vmatpush1.bf16.msra.mxu0 %v4433_v16  ;;  %3054 = vmatpush1.bf16.msra.mxu1 %v4436_v17 }
 0x178   :  { %2749 = vmatprep.subr.bf16.mxu0 %v4443_v18  ;;  %3055 = vmatprep.subr.bf16.mxu1 %v4446_v19 }
 0x17b   :  { %2750 = vmatpush1.bf16.msra.mxu0 %v4441_v20  ;;  %3056 = vmatpush1.bf16.msra.mxu1 %v4444_v21 }
 0x17c   :  { %2751 = vmatprep.subr.bf16.mxu0 %v4449_v22  ;;  %3057 = vmatprep.subr.bf16.mxu1 %v4452_v23 }
 0x17f   :  { %2752 = vmatpush1.bf16.msra.mxu0 %v4447_v24  ;;  %3058 = vmatpush1.bf16.msra.mxu1 %v4450_v25 }
 0x182   :  { %2754 = vmatmul.mubr.bf16.vlgmr.msra.gmra.mrb[0].mxu0 %v4453_v27  ;;  %3060 = vmatmul.mubr.bf16.vlgmr.msra.gmra.mrb[0].mxu1 %v4453_v27 }
 0x183   :  { %2763 = vmatprep.mubr.bf16.mxu0 %v3362_v28  ;;  %3069 = vmatprep.mubr.bf16.mxu1 %v3362_v28 }
 0x18a   :  { %2764 = vmatmul.mubr.bf16.gmra.mrb[4].mxu0 %v3361_v29  ;;  %3070 = vmatmul.mubr.bf16.gmra.mrb[4].mxu1 %v3361_v29 }
 0x255   :  { %v2755_v39 = vpop.f32.mrb[0].mxu0  ;;  %v3061_v40 = vpop.f32.mrb[0].mxu1 }
 0x256   :  { %v2757_v43 = vpop.f32.mrb[1].mxu0  ;;  %v3063_v44 = vpop.f32.mrb[1].mxu1  ;;  %v5724_v47 = vadd.f32 %v2755_v39, %v427_v37  ;;  %v5726_v48 = vadd.f32 %v3061_v40, %v435_v38 }
 0x257   :  { %v2759_v45 = vpop.f32.mrb[2].mxu0  ;;  %v3065_v46 = vpop.f32.mrb[2].mxu1  ;;  %v5730_v53 = vadd.f32 %v2757_v43, %v431_v41  ;;  %v5732_v54 = vadd.f32 %v3063_v44, %v439_v42 }
 0x258   :  { %v3761_v49 = vadd.f32 %v2759_v45, %v427_v37  ;;  %v5728_v50 = vadd.f32 %v3065_v46, %v435_v38  ;;  %v2761_v51 = vpop.f32.mrb[3].mxu0  ;;  %v3067_v52 = vpop.f32.mrb[3].mxu1 }
 0x259   :  { %v3762_v55 = vadd.f32 %v2761_v51, %v431_v41  ;;  %v5734_v56 = vadd.f32 %v3067_v52, %v439_v42 }
 0x25a   :  { %v3078_v57 = vadd.f32 %v3761_v49, %v5724_v47  ;;  %v3097_v58 = vadd.f32 %v5728_v50, %v5726_v48 }
 0x25b   :  { %v3088_v59 = vadd.f32 %v3762_v55, %v5730_v53  ;;  %v3106_v60 = vadd.f32 %v5734_v56, %v5732_v54 }
 0x25d   :  { %v2765_v61 = vpop.f32.mrb[4].mxu0  ;;  %v3071_v62 = vpop.f32.mrb[4].mxu1 }
 0x25e   :  { %v3763_v63 = vadd.f32 %v2765_v61, %v427_v37  ;;  %v3769_v0 = vadd.f32 %v3071_v62, %v435_v38  ;;  %v2767_v1 = vpop.f32.mrb[5].mxu0  ;;  %v3073_v2 = vpop.f32.mrb[5].mxu1 }
 0x25f   :  { %v3764_v3 = vadd.f32 %v2767_v1, %v431_v41  ;;  %v5742_v4 = vadd.f32 %v3073_v2, %v439_v42  ;;  %v2769_v5 = vpop.f32.mrb[6].mxu0  ;;  %v3075_v6 = vpop.f32.mrb[6].mxu1 }
 0x260   :  { %v3080_v7 = vsel %vm3079_vm0, %v3763_v63, 0.0  ;;  %v3098_v8 = vsel %vm3079_vm0, %v3769_v0, 0.0  ;;  %v2770_v9 = vpop.f32.mrb[7].mxu0  ;;  %v3076_v10 = vpop.f32.mrb[7].mxu1 }
 0x261   :  { %v3081_v11 = vadd.f32 %v3080_v7, %v3078_v57  ;;  %v3099_v12 = vadd.f32 %v3098_v8, %v3097_v58  ;;  %v3089_v13 = vsel %vm3079_vm0, %v3764_v3, 0.0  ;;  %v3107_v14 = vsel %vm3079_vm0, %v5742_v4, 0.0 }
 0x262   :  { %v3090_v15 = vadd.f32 %v3089_v13, %v3088_v59  ;;  %v3108_v16 = vadd.f32 %v3107_v14, %v3106_v60 }
 0x263   :  { %v3082_v17 = vrot.slane %v3081_v11, 4  ;;  %v3100_v18 = vrot.slane %v3099_v12, 4 }
 0x264   :  { %v3091_v19 = vrot.slane %v3090_v15, 4  ;;  %v3109_v20 = vrot.slane %v3108_v16, 4 }
 0x265   :  { %v3083_v21 = vadd.f32 %v3082_v17, %v3081_v11  ;;  %v3101_v22 = vadd.f32 %v3100_v18, %v3099_v12 }
 0x266   :  { %v3092_v23 = vadd.f32 %v3091_v19, %v3090_v15  ;;  %v3110_v24 = vadd.f32 %v3109_v20, %v3108_v16 }
 0x267   :  { %v3084_v25 = vrot.slane %v3083_v21, 2  ;;  %v3102_v26 = vrot.slane %v3101_v22, 2 }
 0x268   :  { %v3093_v27 = vrot.slane %v3092_v23, 2  ;;  %v3111_v28 = vrot.slane %v3110_v24, 2 }
 0x269   :  { %v3085_v29 = vadd.f32 %v3084_v25, %v3083_v21  ;;  %v3103_v30 = vadd.f32 %v3102_v26, %v3101_v22 }
 0x26a   :  { %v3094_v34 = vadd.f32 %v3093_v27, %v3092_v23  ;;  %v3112_v37 = vadd.f32 %v3111_v28, %v3110_v24 }
 0x26b   :  { %v3086_v38 = vrot.slane %v3085_v29, 1  ;;  %v3104_v39 = vrot.slane %v3103_v30, 1 }
 0x26c   :  { %v3095_v40 = vrot.slane %v3094_v34, 1  ;;  %v3113_v41 = vrot.slane %v3112_v37, 1 }
 0x26d   :  { %v3087_v42 = vadd.f32 %v3086_v38, %v3085_v29  ;;  %v3105_v43 = vadd.f32 %v3104_v39, %v3103_v30 }
 0x26e   :  { %v3096_v44 = vadd.f32 %v3095_v40, %v3094_v34  ;;  %v3114_v45 = vadd.f32 %v3113_v41, %v3112_v37 }
 0x26f   :  { %v3115_v46 = vmul.f32 0.05, %v3087_v42  ;;  %v3117_v51 = vmul.f32 0.05, %v3105_v43 }
 0x270   :  { %v3116_v52 = vmul.f32 0.05, %v3096_v44  ;;  %v3118_v57 = vmul.f32 0.05, %v3114_v45 }
 0x271   :  { %v5750_v58 = vsub.f32 %v5724_v47, %v3115_v46  ;;  %v5752_v59 = vsub.f32 %v3761_v49, %v3115_v46  ;;  %v5754_v60 = vsub.f32 %v3763_v63, %v3115_v46  ;;  %v5757_v61 = vsub.f32 %v5726_v48, %v3117_v51 }
 0x272   :  { %v5760_v62 = vsub.f32 %v5728_v50, %v3117_v51  ;;  %v5762_v1 = vsub.f32 %v3769_v0, %v3117_v51  ;;  %v5765_v2 = vsub.f32 %v5730_v53, %v3116_v52  ;;  %v5767_v5 = vsub.f32 %v3762_v55, %v3116_v52 }
 0x273   :  { %v3131_v47 = vmul.f32 %v5750_v58, %v5750_v58  ;;  %v3135_v49 = vmul.f32 %v5752_v59, %v5752_v59  ;;  %v3139_v48 = vmul.f32 %v5754_v60, %v5754_v60  ;;  %v3133_v50 = vmul.f32 %v5757_v61, %v5757_v61 }
 0x274   :  { %v3137_v63 = vmul.f32 %v5760_v62, %v5760_v62  ;;  %v3141_v53 = vmul.f32 %v5762_v1, %v5762_v1  ;;  %v5781_v55 = vsub.f32 %v3764_v3, %v3116_v52  ;;  %v3132_v0 = vmul.f32 %v5765_v2, %v5765_v2 }
 0x275   :  { %v3143_v6 = vadd.f32 %v3135_v49, %v3131_v47  ;;  %v3144_v7 = vsel %vm3079_vm0, %v3139_v48, 0.0  ;;  %v3136_v8 = vmul.f32 %v5767_v5, %v5767_v5  ;;  %v5789_v9 = vsub.f32 %v5732_v54, %v3118_v57 }
 0x276   :  { %v3161_v10 = vadd.f32 %v3137_v63, %v3133_v50  ;;  %v3162_v11 = vsel %vm3079_vm0, %v3141_v53, 0.0  ;;  %v3140_v12 = vmul.f32 %v5781_v55, %v5781_v55  ;;  %v5795_v3 = vsub.f32 %v5734_v56, %v3118_v57 }
 0x277   :  { %v3145_v13 = vadd.f32 %v3144_v7, %v3143_v6  ;;  %v3152_v14 = vadd.f32 %v3136_v8, %v3132_v0  ;;  %v5798_v15 = vsub.f32 %v5742_v4, %v3118_v57  ;;  %v3134_v16 = vmul.f32 %v5789_v9, %v5789_v9 }
 0x278   :  { %v3163_v17 = vadd.f32 %v3162_v11, %v3161_v10  ;;  %v3153_v54 = vsel %vm3079_vm0, %v3140_v12, 0.0  ;;  %v3138_v18 = vmul.f32 %v5795_v3, %v5795_v3  ;;  %v4466_v8 = vmov 1966171168  }
 0x279   :  { %v3146_v19 = vrot.slane %v3145_v13, 4  ;;  %v3154_v20 = vadd.f32 %v3153_v54, %v3152_v14  ;;  %v3142_v56 = vmul.f32 %v5798_v15, %v5798_v15  ;;  %v3199_v10 = vunpack.c.l.s4 %v4466_v8 }
 0x27a   :  { %v3164_v21 = vrot.slane %v3163_v17, 4  ;;  %v3170_v22 = vadd.f32 %v3138_v18, %v3134_v16 }
 0x27b   :  { %v3147_v23 = vadd.f32 %v3146_v19, %v3145_v13  ;;  %v3155_v24 = vrot.slane %v3154_v20, 4  ;;  %v3171_v4 = vsel %vm3079_vm0, %v3142_v56, 0.0  ;;  %v3200_v11 = vunpack.c.0.s8 %v3199_v10 }
 0x27c   :  { %v3165_v25 = vadd.f32 %v3164_v21, %v3163_v17  ;;  %v3172_v26 = vadd.f32 %v3171_v4, %v3170_v22  ;;  %v3183_v21 = vld [vmem:[%s5856_s3] sm:$0xf] }
 0x27d   :  { %v3148_v27 = vrot.slane %v3147_v23, 2  ;;  %v3156_v28 = vadd.f32 %v3155_v24, %v3154_v20  ;;  %v3203_v14 = vsub.s32 %v3200_v11, %v5703_v31 }
 0x27e   :  { %v3166_v29 = vrot.slane %v3165_v25, 2  ;;  %v3173_v30 = vrot.slane %v3172_v26, 4 }
 0x27f   :  { %v3149_v34 = vadd.f32 %v3148_v27, %v3147_v23  ;;  %v3157_v37 = vrot.slane %v3156_v28, 2  ;;  %v3255_v23 = vld [vmem:[%s5857_s4] sm:$0xf] }
 0x280   :  { %v3167_v38 = vadd.f32 %v3166_v29, %v3165_v25  ;;  %v3174_v39 = vadd.f32 %v3173_v30, %v3172_v26  ;;  %v3260_v27 = vrot.slane %v3255_v23, %v5706_v32  ;;  %v3264_v29 = vrot.slane %v3255_v23, %v5715_v35 }
 0x281   :  { %v3150_v40 = vrot.slane %v3149_v34, 1  ;;  %v3158_v41 = vadd.f32 %v3157_v37, %v3156_v28  ;;  %v3268_v28 = vrot.slane %v3255_v23, %v5709_v33  ;;  %v3272_v30 = vrot.slane %v3255_v23, %v5718_v36 }
 0x282   :  { %v3168_v42 = vrot.slane %v3167_v38, 1  ;;  %v3175_v43 = vrot.slane %v3174_v39, 2 }
 0x283   :  { %v3151_v44 = vadd.f32 %v3150_v40, %v3149_v34  ;;  %v3159_v45 = vrot.slane %v3158_v41, 1 }
 0x284   :  { %v3169_v46 = vadd.f32 %v3168_v42, %v3167_v38  ;;  %v3176_v51 = vadd.f32 %v3175_v43, %v3174_v39 }
 0x285   :  { %v3179_v52 = vmul.f32 0.05, %v3151_v44  ;;  %v3160_v57 = vadd.f32 %v3159_v45, %v3158_v41 }
 0x286   :  { %v3181_v47 = vmul.f32 0.05, %v3169_v46  ;;  %v3177_v49 = vrot.slane %v3176_v51, 1 }
 0x287   :  { %v3184_v48 = vadd.f32 1e-05, %v3179_v52  ;;  %v3180_v50 = vmul.f32 0.05, %v3160_v57 }
 0x288   :  { %v3186_v63 = vadd.f32 1e-05, %v3181_v47  ;;  %v3178_v53 = vadd.f32 %v3177_v49, %v3176_v51 }
 0x289   :  { %4458 = vrsqrt.f32 %v3184_v48  ;;  %v3185_v0 = vadd.f32 1e-05, %v3180_v50 }
 0x28a   :  { %v3182_v6 = vmul.f32 0.05, %v3178_v53 }
 0x28b   :  { %4460 = vrsqrt.f32 %v3185_v0 }
 0x28c   :  { %4462 = vrsqrt.f32 %v3186_v63  ;;  %v3187_v7 = vadd.f32 1e-05, %v3182_v6 }
 0x28e   :  { %4464 = vrsqrt.f32 %v3187_v7 }
 0x293   :  { %v4459_v12 = vpop.eup %4458 }
 0x295   :  { %v4461_v13 = vpop.eup %4460 }
 0x296   :  { %v4463_v16 = vpop.eup %4462  ;;  %v3196_v17 = vcombine.low %v4459_v12, %v4461_v13 }
 0x298   :  { %v4465_v54 = vpop.eup %4464  ;;  %v3204_v19 = vrot.slane %v3196_v17, %v3203_v14 }
 0x299   :  { %v3197_v18 = vcombine.low %v4463_v16, %v4465_v54 }
 0x29b   :  { %v3211_v20 = vrot.slane %v3197_v18, %v3203_v14 }
 0x29d   :  { %v3212_v56 = vcombine.low %v3204_v19, %v3211_v20 }
 0x29f   :  { %v3219_v22 = vrot.slane %v3212_v56, %v3203_v14 }
 0x2a1   :  { %v3221_v24 = vmul.f32 %v3219_v22, %v3183_v21 }
 0x2a3   :  { %v3226_v4 = vrot.slane %v3221_v24, %v5706_v32  ;;  %v3230_v31 = vrot.slane %v3221_v24, %v5715_v35  ;;  %v3234_v25 = vrot.slane %v3221_v24, %v5709_v33  ;;  %v3238_v26 = vrot.slane %v3221_v24, %v5718_v36 }
 0x2a5   :  { %v3243_v34 = vmul.f32 %v3226_v4, %v5750_v58  ;;  %v3244_v37 = vmul.f32 %v3230_v31, %v5765_v2  ;;  %v3245_v38 = vmul.f32 %v3234_v25, %v5757_v61  ;;  %v3246_v39 = vmul.f32 %v3238_v26, %v5789_v9 }
 0x2a6   :  { %v3247_v40 = vmul.f32 %v3226_v4, %v5752_v59  ;;  %v3248_v41 = vmul.f32 %v3230_v31, %v5767_v5  ;;  %v3249_v32 = vmul.f32 %v3234_v25, %v5760_v62  ;;  %v3250_v33 = vmul.f32 %v3238_v26, %v5795_v3 }
 0x2a7   :  { %v3251_v35 = vmul.f32 %v3226_v4, %v5754_v60  ;;  %v3252_v36 = vmul.f32 %v3230_v31, %v5781_v55  ;;  %v3253_v58 = vmul.f32 %v3234_v25, %v5762_v1  ;;  %v3254_v2 = vmul.f32 %v3238_v26, %v5798_v15 }
 0x2a8   :  { %v3277_v42 = vadd.f32 %v3260_v27, %v3243_v34  ;;  %v3278_v61 = vadd.f32 %v3264_v29, %v3244_v37  ;;  %v3279_v43 = vadd.f32 %v3268_v28, %v3245_v38  ;;  %v3280_v9 = vadd.f32 %v3272_v30, %v3246_v39 }
 0x2a9   :  { %v3281_v44 = vadd.f32 %v3260_v27, %v3247_v40  ;;  %v3282_v59 = vadd.f32 %v3264_v29, %v3248_v41  ;;  %v3283_v45 = vadd.f32 %v3268_v28, %v3249_v32  ;;  %v3284_v5 = vadd.f32 %v3272_v30, %v3250_v33 }
 0x2aa   :  { %v3285_v46 = vadd.f32 %v3260_v27, %v3251_v35  ;;  %v3286_v62 = vadd.f32 %v3264_v29, %v3252_v36  ;;  %v3287_v51 = vadd.f32 %v3268_v28, %v3253_v58  ;;  %v3288_v3 = vadd.f32 %v3272_v30, %v3254_v2 }
 0x2ab   :  { %v3753_v52 = vpack.c.bf16 %v3278_v61, %v3277_v42  ;;  %v3754_v60 = vpack.c.bf16 %v3280_v9, %v3279_v43  ;;  %v3755_v57 = vpack.c.bf16 %v3282_v59, %v3281_v44  ;;  %v3756_v55 = vpack.c.bf16 %v3284_v5, %v3283_v45 }
 0x2ac   :  { %v3757_v47 = vpack.c.bf16 %v3286_v62, %v3285_v46  ;;  %v3758_v1 = vpack.c.bf16 %v3288_v3, %v3287_v51 }
 0x2ad   :  { %3329 = vst [vmem:[%s5858_s5] sm:$0xff] %v3753_v52  ;;  %3330 = vst [vmem:[%s5858_s5 + $0x8] sm:$0xff] %v3754_v60 }
 0x2ae   :  { %3331 = vst [vmem:[%s5858_s5 + $0x10] sm:$0xff] %v3755_v57  ;;  %3332 = vst [vmem:[%s5858_s5 + $0x18] sm:$0xff] %v3756_v55 }
 0x2af   :  { %3333 = vst [vmem:[%s5858_s5 + $0x20] sm:$0x33] %v3757_v47  ;;  %3334 = vst [vmem:[%s5858_s5 + $0x28] sm:$0x33] %v3758_v1 }

// kernel: df_forward.17
= control target key start
LH: loop header
LB: loop body
LE: loop exit
PB: predicated region body
PF: predicated region fallthrough
CT: control target
= control target key end

     0   :  { %v916_v36 = vlaneseq  ;;  %v9154_v37 = vmov 1966171168   ;;  %s12032_s1 = inlined_call_operand.vmem [shape: bf16[3584,512], index: 1, kind: input, shape index: {}]   ;;  %s12033_s0 = inlined_call_operand.vmem [shape: bf16[2,3584], index: 0, kind: input, shape index: {}]   ;;  %s12034_s2 = inlined_call_operand.vmem [shape: f32[1,512], index: 2, kind: input, shape index: {}]   ;;  %s12035_s3 = inlined_call_operand.vmem [shape: f32[2,512], index: 3, kind: output, shape index: {}]  }
   0x1   :  { %v7805_v0 = vld [vmem:[%s12032_s1 + $0x4] ss:$16 sps:$4 sm:$0xff]   ;;  %v7807_v1 = vld [vmem:[%s12032_s1 + $0xc] ss:$16 sps:$4 sm:$0xff]   ;;  %v7809_v2 = vld [vmem:[%s12032_s1] ss:$16 sps:$4 sm:$0xff]   ;;  %v942_v38 = vunpack.c.l.s4 %v9154_v37 }
   0x2   :  { %5619 = vmatprep.subr.bf16.mxu0 %v7805_v0  ;;  %v7810_v3 = vld [vmem:[%s12032_s1 + $0x8] ss:$16 sps:$4 sm:$0xff]   ;;  %6193 = vmatprep.subr.bf16.mxu1 %v7807_v1  ;;  %v7811_v4 = vld [vmem:[%s12032_s1 + $0x24] ss:$16 sps:$4 sm:$0xff]   ;;  %v7813_v5 = vld [vmem:[%s12032_s1 + $0x2c] ss:$16 sps:$4 sm:$0xff]  }
   0x3   :  { %5620 = vmatpush1.bf16.msra.mxu0 %v7809_v2  ;;  %6194 = vmatpush1.bf16.msra.mxu1 %v7810_v3  ;;  %v7815_v6 = vld [vmem:[%s12032_s1 + $0x20] ss:$16 sps:$4 sm:$0xff]   ;;  %v7816_v7 = vld [vmem:[%s12032_s1 + $0x28] ss:$16 sps:$4 sm:$0xff]   ;;  %v7817_v8 = vld [vmem:[%s12032_s1 + $0x44] ss:$16 sps:$4 sm:$0xff]   ;;  %v943_v43 = vunpack.c.0.s8 %v942_v38 }
   0x4   :  { %5621 = vmatprep.subr.bf16.mxu0 %v7811_v4  ;;  %6195 = vmatprep.subr.bf16.mxu1 %v7813_v5  ;;  %v7819_v9 = vld [vmem:[%s12032_s1 + $0x4c] ss:$16 sps:$4 sm:$0xff]   ;;  %v7821_v10 = vld [vmem:[%s12032_s1 + $0x40] ss:$16 sps:$4 sm:$0xff]   ;;  %v7822_v11 = vld [vmem:[%s12032_s1 + $0x48] ss:$16 sps:$4 sm:$0xff]  }
   0x5   :  { %v7823_v12 = vld [vmem:[%s12032_s1 + $0x64] ss:$16 sps:$4 sm:$0xff]   ;;  %v7825_v13 = vld [vmem:[%s12032_s1 + $0x6c] ss:$16 sps:$4 sm:$0xff]   ;;  %v7827_v14 = vld [vmem:[%s12032_s1 + $0x60] ss:$16 sps:$4 sm:$0xff]  }
   0x6   :  { %v7828_v15 = vld [vmem:[%s12032_s1 + $0x68] ss:$16 sps:$4 sm:$0xff]   ;;  %v7829_v16 = vld [vmem:[%s12032_s1 + $0x84] ss:$16 sps:$4 sm:$0xff]   ;;  %v7831_v17 = vld [vmem:[%s12032_s1 + $0x8c] ss:$16 sps:$4 sm:$0xff]  }
   0x7   :  { %5622 = vmatpush1.bf16.msra.mxu0 %v7815_v6  ;;  %6196 = vmatpush1.bf16.msra.mxu1 %v7816_v7  ;;  %v7833_v18 = vld [vmem:[%s12032_s1 + $0x80] ss:$16 sps:$4 sm:$0xff]   ;;  %v7834_v19 = vld [vmem:[%s12032_s1 + $0x88] ss:$16 sps:$4 sm:$0xff]   ;;  %v7835_v20 = vld [vmem:[%s12032_s1 + $0xa4] ss:$16 sps:$4 sm:$0xff]  }
   0x8   :  { %5623 = vmatprep.subr.bf16.mxu0 %v7817_v8  ;;  %6197 = vmatprep.subr.bf16.mxu1 %v7819_v9  ;;  %v7837_v21 = vld [vmem:[%s12032_s1 + $0xac] ss:$16 sps:$4 sm:$0xff]   ;;  %v7839_v22 = vld [vmem:[%s12032_s1 + $0xa0] ss:$16 sps:$4 sm:$0xff]   ;;  %v7840_v23 = vld [vmem:[%s12032_s1 + $0xa8] ss:$16 sps:$4 sm:$0xff]  }
   0x9   :  { %v7841_v24 = vld [vmem:[%s12032_s1 + $0xc4] ss:$16 sps:$4 sm:$0xff]   ;;  %v7843_v25 = vld [vmem:[%s12032_s1 + $0xcc] ss:$16 sps:$4 sm:$0xff]   ;;  %v7845_v26 = vld [vmem:[%s12032_s1 + $0xc0] ss:$16 sps:$4 sm:$0xff]  }
   0xa   :  { %v7846_v27 = vld [vmem:[%s12032_s1 + $0xc8] ss:$16 sps:$4 sm:$0xff]   ;;  %v7847_v28 = vld [vmem:[%s12032_s1 + $0xe4] ss:$16 sps:$4 sm:$0xff]   ;;  %v7849_v29 = vld [vmem:[%s12032_s1 + $0xec] ss:$16 sps:$4 sm:$0xff]  }
   0xb   :  { %5624 = vmatpush1.bf16.msra.mxu0 %v7821_v10  ;;  %6198 = vmatpush1.bf16.msra.mxu1 %v7822_v11  ;;  %v7851_v30 = vld [vmem:[%s12032_s1 + $0xe0] ss:$16 sps:$4 sm:$0xff]   ;;  %v7852_v31 = vld [vmem:[%s12032_s1 + $0xe8] ss:$16 sps:$4 sm:$0xff]   ;;  %v7853_v32 = vld [vmem:[%s12032_s1 + $0x104] ss:$16 sps:$4 sm:$0xff]  }
   0xc   :  { %5625 = vmatprep.subr.bf16.mxu0 %v7823_v12  ;;  %6199 = vmatprep.subr.bf16.mxu1 %v7825_v13  ;;  %v7855_v33 = vld [vmem:[%s12032_s1 + $0x10c] ss:$16 sps:$4 sm:$0xff]   ;;  %v7857_v34 = vld [vmem:[%s12032_s1 + $0x100] ss:$16 sps:$4 sm:$0xff]   ;;  %v7858_v35 = vld [vmem:[%s12032_s1 + $0x108] ss:$16 sps:$4 sm:$0xff]  }
   0xd   :  { %v7859_v39 = vld [vmem:[%s12032_s1 + $0x124] ss:$16 sps:$4 sm:$0xff]   ;;  %v7861_v40 = vld [vmem:[%s12032_s1 + $0x12c] ss:$16 sps:$4 sm:$0xff]   ;;  %v7863_v41 = vld [vmem:[%s12032_s1 + $0x120] ss:$16 sps:$4 sm:$0xff]  }
   0xe   :  { %v9293_v42 = vshrl.u32 %v916_v36, 7  ;;  %v7864_v44 = vld [vmem:[%s12032_s1 + $0x128] ss:$16 sps:$4 sm:$0xff]   ;;  %v7865_v45 = vld [vmem:[%s12032_s1 + $0x144] ss:$16 sps:$4 sm:$0xff]  }
   0xf   :  { %5626 = vmatpush1.bf16.msra.mxu0 %v7827_v14  ;;  %6200 = vmatpush1.bf16.msra.mxu1 %v7828_v15  ;;  %v7867_v46 = vld [vmem:[%s12032_s1 + $0x14c] ss:$16 sps:$4 sm:$0xff]   ;;  %v7869_v47 = vld [vmem:[%s12032_s1 + $0x140] ss:$16 sps:$4 sm:$0xff]   ;;  %v7870_v48 = vld [vmem:[%s12032_s1 + $0x148] ss:$16 sps:$4 sm:$0xff]  }
  0x10   :  { %5627 = vmatprep.subr.bf16.mxu0 %v7829_v16  ;;  %6201 = vmatprep.subr.bf16.mxu1 %v7831_v17  ;;  %v9311_v49 = vsub.s32 %v943_v43, %v9293_v42  ;;  %v7871_v50 = vld [vmem:[%s12032_s1 + $0x164] ss:$16 sps:$4 sm:$0xff]   ;;  %v7873_v51 = vld [vmem:[%s12032_s1 + $0x16c] ss:$16 sps:$4 sm:$0xff]   ;;  %v7875_v53 = vld [vmem:[%s12032_s1 + $0x160] ss:$16 sps:$4 sm:$0xff]  }
  0x11   :  { %v9322_v52 = vld [vmem:[%s12033_s0] sm:$0xff]  ;;  %v7876_v55 = vld [vmem:[%s12032_s1 + $0x168] ss:$16 sps:$4 sm:$0xff]   ;;  %v7879_v57 = vld [vmem:[%s12032_s1 + $0x18c] ss:$16 sps:$4 sm:$0xff]  }
  0x12   :  { %v947_v54 = vrot.slane %v9322_v52, %v9311_v49  ;;  %v7877_v56 = vld [vmem:[%s12032_s1 + $0x184] ss:$16 sps:$4 sm:$0xff]   ;;  %v7881_v59 = vld [vmem:[%s12032_s1 + $0x180] ss:$16 sps:$4 sm:$0xff]   ;;  %v7882_v61 = vld [vmem:[%s12032_s1 + $0x188] ss:$16 sps:$4 sm:$0xff]  }
  0x13   :  { %5628 = vmatpush1.bf16.msra.mxu0 %v7833_v18  ;;  %6202 = vmatpush1.bf16.msra.mxu1 %v7834_v19  ;;  %v7883_v62 = vld [vmem:[%s12032_s1 + $0x1a4] ss:$16 sps:$4 sm:$0xff]   ;;  %v7885_v63 = vld [vmem:[%s12032_s1 + $0x1ac] ss:$16 sps:$4 sm:$0xff]   ;;  %v7887_v0 = vld [vmem:[%s12032_s1 + $0x1a0] ss:$16 sps:$4 sm:$0xff]  }
  0x14   :  { %5629 = vmatprep.subr.bf16.mxu0 %v7835_v20  ;;  %6203 = vmatprep.subr.bf16.mxu1 %v7837_v21  ;;  %v955_v58 = vcombine.high %v947_v54, %v947_v54  ;;  %v7888_v1 = vld [vmem:[%s12032_s1 + $0x1a8] ss:$16 sps:$4 sm:$0xff]   ;;  %v7889_v2 = vld [vmem:[%s12032_s1 + $0x1c4] ss:$16 sps:$4 sm:$0xff]   ;;  %v7891_v3 = vld [vmem:[%s12032_s1 + $0x1cc] ss:$16 sps:$4 sm:$0xff]   ;;  %v9391_v13 = vrot.slane %v947_v54, %v9311_v49 }
  0x15   :  { %v7893_v4 = vld [vmem:[%s12032_s1 + $0x1c0] ss:$16 sps:$4 sm:$0xff]   ;;  %v7894_v5 = vld [vmem:[%s12032_s1 + $0x1c8] ss:$16 sps:$4 sm:$0xff]   ;;  %v7895_v6 = vld [vmem:[%s12032_s1 + $0x1e4] ss:$16 sps:$4 sm:$0xff]  }
  0x16   :  { %v977_v60 = vrot.slane %v955_v58, %v9311_v49  ;;  %v7897_v7 = vld [vmem:[%s12032_s1 + $0x1ec] ss:$16 sps:$4 sm:$0xff]   ;;  %v7899_v8 = vld [vmem:[%s12032_s1 + $0x1e0] ss:$16 sps:$4 sm:$0xff]   ;;  %v7900_v9 = vld [vmem:[%s12032_s1 + $0x1e8] ss:$16 sps:$4 sm:$0xff]  }
  0x17   :  { %5630 = vmatpush1.bf16.msra.mxu0 %v7839_v22  ;;  %6204 = vmatpush1.bf16.msra.mxu1 %v7840_v23  ;;  %v7903_v10 = vld [vmem:[%s12032_s1 + $0x204] ss:$16 sps:$4 sm:$0xff]   ;;  %v7906_v11 = vld [vmem:[%s12032_s1 + $0x20c] ss:$16 sps:$4 sm:$0xff]   ;;  %v7901_v12 = vld [vmem:[%s12032_s1 + $0x200] ss:$16 sps:$4 sm:$0xff]  }
  0x18   :  { %5631 = vmatprep.subr.bf16.mxu0 %v7841_v24  ;;  %6205 = vmatprep.subr.bf16.mxu1 %v7843_v25  ;;  %v7904_v14 = vld [vmem:[%s12032_s1 + $0x208] ss:$16 sps:$4 sm:$0xff]   ;;  %v7909_v15 = vld [vmem:[%s12032_s1 + $0x224] ss:$16 sps:$4 sm:$0xff]   ;;  %v7912_v16 = vld [vmem:[%s12032_s1 + $0x22c] ss:$16 sps:$4 sm:$0xff]   ;;  %v987_v17 = vcombine.high %v977_v60, %v977_v60 }
  0x19   :  { %5651 = vmatprep.mubr.bf16.mxu0 %v977_v60  ;;  %6225 = vmatprep.mubr.bf16.mxu1 %v977_v60  ;;  %v7907_v18 = vld [vmem:[%s12032_s1 + $0x220] ss:$16 sps:$4 sm:$0xff]   ;;  %v7910_v19 = vld [vmem:[%s12032_s1 + $0x228] ss:$16 sps:$4 sm:$0xff]   ;;  %v7915_v20 = vld [vmem:[%s12032_s1 + $0x244] ss:$16 sps:$4 sm:$0xff]  }
  0x1a   :  { %v7918_v21 = vld [vmem:[%s12032_s1 + $0x24c] ss:$16 sps:$4 sm:$0xff]   ;;  %v7913_v22 = vld [vmem:[%s12032_s1 + $0x240] ss:$16 sps:$4 sm:$0xff]   ;;  %v7916_v23 = vld [vmem:[%s12032_s1 + $0x248] ss:$16 sps:$4 sm:$0xff]  }
  0x1b   :  { %5632 = vmatpush1.bf16.msra.mxu0 %v7845_v26  ;;  %6206 = vmatpush1.bf16.msra.mxu1 %v7846_v27  ;;  %v7921_v24 = vld [vmem:[%s12032_s1 + $0x264] ss:$16 sps:$4 sm:$0xff]   ;;  %v7924_v25 = vld [vmem:[%s12032_s1 + $0x26c] ss:$16 sps:$4 sm:$0xff]   ;;  %v7919_v26 = vld [vmem:[%s12032_s1 + $0x260] ss:$16 sps:$4 sm:$0xff]  }
  0x1c   :  { %5633 = vmatprep.subr.bf16.mxu0 %v7847_v28  ;;  %6207 = vmatprep.subr.bf16.mxu1 %v7849_v29  ;;  %v7922_v27 = vld [vmem:[%s12032_s1 + $0x268] ss:$16 sps:$4 sm:$0xff]   ;;  %v7927_v28 = vld [vmem:[%s12032_s1 + $0x284] ss:$16 sps:$4 sm:$0xff]   ;;  %v7930_v29 = vld [vmem:[%s12032_s1 + $0x28c] ss:$16 sps:$4 sm:$0xff]  }
  0x1d   :  { %v7939_v36 = vld [vmem:[%s12032_s1 + $0x2c4] ss:$16 sps:$4 sm:$0xff]   ;;  %v7942_v37 = vld [vmem:[%s12032_s1 + $0x2cc] ss:$16 sps:$4 sm:$0xff]   ;;  %v7937_v38 = vld [vmem:[%s12032_s1 + $0x2c0] ss:$16 sps:$4 sm:$0xff]  }
  0x1e   :  { %v7943_v43 = vld [vmem:[%s12032_s1 + $0x2e0] ss:$16 sps:$4 sm:$0xff]   ;;  %v7958_v54 = vld [vmem:[%s12032_s1 + $0x328] ss:$16 sps:$4 sm:$0xff]   ;;  %v7972_v60 = vld [vmem:[%s12032_s1 + $0x36c] ss:$16 sps:$4 sm:$0xff]  }
  0x1f   :  { %5634 = vmatpush1.bf16.msra.mxu0 %v7851_v30  ;;  %6208 = vmatpush1.bf16.msra.mxu1 %v7852_v31  ;;  %v7925_v30 = vld [vmem:[%s12032_s1 + $0x280] ss:$16 sps:$4 sm:$0xff]   ;;  %v7928_v31 = vld [vmem:[%s12032_s1 + $0x288] ss:$16 sps:$4 sm:$0xff]  }
  0x20   :  { %5635 = vmatprep.subr.bf16.mxu0 %v7853_v32  ;;  %6209 = vmatprep.subr.bf16.mxu1 %v7855_v33  ;;  %v7933_v32 = vld [vmem:[%s12032_s1 + $0x2a4] ss:$16 sps:$4 sm:$0xff]   ;;  %v7936_v33 = vld [vmem:[%s12032_s1 + $0x2ac] ss:$16 sps:$4 sm:$0xff]   ;;  %v7964_v58 = vld [vmem:[%s12032_s1 + $0x348] ss:$16 sps:$4 sm:$0xff]  }
  0x23   :  { %5636 = vmatpush1.bf16.msra.mxu0 %v7857_v34  ;;  %6210 = vmatpush1.bf16.msra.mxu1 %v7858_v35  ;;  %v7931_v34 = vld [vmem:[%s12032_s1 + $0x2a0] ss:$16 sps:$4 sm:$0xff]   ;;  %v7934_v35 = vld [vmem:[%s12032_s1 + $0x2a8] ss:$16 sps:$4 sm:$0xff]  }
  0x24   :  { %5637 = vmatprep.subr.bf16.mxu0 %v7859_v39  ;;  %6211 = vmatprep.subr.bf16.mxu1 %v7861_v40  ;;  %v7940_v39 = vld [vmem:[%s12032_s1 + $0x2c8] ss:$16 sps:$4 sm:$0xff]   ;;  %v7945_v40 = vld [vmem:[%s12032_s1 + $0x2e4] ss:$16 sps:$4 sm:$0xff]  }
  0x27   :  { %5638 = vmatpush1.bf16.msra.mxu0 %v7863_v41  ;;  %6212 = vmatpush1.bf16.msra.mxu1 %v7864_v44  ;;  %v7948_v41 = vld [vmem:[%s12032_s1 + $0x2ec] ss:$16 sps:$4 sm:$0xff]   ;;  %v7946_v44 = vld [vmem:[%s12032_s1 + $0x2e8] ss:$16 sps:$4 sm:$0xff]  }
  0x28   :  { %5639 = vmatprep.subr.bf16.mxu0 %v7865_v45  ;;  %6213 = vmatprep.subr.bf16.mxu1 %v7867_v46  ;;  %v7951_v45 = vld [vmem:[%s12032_s1 + $0x304] ss:$16 sps:$4 sm:$0xff]   ;;  %v7954_v46 = vld [vmem:[%s12032_s1 + $0x30c] ss:$16 sps:$4 sm:$0xff]  }
  0x2b   :  { %5640 = vmatpush1.bf16.msra.mxu0 %v7869_v47  ;;  %6214 = vmatpush1.bf16.msra.mxu1 %v7870_v48  ;;  %v7949_v47 = vld [vmem:[%s12032_s1 + $0x300] ss:$16 sps:$4 sm:$0xff]   ;;  %v7952_v48 = vld [vmem:[%s12032_s1 + $0x308] ss:$16 sps:$4 sm:$0xff]  }
  0x2c   :  { %5641 = vmatprep.subr.bf16.mxu0 %v7871_v50  ;;  %6215 = vmatprep.subr.bf16.mxu1 %v7873_v51  ;;  %v7957_v50 = vld [vmem:[%s12032_s1 + $0x324] ss:$16 sps:$4 sm:$0xff]   ;;  %v7960_v51 = vld [vmem:[%s12032_s1 + $0x32c] ss:$16 sps:$4 sm:$0xff]  }
  0x2f   :  { %5642 = vmatpush1.bf16.msra.mxu0 %v7875_v53  ;;  %6216 = vmatpush1.bf16.msra.mxu1 %v7876_v55  ;;  %v7955_v53 = vld [vmem:[%s12032_s1 + $0x320] ss:$16 sps:$4 sm:$0xff]   ;;  %v7963_v55 = vld [vmem:[%s12032_s1 + $0x344] ss:$16 sps:$4 sm:$0xff]  }
  0x30   :  { %5643 = vmatprep.subr.bf16.mxu0 %v7877_v56  ;;  %6217 = vmatprep.subr.bf16.mxu1 %v7879_v57  ;;  %v7966_v56 = vld [vmem:[%s12032_s1 + $0x34c] ss:$16 sps:$4 sm:$0xff]   ;;  %v7961_v57 = vld [vmem:[%s12032_s1 + $0x340] ss:$16 sps:$4 sm:$0xff]  }
  0x33   :  { %5644 = vmatpush1.bf16.msra.mxu0 %v7881_v59  ;;  %6218 = vmatpush1.bf16.msra.mxu1 %v7882_v61  ;;  %v7969_v59 = vld [vmem:[%s12032_s1 + $0x364] ss:$16 sps:$4 sm:$0xff]   ;;  %v7967_v61 = vld [vmem:[%s12032_s1 + $0x360] ss:$16 sps:$4 sm:$0xff]  }
  0x34   :  { %5645 = vmatprep.subr.bf16.mxu0 %v7883_v62  ;;  %6219 = vmatprep.subr.bf16.mxu1 %v7885_v63  ;;  %v7970_v62 = vld [vmem:[%s12032_s1 + $0x368] ss:$16 sps:$4 sm:$0xff]   ;;  %v7975_v63 = vld [vmem:[%s12032_s1 + $0x384] ss:$16 sps:$4 sm:$0xff]  }
  0x37   :  { %5646 = vmatpush1.bf16.msra.mxu0 %v7887_v0  ;;  %6220 = vmatpush1.bf16.msra.mxu1 %v7888_v1  ;;  %v7978_v0 = vld [vmem:[%s12032_s1 + $0x38c] ss:$16 sps:$4 sm:$0xff]   ;;  %v7973_v1 = vld [vmem:[%s12032_s1 + $0x380] ss:$16 sps:$4 sm:$0xff]  }
  0x38   :  { %5647 = vmatprep.subr.bf16.mxu0 %v7889_v2  ;;  %6221 = vmatprep.subr.bf16.mxu1 %v7891_v3  ;;  %v7976_v2 = vld [vmem:[%s12032_s1 + $0x388] ss:$16 sps:$4 sm:$0xff]   ;;  %v7981_v3 = vld [vmem:[%s12032_s1 + $0x3a4] ss:$16 sps:$4 sm:$0xff]  }
  0x3b   :  { %5648 = vmatpush1.bf16.msra.mxu0 %v7893_v4  ;;  %6222 = vmatpush1.bf16.msra.mxu1 %v7894_v5  ;;  %v7984_v4 = vld [vmem:[%s12032_s1 + $0x3ac] ss:$16 sps:$4 sm:$0xff]   ;;  %v7979_v5 = vld [vmem:[%s12032_s1 + $0x3a0] ss:$16 sps:$4 sm:$0xff]  }
  0x3c   :  { %5649 = vmatprep.subr.bf16.mxu0 %v7895_v6  ;;  %6223 = vmatprep.subr.bf16.mxu1 %v7897_v7  ;;  %v7982_v6 = vld [vmem:[%s12032_s1 + $0x3a8] ss:$16 sps:$4 sm:$0xff]   ;;  %v7987_v7 = vld [vmem:[%s12032_s1 + $0x3c4] ss:$16 sps:$4 sm:$0xff]  }
  0x3f   :  { %5650 = vmatpush1.bf16.msra.mxu0 %v7899_v8  ;;  %6224 = vmatpush1.bf16.msra.mxu1 %v7900_v9  ;;  %v7990_v8 = vld [vmem:[%s12032_s1 + $0x3cc] ss:$16 sps:$4 sm:$0xff]   ;;  %v940_v9 = vcombine.high %v9322_v52, %v9322_v52 }
  0x40   :  { %5660 = vmatprep.subr.bf16.mxu0 %v7903_v10  ;;  %6234 = vmatprep.subr.bf16.mxu1 %v7906_v11  ;;  %v7985_v10 = vld [vmem:[%s12032_s1 + $0x3c0] ss:$16 sps:$4 sm:$0xff]   ;;  %v7988_v11 = vld [vmem:[%s12032_s1 + $0x3c8] ss:$16 sps:$4 sm:$0xff]   ;;  %v7996_v52 = vld [vmem:[%s12032_s1 + $0x3ec] ss:$16 sps:$4 sm:$0xff]  }
  0x42   :  { %5652 = vmatmul.mubr.bf16.vlgmr.msra.gmra.mrb[0].mxu0 %v9391_v13  ;;  %6226 = vmatmul.mubr.bf16.vlgmr.msra.gmra.mrb[0].mxu1 %v9391_v13 }
  0x43   :  { %5661 = vmatpush1.bf16.msra.mxu0 %v7901_v12  ;;  %6235 = vmatpush1.bf16.msra.mxu1 %v7904_v14  ;;  %v7993_v12 = vld [vmem:[%s12032_s1 + $0x3e4] ss:$16 sps:$4 sm:$0xff]   ;;  %v9575_v14 = vrot.slane %v940_v9, %v9311_v49  ;;  %v8072_v9 = vld [vmem:[%s12032_s1 + $0x588] ss:$16 sps:$4 sm:$0xff]  }
  0x44   :  { %5662 = vmatprep.subr.bf16.mxu0 %v7909_v15  ;;  %6236 = vmatprep.subr.bf16.mxu1 %v7912_v16  ;;  %v7991_v15 = vld [vmem:[%s12032_s1 + $0x3e0] ss:$16 sps:$4 sm:$0xff]   ;;  %v7994_v16 = vld [vmem:[%s12032_s1 + $0x3e8] ss:$16 sps:$4 sm:$0xff]  }
  0x45   :  { %5692 = vmatprep.mubr.bf16.mxu0 %v987_v17  ;;  %6266 = vmatprep.mubr.bf16.mxu1 %v987_v17  ;;  %v7999_v17 = vld [vmem:[%s12032_s1 + $0x404] ss:$16 sps:$4 sm:$0xff]  }
  0x47   :  { %5663 = vmatpush1.bf16.msra.mxu0 %v7907_v18  ;;  %6237 = vmatpush1.bf16.msra.mxu1 %v7910_v19  ;;  %v8002_v18 = vld [vmem:[%s12032_s1 + $0x40c] ss:$16 sps:$4 sm:$0xff]   ;;  %v956_v19 = vcombine.high %v9575_v14, %v9575_v14 }
  0x48   :  { %5664 = vmatprep.subr.bf16.mxu0 %v7915_v20  ;;  %6238 = vmatprep.subr.bf16.mxu1 %v7918_v21  ;;  %v7997_v20 = vld [vmem:[%s12032_s1 + $0x400] ss:$16 sps:$4 sm:$0xff]   ;;  %v985_v21 = vcombine.high %v9391_v13, %v9391_v13 }
  0x49   :  { %v8003_v13 = vld [vmem:[%s12032_s1 + $0x420] ss:$16 sps:$4 sm:$0xff]  }
  0x4b   :  { %5665 = vmatpush1.bf16.msra.mxu0 %v7913_v22  ;;  %6239 = vmatpush1.bf16.msra.mxu1 %v7916_v23  ;;  %v8000_v22 = vld [vmem:[%s12032_s1 + $0x408] ss:$16 sps:$4 sm:$0xff]   ;;  %v8005_v23 = vld [vmem:[%s12032_s1 + $0x424] ss:$16 sps:$4 sm:$0xff]  }
  0x4c   :  { %5666 = vmatprep.subr.bf16.mxu0 %v7921_v24  ;;  %6240 = vmatprep.subr.bf16.mxu1 %v7924_v25  ;;  %v8008_v24 = vld [vmem:[%s12032_s1 + $0x42c] ss:$16 sps:$4 sm:$0xff]   ;;  %v9606_v25 = vrot.slane %v956_v19, %v9311_v49  ;;  %v8089_v19 = vld [vmem:[%s12032_s1 + $0x5e4] ss:$16 sps:$4 sm:$0xff]  }
  0x4f   :  { %5667 = vmatpush1.bf16.msra.mxu0 %v7919_v26  ;;  %6241 = vmatpush1.bf16.msra.mxu1 %v7922_v27  ;;  %v8006_v26 = vld [vmem:[%s12032_s1 + $0x428] ss:$16 sps:$4 sm:$0xff]   ;;  %v8011_v27 = vld [vmem:[%s12032_s1 + $0x444] ss:$16 sps:$4 sm:$0xff]  }
  0x50   :  { %5668 = vmatprep.subr.bf16.mxu0 %v7927_v28  ;;  %6242 = vmatprep.subr.bf16.mxu1 %v7930_v29  ;;  %v8014_v28 = vld [vmem:[%s12032_s1 + $0x44c] ss:$16 sps:$4 sm:$0xff]   ;;  %v8009_v29 = vld [vmem:[%s12032_s1 + $0x440] ss:$16 sps:$4 sm:$0xff]  }
  0x53   :  { %5669 = vmatpush1.bf16.msra.mxu0 %v7925_v30  ;;  %6243 = vmatpush1.bf16.msra.mxu1 %v7928_v31  ;;  %v8012_v30 = vld [vmem:[%s12032_s1 + $0x448] ss:$16 sps:$4 sm:$0xff]   ;;  %v8017_v31 = vld [vmem:[%s12032_s1 + $0x464] ss:$16 sps:$4 sm:$0xff]  }
  0x54   :  { %5670 = vmatprep.subr.bf16.mxu0 %v7933_v32  ;;  %6244 = vmatprep.subr.bf16.mxu1 %v7936_v33  ;;  %v8020_v32 = vld [vmem:[%s12032_s1 + $0x46c] ss:$16 sps:$4 sm:$0xff]   ;;  %v8015_v33 = vld [vmem:[%s12032_s1 + $0x460] ss:$16 sps:$4 sm:$0xff]  }
  0x57   :  { %5671 = vmatpush1.bf16.msra.mxu0 %v7931_v34  ;;  %6245 = vmatpush1.bf16.msra.mxu1 %v7934_v35  ;;  %v8018_v34 = vld [vmem:[%s12032_s1 + $0x468] ss:$16 sps:$4 sm:$0xff]   ;;  %v8023_v35 = vld [vmem:[%s12032_s1 + $0x484] ss:$16 sps:$4 sm:$0xff]  }
  0x58   :  { %5672 = vmatprep.subr.bf16.mxu0 %v7939_v36  ;;  %6246 = vmatprep.subr.bf16.mxu1 %v7942_v37  ;;  %v8026_v36 = vld [vmem:[%s12032_s1 + $0x48c] ss:$16 sps:$4 sm:$0xff]   ;;  %v8021_v37 = vld [vmem:[%s12032_s1 + $0x480] ss:$16 sps:$4 sm:$0xff]  }
  0x5b   :  { %5673 = vmatpush1.bf16.msra.mxu0 %v7937_v38  ;;  %6247 = vmatpush1.bf16.msra.mxu1 %v7940_v39  ;;  %v8024_v38 = vld [vmem:[%s12032_s1 + $0x488] ss:$16 sps:$4 sm:$0xff]   ;;  %v8029_v39 = vld [vmem:[%s12032_s1 + $0x4a4] ss:$16 sps:$4 sm:$0xff]  }
  0x5c   :  { %5674 = vmatprep.subr.bf16.mxu0 %v7945_v40  ;;  %6248 = vmatprep.subr.bf16.mxu1 %v7948_v41  ;;  %v8032_v40 = vld [vmem:[%s12032_s1 + $0x4ac] ss:$16 sps:$4 sm:$0xff]   ;;  %v8027_v41 = vld [vmem:[%s12032_s1 + $0x4a0] ss:$16 sps:$4 sm:$0xff]  }
  0x5f   :  { %5675 = vmatpush1.bf16.msra.mxu0 %v7943_v43  ;;  %6249 = vmatpush1.bf16.msra.mxu1 %v7946_v44  ;;  %v8030_v43 = vld [vmem:[%s12032_s1 + $0x4a8] ss:$16 sps:$4 sm:$0xff]   ;;  %v8035_v44 = vld [vmem:[%s12032_s1 + $0x4c4] ss:$16 sps:$4 sm:$0xff]  }
  0x60   :  { %5676 = vmatprep.subr.bf16.mxu0 %v7951_v45  ;;  %6250 = vmatprep.subr.bf16.mxu1 %v7954_v46  ;;  %v8038_v45 = vld [vmem:[%s12032_s1 + $0x4cc] ss:$16 sps:$4 sm:$0xff]   ;;  %v8033_v46 = vld [vmem:[%s12032_s1 + $0x4c0] ss:$16 sps:$4 sm:$0xff]  }
  0x63   :  { %5677 = vmatpush1.bf16.msra.mxu0 %v7949_v47  ;;  %6251 = vmatpush1.bf16.msra.mxu1 %v7952_v48  ;;  %v8036_v47 = vld [vmem:[%s12032_s1 + $0x4c8] ss:$16 sps:$4 sm:$0xff]   ;;  %v8041_v48 = vld [vmem:[%s12032_s1 + $0x4e4] ss:$16 sps:$4 sm:$0xff]  }
  0x64   :  { %5678 = vmatprep.subr.bf16.mxu0 %v7957_v50  ;;  %6252 = vmatprep.subr.bf16.mxu1 %v7960_v51  ;;  %v8044_v50 = vld [vmem:[%s12032_s1 + $0x4ec] ss:$16 sps:$4 sm:$0xff]   ;;  %v8039_v51 = vld [vmem:[%s12032_s1 + $0x4e0] ss:$16 sps:$4 sm:$0xff]  }
  0x67   :  { %5679 = vmatpush1.bf16.msra.mxu0 %v7955_v53  ;;  %6253 = vmatpush1.bf16.msra.mxu1 %v7958_v54  ;;  %v8042_v53 = vld [vmem:[%s12032_s1 + $0x4e8] ss:$16 sps:$4 sm:$0xff]   ;;  %v8047_v54 = vld [vmem:[%s12032_s1 + $0x504] ss:$16 sps:$4 sm:$0xff]  }
  0x68   :  { %5680 = vmatprep.subr.bf16.mxu0 %v7963_v55  ;;  %6254 = vmatprep.subr.bf16.mxu1 %v7966_v56  ;;  %v8050_v55 = vld [vmem:[%s12032_s1 + $0x50c] ss:$16 sps:$4 sm:$0xff]   ;;  %v8045_v56 = vld [vmem:[%s12032_s1 + $0x500] ss:$16 sps:$4 sm:$0xff]  }
  0x6b   :  { %5681 = vmatpush1.bf16.msra.mxu0 %v7961_v57  ;;  %6255 = vmatpush1.bf16.msra.mxu1 %v7964_v58  ;;  %v8048_v57 = vld [vmem:[%s12032_s1 + $0x508] ss:$16 sps:$4 sm:$0xff]   ;;  %v8053_v58 = vld [vmem:[%s12032_s1 + $0x524] ss:$16 sps:$4 sm:$0xff]  }
  0x6c   :  { %5682 = vmatprep.subr.bf16.mxu0 %v7969_v59  ;;  %6256 = vmatprep.subr.bf16.mxu1 %v7972_v60  ;;  %v8056_v59 = vld [vmem:[%s12032_s1 + $0x52c] ss:$16 sps:$4 sm:$0xff]   ;;  %v8051_v60 = vld [vmem:[%s12032_s1 + $0x520] ss:$16 sps:$4 sm:$0xff]  }
  0x6f   :  { %5683 = vmatpush1.bf16.msra.mxu0 %v7967_v61  ;;  %6257 = vmatpush1.bf16.msra.mxu1 %v7970_v62  ;;  %v8054_v61 = vld [vmem:[%s12032_s1 + $0x528] ss:$16 sps:$4 sm:$0xff]   ;;  %v8059_v62 = vld [vmem:[%s12032_s1 + $0x544] ss:$16 sps:$4 sm:$0xff]  }
  0x70   :  { %5684 = vmatprep.subr.bf16.mxu0 %v7975_v63  ;;  %6258 = vmatprep.subr.bf16.mxu1 %v7978_v0  ;;  %v8062_v63 = vld [vmem:[%s12032_s1 + $0x54c] ss:$16 sps:$4 sm:$0xff]   ;;  %v8057_v0 = vld [vmem:[%s12032_s1 + $0x540] ss:$16 sps:$4 sm:$0xff]  }
  0x73   :  { %5685 = vmatpush1.bf16.msra.mxu0 %v7973_v1  ;;  %6259 = vmatpush1.bf16.msra.mxu1 %v7976_v2  ;;  %v8060_v1 = vld [vmem:[%s12032_s1 + $0x548] ss:$16 sps:$4 sm:$0xff]   ;;  %v8065_v2 = vld [vmem:[%s12032_s1 + $0x564] ss:$16 sps:$4 sm:$0xff]  }
  0x74   :  { %5686 = vmatprep.subr.bf16.mxu0 %v7981_v3  ;;  %6260 = vmatprep.subr.bf16.mxu1 %v7984_v4  ;;  %v8068_v3 = vld [vmem:[%s12032_s1 + $0x56c] ss:$16 sps:$4 sm:$0xff]   ;;  %v8063_v4 = vld [vmem:[%s12032_s1 + $0x560] ss:$16 sps:$4 sm:$0xff]  }
  0x77   :  { %5687 = vmatpush1.bf16.msra.mxu0 %v7979_v5  ;;  %6261 = vmatpush1.bf16.msra.mxu1 %v7982_v6  ;;  %v8066_v5 = vld [vmem:[%s12032_s1 + $0x568] ss:$16 sps:$4 sm:$0xff]   ;;  %v8071_v6 = vld [vmem:[%s12032_s1 + $0x584] ss:$16 sps:$4 sm:$0xff]  }
  0x78   :  { %5688 = vmatprep.subr.bf16.mxu0 %v7987_v7  ;;  %6262 = vmatprep.subr.bf16.mxu1 %v7990_v8  ;;  %v8074_v7 = vld [vmem:[%s12032_s1 + $0x58c] ss:$16 sps:$4 sm:$0xff]   ;;  %v8069_v8 = vld [vmem:[%s12032_s1 + $0x580] ss:$16 sps:$4 sm:$0xff]  }
  0x7b   :  { %5689 = vmatpush1.bf16.msra.mxu0 %v7985_v10  ;;  %6263 = vmatpush1.bf16.msra.mxu1 %v7988_v11  ;;  %v8077_v10 = vld [vmem:[%s12032_s1 + $0x5a4] ss:$16 sps:$4 sm:$0xff]   ;;  %v8080_v11 = vld [vmem:[%s12032_s1 + $0x5ac] ss:$16 sps:$4 sm:$0xff]  }
  0x7c   :  { %5690 = vmatprep.subr.bf16.mxu0 %v7993_v12  ;;  %6264 = vmatprep.subr.bf16.mxu1 %v7996_v52  ;;  %v8075_v12 = vld [vmem:[%s12032_s1 + $0x5a0] ss:$16 sps:$4 sm:$0xff]   ;;  %v8078_v52 = vld [vmem:[%s12032_s1 + $0x5a8] ss:$16 sps:$4 sm:$0xff]  }
  0x7f   :  { %5691 = vmatpush1.bf16.msra.mxu0 %v7991_v15  ;;  %6265 = vmatpush1.bf16.msra.mxu1 %v7994_v16  ;;  %v8083_v15 = vld [vmem:[%s12032_s1 + $0x5c4] ss:$16 sps:$4 sm:$0xff]   ;;  %v8086_v16 = vld [vmem:[%s12032_s1 + $0x5cc] ss:$16 sps:$4 sm:$0xff]  }
  0x80   :  { %5701 = vmatprep.subr.bf16.mxu0 %v7999_v17  ;;  %6275 = vmatprep.subr.bf16.mxu1 %v8002_v18  ;;  %v8081_v17 = vld [vmem:[%s12032_s1 + $0x5c0] ss:$16 sps:$4 sm:$0xff]   ;;  %v8084_v18 = vld [vmem:[%s12032_s1 + $0x5c8] ss:$16 sps:$4 sm:$0xff]  }
  0x82   :  { %5693 = vmatmul.mubr.bf16.vlgmr.msra.gmra.mrb[0].mxu0 %v985_v21  ;;  %6267 = vmatmul.mubr.bf16.vlgmr.msra.gmra.mrb[0].mxu1 %v985_v21  ;;  %v8087_v21 = vld [vmem:[%s12032_s1 + $0x5e0] ss:$16 sps:$4 sm:$0xff]  }
  0x83   :  { %5702 = vmatpush1.bf16.msra.mxu0 %v7997_v20  ;;  %6276 = vmatpush1.bf16.msra.mxu1 %v8000_v22  ;;  %v8092_v20 = vld [vmem:[%s12032_s1 + $0x5ec] ss:$16 sps:$4 sm:$0xff]   ;;  %v8090_v22 = vld [vmem:[%s12032_s1 + $0x5e8] ss:$16 sps:$4 sm:$0xff]  }
  0x84   :  { %5703 = vmatprep.subr.bf16.mxu0 %v8005_v23  ;;  %6277 = vmatprep.subr.bf16.mxu1 %v8008_v24  ;;  %v8096_v23 = vld [vmem:[%s12032_s1 + $0x604] ss:$16 sps:$4 sm:$0xff]   ;;  %v8099_v24 = vld [vmem:[%s12032_s1 + $0x60c] ss:$16 sps:$4 sm:$0xff]  }
  0x85   :  { %5733 = vmatprep.mubr.bf16.mxu0 %v9606_v25  ;;  %6307 = vmatprep.mubr.bf16.mxu1 %v9606_v25 }
  0x87   :  { %5704 = vmatpush1.bf16.msra.mxu0 %v8003_v13  ;;  %6278 = vmatpush1.bf16.msra.mxu1 %v8006_v26  ;;  %v8094_v13 = vld [vmem:[%s12032_s1 + $0x600] ss:$16 sps:$4 sm:$0xff]   ;;  %v9795_v26 = vrot.slane %v9575_v14, %v9311_v49  ;;  %v988_v14 = vcombine.high %v9606_v25, %v9606_v25  ;;  %v8108_v25 = vld [vmem:[%s12032_s1 + $0x644] ss:$16 sps:$4 sm:$0xff]  }
  0x88   :  { %5705 = vmatprep.subr.bf16.mxu0 %v8011_v27  ;;  %6279 = vmatprep.subr.bf16.mxu1 %v8014_v28  ;;  %v8097_v27 = vld [vmem:[%s12032_s1 + $0x608] ss:$16 sps:$4 sm:$0xff]   ;;  %v8102_v28 = vld [vmem:[%s12032_s1 + $0x624] ss:$16 sps:$4 sm:$0xff]  }
  0x8b   :  { %5706 = vmatpush1.bf16.msra.mxu0 %v8009_v29  ;;  %6280 = vmatpush1.bf16.msra.mxu1 %v8012_v30  ;;  %v8105_v29 = vld [vmem:[%s12032_s1 + $0x62c] ss:$16 sps:$4 sm:$0xff]   ;;  %v8100_v30 = vld [vmem:[%s12032_s1 + $0x620] ss:$16 sps:$4 sm:$0xff]  }
  0x8c   :  { %5707 = vmatprep.subr.bf16.mxu0 %v8017_v31  ;;  %6281 = vmatprep.subr.bf16.mxu1 %v8020_v32  ;;  %v8103_v31 = vld [vmem:[%s12032_s1 + $0x628] ss:$16 sps:$4 sm:$0xff]   ;;  %v8111_v32 = vld [vmem:[%s12032_s1 + $0x64c] ss:$16 sps:$4 sm:$0xff]  }
  0x8f   :  { %5708 = vmatpush1.bf16.msra.mxu0 %v8015_v33  ;;  %6282 = vmatpush1.bf16.msra.mxu1 %v8018_v34  ;;  %v8106_v33 = vld [vmem:[%s12032_s1 + $0x640] ss:$16 sps:$4 sm:$0xff]   ;;  %v8109_v34 = vld [vmem:[%s12032_s1 + $0x648] ss:$16 sps:$4 sm:$0xff]  }
  0x90   :  { %5709 = vmatprep.subr.bf16.mxu0 %v8023_v35  ;;  %6283 = vmatprep.subr.bf16.mxu1 %v8026_v36  ;;  %v8114_v35 = vld [vmem:[%s12032_s1 + $0x664] ss:$16 sps:$4 sm:$0xff]   ;;  %v8117_v36 = vld [vmem:[%s12032_s1 + $0x66c] ss:$16 sps:$4 sm:$0xff]  }
  0x93   :  { %5710 = vmatpush1.bf16.msra.mxu0 %v8021_v37  ;;  %6284 = vmatpush1.bf16.msra.mxu1 %v8024_v38  ;;  %v8112_v37 = vld [vmem:[%s12032_s1 + $0x660] ss:$16 sps:$4 sm:$0xff]   ;;  %v8115_v38 = vld [vmem:[%s12032_s1 + $0x668] ss:$16 sps:$4 sm:$0xff]  }
  0x94   :  { %5711 = vmatprep.subr.bf16.mxu0 %v8029_v39  ;;  %6285 = vmatprep.subr.bf16.mxu1 %v8032_v40  ;;  %v8120_v39 = vld [vmem:[%s12032_s1 + $0x684] ss:$16 sps:$4 sm:$0xff]   ;;  %v8123_v40 = vld [vmem:[%s12032_s1 + $0x68c] ss:$16 sps:$4 sm:$0xff]  }
  0x97   :  { %5712 = vmatpush1.bf16.msra.mxu0 %v8027_v41  ;;  %6286 = vmatpush1.bf16.msra.mxu1 %v8030_v43  ;;  %v8118_v41 = vld [vmem:[%s12032_s1 + $0x680] ss:$16 sps:$4 sm:$0xff]   ;;  %v8121_v43 = vld [vmem:[%s12032_s1 + $0x688] ss:$16 sps:$4 sm:$0xff]  }
  0x98   :  { %5713 = vmatprep.subr.bf16.mxu0 %v8035_v44  ;;  %6287 = vmatprep.subr.bf16.mxu1 %v8038_v45  ;;  %v8126_v44 = vld [vmem:[%s12032_s1 + $0x6a4] ss:$16 sps:$4 sm:$0xff]   ;;  %v8129_v45 = vld [vmem:[%s12032_s1 + $0x6ac] ss:$16 sps:$4 sm:$0xff]  }
  0x9b   :  { %5714 = vmatpush1.bf16.msra.mxu0 %v8033_v46  ;;  %6288 = vmatpush1.bf16.msra.mxu1 %v8036_v47  ;;  %v8124_v46 = vld [vmem:[%s12032_s1 + $0x6a0] ss:$16 sps:$4 sm:$0xff]   ;;  %v8127_v47 = vld [vmem:[%s12032_s1 + $0x6a8] ss:$16 sps:$4 sm:$0xff]  }
  0x9c   :  { %5715 = vmatprep.subr.bf16.mxu0 %v8041_v48  ;;  %6289 = vmatprep.subr.bf16.mxu1 %v8044_v50  ;;  %v8132_v48 = vld [vmem:[%s12032_s1 + $0x6c4] ss:$16 sps:$4 sm:$0xff]   ;;  %v8135_v50 = vld [vmem:[%s12032_s1 + $0x6cc] ss:$16 sps:$4 sm:$0xff]  }
  0x9f   :  { %5716 = vmatpush1.bf16.msra.mxu0 %v8039_v51  ;;  %6290 = vmatpush1.bf16.msra.mxu1 %v8042_v53  ;;  %v8130_v51 = vld [vmem:[%s12032_s1 + $0x6c0] ss:$16 sps:$4 sm:$0xff]   ;;  %v8133_v53 = vld [vmem:[%s12032_s1 + $0x6c8] ss:$16 sps:$4 sm:$0xff]  }
  0xa0   :  { %5717 = vmatprep.subr.bf16.mxu0 %v8047_v54  ;;  %6291 = vmatprep.subr.bf16.mxu1 %v8050_v55  ;;  %v8138_v54 = vld [vmem:[%s12032_s1 + $0x6e4] ss:$16 sps:$4 sm:$0xff]   ;;  %v8141_v55 = vld [vmem:[%s12032_s1 + $0x6ec] ss:$16 sps:$4 sm:$0xff]  }
  0xa3   :  { %5718 = vmatpush1.bf16.msra.mxu0 %v8045_v56  ;;  %6292 = vmatpush1.bf16.msra.mxu1 %v8048_v57  ;;  %v8136_v56 = vld [vmem:[%s12032_s1 + $0x6e0] ss:$16 sps:$4 sm:$0xff]   ;;  %v8139_v57 = vld [vmem:[%s12032_s1 + $0x6e8] ss:$16 sps:$4 sm:$0xff]  }
  0xa4   :  { %5719 = vmatprep.subr.bf16.mxu0 %v8053_v58  ;;  %6293 = vmatprep.subr.bf16.mxu1 %v8056_v59  ;;  %v8144_v58 = vld [vmem:[%s12032_s1 + $0x704] ss:$16 sps:$4 sm:$0xff]   ;;  %v8147_v59 = vld [vmem:[%s12032_s1 + $0x70c] ss:$16 sps:$4 sm:$0xff]  }
  0xa7   :  { %5720 = vmatpush1.bf16.msra.mxu0 %v8051_v60  ;;  %6294 = vmatpush1.bf16.msra.mxu1 %v8054_v61  ;;  %v8142_v60 = vld [vmem:[%s12032_s1 + $0x700] ss:$16 sps:$4 sm:$0xff]   ;;  %v8145_v61 = vld [vmem:[%s12032_s1 + $0x708] ss:$16 sps:$4 sm:$0xff]  }
  0xa8   :  { %5721 = vmatprep.subr.bf16.mxu0 %v8059_v62  ;;  %6295 = vmatprep.subr.bf16.mxu1 %v8062_v63  ;;  %v8150_v62 = vld [vmem:[%s12032_s1 + $0x724] ss:$16 sps:$4 sm:$0xff]   ;;  %v8153_v63 = vld [vmem:[%s12032_s1 + $0x72c] ss:$16 sps:$4 sm:$0xff]  }
  0xab   :  { %5722 = vmatpush1.bf16.msra.mxu0 %v8057_v0  ;;  %6296 = vmatpush1.bf16.msra.mxu1 %v8060_v1  ;;  %v8148_v0 = vld [vmem:[%s12032_s1 + $0x720] ss:$16 sps:$4 sm:$0xff]   ;;  %v8151_v1 = vld [vmem:[%s12032_s1 + $0x728] ss:$16 sps:$4 sm:$0xff]  }
  0xac   :  { %5723 = vmatprep.subr.bf16.mxu0 %v8065_v2  ;;  %6297 = vmatprep.subr.bf16.mxu1 %v8068_v3  ;;  %v8156_v2 = vld [vmem:[%s12032_s1 + $0x744] ss:$16 sps:$4 sm:$0xff]   ;;  %v8159_v3 = vld [vmem:[%s12032_s1 + $0x74c] ss:$16 sps:$4 sm:$0xff]  }
  0xaf   :  { %5724 = vmatpush1.bf16.msra.mxu0 %v8063_v4  ;;  %6298 = vmatpush1.bf16.msra.mxu1 %v8066_v5  ;;  %v8154_v4 = vld [vmem:[%s12032_s1 + $0x740] ss:$16 sps:$4 sm:$0xff]   ;;  %v8157_v5 = vld [vmem:[%s12032_s1 + $0x748] ss:$16 sps:$4 sm:$0xff]  }
  0xb0   :  { %5725 = vmatprep.subr.bf16.mxu0 %v8071_v6  ;;  %6299 = vmatprep.subr.bf16.mxu1 %v8074_v7  ;;  %v8162_v6 = vld [vmem:[%s12032_s1 + $0x764] ss:$16 sps:$4 sm:$0xff]   ;;  %v8165_v7 = vld [vmem:[%s12032_s1 + $0x76c] ss:$16 sps:$4 sm:$0xff]  }
  0xb3   :  { %5726 = vmatpush1.bf16.msra.mxu0 %v8069_v8  ;;  %6300 = vmatpush1.bf16.msra.mxu1 %v8072_v9  ;;  %v8160_v8 = vld [vmem:[%s12032_s1 + $0x760] ss:$16 sps:$4 sm:$0xff]   ;;  %v8163_v9 = vld [vmem:[%s12032_s1 + $0x768] ss:$16 sps:$4 sm:$0xff]  }
  0xb4   :  { %5727 = vmatprep.subr.bf16.mxu0 %v8077_v10  ;;  %6301 = vmatprep.subr.bf16.mxu1 %v8080_v11  ;;  %v8168_v10 = vld [vmem:[%s12032_s1 + $0x784] ss:$16 sps:$4 sm:$0xff]   ;;  %v8171_v11 = vld [vmem:[%s12032_s1 + $0x78c] ss:$16 sps:$4 sm:$0xff]  }
  0xb7   :  { %5728 = vmatpush1.bf16.msra.mxu0 %v8075_v12  ;;  %6302 = vmatpush1.bf16.msra.mxu1 %v8078_v52  ;;  %v8166_v12 = vld [vmem:[%s12032_s1 + $0x780] ss:$16 sps:$4 sm:$0xff]   ;;  %v8169_v52 = vld [vmem:[%s12032_s1 + $0x788] ss:$16 sps:$4 sm:$0xff]  }
  0xb8   :  { %5729 = vmatprep.subr.bf16.mxu0 %v8083_v15  ;;  %6303 = vmatprep.subr.bf16.mxu1 %v8086_v16  ;;  %v8174_v15 = vld [vmem:[%s12032_s1 + $0x7a4] ss:$16 sps:$4 sm:$0xff]   ;;  %v8177_v16 = vld [vmem:[%s12032_s1 + $0x7ac] ss:$16 sps:$4 sm:$0xff]  }
  0xbb   :  { %5730 = vmatpush1.bf16.msra.mxu0 %v8081_v17  ;;  %6304 = vmatpush1.bf16.msra.mxu1 %v8084_v18  ;;  %v8172_v17 = vld [vmem:[%s12032_s1 + $0x7a0] ss:$16 sps:$4 sm:$0xff]   ;;  %v8175_v18 = vld [vmem:[%s12032_s1 + $0x7a8] ss:$16 sps:$4 sm:$0xff]  }
  0xbc   :  { %5731 = vmatprep.subr.bf16.mxu0 %v8089_v19  ;;  %6305 = vmatprep.subr.bf16.mxu1 %v8092_v20  ;;  %v8180_v19 = vld [vmem:[%s12032_s1 + $0x7c4] ss:$16 sps:$4 sm:$0xff]   ;;  %v8183_v20 = vld [vmem:[%s12032_s1 + $0x7cc] ss:$16 sps:$4 sm:$0xff]  }
  0xbf   :  { %5732 = vmatpush1.bf16.msra.mxu0 %v8087_v21  ;;  %6306 = vmatpush1.bf16.msra.mxu1 %v8090_v22  ;;  %v9969_v21 = vld.sshfl [vmem:[%s12033_s0 + $0x8] sm:$0xff pattern:$0x75316420]  ;;  %v8178_v22 = vld [vmem:[%s12032_s1 + $0x7c0] ss:$16 sps:$4 sm:$0xff]  }
  0xc0   :  { %5742 = vmatprep.subr.bf16.mxu0 %v8096_v23  ;;  %6316 = vmatprep.subr.bf16.mxu1 %v8099_v24  ;;  %v8181_v23 = vld [vmem:[%s12032_s1 + $0x7c8] ss:$16 sps:$4 sm:$0xff]   ;;  %v8186_v24 = vld [vmem:[%s12032_s1 + $0x7e4] ss:$16 sps:$4 sm:$0xff]  }
  0xc2   :  { %5734 = vmatmul.mubr.bf16.vlgmr.msra.gmra.mrb[0].mxu0 %v9795_v26  ;;  %6308 = vmatmul.mubr.bf16.vlgmr.msra.gmra.mrb[0].mxu1 %v9795_v26 }
  0xc3   :  { %5743 = vmatpush1.bf16.msra.mxu0 %v8094_v13  ;;  %6317 = vmatpush1.bf16.msra.mxu1 %v8097_v27  ;;  %v8189_v13 = vld [vmem:[%s12032_s1 + $0x7ec] ss:$16 sps:$4 sm:$0xff]   ;;  %v8184_v27 = vld [vmem:[%s12032_s1 + $0x7e0] ss:$16 sps:$4 sm:$0xff]  }
  0xc4   :  { %5744 = vmatprep.subr.bf16.mxu0 %v8102_v28  ;;  %6318 = vmatprep.subr.bf16.mxu1 %v8105_v29  ;;  %v8187_v28 = vld [vmem:[%s12032_s1 + $0x7e8] ss:$16 sps:$4 sm:$0xff]   ;;  %v8192_v29 = vld [vmem:[%s12032_s1 + $0x804] ss:$16 sps:$4 sm:$0xff]  }
  0xc5   :  { %5774 = vmatprep.mubr.bf16.mxu0 %v988_v14  ;;  %6348 = vmatprep.mubr.bf16.mxu1 %v988_v14  ;;  %v8195_v14 = vld [vmem:[%s12032_s1 + $0x80c] ss:$16 sps:$4 sm:$0xff]  }
  0xc7   :  { %5745 = vmatpush1.bf16.msra.mxu0 %v8100_v30  ;;  %6319 = vmatpush1.bf16.msra.mxu1 %v8103_v31  ;;  %v1004_v30 = vcombine.high %v9969_v21, %v9969_v21  ;;  %v986_v31 = vcombine.high %v9795_v26, %v9795_v26  ;;  %v8201_v26 = vld [vmem:[%s12032_s1 + $0x82c] ss:$16 sps:$4 sm:$0xff]  }
  0xc8   :  { %5746 = vmatprep.subr.bf16.mxu0 %v8108_v25  ;;  %6320 = vmatprep.subr.bf16.mxu1 %v8111_v32  ;;  %v8190_v25 = vld [vmem:[%s12032_s1 + $0x800] ss:$16 sps:$4 sm:$0xff]   ;;  %v8193_v32 = vld [vmem:[%s12032_s1 + $0x808] ss:$16 sps:$4 sm:$0xff]  }
  0xcb   :  { %5747 = vmatpush1.bf16.msra.mxu0 %v8106_v33  ;;  %6321 = vmatpush1.bf16.msra.mxu1 %v8109_v34  ;;  %v8198_v33 = vld [vmem:[%s12032_s1 + $0x824] ss:$16 sps:$4 sm:$0xff]   ;;  %v10012_v34 = vrot.slane %v1004_v30, %v9311_v49 }
  0xcc   :  { %5748 = vmatprep.subr.bf16.mxu0 %v8114_v35  ;;  %6322 = vmatprep.subr.bf16.mxu1 %v8117_v36  ;;  %v8196_v35 = vld [vmem:[%s12032_s1 + $0x820] ss:$16 sps:$4 sm:$0xff]   ;;  %v8199_v36 = vld [vmem:[%s12032_s1 + $0x828] ss:$16 sps:$4 sm:$0xff]   ;;  %v8282_v30 = vld [vmem:[%s12032_s1 + $0x9e4] ss:$16 sps:$4 sm:$0xff]  }
  0xcf   :  { %5749 = vmatpush1.bf16.msra.mxu0 %v8112_v37  ;;  %6323 = vmatpush1.bf16.msra.mxu1 %v8115_v38  ;;  %v8204_v37 = vld [vmem:[%s12032_s1 + $0x844] ss:$16 sps:$4 sm:$0xff]   ;;  %v8207_v38 = vld [vmem:[%s12032_s1 + $0x84c] ss:$16 sps:$4 sm:$0xff]  }
  0xd0   :  { %5750 = vmatprep.subr.bf16.mxu0 %v8120_v39  ;;  %6324 = vmatprep.subr.bf16.mxu1 %v8123_v40  ;;  %v8202_v39 = vld [vmem:[%s12032_s1 + $0x840] ss:$16 sps:$4 sm:$0xff]   ;;  %v8205_v40 = vld [vmem:[%s12032_s1 + $0x848] ss:$16 sps:$4 sm:$0xff]  }
  0xd3   :  { %5751 = vmatpush1.bf16.msra.mxu0 %v8118_v41  ;;  %6325 = vmatpush1.bf16.msra.mxu1 %v8121_v43  ;;  %v8210_v41 = vld [vmem:[%s12032_s1 + $0x864] ss:$16 sps:$4 sm:$0xff]   ;;  %v8213_v43 = vld [vmem:[%s12032_s1 + $0x86c] ss:$16 sps:$4 sm:$0xff]  }
  0xd4   :  { %5752 = vmatprep.subr.bf16.mxu0 %v8126_v44  ;;  %6326 = vmatprep.subr.bf16.mxu1 %v8129_v45  ;;  %v8208_v44 = vld [vmem:[%s12032_s1 + $0x860] ss:$16 sps:$4 sm:$0xff]   ;;  %v8211_v45 = vld [vmem:[%s12032_s1 + $0x868] ss:$16 sps:$4 sm:$0xff]  }
  0xd7   :  { %5753 = vmatpush1.bf16.msra.mxu0 %v8124_v46  ;;  %6327 = vmatpush1.bf16.msra.mxu1 %v8127_v47  ;;  %v8216_v46 = vld [vmem:[%s12032_s1 + $0x884] ss:$16 sps:$4 sm:$0xff]   ;;  %v8219_v47 = vld [vmem:[%s12032_s1 + $0x88c] ss:$16 sps:$4 sm:$0xff]  }
  0xd8   :  { %5754 = vmatprep.subr.bf16.mxu0 %v8132_v48  ;;  %6328 = vmatprep.subr.bf16.mxu1 %v8135_v50  ;;  %v8214_v48 = vld [vmem:[%s12032_s1 + $0x880] ss:$16 sps:$4 sm:$0xff]   ;;  %v8217_v50 = vld [vmem:[%s12032_s1 + $0x888] ss:$16 sps:$4 sm:$0xff]  }
  0xdb   :  { %5755 = vmatpush1.bf16.msra.mxu0 %v8130_v51  ;;  %6329 = vmatpush1.bf16.msra.mxu1 %v8133_v53  ;;  %v8222_v51 = vld [vmem:[%s12032_s1 + $0x8a4] ss:$16 sps:$4 sm:$0xff]   ;;  %v8225_v53 = vld [vmem:[%s12032_s1 + $0x8ac] ss:$16 sps:$4 sm:$0xff]  }
  0xdc   :  { %5756 = vmatprep.subr.bf16.mxu0 %v8138_v54  ;;  %6330 = vmatprep.subr.bf16.mxu1 %v8141_v55  ;;  %v8220_v54 = vld [vmem:[%s12032_s1 + $0x8a0] ss:$16 sps:$4 sm:$0xff]   ;;  %v8223_v55 = vld [vmem:[%s12032_s1 + $0x8a8] ss:$16 sps:$4 sm:$0xff]  }
  0xdf   :  { %5757 = vmatpush1.bf16.msra.mxu0 %v8136_v56  ;;  %6331 = vmatpush1.bf16.msra.mxu1 %v8139_v57  ;;  %v8228_v56 = vld [vmem:[%s12032_s1 + $0x8c4] ss:$16 sps:$4 sm:$0xff]   ;;  %v8231_v57 = vld [vmem:[%s12032_s1 + $0x8cc] ss:$16 sps:$4 sm:$0xff]  }
  0xe0   :  { %5758 = vmatprep.subr.bf16.mxu0 %v8144_v58  ;;  %6332 = vmatprep.subr.bf16.mxu1 %v8147_v59  ;;  %v8226_v58 = vld [vmem:[%s12032_s1 + $0x8c0] ss:$16 sps:$4 sm:$0xff]   ;;  %v8229_v59 = vld [vmem:[%s12032_s1 + $0x8c8] ss:$16 sps:$4 sm:$0xff]  }
  0xe3   :  { %5759 = vmatpush1.bf16.msra.mxu0 %v8142_v60  ;;  %6333 = vmatpush1.bf16.msra.mxu1 %v8145_v61  ;;  %v8234_v60 = vld [vmem:[%s12032_s1 + $0x8e4] ss:$16 sps:$4 sm:$0xff]   ;;  %v8237_v61 = vld [vmem:[%s12032_s1 + $0x8ec] ss:$16 sps:$4 sm:$0xff]  }
  0xe4   :  { %5760 = vmatprep.subr.bf16.mxu0 %v8150_v62  ;;  %6334 = vmatprep.subr.bf16.mxu1 %v8153_v63  ;;  %v8232_v62 = vld [vmem:[%s12032_s1 + $0x8e0] ss:$16 sps:$4 sm:$0xff]   ;;  %v8235_v63 = vld [vmem:[%s12032_s1 + $0x8e8] ss:$16 sps:$4 sm:$0xff]  }
  0xe7   :  { %5761 = vmatpush1.bf16.msra.mxu0 %v8148_v0  ;;  %6335 = vmatpush1.bf16.msra.mxu1 %v8151_v1  ;;  %v8240_v0 = vld [vmem:[%s12032_s1 + $0x904] ss:$16 sps:$4 sm:$0xff]   ;;  %v8243_v1 = vld [vmem:[%s12032_s1 + $0x90c] ss:$16 sps:$4 sm:$0xff]  }
  0xe8   :  { %5762 = vmatprep.subr.bf16.mxu0 %v8156_v2  ;;  %6336 = vmatprep.subr.bf16.mxu1 %v8159_v3  ;;  %v8238_v2 = vld [vmem:[%s12032_s1 + $0x900] ss:$16 sps:$4 sm:$0xff]   ;;  %v8241_v3 = vld [vmem:[%s12032_s1 + $0x908] ss:$16 sps:$4 sm:$0xff]  }
  0xeb   :  { %5763 = vmatpush1.bf16.msra.mxu0 %v8154_v4  ;;  %6337 = vmatpush1.bf16.msra.mxu1 %v8157_v5  ;;  %v8246_v4 = vld [vmem:[%s12032_s1 + $0x924] ss:$16 sps:$4 sm:$0xff]   ;;  %v8249_v5 = vld [vmem:[%s12032_s1 + $0x92c] ss:$16 sps:$4 sm:$0xff]  }
  0xec   :  { %5764 = vmatprep.subr.bf16.mxu0 %v8162_v6  ;;  %6338 = vmatprep.subr.bf16.mxu1 %v8165_v7  ;;  %v8244_v6 = vld [vmem:[%s12032_s1 + $0x920] ss:$16 sps:$4 sm:$0xff]   ;;  %v8247_v7 = vld [vmem:[%s12032_s1 + $0x928] ss:$16 sps:$4 sm:$0xff]  }
  0xef   :  { %5765 = vmatpush1.bf16.msra.mxu0 %v8160_v8  ;;  %6339 = vmatpush1.bf16.msra.mxu1 %v8163_v9  ;;  %v8252_v8 = vld [vmem:[%s12032_s1 + $0x944] ss:$16 sps:$4 sm:$0xff]   ;;  %v8255_v9 = vld [vmem:[%s12032_s1 + $0x94c] ss:$16 sps:$4 sm:$0xff]  }
  0xf0   :  { %5766 = vmatprep.subr.bf16.mxu0 %v8168_v10  ;;  %6340 = vmatprep.subr.bf16.mxu1 %v8171_v11  ;;  %v8250_v10 = vld [vmem:[%s12032_s1 + $0x940] ss:$16 sps:$4 sm:$0xff]   ;;  %v8253_v11 = vld [vmem:[%s12032_s1 + $0x948] ss:$16 sps:$4 sm:$0xff]  }
  0xf3   :  { %5767 = vmatpush1.bf16.msra.mxu0 %v8166_v12  ;;  %6341 = vmatpush1.bf16.msra.mxu1 %v8169_v52  ;;  %v8258_v12 = vld [vmem:[%s12032_s1 + $0x964] ss:$16 sps:$4 sm:$0xff]   ;;  %v8261_v52 = vld [vmem:[%s12032_s1 + $0x96c] ss:$16 sps:$4 sm:$0xff]  }
  0xf4   :  { %5768 = vmatprep.subr.bf16.mxu0 %v8174_v15  ;;  %6342 = vmatprep.subr.bf16.mxu1 %v8177_v16  ;;  %v8256_v15 = vld [vmem:[%s12032_s1 + $0x960] ss:$16 sps:$4 sm:$0xff]   ;;  %v8259_v16 = vld [vmem:[%s12032_s1 + $0x968] ss:$16 sps:$4 sm:$0xff]  }
  0xf7   :  { %5769 = vmatpush1.bf16.msra.mxu0 %v8172_v17  ;;  %6343 = vmatpush1.bf16.msra.mxu1 %v8175_v18  ;;  %v8264_v17 = vld [vmem:[%s12032_s1 + $0x984] ss:$16 sps:$4 sm:$0xff]   ;;  %v8267_v18 = vld [vmem:[%s12032_s1 + $0x98c] ss:$16 sps:$4 sm:$0xff]  }
  0xf8   :  { %5770 = vmatprep.subr.bf16.mxu0 %v8180_v19  ;;  %6344 = vmatprep.subr.bf16.mxu1 %v8183_v20  ;;  %v8262_v19 = vld [vmem:[%s12032_s1 + $0x980] ss:$16 sps:$4 sm:$0xff]   ;;  %v8265_v20 = vld [vmem:[%s12032_s1 + $0x988] ss:$16 sps:$4 sm:$0xff]  }
  0xfb   :  { %5771 = vmatpush1.bf16.msra.mxu0 %v8178_v22  ;;  %6345 = vmatpush1.bf16.msra.mxu1 %v8181_v23  ;;  %v8270_v22 = vld [vmem:[%s12032_s1 + $0x9a4] ss:$16 sps:$4 sm:$0xff]   ;;  %v8273_v23 = vld [vmem:[%s12032_s1 + $0x9ac] ss:$16 sps:$4 sm:$0xff]  }
  0xfc   :  { %5772 = vmatprep.subr.bf16.mxu0 %v8186_v24  ;;  %6346 = vmatprep.subr.bf16.mxu1 %v8189_v13  ;;  %v8268_v24 = vld [vmem:[%s12032_s1 + $0x9a0] ss:$16 sps:$4 sm:$0xff]   ;;  %v8271_v13 = vld [vmem:[%s12032_s1 + $0x9a8] ss:$16 sps:$4 sm:$0xff]  }
  0xff   :  { %5773 = vmatpush1.bf16.msra.mxu0 %v8184_v27  ;;  %6347 = vmatpush1.bf16.msra.mxu1 %v8187_v28  ;;  %v8276_v27 = vld [vmem:[%s12032_s1 + $0x9c4] ss:$16 sps:$4 sm:$0xff]   ;;  %v8279_v28 = vld [vmem:[%s12032_s1 + $0x9cc] ss:$16 sps:$4 sm:$0xff]  }
 0x100   :  { %5783 = vmatprep.subr.bf16.mxu0 %v8192_v29  ;;  %6357 = vmatprep.subr.bf16.mxu1 %v8195_v14  ;;  %v8274_v29 = vld [vmem:[%s12032_s1 + $0x9c0] ss:$16 sps:$4 sm:$0xff]   ;;  %v8277_v14 = vld [vmem:[%s12032_s1 + $0x9c8] ss:$16 sps:$4 sm:$0xff]  }
 0x102   :  { %5775 = vmatmul.mubr.bf16.vlgmr.msra.gmra.mrb[0].mxu0 %v986_v31  ;;  %6349 = vmatmul.mubr.bf16.vlgmr.msra.gmra.mrb[0].mxu1 %v986_v31  ;;  %v8285_v31 = vld [vmem:[%s12032_s1 + $0x9ec] ss:$16 sps:$4 sm:$0xff]  }
 0x103   :  { %5784 = vmatpush1.bf16.msra.mxu0 %v8190_v25  ;;  %6358 = vmatpush1.bf16.msra.mxu1 %v8193_v32  ;;  %v8280_v25 = vld [vmem:[%s12032_s1 + $0x9e0] ss:$16 sps:$4 sm:$0xff]   ;;  %v8283_v32 = vld [vmem:[%s12032_s1 + $0x9e8] ss:$16 sps:$4 sm:$0xff]  }
 0x104   :  { %5785 = vmatprep.subr.bf16.mxu0 %v8198_v33  ;;  %6359 = vmatprep.subr.bf16.mxu1 %v8201_v26  ;;  %v8288_v33 = vld [vmem:[%s12032_s1 + $0xa04] ss:$16 sps:$4 sm:$0xff]   ;;  %v8291_v26 = vld [vmem:[%s12032_s1 + $0xa0c] ss:$16 sps:$4 sm:$0xff]  }
 0x105   :  { %5815 = vmatprep.mubr.bf16.mxu0 %v10012_v34  ;;  %6389 = vmatprep.mubr.bf16.mxu1 %v10012_v34 }
 0x107   :  { %5786 = vmatpush1.bf16.msra.mxu0 %v8196_v35  ;;  %6360 = vmatpush1.bf16.msra.mxu1 %v8199_v36  ;;  %v10198_v35 = vrot.slane %v9969_v21, %v9311_v49  ;;  %v8286_v36 = vld [vmem:[%s12032_s1 + $0xa00] ss:$16 sps:$4 sm:$0xff]   ;;  %v8297_v21 = vld [vmem:[%s12032_s1 + $0xa2c] ss:$16 sps:$4 sm:$0xff]  }
 0x108   :  { %5787 = vmatprep.subr.bf16.mxu0 %v8204_v37  ;;  %6361 = vmatprep.subr.bf16.mxu1 %v8207_v38  ;;  %v8289_v37 = vld [vmem:[%s12032_s1 + $0xa08] ss:$16 sps:$4 sm:$0xff]   ;;  %v8294_v38 = vld [vmem:[%s12032_s1 + $0xa24] ss:$16 sps:$4 sm:$0xff]  }
 0x10b   :  { %5788 = vmatpush1.bf16.msra.mxu0 %v8202_v39  ;;  %6362 = vmatpush1.bf16.msra.mxu1 %v8205_v40  ;;  %v1036_v39 = vcombine.high %v10012_v34, %v10012_v34  ;;  %v8292_v40 = vld [vmem:[%s12032_s1 + $0xa20] ss:$16 sps:$4 sm:$0xff]   ;;  %v8300_v34 = vld [vmem:[%s12032_s1 + $0xa44] ss:$16 sps:$4 sm:$0xff]  }
 0x10c   :  { %5789 = vmatprep.subr.bf16.mxu0 %v8210_v41  ;;  %6363 = vmatprep.subr.bf16.mxu1 %v8213_v43  ;;  %v8295_v41 = vld [vmem:[%s12032_s1 + $0xa28] ss:$16 sps:$4 sm:$0xff]   ;;  %v8303_v43 = vld [vmem:[%s12032_s1 + $0xa4c] ss:$16 sps:$4 sm:$0xff]  }
 0x10f   :  { %5790 = vmatpush1.bf16.msra.mxu0 %v8208_v44  ;;  %6364 = vmatpush1.bf16.msra.mxu1 %v8211_v45  ;;  %v8298_v44 = vld [vmem:[%s12032_s1 + $0xa40] ss:$16 sps:$4 sm:$0xff]   ;;  %v8301_v45 = vld [vmem:[%s12032_s1 + $0xa48] ss:$16 sps:$4 sm:$0xff]  }
 0x110   :  { %5791 = vmatprep.subr.bf16.mxu0 %v8216_v46  ;;  %6365 = vmatprep.subr.bf16.mxu1 %v8219_v47  ;;  %v8306_v46 = vld [vmem:[%s12032_s1 + $0xa64] ss:$16 sps:$4 sm:$0xff]   ;;  %v8309_v47 = vld [vmem:[%s12032_s1 + $0xa6c] ss:$16 sps:$4 sm:$0xff]  }
 0x113   :  { %5792 = vmatpush1.bf16.msra.mxu0 %v8214_v48  ;;  %6366 = vmatpush1.bf16.msra.mxu1 %v8217_v50  ;;  %v8304_v48 = vld [vmem:[%s12032_s1 + $0xa60] ss:$16 sps:$4 sm:$0xff]   ;;  %v8307_v50 = vld [vmem:[%s12032_s1 + $0xa68] ss:$16 sps:$4 sm:$0xff]  }
 0x114   :  { %5793 = vmatprep.subr.bf16.mxu0 %v8222_v51  ;;  %6367 = vmatprep.subr.bf16.mxu1 %v8225_v53  ;;  %v8312_v51 = vld [vmem:[%s12032_s1 + $0xa84] ss:$16 sps:$4 sm:$0xff]   ;;  %v8315_v53 = vld [vmem:[%s12032_s1 + $0xa8c] ss:$16 sps:$4 sm:$0xff]  }
 0x117   :  { %5794 = vmatpush1.bf16.msra.mxu0 %v8220_v54  ;;  %6368 = vmatpush1.bf16.msra.mxu1 %v8223_v55  ;;  %v8310_v54 = vld [vmem:[%s12032_s1 + $0xa80] ss:$16 sps:$4 sm:$0xff]   ;;  %v8313_v55 = vld [vmem:[%s12032_s1 + $0xa88] ss:$16 sps:$4 sm:$0xff]  }
 0x118   :  { %5795 = vmatprep.subr.bf16.mxu0 %v8228_v56  ;;  %6369 = vmatprep.subr.bf16.mxu1 %v8231_v57  ;;  %v8318_v56 = vld [vmem:[%s12032_s1 + $0xaa4] ss:$16 sps:$4 sm:$0xff]   ;;  %v8321_v57 = vld [vmem:[%s12032_s1 + $0xaac] ss:$16 sps:$4 sm:$0xff]  }
 0x11b   :  { %5796 = vmatpush1.bf16.msra.mxu0 %v8226_v58  ;;  %6370 = vmatpush1.bf16.msra.mxu1 %v8229_v59  ;;  %v8316_v58 = vld [vmem:[%s12032_s1 + $0xaa0] ss:$16 sps:$4 sm:$0xff]   ;;  %v8319_v59 = vld [vmem:[%s12032_s1 + $0xaa8] ss:$16 sps:$4 sm:$0xff]  }
 0x11c   :  { %5797 = vmatprep.subr.bf16.mxu0 %v8234_v60  ;;  %6371 = vmatprep.subr.bf16.mxu1 %v8237_v61  ;;  %v8324_v60 = vld [vmem:[%s12032_s1 + $0xac4] ss:$16 sps:$4 sm:$0xff]   ;;  %v8327_v61 = vld [vmem:[%s12032_s1 + $0xacc] ss:$16 sps:$4 sm:$0xff]  }
 0x11f   :  { %5798 = vmatpush1.bf16.msra.mxu0 %v8232_v62  ;;  %6372 = vmatpush1.bf16.msra.mxu1 %v8235_v63  ;;  %v8322_v62 = vld [vmem:[%s12032_s1 + $0xac0] ss:$16 sps:$4 sm:$0xff]   ;;  %v8325_v63 = vld [vmem:[%s12032_s1 + $0xac8] ss:$16 sps:$4 sm:$0xff]  }
 0x120   :  { %5799 = vmatprep.subr.bf16.mxu0 %v8240_v0  ;;  %6373 = vmatprep.subr.bf16.mxu1 %v8243_v1  ;;  %v8330_v0 = vld [vmem:[%s12032_s1 + $0xae4] ss:$16 sps:$4 sm:$0xff]   ;;  %v8333_v1 = vld [vmem:[%s12032_s1 + $0xaec] ss:$16 sps:$4 sm:$0xff]  }
 0x123   :  { %5800 = vmatpush1.bf16.msra.mxu0 %v8238_v2  ;;  %6374 = vmatpush1.bf16.msra.mxu1 %v8241_v3  ;;  %v8328_v2 = vld [vmem:[%s12032_s1 + $0xae0] ss:$16 sps:$4 sm:$0xff]   ;;  %v8331_v3 = vld [vmem:[%s12032_s1 + $0xae8] ss:$16 sps:$4 sm:$0xff]  }
 0x124   :  { %5801 = vmatprep.subr.bf16.mxu0 %v8246_v4  ;;  %6375 = vmatprep.subr.bf16.mxu1 %v8249_v5  ;;  %v8336_v4 = vld [vmem:[%s12032_s1 + $0xb04] ss:$16 sps:$4 sm:$0xff]   ;;  %v8339_v5 = vld [vmem:[%s12032_s1 + $0xb0c] ss:$16 sps:$4 sm:$0xff]  }
 0x127   :  { %5802 = vmatpush1.bf16.msra.mxu0 %v8244_v6  ;;  %6376 = vmatpush1.bf16.msra.mxu1 %v8247_v7  ;;  %v8334_v6 = vld [vmem:[%s12032_s1 + $0xb00] ss:$16 sps:$4 sm:$0xff]   ;;  %v8337_v7 = vld [vmem:[%s12032_s1 + $0xb08] ss:$16 sps:$4 sm:$0xff]  }
 0x128   :  { %5803 = vmatprep.subr.bf16.mxu0 %v8252_v8  ;;  %6377 = vmatprep.subr.bf16.mxu1 %v8255_v9  ;;  %v8342_v8 = vld [vmem:[%s12032_s1 + $0xb24] ss:$16 sps:$4 sm:$0xff]   ;;  %v8345_v9 = vld [vmem:[%s12032_s1 + $0xb2c] ss:$16 sps:$4 sm:$0xff]  }
 0x12b   :  { %5804 = vmatpush1.bf16.msra.mxu0 %v8250_v10  ;;  %6378 = vmatpush1.bf16.msra.mxu1 %v8253_v11  ;;  %v8340_v10 = vld [vmem:[%s12032_s1 + $0xb20] ss:$16 sps:$4 sm:$0xff]   ;;  %v8343_v11 = vld [vmem:[%s12032_s1 + $0xb28] ss:$16 sps:$4 sm:$0xff]  }
 0x12c   :  { %5805 = vmatprep.subr.bf16.mxu0 %v8258_v12  ;;  %6379 = vmatprep.subr.bf16.mxu1 %v8261_v52  ;;  %v8348_v12 = vld [vmem:[%s12032_s1 + $0xb44] ss:$16 sps:$4 sm:$0xff]   ;;  %v8351_v52 = vld [vmem:[%s12032_s1 + $0xb4c] ss:$16 sps:$4 sm:$0xff]  }
 0x12f   :  { %5806 = vmatpush1.bf16.msra.mxu0 %v8256_v15  ;;  %6380 = vmatpush1.bf16.msra.mxu1 %v8259_v16  ;;  %v8346_v15 = vld [vmem:[%s12032_s1 + $0xb40] ss:$16 sps:$4 sm:$0xff]   ;;  %v8349_v16 = vld [vmem:[%s12032_s1 + $0xb48] ss:$16 sps:$4 sm:$0xff]  }
 0x130   :  { %5807 = vmatprep.subr.bf16.mxu0 %v8264_v17  ;;  %6381 = vmatprep.subr.bf16.mxu1 %v8267_v18  ;;  %v8354_v17 = vld [vmem:[%s12032_s1 + $0xb64] ss:$16 sps:$4 sm:$0xff]   ;;  %v8357_v18 = vld [vmem:[%s12032_s1 + $0xb6c] ss:$16 sps:$4 sm:$0xff]  }
 0x133   :  { %5808 = vmatpush1.bf16.msra.mxu0 %v8262_v19  ;;  %6382 = vmatpush1.bf16.msra.mxu1 %v8265_v20  ;;  %v8352_v19 = vld [vmem:[%s12032_s1 + $0xb60] ss:$16 sps:$4 sm:$0xff]   ;;  %v8355_v20 = vld [vmem:[%s12032_s1 + $0xb68] ss:$16 sps:$4 sm:$0xff]  }
 0x134   :  { %5809 = vmatprep.subr.bf16.mxu0 %v8270_v22  ;;  %6383 = vmatprep.subr.bf16.mxu1 %v8273_v23  ;;  %v8360_v22 = vld [vmem:[%s12032_s1 + $0xb84] ss:$16 sps:$4 sm:$0xff]   ;;  %v8363_v23 = vld [vmem:[%s12032_s1 + $0xb8c] ss:$16 sps:$4 sm:$0xff]  }
 0x137   :  { %5810 = vmatpush1.bf16.msra.mxu0 %v8268_v24  ;;  %6384 = vmatpush1.bf16.msra.mxu1 %v8271_v13  ;;  %v8358_v24 = vld [vmem:[%s12032_s1 + $0xb80] ss:$16 sps:$4 sm:$0xff]   ;;  %v8361_v13 = vld [vmem:[%s12032_s1 + $0xb88] ss:$16 sps:$4 sm:$0xff]  }
 0x138   :  { %5811 = vmatprep.subr.bf16.mxu0 %v8276_v27  ;;  %6385 = vmatprep.subr.bf16.mxu1 %v8279_v28  ;;  %v8366_v27 = vld [vmem:[%s12032_s1 + $0xba4] ss:$16 sps:$4 sm:$0xff]   ;;  %v8369_v28 = vld [vmem:[%s12032_s1 + $0xbac] ss:$16 sps:$4 sm:$0xff]  }
 0x13b   :  { %5812 = vmatpush1.bf16.msra.mxu0 %v8274_v29  ;;  %6386 = vmatpush1.bf16.msra.mxu1 %v8277_v14  ;;  %v8364_v29 = vld [vmem:[%s12032_s1 + $0xba0] ss:$16 sps:$4 sm:$0xff]   ;;  %v8367_v14 = vld [vmem:[%s12032_s1 + $0xba8] ss:$16 sps:$4 sm:$0xff]  }
 0x13c   :  { %5813 = vmatprep.subr.bf16.mxu0 %v8282_v30  ;;  %6387 = vmatprep.subr.bf16.mxu1 %v8285_v31  ;;  %v8372_v30 = vld [vmem:[%s12032_s1 + $0xbc4] ss:$16 sps:$4 sm:$0xff]   ;;  %v8375_v31 = vld [vmem:[%s12032_s1 + $0xbcc] ss:$16 sps:$4 sm:$0xff]  }
 0x13f   :  { %5814 = vmatpush1.bf16.msra.mxu0 %v8280_v25  ;;  %6388 = vmatpush1.bf16.msra.mxu1 %v8283_v32  ;;  %v9152_v25 = vld [vmem:[%s12033_s0 + $0x8] sm:$0xff] }
 0x140   :  { %5824 = vmatprep.subr.bf16.mxu0 %v8288_v33  ;;  %6398 = vmatprep.subr.bf16.mxu1 %v8291_v26  ;;  %v989_v32 = vcombine.high %v9152_v25, %v9152_v25  ;;  %v8370_v33 = vld [vmem:[%s12032_s1 + $0xbc0] ss:$16 sps:$4 sm:$0xff]   ;;  %v8373_v26 = vld [vmem:[%s12032_s1 + $0xbc8] ss:$16 sps:$4 sm:$0xff]  }
 0x141   :  { %v8454_v25 = vld [vmem:[%s12032_s1 + $0xd80] ss:$16 sps:$4 sm:$0xff]  }
 0x142   :  { %5816 = vmatmul.mubr.bf16.vlgmr.msra.gmra.mrb[0].mxu0 %v10198_v35  ;;  %6390 = vmatmul.mubr.bf16.vlgmr.msra.gmra.mrb[0].mxu1 %v10198_v35 }
 0x143   :  { %5825 = vmatpush1.bf16.msra.mxu0 %v8286_v36  ;;  %6399 = vmatpush1.bf16.msra.mxu1 %v8289_v37  ;;  %v8378_v36 = vld [vmem:[%s12032_s1 + $0xbe4] ss:$16 sps:$4 sm:$0xff]   ;;  %v8381_v37 = vld [vmem:[%s12032_s1 + $0xbec] ss:$16 sps:$4 sm:$0xff]  }
 0x144   :  { %5826 = vmatprep.subr.bf16.mxu0 %v8294_v38  ;;  %6400 = vmatprep.subr.bf16.mxu1 %v8297_v21  ;;  %v10388_v38 = vrot.slane %v989_v32, %v9311_v49  ;;  %v8376_v21 = vld [vmem:[%s12032_s1 + $0xbe0] ss:$16 sps:$4 sm:$0xff]   ;;  %v8457_v32 = vld [vmem:[%s12032_s1 + $0xd88] ss:$16 sps:$4 sm:$0xff]  }
 0x145   :  { %5856 = vmatprep.mubr.bf16.mxu0 %v1036_v39  ;;  %6430 = vmatprep.mubr.bf16.mxu1 %v1036_v39  ;;  %v8379_v39 = vld [vmem:[%s12032_s1 + $0xbe8] ss:$16 sps:$4 sm:$0xff]  }
 0x147   :  { %5827 = vmatpush1.bf16.msra.mxu0 %v8292_v40  ;;  %6401 = vmatpush1.bf16.msra.mxu1 %v8295_v41  ;;  %v8384_v40 = vld [vmem:[%s12032_s1 + $0xc04] ss:$16 sps:$4 sm:$0xff]   ;;  %v8387_v41 = vld [vmem:[%s12032_s1 + $0xc0c] ss:$16 sps:$4 sm:$0xff]  }
 0x148   :  { %5828 = vmatprep.subr.bf16.mxu0 %v8300_v34  ;;  %6402 = vmatprep.subr.bf16.mxu1 %v8303_v43  ;;  %v1005_v34 = vcombine.high %v10388_v38, %v10388_v38  ;;  %v1034_v43 = vcombine.high %v10198_v35, %v10198_v35  ;;  %v8393_v35 = vld [vmem:[%s12032_s1 + $0xc2c] ss:$16 sps:$4 sm:$0xff]  }
 0x14b   :  { %5829 = vmatpush1.bf16.msra.mxu0 %v8298_v44  ;;  %6403 = vmatpush1.bf16.msra.mxu1 %v8301_v45  ;;  %v8382_v44 = vld [vmem:[%s12032_s1 + $0xc00] ss:$16 sps:$4 sm:$0xff]   ;;  %v8385_v45 = vld [vmem:[%s12032_s1 + $0xc08] ss:$16 sps:$4 sm:$0xff]  }
 0x14c   :  { %5830 = vmatprep.subr.bf16.mxu0 %v8306_v46  ;;  %6404 = vmatprep.subr.bf16.mxu1 %v8309_v47  ;;  %v8390_v46 = vld [vmem:[%s12032_s1 + $0xc24] ss:$16 sps:$4 sm:$0xff]   ;;  %v10419_v47 = vrot.slane %v1005_v34, %v9311_v49 }
 0x14d   :  { %v8474_v34 = vld [vmem:[%s12032_s1 + $0xde4] ss:$16 sps:$4 sm:$0xff]  }
 0x14f   :  { %5831 = vmatpush1.bf16.msra.mxu0 %v8304_v48  ;;  %6405 = vmatpush1.bf16.msra.mxu1 %v8307_v50  ;;  %v8388_v48 = vld [vmem:[%s12032_s1 + $0xc20] ss:$16 sps:$4 sm:$0xff]   ;;  %v8391_v50 = vld [vmem:[%s12032_s1 + $0xc28] ss:$16 sps:$4 sm:$0xff]  }
 0x150   :  { %5832 = vmatprep.subr.bf16.mxu0 %v8312_v51  ;;  %6406 = vmatprep.subr.bf16.mxu1 %v8315_v53  ;;  %v8396_v51 = vld [vmem:[%s12032_s1 + $0xc44] ss:$16 sps:$4 sm:$0xff]   ;;  %v8399_v53 = vld [vmem:[%s12032_s1 + $0xc4c] ss:$16 sps:$4 sm:$0xff]  }
 0x153   :  { %5833 = vmatpush1.bf16.msra.mxu0 %v8310_v54  ;;  %6407 = vmatpush1.bf16.msra.mxu1 %v8313_v55  ;;  %v8394_v54 = vld [vmem:[%s12032_s1 + $0xc40] ss:$16 sps:$4 sm:$0xff]   ;;  %v8397_v55 = vld [vmem:[%s12032_s1 + $0xc48] ss:$16 sps:$4 sm:$0xff]  }
 0x154   :  { %5834 = vmatprep.subr.bf16.mxu0 %v8318_v56  ;;  %6408 = vmatprep.subr.bf16.mxu1 %v8321_v57  ;;  %v8402_v56 = vld [vmem:[%s12032_s1 + $0xc64] ss:$16 sps:$4 sm:$0xff]   ;;  %v8405_v57 = vld [vmem:[%s12032_s1 + $0xc6c] ss:$16 sps:$4 sm:$0xff]  }
 0x157   :  { %5835 = vmatpush1.bf16.msra.mxu0 %v8316_v58  ;;  %6409 = vmatpush1.bf16.msra.mxu1 %v8319_v59  ;;  %v8400_v58 = vld [vmem:[%s12032_s1 + $0xc60] ss:$16 sps:$4 sm:$0xff]   ;;  %v8403_v59 = vld [vmem:[%s12032_s1 + $0xc68] ss:$16 sps:$4 sm:$0xff]  }
 0x158   :  { %5836 = vmatprep.subr.bf16.mxu0 %v8324_v60  ;;  %6410 = vmatprep.subr.bf16.mxu1 %v8327_v61  ;;  %v8408_v60 = vld [vmem:[%s12032_s1 + $0xc84] ss:$16 sps:$4 sm:$0xff]   ;;  %v8411_v61 = vld [vmem:[%s12032_s1 + $0xc8c] ss:$16 sps:$4 sm:$0xff]  }
 0x15b   :  { %5837 = vmatpush1.bf16.msra.mxu0 %v8322_v62  ;;  %6411 = vmatpush1.bf16.msra.mxu1 %v8325_v63  ;;  %v8406_v62 = vld [vmem:[%s12032_s1 + $0xc80] ss:$16 sps:$4 sm:$0xff]   ;;  %v8409_v63 = vld [vmem:[%s12032_s1 + $0xc88] ss:$16 sps:$4 sm:$0xff]  }
 0x15c   :  { %5838 = vmatprep.subr.bf16.mxu0 %v8330_v0  ;;  %6412 = vmatprep.subr.bf16.mxu1 %v8333_v1  ;;  %v8414_v0 = vld [vmem:[%s12032_s1 + $0xca4] ss:$16 sps:$4 sm:$0xff]   ;;  %v8417_v1 = vld [vmem:[%s12032_s1 + $0xcac] ss:$16 sps:$4 sm:$0xff]  }
 0x15f   :  { %5839 = vmatpush1.bf16.msra.mxu0 %v8328_v2  ;;  %6413 = vmatpush1.bf16.msra.mxu1 %v8331_v3  ;;  %v8412_v2 = vld [vmem:[%s12032_s1 + $0xca0] ss:$16 sps:$4 sm:$0xff]   ;;  %v8415_v3 = vld [vmem:[%s12032_s1 + $0xca8] ss:$16 sps:$4 sm:$0xff]  }
 0x160   :  { %5840 = vmatprep.subr.bf16.mxu0 %v8336_v4  ;;  %6414 = vmatprep.subr.bf16.mxu1 %v8339_v5  ;;  %v8420_v4 = vld [vmem:[%s12032_s1 + $0xcc4] ss:$16 sps:$4 sm:$0xff]   ;;  %v8423_v5 = vld [vmem:[%s12032_s1 + $0xccc] ss:$16 sps:$4 sm:$0xff]  }
 0x163   :  { %5841 = vmatpush1.bf16.msra.mxu0 %v8334_v6  ;;  %6415 = vmatpush1.bf16.msra.mxu1 %v8337_v7  ;;  %v8418_v6 = vld [vmem:[%s12032_s1 + $0xcc0] ss:$16 sps:$4 sm:$0xff]   ;;  %v8421_v7 = vld [vmem:[%s12032_s1 + $0xcc8] ss:$16 sps:$4 sm:$0xff]  }
 0x164   :  { %5842 = vmatprep.subr.bf16.mxu0 %v8342_v8  ;;  %6416 = vmatprep.subr.bf16.mxu1 %v8345_v9  ;;  %v8426_v8 = vld [vmem:[%s12032_s1 + $0xce4] ss:$16 sps:$4 sm:$0xff]   ;;  %v8429_v9 = vld [vmem:[%s12032_s1 + $0xcec] ss:$16 sps:$4 sm:$0xff]  }
 0x167   :  { %5843 = vmatpush1.bf16.msra.mxu0 %v8340_v10  ;;  %6417 = vmatpush1.bf16.msra.mxu1 %v8343_v11  ;;  %v8424_v10 = vld [vmem:[%s12032_s1 + $0xce0] ss:$16 sps:$4 sm:$0xff]   ;;  %v8427_v11 = vld [vmem:[%s12032_s1 + $0xce8] ss:$16 sps:$4 sm:$0xff]  }
 0x168   :  { %5844 = vmatprep.subr.bf16.mxu0 %v8348_v12  ;;  %6418 = vmatprep.subr.bf16.mxu1 %v8351_v52  ;;  %v8432_v12 = vld [vmem:[%s12032_s1 + $0xd04] ss:$16 sps:$4 sm:$0xff]   ;;  %v8435_v52 = vld [vmem:[%s12032_s1 + $0xd0c] ss:$16 sps:$4 sm:$0xff]  }
 0x16b   :  { %5845 = vmatpush1.bf16.msra.mxu0 %v8346_v15  ;;  %6419 = vmatpush1.bf16.msra.mxu1 %v8349_v16  ;;  %v8430_v15 = vld [vmem:[%s12032_s1 + $0xd00] ss:$16 sps:$4 sm:$0xff]   ;;  %v8433_v16 = vld [vmem:[%s12032_s1 + $0xd08] ss:$16 sps:$4 sm:$0xff]  }
 0x16c   :  { %5846 = vmatprep.subr.bf16.mxu0 %v8354_v17  ;;  %6420 = vmatprep.subr.bf16.mxu1 %v8357_v18  ;;  %v8438_v17 = vld [vmem:[%s12032_s1 + $0xd24] ss:$16 sps:$4 sm:$0xff]   ;;  %v8441_v18 = vld [vmem:[%s12032_s1 + $0xd2c] ss:$16 sps:$4 sm:$0xff]  }
 0x16f   :  { %5847 = vmatpush1.bf16.msra.mxu0 %v8352_v19  ;;  %6421 = vmatpush1.bf16.msra.mxu1 %v8355_v20  ;;  %v8436_v19 = vld [vmem:[%s12032_s1 + $0xd20] ss:$16 sps:$4 sm:$0xff]   ;;  %v8439_v20 = vld [vmem:[%s12032_s1 + $0xd28] ss:$16 sps:$4 sm:$0xff]  }
 0x170   :  { %5848 = vmatprep.subr.bf16.mxu0 %v8360_v22  ;;  %6422 = vmatprep.subr.bf16.mxu1 %v8363_v23  ;;  %v8444_v22 = vld [vmem:[%s12032_s1 + $0xd44] ss:$16 sps:$4 sm:$0xff]   ;;  %v8447_v23 = vld [vmem:[%s12032_s1 + $0xd4c] ss:$16 sps:$4 sm:$0xff]  }
 0x173   :  { %5849 = vmatpush1.bf16.msra.mxu0 %v8358_v24  ;;  %6423 = vmatpush1.bf16.msra.mxu1 %v8361_v13  ;;  %v8442_v24 = vld [vmem:[%s12032_s1 + $0xd40] ss:$16 sps:$4 sm:$0xff]   ;;  %v8445_v13 = vld [vmem:[%s12032_s1 + $0xd48] ss:$16 sps:$4 sm:$0xff]  }
 0x174   :  { %5850 = vmatprep.subr.bf16.mxu0 %v8366_v27  ;;  %6424 = vmatprep.subr.bf16.mxu1 %v8369_v28  ;;  %v8450_v27 = vld [vmem:[%s12032_s1 + $0xd64] ss:$16 sps:$4 sm:$0xff]   ;;  %v8453_v28 = vld [vmem:[%s12032_s1 + $0xd6c] ss:$16 sps:$4 sm:$0xff]  }
 0x177   :  { %5851 = vmatpush1.bf16.msra.mxu0 %v8364_v29  ;;  %6425 = vmatpush1.bf16.msra.mxu1 %v8367_v14  ;;  %v8448_v29 = vld [vmem:[%s12032_s1 + $0xd60] ss:$16 sps:$4 sm:$0xff]   ;;  %v8451_v14 = vld [vmem:[%s12032_s1 + $0xd68] ss:$16 sps:$4 sm:$0xff]  }
 0x178   :  { %5852 = vmatprep.subr.bf16.mxu0 %v8372_v30  ;;  %6426 = vmatprep.subr.bf16.mxu1 %v8375_v31  ;;  %v8456_v30 = vld [vmem:[%s12032_s1 + $0xd84] ss:$16 sps:$4 sm:$0xff]   ;;  %v8459_v31 = vld [vmem:[%s12032_s1 + $0xd8c] ss:$16 sps:$4 sm:$0xff]  }
 0x17b   :  { %5853 = vmatpush1.bf16.msra.mxu0 %v8370_v33  ;;  %6427 = vmatpush1.bf16.msra.mxu1 %v8373_v26  ;;  %v8462_v33 = vld [vmem:[%s12032_s1 + $0xda4] ss:$16 sps:$4 sm:$0xff]   ;;  %v8465_v26 = vld [vmem:[%s12032_s1 + $0xdac] ss:$16 sps:$4 sm:$0xff]  }
 0x17c   :  { %5854 = vmatprep.subr.bf16.mxu0 %v8378_v36  ;;  %6428 = vmatprep.subr.bf16.mxu1 %v8381_v37  ;;  %v8460_v36 = vld [vmem:[%s12032_s1 + $0xda0] ss:$16 sps:$4 sm:$0xff]   ;;  %v8463_v37 = vld [vmem:[%s12032_s1 + $0xda8] ss:$16 sps:$4 sm:$0xff]  }
 0x17f   :  { %5855 = vmatpush1.bf16.msra.mxu0 %v8376_v21  ;;  %6429 = vmatpush1.bf16.msra.mxu1 %v8379_v39  ;;  %v8468_v21 = vld [vmem:[%s12032_s1 + $0xdc4] ss:$16 sps:$4 sm:$0xff]   ;;  %v8471_v39 = vld [vmem:[%s12032_s1 + $0xdcc] ss:$16 sps:$4 sm:$0xff]  }
 0x180   :  { %5865 = vmatprep.subr.bf16.mxu0 %v8384_v40  ;;  %6439 = vmatprep.subr.bf16.mxu1 %v8387_v41  ;;  %v8466_v40 = vld [vmem:[%s12032_s1 + $0xdc0] ss:$16 sps:$4 sm:$0xff]   ;;  %v8469_v41 = vld [vmem:[%s12032_s1 + $0xdc8] ss:$16 sps:$4 sm:$0xff]  }
 0x182   :  { %5857 = vmatmul.mubr.bf16.vlgmr.msra.gmra.mrb[0].mxu0 %v1034_v43  ;;  %6431 = vmatmul.mubr.bf16.vlgmr.msra.gmra.mrb[0].mxu1 %v1034_v43  ;;  %v8477_v43 = vld [vmem:[%s12032_s1 + $0xdec] ss:$16 sps:$4 sm:$0xff]  }
 0x183   :  { %5866 = vmatpush1.bf16.msra.mxu0 %v8382_v44  ;;  %6440 = vmatpush1.bf16.msra.mxu1 %v8385_v45  ;;  %v8472_v44 = vld [vmem:[%s12032_s1 + $0xde0] ss:$16 sps:$4 sm:$0xff]   ;;  %v8475_v45 = vld [vmem:[%s12032_s1 + $0xde8] ss:$16 sps:$4 sm:$0xff]  }
 0x184   :  { %5867 = vmatprep.subr.bf16.mxu0 %v8390_v46  ;;  %6441 = vmatprep.subr.bf16.mxu1 %v8393_v35  ;;  %v8481_v46 = vld [vmem:[%s12032_s1 + $0xe04] ss:$16 sps:$4 sm:$0xff]   ;;  %v8484_v35 = vld [vmem:[%s12032_s1 + $0xe0c] ss:$16 sps:$4 sm:$0xff]  }
 0x185   :  { %5897 = vmatprep.mubr.bf16.mxu0 %v10419_v47  ;;  %6471 = vmatprep.mubr.bf16.mxu1 %v10419_v47 }
 0x187   :  { %5868 = vmatpush1.bf16.msra.mxu0 %v8388_v48  ;;  %6442 = vmatpush1.bf16.msra.mxu1 %v8391_v50  ;;  %v10605_v48 = vrot.slane %v10388_v38, %v9311_v49  ;;  %v8479_v50 = vld [vmem:[%s12032_s1 + $0xe00] ss:$16 sps:$4 sm:$0xff]   ;;  %v8490_v38 = vld [vmem:[%s12032_s1 + $0xe2c] ss:$16 sps:$4 sm:$0xff]  }
 0x188   :  { %5869 = vmatprep.subr.bf16.mxu0 %v8396_v51  ;;  %6443 = vmatprep.subr.bf16.mxu1 %v8399_v53  ;;  %v8482_v51 = vld [vmem:[%s12032_s1 + $0xe08] ss:$16 sps:$4 sm:$0xff]   ;;  %v8487_v53 = vld [vmem:[%s12032_s1 + $0xe24] ss:$16 sps:$4 sm:$0xff]  }
 0x18b   :  { %5870 = vmatpush1.bf16.msra.mxu0 %v8394_v54  ;;  %6444 = vmatpush1.bf16.msra.mxu1 %v8397_v55  ;;  %v1037_v54 = vcombine.high %v10419_v47, %v10419_v47  ;;  %v8485_v55 = vld [vmem:[%s12032_s1 + $0xe20] ss:$16 sps:$4 sm:$0xff]   ;;  %v8493_v47 = vld [vmem:[%s12032_s1 + $0xe44] ss:$16 sps:$4 sm:$0xff]  }
 0x18c   :  { %5871 = vmatprep.subr.bf16.mxu0 %v8402_v56  ;;  %6445 = vmatprep.subr.bf16.mxu1 %v8405_v57  ;;  %v8488_v56 = vld [vmem:[%s12032_s1 + $0xe28] ss:$16 sps:$4 sm:$0xff]   ;;  %v8496_v57 = vld [vmem:[%s12032_s1 + $0xe4c] ss:$16 sps:$4 sm:$0xff]  }
 0x18f   :  { %5872 = vmatpush1.bf16.msra.mxu0 %v8400_v58  ;;  %6446 = vmatpush1.bf16.msra.mxu1 %v8403_v59  ;;  %v8491_v58 = vld [vmem:[%s12032_s1 + $0xe40] ss:$16 sps:$4 sm:$0xff]   ;;  %v8494_v59 = vld [vmem:[%s12032_s1 + $0xe48] ss:$16 sps:$4 sm:$0xff]  }
 0x190   :  { %5873 = vmatprep.subr.bf16.mxu0 %v8408_v60  ;;  %6447 = vmatprep.subr.bf16.mxu1 %v8411_v61  ;;  %v8499_v60 = vld [vmem:[%s12032_s1 + $0xe64] ss:$16 sps:$4 sm:$0xff]   ;;  %v8502_v61 = vld [vmem:[%s12032_s1 + $0xe6c] ss:$16 sps:$4 sm:$0xff]  }
 0x193   :  { %5874 = vmatpush1.bf16.msra.mxu0 %v8406_v62  ;;  %6448 = vmatpush1.bf16.msra.mxu1 %v8409_v63  ;;  %v8497_v62 = vld [vmem:[%s12032_s1 + $0xe60] ss:$16 sps:$4 sm:$0xff]   ;;  %v8500_v63 = vld [vmem:[%s12032_s1 + $0xe68] ss:$16 sps:$4 sm:$0xff]  }
 0x194   :  { %5875 = vmatprep.subr.bf16.mxu0 %v8414_v0  ;;  %6449 = vmatprep.subr.bf16.mxu1 %v8417_v1  ;;  %v8505_v0 = vld [vmem:[%s12032_s1 + $0xe84] ss:$16 sps:$4 sm:$0xff]   ;;  %v8508_v1 = vld [vmem:[%s12032_s1 + $0xe8c] ss:$16 sps:$4 sm:$0xff]  }
 0x197   :  { %5876 = vmatpush1.bf16.msra.mxu0 %v8412_v2  ;;  %6450 = vmatpush1.bf16.msra.mxu1 %v8415_v3  ;;  %v8503_v2 = vld [vmem:[%s12032_s1 + $0xe80] ss:$16 sps:$4 sm:$0xff]   ;;  %v8506_v3 = vld [vmem:[%s12032_s1 + $0xe88] ss:$16 sps:$4 sm:$0xff]  }
 0x198   :  { %5877 = vmatprep.subr.bf16.mxu0 %v8420_v4  ;;  %6451 = vmatprep.subr.bf16.mxu1 %v8423_v5  ;;  %v8511_v4 = vld [vmem:[%s12032_s1 + $0xea4] ss:$16 sps:$4 sm:$0xff]   ;;  %v8514_v5 = vld [vmem:[%s12032_s1 + $0xeac] ss:$16 sps:$4 sm:$0xff]  }
 0x19b   :  { %5878 = vmatpush1.bf16.msra.mxu0 %v8418_v6  ;;  %6452 = vmatpush1.bf16.msra.mxu1 %v8421_v7  ;;  %v8509_v6 = vld [vmem:[%s12032_s1 + $0xea0] ss:$16 sps:$4 sm:$0xff]   ;;  %v8512_v7 = vld [vmem:[%s12032_s1 + $0xea8] ss:$16 sps:$4 sm:$0xff]  }
 0x19c   :  { %5879 = vmatprep.subr.bf16.mxu0 %v8426_v8  ;;  %6453 = vmatprep.subr.bf16.mxu1 %v8429_v9  ;;  %v8517_v8 = vld [vmem:[%s12032_s1 + $0xec4] ss:$16 sps:$4 sm:$0xff]   ;;  %v8520_v9 = vld [vmem:[%s12032_s1 + $0xecc] ss:$16 sps:$4 sm:$0xff]  }
 0x19f   :  { %5880 = vmatpush1.bf16.msra.mxu0 %v8424_v10  ;;  %6454 = vmatpush1.bf16.msra.mxu1 %v8427_v11  ;;  %v8515_v10 = vld [vmem:[%s12032_s1 + $0xec0] ss:$16 sps:$4 sm:$0xff]   ;;  %v8518_v11 = vld [vmem:[%s12032_s1 + $0xec8] ss:$16 sps:$4 sm:$0xff]  }
 0x1a0   :  { %5881 = vmatprep.subr.bf16.mxu0 %v8432_v12  ;;  %6455 = vmatprep.subr.bf16.mxu1 %v8435_v52  ;;  %v8523_v12 = vld [vmem:[%s12032_s1 + $0xee4] ss:$16 sps:$4 sm:$0xff]   ;;  %v8526_v52 = vld [vmem:[%s12032_s1 + $0xeec] ss:$16 sps:$4 sm:$0xff]  }
 0x1a3   :  { %5882 = vmatpush1.bf16.msra.mxu0 %v8430_v15  ;;  %6456 = vmatpush1.bf16.msra.mxu1 %v8433_v16  ;;  %v8521_v15 = vld [vmem:[%s12032_s1 + $0xee0] ss:$16 sps:$4 sm:$0xff]   ;;  %v8524_v16 = vld [vmem:[%s12032_s1 + $0xee8] ss:$16 sps:$4 sm:$0xff]  }
 0x1a4   :  { %5883 = vmatprep.subr.bf16.mxu0 %v8438_v17  ;;  %6457 = vmatprep.subr.bf16.mxu1 %v8441_v18  ;;  %v8529_v17 = vld [vmem:[%s12032_s1 + $0xf04] ss:$16 sps:$4 sm:$0xff]   ;;  %v8532_v18 = vld [vmem:[%s12032_s1 + $0xf0c] ss:$16 sps:$4 sm:$0xff]  }
 0x1a7   :  { %5884 = vmatpush1.bf16.msra.mxu0 %v8436_v19  ;;  %6458 = vmatpush1.bf16.msra.mxu1 %v8439_v20  ;;  %v8527_v19 = vld [vmem:[%s12032_s1 + $0xf00] ss:$16 sps:$4 sm:$0xff]   ;;  %v8530_v20 = vld [vmem:[%s12032_s1 + $0xf08] ss:$16 sps:$4 sm:$0xff]  }
 0x1a8   :  { %5885 = vmatprep.subr.bf16.mxu0 %v8444_v22  ;;  %6459 = vmatprep.subr.bf16.mxu1 %v8447_v23  ;;  %v8535_v22 = vld [vmem:[%s12032_s1 + $0xf24] ss:$16 sps:$4 sm:$0xff]   ;;  %v8538_v23 = vld [vmem:[%s12032_s1 + $0xf2c] ss:$16 sps:$4 sm:$0xff]  }
 0x1ab   :  { %5886 = vmatpush1.bf16.msra.mxu0 %v8442_v24  ;;  %6460 = vmatpush1.bf16.msra.mxu1 %v8445_v13  ;;  %v8533_v24 = vld [vmem:[%s12032_s1 + $0xf20] ss:$16 sps:$4 sm:$0xff]   ;;  %v8536_v13 = vld [vmem:[%s12032_s1 + $0xf28] ss:$16 sps:$4 sm:$0xff]  }
 0x1ac   :  { %5887 = vmatprep.subr.bf16.mxu0 %v8450_v27  ;;  %6461 = vmatprep.subr.bf16.mxu1 %v8453_v28  ;;  %v8541_v27 = vld [vmem:[%s12032_s1 + $0xf44] ss:$16 sps:$4 sm:$0xff]   ;;  %v8544_v28 = vld [vmem:[%s12032_s1 + $0xf4c] ss:$16 sps:$4 sm:$0xff]  }
 0x1af   :  { %5888 = vmatpush1.bf16.msra.mxu0 %v8448_v29  ;;  %6462 = vmatpush1.bf16.msra.mxu1 %v8451_v14  ;;  %v8539_v29 = vld [vmem:[%s12032_s1 + $0xf40] ss:$16 sps:$4 sm:$0xff]   ;;  %v8542_v14 = vld [vmem:[%s12032_s1 + $0xf48] ss:$16 sps:$4 sm:$0xff]  }
 0x1b0   :  { %5889 = vmatprep.subr.bf16.mxu0 %v8456_v30  ;;  %6463 = vmatprep.subr.bf16.mxu1 %v8459_v31  ;;  %v8547_v30 = vld [vmem:[%s12032_s1 + $0xf64] ss:$16 sps:$4 sm:$0xff]   ;;  %v8550_v31 = vld [vmem:[%s12032_s1 + $0xf6c] ss:$16 sps:$4 sm:$0xff]  }
 0x1b3   :  { %5890 = vmatpush1.bf16.msra.mxu0 %v8454_v25  ;;  %6464 = vmatpush1.bf16.msra.mxu1 %v8457_v32  ;;  %v8545_v25 = vld [vmem:[%s12032_s1 + $0xf60] ss:$16 sps:$4 sm:$0xff]   ;;  %v8548_v32 = vld [vmem:[%s12032_s1 + $0xf68] ss:$16 sps:$4 sm:$0xff]  }
 0x1b4   :  { %5891 = vmatprep.subr.bf16.mxu0 %v8462_v33  ;;  %6465 = vmatprep.subr.bf16.mxu1 %v8465_v26  ;;  %v8553_v33 = vld [vmem:[%s12032_s1 + $0xf84] ss:$16 sps:$4 sm:$0xff]   ;;  %v8556_v26 = vld [vmem:[%s12032_s1 + $0xf8c] ss:$16 sps:$4 sm:$0xff]  }
 0x1b7   :  { %5892 = vmatpush1.bf16.msra.mxu0 %v8460_v36  ;;  %6466 = vmatpush1.bf16.msra.mxu1 %v8463_v37  ;;  %v8551_v36 = vld [vmem:[%s12032_s1 + $0xf80] ss:$16 sps:$4 sm:$0xff]   ;;  %v8554_v37 = vld [vmem:[%s12032_s1 + $0xf88] ss:$16 sps:$4 sm:$0xff]  }
 0x1b8   :  { %5893 = vmatprep.subr.bf16.mxu0 %v8468_v21  ;;  %6467 = vmatprep.subr.bf16.mxu1 %v8471_v39  ;;  %v8559_v21 = vld [vmem:[%s12032_s1 + $0xfa4] ss:$16 sps:$4 sm:$0xff]   ;;  %v8562_v39 = vld [vmem:[%s12032_s1 + $0xfac] ss:$16 sps:$4 sm:$0xff]  }
 0x1bb   :  { %5894 = vmatpush1.bf16.msra.mxu0 %v8466_v40  ;;  %6468 = vmatpush1.bf16.msra.mxu1 %v8469_v41  ;;  %v8557_v40 = vld [vmem:[%s12032_s1 + $0xfa0] ss:$16 sps:$4 sm:$0xff]   ;;  %v8560_v41 = vld [vmem:[%s12032_s1 + $0xfa8] ss:$16 sps:$4 sm:$0xff]  }
 0x1bc   :  { %5895 = vmatprep.subr.bf16.mxu0 %v8474_v34  ;;  %6469 = vmatprep.subr.bf16.mxu1 %v8477_v43  ;;  %v8565_v34 = vld [vmem:[%s12032_s1 + $0xfc4] ss:$16 sps:$4 sm:$0xff]   ;;  %v8568_v43 = vld [vmem:[%s12032_s1 + $0xfcc] ss:$16 sps:$4 sm:$0xff]  }
 0x1bf   :  { %5896 = vmatpush1.bf16.msra.mxu0 %v8472_v44  ;;  %6470 = vmatpush1.bf16.msra.mxu1 %v8475_v45  ;;  %v10782_v44 = vld [vmem:[%s12033_s0 + $0x10] sm:$0xff] }
 0x1c0   :  { %5906 = vmatprep.subr.bf16.mxu0 %v8481_v46  ;;  %6480 = vmatprep.subr.bf16.mxu1 %v8484_v35  ;;  %v8563_v45 = vld [vmem:[%s12032_s1 + $0xfc0] ss:$16 sps:$4 sm:$0xff]   ;;  %v8566_v46 = vld [vmem:[%s12032_s1 + $0xfc8] ss:$16 sps:$4 sm:$0xff]   ;;  %v8571_v35 = vld [vmem:[%s12032_s1 + $0xfe4] ss:$16 sps:$4 sm:$0xff]  }
 0x1c2   :  { %5898 = vmatmul.mubr.bf16.vlgmr.msra.gmra.mrb[0].mxu0 %v10605_v48  ;;  %6472 = vmatmul.mubr.bf16.vlgmr.msra.gmra.mrb[0].mxu1 %v10605_v48 }
 0x1c3   :  { %5907 = vmatpush1.bf16.msra.mxu0 %v8479_v50  ;;  %6481 = vmatpush1.bf16.msra.mxu1 %v8482_v51  ;;  %v8574_v50 = vld [vmem:[%s12032_s1 + $0xfec] ss:$16 sps:$4 sm:$0xff]   ;;  %v10798_v51 = vrot.slane %v10782_v44, %v9311_v49 }
 0x1c4   :  { %5908 = vmatprep.subr.bf16.mxu0 %v8487_v53  ;;  %6482 = vmatprep.subr.bf16.mxu1 %v8490_v38  ;;  %v8569_v53 = vld [vmem:[%s12032_s1 + $0xfe0] ss:$16 sps:$4 sm:$0xff]   ;;  %v8572_v38 = vld [vmem:[%s12032_s1 + $0xfe8] ss:$16 sps:$4 sm:$0xff]  }
 0x1c5   :  { %5938 = vmatprep.mubr.bf16.mxu0 %v1037_v54  ;;  %6512 = vmatprep.mubr.bf16.mxu1 %v1037_v54  ;;  %v8577_v54 = vld [vmem:[%s12032_s1 + $0x1004] ss:$16 sps:$4 sm:$0xff]  }
 0x1c7   :  { %5909 = vmatpush1.bf16.msra.mxu0 %v8485_v55  ;;  %6483 = vmatpush1.bf16.msra.mxu1 %v8488_v56  ;;  %v8580_v55 = vld [vmem:[%s12032_s1 + $0x100c] ss:$16 sps:$4 sm:$0xff]   ;;  %v1053_v56 = vcombine.high %v10798_v51, %v10798_v51 }
 0x1c8   :  { %5910 = vmatprep.subr.bf16.mxu0 %v8493_v47  ;;  %6484 = vmatprep.subr.bf16.mxu1 %v8496_v57  ;;  %v1035_v47 = vcombine.high %v10605_v48, %v10605_v48  ;;  %v8575_v57 = vld [vmem:[%s12032_s1 + $0x1000] ss:$16 sps:$4 sm:$0xff]   ;;  %v8586_v48 = vld [vmem:[%s12032_s1 + $0x102c] ss:$16 sps:$4 sm:$0xff]  }
 0x1cb   :  { %5911 = vmatpush1.bf16.msra.mxu0 %v8491_v58  ;;  %6485 = vmatpush1.bf16.msra.mxu1 %v8494_v59  ;;  %v8578_v58 = vld [vmem:[%s12032_s1 + $0x1008] ss:$16 sps:$4 sm:$0xff]   ;;  %v8583_v59 = vld [vmem:[%s12032_s1 + $0x1024] ss:$16 sps:$4 sm:$0xff]  }
 0x1cc   :  { %5912 = vmatprep.subr.bf16.mxu0 %v8499_v60  ;;  %6486 = vmatprep.subr.bf16.mxu1 %v8502_v61  ;;  %v10829_v60 = vrot.slane %v1053_v56, %v9311_v49  ;;  %v8581_v61 = vld [vmem:[%s12032_s1 + $0x1020] ss:$16 sps:$4 sm:$0xff]   ;;  %v8662_v56 = vld [vmem:[%s12032_s1 + $0x11c8] ss:$16 sps:$4 sm:$0xff]  }
 0x1cf   :  { %5913 = vmatpush1.bf16.msra.mxu0 %v8497_v62  ;;  %6487 = vmatpush1.bf16.msra.mxu1 %v8500_v63  ;;  %v8584_v62 = vld [vmem:[%s12032_s1 + $0x1028] ss:$16 sps:$4 sm:$0xff]   ;;  %v8589_v63 = vld [vmem:[%s12032_s1 + $0x1044] ss:$16 sps:$4 sm:$0xff]  }
 0x1d0   :  { %5914 = vmatprep.subr.bf16.mxu0 %v8505_v0  ;;  %6488 = vmatprep.subr.bf16.mxu1 %v8508_v1  ;;  %v8592_v0 = vld [vmem:[%s12032_s1 + $0x104c] ss:$16 sps:$4 sm:$0xff]   ;;  %v8587_v1 = vld [vmem:[%s12032_s1 + $0x1040] ss:$16 sps:$4 sm:$0xff]  }
 0x1d3   :  { %5915 = vmatpush1.bf16.msra.mxu0 %v8503_v2  ;;  %6489 = vmatpush1.bf16.msra.mxu1 %v8506_v3  ;;  %v8590_v2 = vld [vmem:[%s12032_s1 + $0x1048] ss:$16 sps:$4 sm:$0xff]   ;;  %v8595_v3 = vld [vmem:[%s12032_s1 + $0x1064] ss:$16 sps:$4 sm:$0xff]  }
 0x1d4   :  { %5916 = vmatprep.subr.bf16.mxu0 %v8511_v4  ;;  %6490 = vmatprep.subr.bf16.mxu1 %v8514_v5  ;;  %v8598_v4 = vld [vmem:[%s12032_s1 + $0x106c] ss:$16 sps:$4 sm:$0xff]   ;;  %v8593_v5 = vld [vmem:[%s12032_s1 + $0x1060] ss:$16 sps:$4 sm:$0xff]  }
 0x1d7   :  { %5917 = vmatpush1.bf16.msra.mxu0 %v8509_v6  ;;  %6491 = vmatpush1.bf16.msra.mxu1 %v8512_v7  ;;  %v8596_v6 = vld [vmem:[%s12032_s1 + $0x1068] ss:$16 sps:$4 sm:$0xff]   ;;  %v8601_v7 = vld [vmem:[%s12032_s1 + $0x1084] ss:$16 sps:$4 sm:$0xff]  }
 0x1d8   :  { %5918 = vmatprep.subr.bf16.mxu0 %v8517_v8  ;;  %6492 = vmatprep.subr.bf16.mxu1 %v8520_v9  ;;  %v8604_v8 = vld [vmem:[%s12032_s1 + $0x108c] ss:$16 sps:$4 sm:$0xff]   ;;  %v8599_v9 = vld [vmem:[%s12032_s1 + $0x1080] ss:$16 sps:$4 sm:$0xff]  }
 0x1db   :  { %5919 = vmatpush1.bf16.msra.mxu0 %v8515_v10  ;;  %6493 = vmatpush1.bf16.msra.mxu1 %v8518_v11  ;;  %v8602_v10 = vld [vmem:[%s12032_s1 + $0x1088] ss:$16 sps:$4 sm:$0xff]   ;;  %v8607_v11 = vld [vmem:[%s12032_s1 + $0x10a4] ss:$16 sps:$4 sm:$0xff]  }
 0x1dc   :  { %5920 = vmatprep.subr.bf16.mxu0 %v8523_v12  ;;  %6494 = vmatprep.subr.bf16.mxu1 %v8526_v52  ;;  %v8610_v12 = vld [vmem:[%s12032_s1 + $0x10ac] ss:$16 sps:$4 sm:$0xff]   ;;  %v8605_v52 = vld [vmem:[%s12032_s1 + $0x10a0] ss:$16 sps:$4 sm:$0xff]  }
 0x1df   :  { %5921 = vmatpush1.bf16.msra.mxu0 %v8521_v15  ;;  %6495 = vmatpush1.bf16.msra.mxu1 %v8524_v16  ;;  %v8608_v15 = vld [vmem:[%s12032_s1 + $0x10a8] ss:$16 sps:$4 sm:$0xff]   ;;  %v8613_v16 = vld [vmem:[%s12032_s1 + $0x10c4] ss:$16 sps:$4 sm:$0xff]  }
 0x1e0   :  { %5922 = vmatprep.subr.bf16.mxu0 %v8529_v17  ;;  %6496 = vmatprep.subr.bf16.mxu1 %v8532_v18  ;;  %v8616_v17 = vld [vmem:[%s12032_s1 + $0x10cc] ss:$16 sps:$4 sm:$0xff]   ;;  %v8611_v18 = vld [vmem:[%s12032_s1 + $0x10c0] ss:$16 sps:$4 sm:$0xff]  }
 0x1e3   :  { %5923 = vmatpush1.bf16.msra.mxu0 %v8527_v19  ;;  %6497 = vmatpush1.bf16.msra.mxu1 %v8530_v20  ;;  %v8614_v19 = vld [vmem:[%s12032_s1 + $0x10c8] ss:$16 sps:$4 sm:$0xff]   ;;  %v8619_v20 = vld [vmem:[%s12032_s1 + $0x10e4] ss:$16 sps:$4 sm:$0xff]  }
 0x1e4   :  { %5924 = vmatprep.subr.bf16.mxu0 %v8535_v22  ;;  %6498 = vmatprep.subr.bf16.mxu1 %v8538_v23  ;;  %v8622_v22 = vld [vmem:[%s12032_s1 + $0x10ec] ss:$16 sps:$4 sm:$0xff]   ;;  %v8617_v23 = vld [vmem:[%s12032_s1 + $0x10e0] ss:$16 sps:$4 sm:$0xff]  }
 0x1e7   :  { %5925 = vmatpush1.bf16.msra.mxu0 %v8533_v24  ;;  %6499 = vmatpush1.bf16.msra.mxu1 %v8536_v13  ;;  %v8620_v24 = vld [vmem:[%s12032_s1 + $0x10e8] ss:$16 sps:$4 sm:$0xff]   ;;  %v8625_v13 = vld [vmem:[%s12032_s1 + $0x1104] ss:$16 sps:$4 sm:$0xff]  }
 0x1e8   :  { %5926 = vmatprep.subr.bf16.mxu0 %v8541_v27  ;;  %6500 = vmatprep.subr.bf16.mxu1 %v8544_v28  ;;  %v8628_v27 = vld [vmem:[%s12032_s1 + $0x110c] ss:$16 sps:$4 sm:$0xff]   ;;  %v8623_v28 = vld [vmem:[%s12032_s1 + $0x1100] ss:$16 sps:$4 sm:$0xff]  }
 0x1eb   :  { %5927 = vmatpush1.bf16.msra.mxu0 %v8539_v29  ;;  %6501 = vmatpush1.bf16.msra.mxu1 %v8542_v14  ;;  %v8626_v29 = vld [vmem:[%s12032_s1 + $0x1108] ss:$16 sps:$4 sm:$0xff]   ;;  %v8631_v14 = vld [vmem:[%s12032_s1 + $0x1124] ss:$16 sps:$4 sm:$0xff]  }
 0x1ec   :  { %5928 = vmatprep.subr.bf16.mxu0 %v8547_v30  ;;  %6502 = vmatprep.subr.bf16.mxu1 %v8550_v31  ;;  %v8634_v30 = vld [vmem:[%s12032_s1 + $0x112c] ss:$16 sps:$4 sm:$0xff]   ;;  %v8629_v31 = vld [vmem:[%s12032_s1 + $0x1120] ss:$16 sps:$4 sm:$0xff]  }
 0x1ef   :  { %5929 = vmatpush1.bf16.msra.mxu0 %v8545_v25  ;;  %6503 = vmatpush1.bf16.msra.mxu1 %v8548_v32  ;;  %v8632_v25 = vld [vmem:[%s12032_s1 + $0x1128] ss:$16 sps:$4 sm:$0xff]   ;;  %v8637_v32 = vld [vmem:[%s12032_s1 + $0x1144] ss:$16 sps:$4 sm:$0xff]  }
 0x1f0   :  { %5930 = vmatprep.subr.bf16.mxu0 %v8553_v33  ;;  %6504 = vmatprep.subr.bf16.mxu1 %v8556_v26  ;;  %v8640_v33 = vld [vmem:[%s12032_s1 + $0x114c] ss:$16 sps:$4 sm:$0xff]   ;;  %v8635_v26 = vld [vmem:[%s12032_s1 + $0x1140] ss:$16 sps:$4 sm:$0xff]  }
 0x1f3   :  { %5931 = vmatpush1.bf16.msra.mxu0 %v8551_v36  ;;  %6505 = vmatpush1.bf16.msra.mxu1 %v8554_v37  ;;  %v8638_v36 = vld [vmem:[%s12032_s1 + $0x1148] ss:$16 sps:$4 sm:$0xff]   ;;  %v8643_v37 = vld [vmem:[%s12032_s1 + $0x1164] ss:$16 sps:$4 sm:$0xff]  }
 0x1f4   :  { %5932 = vmatprep.subr.bf16.mxu0 %v8559_v21  ;;  %6506 = vmatprep.subr.bf16.mxu1 %v8562_v39  ;;  %v8646_v21 = vld [vmem:[%s12032_s1 + $0x116c] ss:$16 sps:$4 sm:$0xff]   ;;  %v8641_v39 = vld [vmem:[%s12032_s1 + $0x1160] ss:$16 sps:$4 sm:$0xff]  }
 0x1f7   :  { %5933 = vmatpush1.bf16.msra.mxu0 %v8557_v40  ;;  %6507 = vmatpush1.bf16.msra.mxu1 %v8560_v41  ;;  %v8644_v40 = vld [vmem:[%s12032_s1 + $0x1168] ss:$16 sps:$4 sm:$0xff]   ;;  %v8649_v41 = vld [vmem:[%s12032_s1 + $0x1184] ss:$16 sps:$4 sm:$0xff]  }
 0x1f8   :  { %5934 = vmatprep.subr.bf16.mxu0 %v8565_v34  ;;  %6508 = vmatprep.subr.bf16.mxu1 %v8568_v43  ;;  %v8652_v34 = vld [vmem:[%s12032_s1 + $0x118c] ss:$16 sps:$4 sm:$0xff]   ;;  %v8647_v43 = vld [vmem:[%s12032_s1 + $0x1180] ss:$16 sps:$4 sm:$0xff]  }
 0x1fb   :  { %5935 = vmatpush1.bf16.msra.mxu0 %v8563_v45  ;;  %6509 = vmatpush1.bf16.msra.mxu1 %v8566_v46  ;;  %v8650_v45 = vld [vmem:[%s12032_s1 + $0x1188] ss:$16 sps:$4 sm:$0xff]   ;;  %v8655_v46 = vld [vmem:[%s12032_s1 + $0x11a4] ss:$16 sps:$4 sm:$0xff]  }
 0x1fc   :  { %5936 = vmatprep.subr.bf16.mxu0 %v8571_v35  ;;  %6510 = vmatprep.subr.bf16.mxu1 %v8574_v50  ;;  %v8658_v35 = vld [vmem:[%s12032_s1 + $0x11ac] ss:$16 sps:$4 sm:$0xff]   ;;  %v8653_v50 = vld [vmem:[%s12032_s1 + $0x11a0] ss:$16 sps:$4 sm:$0xff]  }
 0x1ff   :  { %5937 = vmatpush1.bf16.msra.mxu0 %v8569_v53  ;;  %6511 = vmatpush1.bf16.msra.mxu1 %v8572_v38  ;;  %v8656_v53 = vld [vmem:[%s12032_s1 + $0x11a8] ss:$16 sps:$4 sm:$0xff]   ;;  %v8661_v38 = vld [vmem:[%s12032_s1 + $0x11c4] ss:$16 sps:$4 sm:$0xff]  }
 0x200   :  { %5947 = vmatprep.subr.bf16.mxu0 %v8577_v54  ;;  %6521 = vmatprep.subr.bf16.mxu1 %v8580_v55  ;;  %v8664_v54 = vld [vmem:[%s12032_s1 + $0x11cc] ss:$16 sps:$4 sm:$0xff]   ;;  %v8659_v55 = vld [vmem:[%s12032_s1 + $0x11c0] ss:$16 sps:$4 sm:$0xff]  }
 0x202   :  { %5939 = vmatmul.mubr.bf16.vlgmr.msra.gmra.mrb[0].mxu0 %v1035_v47  ;;  %6513 = vmatmul.mubr.bf16.vlgmr.msra.gmra.mrb[0].mxu1 %v1035_v47  ;;  %v8667_v47 = vld [vmem:[%s12032_s1 + $0x11e4] ss:$16 sps:$4 sm:$0xff]  }
 0x203   :  { %5948 = vmatpush1.bf16.msra.mxu0 %v8575_v57  ;;  %6522 = vmatpush1.bf16.msra.mxu1 %v8578_v58  ;;  %v8670_v57 = vld [vmem:[%s12032_s1 + $0x11ec] ss:$16 sps:$4 sm:$0xff]   ;;  %v8665_v58 = vld [vmem:[%s12032_s1 + $0x11e0] ss:$16 sps:$4 sm:$0xff]  }
 0x204   :  { %5949 = vmatprep.subr.bf16.mxu0 %v8583_v59  ;;  %6523 = vmatprep.subr.bf16.mxu1 %v8586_v48  ;;  %v8668_v59 = vld [vmem:[%s12032_s1 + $0x11e8] ss:$16 sps:$4 sm:$0xff]   ;;  %v8673_v48 = vld [vmem:[%s12032_s1 + $0x1204] ss:$16 sps:$4 sm:$0xff]  }
 0x205   :  { %5979 = vmatprep.mubr.bf16.mxu0 %v10829_v60  ;;  %6553 = vmatprep.mubr.bf16.mxu1 %v10829_v60 }
 0x207   :  { %5950 = vmatpush1.bf16.msra.mxu0 %v8581_v61  ;;  %6524 = vmatpush1.bf16.msra.mxu1 %v8584_v62  ;;  %v8676_v61 = vld [vmem:[%s12032_s1 + $0x120c] ss:$16 sps:$4 sm:$0xff]   ;;  %v11015_v62 = vrot.slane %v10798_v51, %v9311_v49 }
 0x208   :  { %5951 = vmatprep.subr.bf16.mxu0 %v8589_v63  ;;  %6525 = vmatprep.subr.bf16.mxu1 %v8592_v0  ;;  %v8671_v63 = vld [vmem:[%s12032_s1 + $0x1200] ss:$16 sps:$4 sm:$0xff]   ;;  %v8674_v0 = vld [vmem:[%s12032_s1 + $0x1208] ss:$16 sps:$4 sm:$0xff]   ;;  %v8682_v51 = vld [vmem:[%s12032_s1 + $0x122c] ss:$16 sps:$4 sm:$0xff]  }
 0x20b   :  { %5952 = vmatpush1.bf16.msra.mxu0 %v8587_v1  ;;  %6526 = vmatpush1.bf16.msra.mxu1 %v8590_v2  ;;  %v8679_v1 = vld [vmem:[%s12032_s1 + $0x1224] ss:$16 sps:$4 sm:$0xff]   ;;  %v1085_v2 = vcombine.high %v10829_v60, %v10829_v60 }
 0x20c   :  { %5953 = vmatprep.subr.bf16.mxu0 %v8595_v3  ;;  %6527 = vmatprep.subr.bf16.mxu1 %v8598_v4  ;;  %v8677_v3 = vld [vmem:[%s12032_s1 + $0x1220] ss:$16 sps:$4 sm:$0xff]   ;;  %v8680_v4 = vld [vmem:[%s12032_s1 + $0x1228] ss:$16 sps:$4 sm:$0xff]   ;;  %v8685_v60 = vld [vmem:[%s12032_s1 + $0x1244] ss:$16 sps:$4 sm:$0xff]  }
 0x20f   :  { %5954 = vmatpush1.bf16.msra.mxu0 %v8593_v5  ;;  %6528 = vmatpush1.bf16.msra.mxu1 %v8596_v6  ;;  %v8688_v5 = vld [vmem:[%s12032_s1 + $0x124c] ss:$16 sps:$4 sm:$0xff]   ;;  %v8683_v6 = vld [vmem:[%s12032_s1 + $0x1240] ss:$16 sps:$4 sm:$0xff]  }
 0x210   :  { %5955 = vmatprep.subr.bf16.mxu0 %v8601_v7  ;;  %6529 = vmatprep.subr.bf16.mxu1 %v8604_v8  ;;  %v8686_v7 = vld [vmem:[%s12032_s1 + $0x1248] ss:$16 sps:$4 sm:$0xff]   ;;  %v8691_v8 = vld [vmem:[%s12032_s1 + $0x1264] ss:$16 sps:$4 sm:$0xff]  }
 0x213   :  { %5956 = vmatpush1.bf16.msra.mxu0 %v8599_v9  ;;  %6530 = vmatpush1.bf16.msra.mxu1 %v8602_v10  ;;  %v8694_v9 = vld [vmem:[%s12032_s1 + $0x126c] ss:$16 sps:$4 sm:$0xff]   ;;  %v8689_v10 = vld [vmem:[%s12032_s1 + $0x1260] ss:$16 sps:$4 sm:$0xff]  }
 0x214   :  { %5957 = vmatprep.subr.bf16.mxu0 %v8607_v11  ;;  %6531 = vmatprep.subr.bf16.mxu1 %v8610_v12  ;;  %v8692_v11 = vld [vmem:[%s12032_s1 + $0x1268] ss:$16 sps:$4 sm:$0xff]   ;;  %v8697_v12 = vld [vmem:[%s12032_s1 + $0x1284] ss:$16 sps:$4 sm:$0xff]  }
 0x217   :  { %5958 = vmatpush1.bf16.msra.mxu0 %v8605_v52  ;;  %6532 = vmatpush1.bf16.msra.mxu1 %v8608_v15  ;;  %v8700_v52 = vld [vmem:[%s12032_s1 + $0x128c] ss:$16 sps:$4 sm:$0xff]   ;;  %v8695_v15 = vld [vmem:[%s12032_s1 + $0x1280] ss:$16 sps:$4 sm:$0xff]  }
 0x218   :  { %5959 = vmatprep.subr.bf16.mxu0 %v8613_v16  ;;  %6533 = vmatprep.subr.bf16.mxu1 %v8616_v17  ;;  %v8698_v16 = vld [vmem:[%s12032_s1 + $0x1288] ss:$16 sps:$4 sm:$0xff]   ;;  %v8703_v17 = vld [vmem:[%s12032_s1 + $0x12a4] ss:$16 sps:$4 sm:$0xff]  }
 0x21b   :  { %5960 = vmatpush1.bf16.msra.mxu0 %v8611_v18  ;;  %6534 = vmatpush1.bf16.msra.mxu1 %v8614_v19  ;;  %v8706_v18 = vld [vmem:[%s12032_s1 + $0x12ac] ss:$16 sps:$4 sm:$0xff]   ;;  %v8701_v19 = vld [vmem:[%s12032_s1 + $0x12a0] ss:$16 sps:$4 sm:$0xff]  }
 0x21c   :  { %5961 = vmatprep.subr.bf16.mxu0 %v8619_v20  ;;  %6535 = vmatprep.subr.bf16.mxu1 %v8622_v22  ;;  %v8704_v20 = vld [vmem:[%s12032_s1 + $0x12a8] ss:$16 sps:$4 sm:$0xff]   ;;  %v8709_v22 = vld [vmem:[%s12032_s1 + $0x12c4] ss:$16 sps:$4 sm:$0xff]  }
 0x21f   :  { %5962 = vmatpush1.bf16.msra.mxu0 %v8617_v23  ;;  %6536 = vmatpush1.bf16.msra.mxu1 %v8620_v24  ;;  %v8712_v23 = vld [vmem:[%s12032_s1 + $0x12cc] ss:$16 sps:$4 sm:$0xff]   ;;  %v8707_v24 = vld [vmem:[%s12032_s1 + $0x12c0] ss:$16 sps:$4 sm:$0xff]  }
 0x220   :  { %5963 = vmatprep.subr.bf16.mxu0 %v8625_v13  ;;  %6537 = vmatprep.subr.bf16.mxu1 %v8628_v27  ;;  %v8710_v13 = vld [vmem:[%s12032_s1 + $0x12c8] ss:$16 sps:$4 sm:$0xff]   ;;  %v8715_v27 = vld [vmem:[%s12032_s1 + $0x12e4] ss:$16 sps:$4 sm:$0xff]  }
 0x223   :  { %5964 = vmatpush1.bf16.msra.mxu0 %v8623_v28  ;;  %6538 = vmatpush1.bf16.msra.mxu1 %v8626_v29  ;;  %v8718_v28 = vld [vmem:[%s12032_s1 + $0x12ec] ss:$16 sps:$4 sm:$0xff]   ;;  %v8713_v29 = vld [vmem:[%s12032_s1 + $0x12e0] ss:$16 sps:$4 sm:$0xff]  }
 0x224   :  { %5965 = vmatprep.subr.bf16.mxu0 %v8631_v14  ;;  %6539 = vmatprep.subr.bf16.mxu1 %v8634_v30  ;;  %v8716_v14 = vld [vmem:[%s12032_s1 + $0x12e8] ss:$16 sps:$4 sm:$0xff]   ;;  %v8721_v30 = vld [vmem:[%s12032_s1 + $0x1304] ss:$16 sps:$4 sm:$0xff]  }
 0x227   :  { %5966 = vmatpush1.bf16.msra.mxu0 %v8629_v31  ;;  %6540 = vmatpush1.bf16.msra.mxu1 %v8632_v25  ;;  %v8724_v31 = vld [vmem:[%s12032_s1 + $0x130c] ss:$16 sps:$4 sm:$0xff]   ;;  %v8719_v25 = vld [vmem:[%s12032_s1 + $0x1300] ss:$16 sps:$4 sm:$0xff]  }
 0x228   :  { %5967 = vmatprep.subr.bf16.mxu0 %v8637_v32  ;;  %6541 = vmatprep.subr.bf16.mxu1 %v8640_v33  ;;  %v8722_v32 = vld [vmem:[%s12032_s1 + $0x1308] ss:$16 sps:$4 sm:$0xff]   ;;  %v8727_v33 = vld [vmem:[%s12032_s1 + $0x1324] ss:$16 sps:$4 sm:$0xff]  }
 0x22b   :  { %5968 = vmatpush1.bf16.msra.mxu0 %v8635_v26  ;;  %6542 = vmatpush1.bf16.msra.mxu1 %v8638_v36  ;;  %v8730_v26 = vld [vmem:[%s12032_s1 + $0x132c] ss:$16 sps:$4 sm:$0xff]   ;;  %v8725_v36 = vld [vmem:[%s12032_s1 + $0x1320] ss:$16 sps:$4 sm:$0xff]  }
 0x22c   :  { %5969 = vmatprep.subr.bf16.mxu0 %v8643_v37  ;;  %6543 = vmatprep.subr.bf16.mxu1 %v8646_v21  ;;  %v8728_v37 = vld [vmem:[%s12032_s1 + $0x1328] ss:$16 sps:$4 sm:$0xff]   ;;  %v8733_v21 = vld [vmem:[%s12032_s1 + $0x1344] ss:$16 sps:$4 sm:$0xff]  }
 0x22f   :  { %5970 = vmatpush1.bf16.msra.mxu0 %v8641_v39  ;;  %6544 = vmatpush1.bf16.msra.mxu1 %v8644_v40  ;;  %v8736_v39 = vld [vmem:[%s12032_s1 + $0x134c] ss:$16 sps:$4 sm:$0xff]   ;;  %v8731_v40 = vld [vmem:[%s12032_s1 + $0x1340] ss:$16 sps:$4 sm:$0xff]  }
 0x230   :  { %5971 = vmatprep.subr.bf16.mxu0 %v8649_v41  ;;  %6545 = vmatprep.subr.bf16.mxu1 %v8652_v34  ;;  %v8734_v41 = vld [vmem:[%s12032_s1 + $0x1348] ss:$16 sps:$4 sm:$0xff]   ;;  %v8739_v34 = vld [vmem:[%s12032_s1 + $0x1364] ss:$16 sps:$4 sm:$0xff]  }
 0x233   :  { %5972 = vmatpush1.bf16.msra.mxu0 %v8647_v43  ;;  %6546 = vmatpush1.bf16.msra.mxu1 %v8650_v45  ;;  %v8742_v43 = vld [vmem:[%s12032_s1 + $0x136c] ss:$16 sps:$4 sm:$0xff]   ;;  %v8737_v45 = vld [vmem:[%s12032_s1 + $0x1360] ss:$16 sps:$4 sm:$0xff]  }
 0x234   :  { %5973 = vmatprep.subr.bf16.mxu0 %v8655_v46  ;;  %6547 = vmatprep.subr.bf16.mxu1 %v8658_v35  ;;  %v8740_v46 = vld [vmem:[%s12032_s1 + $0x1368] ss:$16 sps:$4 sm:$0xff]   ;;  %v8745_v35 = vld [vmem:[%s12032_s1 + $0x1384] ss:$16 sps:$4 sm:$0xff]  }
 0x237   :  { %5974 = vmatpush1.bf16.msra.mxu0 %v8653_v50  ;;  %6548 = vmatpush1.bf16.msra.mxu1 %v8656_v53  ;;  %v8748_v50 = vld [vmem:[%s12032_s1 + $0x138c] ss:$16 sps:$4 sm:$0xff]   ;;  %v8743_v53 = vld [vmem:[%s12032_s1 + $0x1380] ss:$16 sps:$4 sm:$0xff]  }
 0x238   :  { %5975 = vmatprep.subr.bf16.mxu0 %v8661_v38  ;;  %6549 = vmatprep.subr.bf16.mxu1 %v8664_v54  ;;  %v8746_v38 = vld [vmem:[%s12032_s1 + $0x1388] ss:$16 sps:$4 sm:$0xff]   ;;  %v8751_v54 = vld [vmem:[%s12032_s1 + $0x13a4] ss:$16 sps:$4 sm:$0xff]  }
 0x23b   :  { %5976 = vmatpush1.bf16.msra.mxu0 %v8659_v55  ;;  %6550 = vmatpush1.bf16.msra.mxu1 %v8662_v56  ;;  %v8754_v55 = vld [vmem:[%s12032_s1 + $0x13ac] ss:$16 sps:$4 sm:$0xff]   ;;  %v8749_v56 = vld [vmem:[%s12032_s1 + $0x13a0] ss:$16 sps:$4 sm:$0xff]  }
 0x23c   :  { %5977 = vmatprep.subr.bf16.mxu0 %v8667_v47  ;;  %6551 = vmatprep.subr.bf16.mxu1 %v8670_v57  ;;  %v8752_v47 = vld [vmem:[%s12032_s1 + $0x13a8] ss:$16 sps:$4 sm:$0xff]   ;;  %v8757_v57 = vld [vmem:[%s12032_s1 + $0x13c4] ss:$16 sps:$4 sm:$0xff]  }
 0x23f   :  { %5978 = vmatpush1.bf16.msra.mxu0 %v8665_v58  ;;  %6552 = vmatpush1.bf16.msra.mxu1 %v8668_v59  ;;  %v8760_v58 = vld [vmem:[%s12032_s1 + $0x13cc] ss:$16 sps:$4 sm:$0xff]   ;;  %v1038_v59 = vcombine.high %v10782_v44, %v10782_v44 }
 0x240   :  { %5988 = vmatprep.subr.bf16.mxu0 %v8673_v48  ;;  %6562 = vmatprep.subr.bf16.mxu1 %v8676_v61  ;;  %v8755_v48 = vld [vmem:[%s12032_s1 + $0x13c0] ss:$16 sps:$4 sm:$0xff]   ;;  %v8758_v61 = vld [vmem:[%s12032_s1 + $0x13c8] ss:$16 sps:$4 sm:$0xff]   ;;  %v8766_v44 = vld [vmem:[%s12032_s1 + $0x13ec] ss:$16 sps:$4 sm:$0xff]  }
 0x242   :  { %5980 = vmatmul.mubr.bf16.vlgmr.msra.gmra.mrb[0].mxu0 %v11015_v62  ;;  %6554 = vmatmul.mubr.bf16.vlgmr.msra.gmra.mrb[0].mxu1 %v11015_v62 }
 0x243   :  { %5989 = vmatpush1.bf16.msra.mxu0 %v8671_v63  ;;  %6563 = vmatpush1.bf16.msra.mxu1 %v8674_v0  ;;  %v8763_v63 = vld [vmem:[%s12032_s1 + $0x13e4] ss:$16 sps:$4 sm:$0xff]   ;;  %v11204_v0 = vrot.slane %v1038_v59, %v9311_v49  ;;  %v8842_v59 = vld [vmem:[%s12032_s1 + $0x1588] ss:$16 sps:$4 sm:$0xff]  }
 0x244   :  { %5990 = vmatprep.subr.bf16.mxu0 %v8679_v1  ;;  %6564 = vmatprep.subr.bf16.mxu1 %v8682_v51  ;;  %v8761_v1 = vld [vmem:[%s12032_s1 + $0x13e0] ss:$16 sps:$4 sm:$0xff]   ;;  %v8764_v51 = vld [vmem:[%s12032_s1 + $0x13e8] ss:$16 sps:$4 sm:$0xff]  }
 0x245   :  { %6020 = vmatprep.mubr.bf16.mxu0 %v1085_v2  ;;  %6594 = vmatprep.mubr.bf16.mxu1 %v1085_v2  ;;  %v8769_v2 = vld [vmem:[%s12032_s1 + $0x1404] ss:$16 sps:$4 sm:$0xff]  }
 0x247   :  { %5991 = vmatpush1.bf16.msra.mxu0 %v8677_v3  ;;  %6565 = vmatpush1.bf16.msra.mxu1 %v8680_v4  ;;  %v8772_v3 = vld [vmem:[%s12032_s1 + $0x140c] ss:$16 sps:$4 sm:$0xff]   ;;  %v1054_v4 = vcombine.high %v11204_v0, %v11204_v0 }
 0x248   :  { %5992 = vmatprep.subr.bf16.mxu0 %v8685_v60  ;;  %6566 = vmatprep.subr.bf16.mxu1 %v8688_v5  ;;  %v1083_v60 = vcombine.high %v11015_v62, %v11015_v62  ;;  %v8767_v5 = vld [vmem:[%s12032_s1 + $0x1400] ss:$16 sps:$4 sm:$0xff]   ;;  %v8778_v62 = vld [vmem:[%s12032_s1 + $0x142c] ss:$16 sps:$4 sm:$0xff]  }
 0x24b   :  { %5993 = vmatpush1.bf16.msra.mxu0 %v8683_v6  ;;  %6567 = vmatpush1.bf16.msra.mxu1 %v8686_v7  ;;  %v8770_v6 = vld [vmem:[%s12032_s1 + $0x1408] ss:$16 sps:$4 sm:$0xff]   ;;  %v8775_v7 = vld [vmem:[%s12032_s1 + $0x1424] ss:$16 sps:$4 sm:$0xff]  }
 0x24c   :  { %5994 = vmatprep.subr.bf16.mxu0 %v8691_v8  ;;  %6568 = vmatprep.subr.bf16.mxu1 %v8694_v9  ;;  %v11235_v8 = vrot.slane %v1054_v4, %v9311_v49  ;;  %v8773_v9 = vld [vmem:[%s12032_s1 + $0x1420] ss:$16 sps:$4 sm:$0xff]   ;;  %v8859_v4 = vld [vmem:[%s12032_s1 + $0x15e4] ss:$16 sps:$4 sm:$0xff]  }
 0x24f   :  { %5995 = vmatpush1.bf16.msra.mxu0 %v8689_v10  ;;  %6569 = vmatpush1.bf16.msra.mxu1 %v8692_v11  ;;  %v8776_v10 = vld [vmem:[%s12032_s1 + $0x1428] ss:$16 sps:$4 sm:$0xff]   ;;  %v8781_v11 = vld [vmem:[%s12032_s1 + $0x1444] ss:$16 sps:$4 sm:$0xff]  }
 0x250   :  { %5996 = vmatprep.subr.bf16.mxu0 %v8697_v12  ;;  %6570 = vmatprep.subr.bf16.mxu1 %v8700_v52  ;;  %v8784_v12 = vld [vmem:[%s12032_s1 + $0x144c] ss:$16 sps:$4 sm:$0xff]   ;;  %v8779_v52 = vld [vmem:[%s12032_s1 + $0x1440] ss:$16 sps:$4 sm:$0xff]  }
 0x253   :  { %5997 = vmatpush1.bf16.msra.mxu0 %v8695_v15  ;;  %6571 = vmatpush1.bf16.msra.mxu1 %v8698_v16  ;;  %v8782_v15 = vld [vmem:[%s12032_s1 + $0x1448] ss:$16 sps:$4 sm:$0xff]   ;;  %v8787_v16 = vld [vmem:[%s12032_s1 + $0x1464] ss:$16 sps:$4 sm:$0xff]  }
 0x254   :  { %5998 = vmatprep.subr.bf16.mxu0 %v8703_v17  ;;  %6572 = vmatprep.subr.bf16.mxu1 %v8706_v18  ;;  %v8790_v17 = vld [vmem:[%s12032_s1 + $0x146c] ss:$16 sps:$4 sm:$0xff]   ;;  %v8785_v18 = vld [vmem:[%s12032_s1 + $0x1460] ss:$16 sps:$4 sm:$0xff]  }
 0x257   :  { %5999 = vmatpush1.bf16.msra.mxu0 %v8701_v19  ;;  %6573 = vmatpush1.bf16.msra.mxu1 %v8704_v20  ;;  %v8788_v19 = vld [vmem:[%s12032_s1 + $0x1468] ss:$16 sps:$4 sm:$0xff]   ;;  %v8793_v20 = vld [vmem:[%s12032_s1 + $0x1484] ss:$16 sps:$4 sm:$0xff]  }
 0x258   :  { %6000 = vmatprep.subr.bf16.mxu0 %v8709_v22  ;;  %6574 = vmatprep.subr.bf16.mxu1 %v8712_v23  ;;  %v8796_v22 = vld [vmem:[%s12032_s1 + $0x148c] ss:$16 sps:$4 sm:$0xff]   ;;  %v8791_v23 = vld [vmem:[%s12032_s1 + $0x1480] ss:$16 sps:$4 sm:$0xff]  }
 0x25b   :  { %6001 = vmatpush1.bf16.msra.mxu0 %v8707_v24  ;;  %6575 = vmatpush1.bf16.msra.mxu1 %v8710_v13  ;;  %v8794_v24 = vld [vmem:[%s12032_s1 + $0x1488] ss:$16 sps:$4 sm:$0xff]   ;;  %v8799_v13 = vld [vmem:[%s12032_s1 + $0x14a4] ss:$16 sps:$4 sm:$0xff]  }
 0x25c   :  { %6002 = vmatprep.subr.bf16.mxu0 %v8715_v27  ;;  %6576 = vmatprep.subr.bf16.mxu1 %v8718_v28  ;;  %v8802_v27 = vld [vmem:[%s12032_s1 + $0x14ac] ss:$16 sps:$4 sm:$0xff]   ;;  %v8797_v28 = vld [vmem:[%s12032_s1 + $0x14a0] ss:$16 sps:$4 sm:$0xff]  }
 0x25f   :  { %6003 = vmatpush1.bf16.msra.mxu0 %v8713_v29  ;;  %6577 = vmatpush1.bf16.msra.mxu1 %v8716_v14  ;;  %v8800_v29 = vld [vmem:[%s12032_s1 + $0x14a8] ss:$16 sps:$4 sm:$0xff]   ;;  %v8805_v14 = vld [vmem:[%s12032_s1 + $0x14c4] ss:$16 sps:$4 sm:$0xff]  }
 0x260   :  { %6004 = vmatprep.subr.bf16.mxu0 %v8721_v30  ;;  %6578 = vmatprep.subr.bf16.mxu1 %v8724_v31  ;;  %v8808_v30 = vld [vmem:[%s12032_s1 + $0x14cc] ss:$16 sps:$4 sm:$0xff]   ;;  %v8803_v31 = vld [vmem:[%s12032_s1 + $0x14c0] ss:$16 sps:$4 sm:$0xff]  }
 0x263   :  { %6005 = vmatpush1.bf16.msra.mxu0 %v8719_v25  ;;  %6579 = vmatpush1.bf16.msra.mxu1 %v8722_v32  ;;  %v8806_v25 = vld [vmem:[%s12032_s1 + $0x14c8] ss:$16 sps:$4 sm:$0xff]   ;;  %v8811_v32 = vld [vmem:[%s12032_s1 + $0x14e4] ss:$16 sps:$4 sm:$0xff]  }
 0x264   :  { %6006 = vmatprep.subr.bf16.mxu0 %v8727_v33  ;;  %6580 = vmatprep.subr.bf16.mxu1 %v8730_v26  ;;  %v8814_v33 = vld [vmem:[%s12032_s1 + $0x14ec] ss:$16 sps:$4 sm:$0xff]   ;;  %v8809_v26 = vld [vmem:[%s12032_s1 + $0x14e0] ss:$16 sps:$4 sm:$0xff]  }
 0x267   :  { %6007 = vmatpush1.bf16.msra.mxu0 %v8725_v36  ;;  %6581 = vmatpush1.bf16.msra.mxu1 %v8728_v37  ;;  %v8812_v36 = vld [vmem:[%s12032_s1 + $0x14e8] ss:$16 sps:$4 sm:$0xff]   ;;  %v8817_v37 = vld [vmem:[%s12032_s1 + $0x1504] ss:$16 sps:$4 sm:$0xff]  }
 0x268   :  { %6008 = vmatprep.subr.bf16.mxu0 %v8733_v21  ;;  %6582 = vmatprep.subr.bf16.mxu1 %v8736_v39  ;;  %v8820_v21 = vld [vmem:[%s12032_s1 + $0x150c] ss:$16 sps:$4 sm:$0xff]   ;;  %v8815_v39 = vld [vmem:[%s12032_s1 + $0x1500] ss:$16 sps:$4 sm:$0xff]  }
 0x26b   :  { %6009 = vmatpush1.bf16.msra.mxu0 %v8731_v40  ;;  %6583 = vmatpush1.bf16.msra.mxu1 %v8734_v41  ;;  %v8818_v40 = vld [vmem:[%s12032_s1 + $0x1508] ss:$16 sps:$4 sm:$0xff]   ;;  %v8823_v41 = vld [vmem:[%s12032_s1 + $0x1524] ss:$16 sps:$4 sm:$0xff]  }
 0x26c   :  { %6010 = vmatprep.subr.bf16.mxu0 %v8739_v34  ;;  %6584 = vmatprep.subr.bf16.mxu1 %v8742_v43  ;;  %v8826_v34 = vld [vmem:[%s12032_s1 + $0x152c] ss:$16 sps:$4 sm:$0xff]   ;;  %v8821_v43 = vld [vmem:[%s12032_s1 + $0x1520] ss:$16 sps:$4 sm:$0xff]  }
 0x26f   :  { %6011 = vmatpush1.bf16.msra.mxu0 %v8737_v45  ;;  %6585 = vmatpush1.bf16.msra.mxu1 %v8740_v46  ;;  %v8824_v45 = vld [vmem:[%s12032_s1 + $0x1528] ss:$16 sps:$4 sm:$0xff]   ;;  %v8829_v46 = vld [vmem:[%s12032_s1 + $0x1544] ss:$16 sps:$4 sm:$0xff]  }
 0x270   :  { %6012 = vmatprep.subr.bf16.mxu0 %v8745_v35  ;;  %6586 = vmatprep.subr.bf16.mxu1 %v8748_v50  ;;  %v8832_v35 = vld [vmem:[%s12032_s1 + $0x154c] ss:$16 sps:$4 sm:$0xff]   ;;  %v8827_v50 = vld [vmem:[%s12032_s1 + $0x1540] ss:$16 sps:$4 sm:$0xff]  }
 0x273   :  { %6013 = vmatpush1.bf16.msra.mxu0 %v8743_v53  ;;  %6587 = vmatpush1.bf16.msra.mxu1 %v8746_v38  ;;  %v8830_v53 = vld [vmem:[%s12032_s1 + $0x1548] ss:$16 sps:$4 sm:$0xff]   ;;  %v8835_v38 = vld [vmem:[%s12032_s1 + $0x1564] ss:$16 sps:$4 sm:$0xff]  }
 0x274   :  { %6014 = vmatprep.subr.bf16.mxu0 %v8751_v54  ;;  %6588 = vmatprep.subr.bf16.mxu1 %v8754_v55  ;;  %v8838_v54 = vld [vmem:[%s12032_s1 + $0x156c] ss:$16 sps:$4 sm:$0xff]   ;;  %v8833_v55 = vld [vmem:[%s12032_s1 + $0x1560] ss:$16 sps:$4 sm:$0xff]  }
 0x277   :  { %6015 = vmatpush1.bf16.msra.mxu0 %v8749_v56  ;;  %6589 = vmatpush1.bf16.msra.mxu1 %v8752_v47  ;;  %v8836_v56 = vld [vmem:[%s12032_s1 + $0x1568] ss:$16 sps:$4 sm:$0xff]   ;;  %v8841_v47 = vld [vmem:[%s12032_s1 + $0x1584] ss:$16 sps:$4 sm:$0xff]  }
 0x278   :  { %6016 = vmatprep.subr.bf16.mxu0 %v8757_v57  ;;  %6590 = vmatprep.subr.bf16.mxu1 %v8760_v58  ;;  %v8844_v57 = vld [vmem:[%s12032_s1 + $0x158c] ss:$16 sps:$4 sm:$0xff]   ;;  %v8839_v58 = vld [vmem:[%s12032_s1 + $0x1580] ss:$16 sps:$4 sm:$0xff]  }
 0x27b   :  { %6017 = vmatpush1.bf16.msra.mxu0 %v8755_v48  ;;  %6591 = vmatpush1.bf16.msra.mxu1 %v8758_v61  ;;  %v8847_v48 = vld [vmem:[%s12032_s1 + $0x15a4] ss:$16 sps:$4 sm:$0xff]   ;;  %v8850_v61 = vld [vmem:[%s12032_s1 + $0x15ac] ss:$16 sps:$4 sm:$0xff]  }
 0x27c   :  { %6018 = vmatprep.subr.bf16.mxu0 %v8763_v63  ;;  %6592 = vmatprep.subr.bf16.mxu1 %v8766_v44  ;;  %v8845_v63 = vld [vmem:[%s12032_s1 + $0x15a0] ss:$16 sps:$4 sm:$0xff]   ;;  %v8848_v44 = vld [vmem:[%s12032_s1 + $0x15a8] ss:$16 sps:$4 sm:$0xff]  }
 0x27f   :  { %6019 = vmatpush1.bf16.msra.mxu0 %v8761_v1  ;;  %6593 = vmatpush1.bf16.msra.mxu1 %v8764_v51  ;;  %v8853_v1 = vld [vmem:[%s12032_s1 + $0x15c4] ss:$16 sps:$4 sm:$0xff]   ;;  %v8856_v51 = vld [vmem:[%s12032_s1 + $0x15cc] ss:$16 sps:$4 sm:$0xff]  }
 0x280   :  { %6029 = vmatprep.subr.bf16.mxu0 %v8769_v2  ;;  %6603 = vmatprep.subr.bf16.mxu1 %v8772_v3  ;;  %v8851_v2 = vld [vmem:[%s12032_s1 + $0x15c0] ss:$16 sps:$4 sm:$0xff]   ;;  %v8854_v3 = vld [vmem:[%s12032_s1 + $0x15c8] ss:$16 sps:$4 sm:$0xff]  }
 0x282   :  { %6021 = vmatmul.mubr.bf16.vlgmr.msra.gmra.mrb[0].mxu0 %v1083_v60  ;;  %6595 = vmatmul.mubr.bf16.vlgmr.msra.gmra.mrb[0].mxu1 %v1083_v60  ;;  %v8862_v60 = vld [vmem:[%s12032_s1 + $0x15ec] ss:$16 sps:$4 sm:$0xff]  }
 0x283   :  { %6030 = vmatpush1.bf16.msra.mxu0 %v8767_v5  ;;  %6604 = vmatpush1.bf16.msra.mxu1 %v8770_v6  ;;  %v8857_v5 = vld [vmem:[%s12032_s1 + $0x15e0] ss:$16 sps:$4 sm:$0xff]   ;;  %v8860_v6 = vld [vmem:[%s12032_s1 + $0x15e8] ss:$16 sps:$4 sm:$0xff]  }
 0x284   :  { %6031 = vmatprep.subr.bf16.mxu0 %v8775_v7  ;;  %6605 = vmatprep.subr.bf16.mxu1 %v8778_v62  ;;  %v8866_v7 = vld [vmem:[%s12032_s1 + $0x1604] ss:$16 sps:$4 sm:$0xff]   ;;  %v8869_v62 = vld [vmem:[%s12032_s1 + $0x160c] ss:$16 sps:$4 sm:$0xff]  }
 0x285   :  { %6061 = vmatprep.mubr.bf16.mxu0 %v11235_v8  ;;  %6635 = vmatprep.mubr.bf16.mxu1 %v11235_v8 }
 0x287   :  { %6032 = vmatpush1.bf16.msra.mxu0 %v8773_v9  ;;  %6606 = vmatpush1.bf16.msra.mxu1 %v8776_v10  ;;  %v11421_v9 = vrot.slane %v11204_v0, %v9311_v49  ;;  %v8864_v10 = vld [vmem:[%s12032_s1 + $0x1600] ss:$16 sps:$4 sm:$0xff]   ;;  %v8875_v0 = vld [vmem:[%s12032_s1 + $0x162c] ss:$16 sps:$4 sm:$0xff]  }
 0x288   :  { %6033 = vmatprep.subr.bf16.mxu0 %v8781_v11  ;;  %6607 = vmatprep.subr.bf16.mxu1 %v8784_v12  ;;  %v8867_v11 = vld [vmem:[%s12032_s1 + $0x1608] ss:$16 sps:$4 sm:$0xff]   ;;  %v8872_v12 = vld [vmem:[%s12032_s1 + $0x1624] ss:$16 sps:$4 sm:$0xff]  }
 0x28b   :  { %6034 = vmatpush1.bf16.msra.mxu0 %v8779_v52  ;;  %6608 = vmatpush1.bf16.msra.mxu1 %v8782_v15  ;;  %v1086_v52 = vcombine.high %v11235_v8, %v11235_v8  ;;  %v8870_v15 = vld [vmem:[%s12032_s1 + $0x1620] ss:$16 sps:$4 sm:$0xff]   ;;  %v8878_v8 = vld [vmem:[%s12032_s1 + $0x1644] ss:$16 sps:$4 sm:$0xff]  }
 0x28c   :  { %6035 = vmatprep.subr.bf16.mxu0 %v8787_v16  ;;  %6609 = vmatprep.subr.bf16.mxu1 %v8790_v17  ;;  %v8873_v16 = vld [vmem:[%s12032_s1 + $0x1628] ss:$16 sps:$4 sm:$0xff]   ;;  %v8881_v17 = vld [vmem:[%s12032_s1 + $0x164c] ss:$16 sps:$4 sm:$0xff]  }
 0x28f   :  { %6036 = vmatpush1.bf16.msra.mxu0 %v8785_v18  ;;  %6610 = vmatpush1.bf16.msra.mxu1 %v8788_v19  ;;  %v8876_v18 = vld [vmem:[%s12032_s1 + $0x1640] ss:$16 sps:$4 sm:$0xff]   ;;  %v8879_v19 = vld [vmem:[%s12032_s1 + $0x1648] ss:$16 sps:$4 sm:$0xff]  }
 0x290   :  { %6037 = vmatprep.subr.bf16.mxu0 %v8793_v20  ;;  %6611 = vmatprep.subr.bf16.mxu1 %v8796_v22  ;;  %v8884_v20 = vld [vmem:[%s12032_s1 + $0x1664] ss:$16 sps:$4 sm:$0xff]   ;;  %v8887_v22 = vld [vmem:[%s12032_s1 + $0x166c] ss:$16 sps:$4 sm:$0xff]  }
 0x293   :  { %6038 = vmatpush1.bf16.msra.mxu0 %v8791_v23  ;;  %6612 = vmatpush1.bf16.msra.mxu1 %v8794_v24  ;;  %v8882_v23 = vld [vmem:[%s12032_s1 + $0x1660] ss:$16 sps:$4 sm:$0xff]   ;;  %v8885_v24 = vld [vmem:[%s12032_s1 + $0x1668] ss:$16 sps:$4 sm:$0xff]  }
 0x294   :  { %6039 = vmatprep.subr.bf16.mxu0 %v8799_v13  ;;  %6613 = vmatprep.subr.bf16.mxu1 %v8802_v27  ;;  %v8890_v13 = vld [vmem:[%s12032_s1 + $0x1684] ss:$16 sps:$4 sm:$0xff]   ;;  %v8893_v27 = vld [vmem:[%s12032_s1 + $0x168c] ss:$16 sps:$4 sm:$0xff]  }
 0x297   :  { %6040 = vmatpush1.bf16.msra.mxu0 %v8797_v28  ;;  %6614 = vmatpush1.bf16.msra.mxu1 %v8800_v29  ;;  %v8888_v28 = vld [vmem:[%s12032_s1 + $0x1680] ss:$16 sps:$4 sm:$0xff]   ;;  %v8891_v29 = vld [vmem:[%s12032_s1 + $0x1688] ss:$16 sps:$4 sm:$0xff]  }
 0x298   :  { %6041 = vmatprep.subr.bf16.mxu0 %v8805_v14  ;;  %6615 = vmatprep.subr.bf16.mxu1 %v8808_v30  ;;  %v8896_v14 = vld [vmem:[%s12032_s1 + $0x16a4] ss:$16 sps:$4 sm:$0xff]   ;;  %v8899_v30 = vld [vmem:[%s12032_s1 + $0x16ac] ss:$16 sps:$4 sm:$0xff]  }
 0x29b   :  { %6042 = vmatpush1.bf16.msra.mxu0 %v8803_v31  ;;  %6616 = vmatpush1.bf16.msra.mxu1 %v8806_v25  ;;  %v8894_v31 = vld [vmem:[%s12032_s1 + $0x16a0] ss:$16 sps:$4 sm:$0xff]   ;;  %v8897_v25 = vld [vmem:[%s12032_s1 + $0x16a8] ss:$16 sps:$4 sm:$0xff]  }
 0x29c   :  { %6043 = vmatprep.subr.bf16.mxu0 %v8811_v32  ;;  %6617 = vmatprep.subr.bf16.mxu1 %v8814_v33  ;;  %v8902_v32 = vld [vmem:[%s12032_s1 + $0x16c4] ss:$16 sps:$4 sm:$0xff]   ;;  %v8905_v33 = vld [vmem:[%s12032_s1 + $0x16cc] ss:$16 sps:$4 sm:$0xff]  }
 0x29f   :  { %6044 = vmatpush1.bf16.msra.mxu0 %v8809_v26  ;;  %6618 = vmatpush1.bf16.msra.mxu1 %v8812_v36  ;;  %v8900_v26 = vld [vmem:[%s12032_s1 + $0x16c0] ss:$16 sps:$4 sm:$0xff]   ;;  %v8903_v36 = vld [vmem:[%s12032_s1 + $0x16c8] ss:$16 sps:$4 sm:$0xff]  }
 0x2a0   :  { %6045 = vmatprep.subr.bf16.mxu0 %v8817_v37  ;;  %6619 = vmatprep.subr.bf16.mxu1 %v8820_v21  ;;  %v8908_v37 = vld [vmem:[%s12032_s1 + $0x16e4] ss:$16 sps:$4 sm:$0xff]   ;;  %v8911_v21 = vld [vmem:[%s12032_s1 + $0x16ec] ss:$16 sps:$4 sm:$0xff]  }
 0x2a3   :  { %6046 = vmatpush1.bf16.msra.mxu0 %v8815_v39  ;;  %6620 = vmatpush1.bf16.msra.mxu1 %v8818_v40  ;;  %v8906_v39 = vld [vmem:[%s12032_s1 + $0x16e0] ss:$16 sps:$4 sm:$0xff]   ;;  %v8909_v40 = vld [vmem:[%s12032_s1 + $0x16e8] ss:$16 sps:$4 sm:$0xff]  }
 0x2a4   :  { %6047 = vmatprep.subr.bf16.mxu0 %v8823_v41  ;;  %6621 = vmatprep.subr.bf16.mxu1 %v8826_v34  ;;  %v8914_v41 = vld [vmem:[%s12032_s1 + $0x1704] ss:$16 sps:$4 sm:$0xff]   ;;  %v8917_v34 = vld [vmem:[%s12032_s1 + $0x170c] ss:$16 sps:$4 sm:$0xff]  }
 0x2a7   :  { %6048 = vmatpush1.bf16.msra.mxu0 %v8821_v43  ;;  %6622 = vmatpush1.bf16.msra.mxu1 %v8824_v45  ;;  %v8912_v43 = vld [vmem:[%s12032_s1 + $0x1700] ss:$16 sps:$4 sm:$0xff]   ;;  %v8915_v45 = vld [vmem:[%s12032_s1 + $0x1708] ss:$16 sps:$4 sm:$0xff]  }
 0x2a8   :  { %6049 = vmatprep.subr.bf16.mxu0 %v8829_v46  ;;  %6623 = vmatprep.subr.bf16.mxu1 %v8832_v35  ;;  %v8920_v46 = vld [vmem:[%s12032_s1 + $0x1724] ss:$16 sps:$4 sm:$0xff]   ;;  %v8923_v35 = vld [vmem:[%s12032_s1 + $0x172c] ss:$16 sps:$4 sm:$0xff]  }
 0x2ab   :  { %6050 = vmatpush1.bf16.msra.mxu0 %v8827_v50  ;;  %6624 = vmatpush1.bf16.msra.mxu1 %v8830_v53  ;;  %v8918_v50 = vld [vmem:[%s12032_s1 + $0x1720] ss:$16 sps:$4 sm:$0xff]   ;;  %v8921_v53 = vld [vmem:[%s12032_s1 + $0x1728] ss:$16 sps:$4 sm:$0xff]  }
 0x2ac   :  { %6051 = vmatprep.subr.bf16.mxu0 %v8835_v38  ;;  %6625 = vmatprep.subr.bf16.mxu1 %v8838_v54  ;;  %v8926_v38 = vld [vmem:[%s12032_s1 + $0x1744] ss:$16 sps:$4 sm:$0xff]   ;;  %v8929_v54 = vld [vmem:[%s12032_s1 + $0x174c] ss:$16 sps:$4 sm:$0xff]  }
 0x2af   :  { %6052 = vmatpush1.bf16.msra.mxu0 %v8833_v55  ;;  %6626 = vmatpush1.bf16.msra.mxu1 %v8836_v56  ;;  %v8924_v55 = vld [vmem:[%s12032_s1 + $0x1740] ss:$16 sps:$4 sm:$0xff]   ;;  %v8927_v56 = vld [vmem:[%s12032_s1 + $0x1748] ss:$16 sps:$4 sm:$0xff]  }
 0x2b0   :  { %6053 = vmatprep.subr.bf16.mxu0 %v8841_v47  ;;  %6627 = vmatprep.subr.bf16.mxu1 %v8844_v57  ;;  %v8932_v47 = vld [vmem:[%s12032_s1 + $0x1764] ss:$16 sps:$4 sm:$0xff]   ;;  %v8935_v57 = vld [vmem:[%s12032_s1 + $0x176c] ss:$16 sps:$4 sm:$0xff]  }
 0x2b3   :  { %6054 = vmatpush1.bf16.msra.mxu0 %v8839_v58  ;;  %6628 = vmatpush1.bf16.msra.mxu1 %v8842_v59  ;;  %v8930_v58 = vld [vmem:[%s12032_s1 + $0x1760] ss:$16 sps:$4 sm:$0xff]   ;;  %v8933_v59 = vld [vmem:[%s12032_s1 + $0x1768] ss:$16 sps:$4 sm:$0xff]  }
 0x2b4   :  { %6055 = vmatprep.subr.bf16.mxu0 %v8847_v48  ;;  %6629 = vmatprep.subr.bf16.mxu1 %v8850_v61  ;;  %v8938_v48 = vld [vmem:[%s12032_s1 + $0x1784] ss:$16 sps:$4 sm:$0xff]   ;;  %v8941_v61 = vld [vmem:[%s12032_s1 + $0x178c] ss:$16 sps:$4 sm:$0xff]  }
 0x2b7   :  { %6056 = vmatpush1.bf16.msra.mxu0 %v8845_v63  ;;  %6630 = vmatpush1.bf16.msra.mxu1 %v8848_v44  ;;  %v8936_v63 = vld [vmem:[%s12032_s1 + $0x1780] ss:$16 sps:$4 sm:$0xff]   ;;  %v8939_v44 = vld [vmem:[%s12032_s1 + $0x1788] ss:$16 sps:$4 sm:$0xff]  }
 0x2b8   :  { %6057 = vmatprep.subr.bf16.mxu0 %v8853_v1  ;;  %6631 = vmatprep.subr.bf16.mxu1 %v8856_v51  ;;  %v8944_v1 = vld [vmem:[%s12032_s1 + $0x17a4] ss:$16 sps:$4 sm:$0xff]   ;;  %v8947_v51 = vld [vmem:[%s12032_s1 + $0x17ac] ss:$16 sps:$4 sm:$0xff]  }
 0x2bb   :  { %6058 = vmatpush1.bf16.msra.mxu0 %v8851_v2  ;;  %6632 = vmatpush1.bf16.msra.mxu1 %v8854_v3  ;;  %v8942_v2 = vld [vmem:[%s12032_s1 + $0x17a0] ss:$16 sps:$4 sm:$0xff]   ;;  %v8945_v3 = vld [vmem:[%s12032_s1 + $0x17a8] ss:$16 sps:$4 sm:$0xff]  }
 0x2bc   :  { %6059 = vmatprep.subr.bf16.mxu0 %v8859_v4  ;;  %6633 = vmatprep.subr.bf16.mxu1 %v8862_v60  ;;  %v8950_v4 = vld [vmem:[%s12032_s1 + $0x17c4] ss:$16 sps:$4 sm:$0xff]   ;;  %v8953_v60 = vld [vmem:[%s12032_s1 + $0x17cc] ss:$16 sps:$4 sm:$0xff]  }
 0x2bf   :  { %6060 = vmatpush1.bf16.msra.mxu0 %v8857_v5  ;;  %6634 = vmatpush1.bf16.msra.mxu1 %v8860_v6  ;;  %v8948_v5 = vld [vmem:[%s12032_s1 + $0x17c0] ss:$16 sps:$4 sm:$0xff]   ;;  %v8951_v6 = vld [vmem:[%s12032_s1 + $0x17c8] ss:$16 sps:$4 sm:$0xff]  }
 0x2c0   :  { %6070 = vmatprep.subr.bf16.mxu0 %v8866_v7  ;;  %6644 = vmatprep.subr.bf16.mxu1 %v8869_v62  ;;  %v8956_v7 = vld [vmem:[%s12032_s1 + $0x17e4] ss:$16 sps:$4 sm:$0xff]   ;;  %v8959_v62 = vld [vmem:[%s12032_s1 + $0x17ec] ss:$16 sps:$4 sm:$0xff]  }
 0x2c2   :  { %6062 = vmatmul.mubr.bf16.vlgmr.msra.gmra.mrb[0].mxu0 %v11421_v9  ;;  %6636 = vmatmul.mubr.bf16.vlgmr.msra.gmra.mrb[0].mxu1 %v11421_v9 }
 0x2c3   :  { %6071 = vmatpush1.bf16.msra.mxu0 %v8864_v10  ;;  %6645 = vmatpush1.bf16.msra.mxu1 %v8867_v11  ;;  %v11610_v10 = vld.sshfl [vmem:[%s12033_s0 + $0x18] sm:$0x33 pattern:$0x75316420]  ;;  %v8954_v11 = vld [vmem:[%s12032_s1 + $0x17e0] ss:$16 sps:$4 sm:$0xff]  }
 0x2c4   :  { %6072 = vmatprep.subr.bf16.mxu0 %v8872_v12  ;;  %6646 = vmatprep.subr.bf16.mxu1 %v8875_v0  ;;  %v8957_v12 = vld [vmem:[%s12032_s1 + $0x17e8] ss:$16 sps:$4 sm:$0xff]   ;;  %v8962_v0 = vld [vmem:[%s12032_s1 + $0x1804] ss:$16 sps:$4 sm:$0xff]  }
 0x2c5   :  { %6102 = vmatprep.mubr.bf16.mxu0 %v1086_v52  ;;  %6676 = vmatprep.mubr.bf16.mxu1 %v1086_v52  ;;  %v8965_v52 = vld [vmem:[%s12032_s1 + $0x180c] ss:$16 sps:$4 sm:$0xff]  }
 0x2c7   :  { %6073 = vmatpush1.bf16.msra.mxu0 %v8870_v15  ;;  %6647 = vmatpush1.bf16.msra.mxu1 %v8873_v16  ;;  %v1094_v15 = vcombine.high %v11610_v10, %v11610_v10  ;;  %v1084_v16 = vcombine.high %v11421_v9, %v11421_v9  ;;  %v8971_v9 = vld [vmem:[%s12032_s1 + $0x182c] ss:$16 sps:$4 sm:$0xff]  }
 0x2c8   :  { %6074 = vmatprep.subr.bf16.mxu0 %v8878_v8  ;;  %6648 = vmatprep.subr.bf16.mxu1 %v8881_v17  ;;  %v8960_v8 = vld [vmem:[%s12032_s1 + $0x1800] ss:$16 sps:$4 sm:$0xff]   ;;  %v8963_v17 = vld [vmem:[%s12032_s1 + $0x1808] ss:$16 sps:$4 sm:$0xff]  }
 0x2cb   :  { %6075 = vmatpush1.bf16.msra.mxu0 %v8876_v18  ;;  %6649 = vmatpush1.bf16.msra.mxu1 %v8879_v19  ;;  %v8968_v18 = vld [vmem:[%s12032_s1 + $0x1824] ss:$16 sps:$4 sm:$0xff]   ;;  %v11641_v19 = vrot.slane %v1094_v15, %v9311_v49 }
 0x2cc   :  { %6076 = vmatprep.subr.bf16.mxu0 %v8884_v20  ;;  %6650 = vmatprep.subr.bf16.mxu1 %v8887_v22  ;;  %v8966_v20 = vld [vmem:[%s12032_s1 + $0x1820] ss:$16 sps:$4 sm:$0xff]   ;;  %v8969_v22 = vld [vmem:[%s12032_s1 + $0x1828] ss:$16 sps:$4 sm:$0xff]   ;;  %v9052_v15 = vld [vmem:[%s12032_s1 + $0x19e4] ss:$16 sps:$4 sm:$0xff]  }
 0x2cf   :  { %6077 = vmatpush1.bf16.msra.mxu0 %v8882_v23  ;;  %6651 = vmatpush1.bf16.msra.mxu1 %v8885_v24  ;;  %v8974_v23 = vld [vmem:[%s12032_s1 + $0x1844] ss:$16 sps:$4 sm:$0xff]   ;;  %v8977_v24 = vld [vmem:[%s12032_s1 + $0x184c] ss:$16 sps:$4 sm:$0xff]  }
 0x2d0   :  { %6078 = vmatprep.subr.bf16.mxu0 %v8890_v13  ;;  %6652 = vmatprep.subr.bf16.mxu1 %v8893_v27  ;;  %v8972_v13 = vld [vmem:[%s12032_s1 + $0x1840] ss:$16 sps:$4 sm:$0xff]   ;;  %v8975_v27 = vld [vmem:[%s12032_s1 + $0x1848] ss:$16 sps:$4 sm:$0xff]  }
 0x2d3   :  { %6079 = vmatpush1.bf16.msra.mxu0 %v8888_v28  ;;  %6653 = vmatpush1.bf16.msra.mxu1 %v8891_v29  ;;  %v8980_v28 = vld [vmem:[%s12032_s1 + $0x1864] ss:$16 sps:$4 sm:$0xff]   ;;  %v8983_v29 = vld [vmem:[%s12032_s1 + $0x186c] ss:$16 sps:$4 sm:$0xff]  }
 0x2d4   :  { %6080 = vmatprep.subr.bf16.mxu0 %v8896_v14  ;;  %6654 = vmatprep.subr.bf16.mxu1 %v8899_v30  ;;  %v8978_v14 = vld [vmem:[%s12032_s1 + $0x1860] ss:$16 sps:$4 sm:$0xff]   ;;  %v8981_v30 = vld [vmem:[%s12032_s1 + $0x1868] ss:$16 sps:$4 sm:$0xff]  }
 0x2d7   :  { %6081 = vmatpush1.bf16.msra.mxu0 %v8894_v31  ;;  %6655 = vmatpush1.bf16.msra.mxu1 %v8897_v25  ;;  %v8986_v31 = vld [vmem:[%s12032_s1 + $0x1884] ss:$16 sps:$4 sm:$0xff]   ;;  %v8989_v25 = vld [vmem:[%s12032_s1 + $0x188c] ss:$16 sps:$4 sm:$0xff]  }
 0x2d8   :  { %6082 = vmatprep.subr.bf16.mxu0 %v8902_v32  ;;  %6656 = vmatprep.subr.bf16.mxu1 %v8905_v33  ;;  %v8984_v32 = vld [vmem:[%s12032_s1 + $0x1880] ss:$16 sps:$4 sm:$0xff]   ;;  %v8987_v33 = vld [vmem:[%s12032_s1 + $0x1888] ss:$16 sps:$4 sm:$0xff]  }
 0x2db   :  { %6083 = vmatpush1.bf16.msra.mxu0 %v8900_v26  ;;  %6657 = vmatpush1.bf16.msra.mxu1 %v8903_v36  ;;  %v8992_v26 = vld [vmem:[%s12032_s1 + $0x18a4] ss:$16 sps:$4 sm:$0xff]   ;;  %v8995_v36 = vld [vmem:[%s12032_s1 + $0x18ac] ss:$16 sps:$4 sm:$0xff]  }
 0x2dc   :  { %6084 = vmatprep.subr.bf16.mxu0 %v8908_v37  ;;  %6658 = vmatprep.subr.bf16.mxu1 %v8911_v21  ;;  %v8990_v37 = vld [vmem:[%s12032_s1 + $0x18a0] ss:$16 sps:$4 sm:$0xff]   ;;  %v8993_v21 = vld [vmem:[%s12032_s1 + $0x18a8] ss:$16 sps:$4 sm:$0xff]  }
 0x2df   :  { %6085 = vmatpush1.bf16.msra.mxu0 %v8906_v39  ;;  %6659 = vmatpush1.bf16.msra.mxu1 %v8909_v40  ;;  %v8998_v39 = vld [vmem:[%s12032_s1 + $0x18c4] ss:$16 sps:$4 sm:$0xff]   ;;  %v9001_v40 = vld [vmem:[%s12032_s1 + $0x18cc] ss:$16 sps:$4 sm:$0xff]  }
 0x2e0   :  { %6086 = vmatprep.subr.bf16.mxu0 %v8914_v41  ;;  %6660 = vmatprep.subr.bf16.mxu1 %v8917_v34  ;;  %v8996_v41 = vld [vmem:[%s12032_s1 + $0x18c0] ss:$16 sps:$4 sm:$0xff]   ;;  %v8999_v34 = vld [vmem:[%s12032_s1 + $0x18c8] ss:$16 sps:$4 sm:$0xff]  }
 0x2e3   :  { %6087 = vmatpush1.bf16.msra.mxu0 %v8912_v43  ;;  %6661 = vmatpush1.bf16.msra.mxu1 %v8915_v45  ;;  %v9004_v43 = vld [vmem:[%s12032_s1 + $0x18e4] ss:$16 sps:$4 sm:$0xff]   ;;  %v9007_v45 = vld [vmem:[%s12032_s1 + $0x18ec] ss:$16 sps:$4 sm:$0xff]  }
 0x2e4   :  { %6088 = vmatprep.subr.bf16.mxu0 %v8920_v46  ;;  %6662 = vmatprep.subr.bf16.mxu1 %v8923_v35  ;;  %v9002_v46 = vld [vmem:[%s12032_s1 + $0x18e0] ss:$16 sps:$4 sm:$0xff]   ;;  %v9005_v35 = vld [vmem:[%s12032_s1 + $0x18e8] ss:$16 sps:$4 sm:$0xff]  }
 0x2e7   :  { %6089 = vmatpush1.bf16.msra.mxu0 %v8918_v50  ;;  %6663 = vmatpush1.bf16.msra.mxu1 %v8921_v53  ;;  %v9010_v50 = vld [vmem:[%s12032_s1 + $0x1904] ss:$16 sps:$4 sm:$0xff]   ;;  %v9013_v53 = vld [vmem:[%s12032_s1 + $0x190c] ss:$16 sps:$4 sm:$0xff]  }
 0x2e8   :  { %6090 = vmatprep.subr.bf16.mxu0 %v8926_v38  ;;  %6664 = vmatprep.subr.bf16.mxu1 %v8929_v54  ;;  %v9008_v38 = vld [vmem:[%s12032_s1 + $0x1900] ss:$16 sps:$4 sm:$0xff]   ;;  %v9011_v54 = vld [vmem:[%s12032_s1 + $0x1908] ss:$16 sps:$4 sm:$0xff]  }
 0x2eb   :  { %6091 = vmatpush1.bf16.msra.mxu0 %v8924_v55  ;;  %6665 = vmatpush1.bf16.msra.mxu1 %v8927_v56  ;;  %v9016_v55 = vld [vmem:[%s12032_s1 + $0x1924] ss:$16 sps:$4 sm:$0xff]   ;;  %v9019_v56 = vld [vmem:[%s12032_s1 + $0x192c] ss:$16 sps:$4 sm:$0xff]  }
 0x2ec   :  { %6092 = vmatprep.subr.bf16.mxu0 %v8932_v47  ;;  %6666 = vmatprep.subr.bf16.mxu1 %v8935_v57  ;;  %v9014_v47 = vld [vmem:[%s12032_s1 + $0x1920] ss:$16 sps:$4 sm:$0xff]   ;;  %v9017_v57 = vld [vmem:[%s12032_s1 + $0x1928] ss:$16 sps:$4 sm:$0xff]  }
 0x2ef   :  { %6093 = vmatpush1.bf16.msra.mxu0 %v8930_v58  ;;  %6667 = vmatpush1.bf16.msra.mxu1 %v8933_v59  ;;  %v9022_v58 = vld [vmem:[%s12032_s1 + $0x1944] ss:$16 sps:$4 sm:$0xff]   ;;  %v9025_v59 = vld [vmem:[%s12032_s1 + $0x194c] ss:$16 sps:$4 sm:$0xff]  }
 0x2f0   :  { %6094 = vmatprep.subr.bf16.mxu0 %v8938_v48  ;;  %6668 = vmatprep.subr.bf16.mxu1 %v8941_v61  ;;  %v9020_v48 = vld [vmem:[%s12032_s1 + $0x1940] ss:$16 sps:$4 sm:$0xff]   ;;  %v9023_v61 = vld [vmem:[%s12032_s1 + $0x1948] ss:$16 sps:$4 sm:$0xff]  }
 0x2f3   :  { %6095 = vmatpush1.bf16.msra.mxu0 %v8936_v63  ;;  %6669 = vmatpush1.bf16.msra.mxu1 %v8939_v44  ;;  %v9028_v63 = vld [vmem:[%s12032_s1 + $0x1964] ss:$16 sps:$4 sm:$0xff]   ;;  %v9031_v44 = vld [vmem:[%s12032_s1 + $0x196c] ss:$16 sps:$4 sm:$0xff]  }
 0x2f4   :  { %6096 = vmatprep.subr.bf16.mxu0 %v8944_v1  ;;  %6670 = vmatprep.subr.bf16.mxu1 %v8947_v51  ;;  %v9026_v1 = vld [vmem:[%s12032_s1 + $0x1960] ss:$16 sps:$4 sm:$0xff]   ;;  %v9029_v51 = vld [vmem:[%s12032_s1 + $0x1968] ss:$16 sps:$4 sm:$0xff]  }
 0x2f7   :  { %6097 = vmatpush1.bf16.msra.mxu0 %v8942_v2  ;;  %6671 = vmatpush1.bf16.msra.mxu1 %v8945_v3  ;;  %v9034_v2 = vld [vmem:[%s12032_s1 + $0x1984] ss:$16 sps:$4 sm:$0xff]   ;;  %v9037_v3 = vld [vmem:[%s12032_s1 + $0x198c] ss:$16 sps:$4 sm:$0xff]  }
 0x2f8   :  { %6098 = vmatprep.subr.bf16.mxu0 %v8950_v4  ;;  %6672 = vmatprep.subr.bf16.mxu1 %v8953_v60  ;;  %v9032_v4 = vld [vmem:[%s12032_s1 + $0x1980] ss:$16 sps:$4 sm:$0xff]   ;;  %v9035_v60 = vld [vmem:[%s12032_s1 + $0x1988] ss:$16 sps:$4 sm:$0xff]  }
 0x2fb   :  { %6099 = vmatpush1.bf16.msra.mxu0 %v8948_v5  ;;  %6673 = vmatpush1.bf16.msra.mxu1 %v8951_v6  ;;  %v9040_v5 = vld [vmem:[%s12032_s1 + $0x19a4] ss:$16 sps:$4 sm:$0xff]   ;;  %v9043_v6 = vld [vmem:[%s12032_s1 + $0x19ac] ss:$16 sps:$4 sm:$0xff]  }
 0x2fc   :  { %6100 = vmatprep.subr.bf16.mxu0 %v8956_v7  ;;  %6674 = vmatprep.subr.bf16.mxu1 %v8959_v62  ;;  %v9038_v7 = vld [vmem:[%s12032_s1 + $0x19a0] ss:$16 sps:$4 sm:$0xff]   ;;  %v9041_v62 = vld [vmem:[%s12032_s1 + $0x19a8] ss:$16 sps:$4 sm:$0xff]  }
 0x2ff   :  { %6101 = vmatpush1.bf16.msra.mxu0 %v8954_v11  ;;  %6675 = vmatpush1.bf16.msra.mxu1 %v8957_v12  ;;  %v9046_v11 = vld [vmem:[%s12032_s1 + $0x19c4] ss:$16 sps:$4 sm:$0xff]   ;;  %v9049_v12 = vld [vmem:[%s12032_s1 + $0x19cc] ss:$16 sps:$4 sm:$0xff]  }
 0x300   :  { %6111 = vmatprep.subr.bf16.mxu0 %v8962_v0  ;;  %6685 = vmatprep.subr.bf16.mxu1 %v8965_v52  ;;  %v9044_v0 = vld [vmem:[%s12032_s1 + $0x19c0] ss:$16 sps:$4 sm:$0xff]   ;;  %v9047_v52 = vld [vmem:[%s12032_s1 + $0x19c8] ss:$16 sps:$4 sm:$0xff]  }
 0x302   :  { %6103 = vmatmul.mubr.bf16.vlgmr.msra.gmra.mrb[0].mxu0 %v1084_v16  ;;  %6677 = vmatmul.mubr.bf16.vlgmr.msra.gmra.mrb[0].mxu1 %v1084_v16  ;;  %v9055_v16 = vld [vmem:[%s12032_s1 + $0x19ec] ss:$16 sps:$4 sm:$0xff]  }
 0x303   :  { %6112 = vmatpush1.bf16.msra.mxu0 %v8960_v8  ;;  %6686 = vmatpush1.bf16.msra.mxu1 %v8963_v17  ;;  %v9050_v8 = vld [vmem:[%s12032_s1 + $0x19e0] ss:$16 sps:$4 sm:$0xff]   ;;  %v9053_v17 = vld [vmem:[%s12032_s1 + $0x19e8] ss:$16 sps:$4 sm:$0xff]  }
 0x304   :  { %6113 = vmatprep.subr.bf16.mxu0 %v8968_v18  ;;  %6687 = vmatprep.subr.bf16.mxu1 %v8971_v9  ;;  %v9058_v18 = vld [vmem:[%s12032_s1 + $0x1a04] ss:$16 sps:$4 sm:$0xff]   ;;  %v9061_v9 = vld [vmem:[%s12032_s1 + $0x1a0c] ss:$16 sps:$4 sm:$0xff]  }
 0x305   :  { %6143 = vmatprep.mubr.bf16.mxu0 %v11641_v19  ;;  %6717 = vmatprep.mubr.bf16.mxu1 %v11641_v19 }
 0x307   :  { %6114 = vmatpush1.bf16.msra.mxu0 %v8966_v20  ;;  %6688 = vmatpush1.bf16.msra.mxu1 %v8969_v22  ;;  %v11827_v20 = vrot.slane %v11610_v10, %v9311_v49  ;;  %v9056_v22 = vld [vmem:[%s12032_s1 + $0x1a00] ss:$16 sps:$4 sm:$0xff]   ;;  %v9067_v49 = vld [vmem:[%s12032_s1 + $0x1a2c] ss:$16 sps:$4 sm:$0xff]   ;;  %v1110_v10 = vcombine.high %v11641_v19, %v11641_v19  ;;  %v9070_v19 = vld [vmem:[%s12032_s1 + $0x1a44] ss:$16 sps:$4 sm:$0xff]  }
 0x308   :  { %6115 = vmatprep.subr.bf16.mxu0 %v8974_v23  ;;  %6689 = vmatprep.subr.bf16.mxu1 %v8977_v24  ;;  %v9059_v23 = vld [vmem:[%s12032_s1 + $0x1a08] ss:$16 sps:$4 sm:$0xff]   ;;  %v9064_v24 = vld [vmem:[%s12032_s1 + $0x1a24] ss:$16 sps:$4 sm:$0xff]  }
 0x30b   :  { %6116 = vmatpush1.bf16.msra.mxu0 %v8972_v13  ;;  %6690 = vmatpush1.bf16.msra.mxu1 %v8975_v27  ;;  %v9062_v13 = vld [vmem:[%s12032_s1 + $0x1a20] ss:$16 sps:$4 sm:$0xff]   ;;  %v9065_v27 = vld [vmem:[%s12032_s1 + $0x1a28] ss:$16 sps:$4 sm:$0xff]  }
 0x30c   :  { %6117 = vmatprep.subr.bf16.mxu0 %v8980_v28  ;;  %6691 = vmatprep.subr.bf16.mxu1 %v8983_v29  ;;  %v9073_v28 = vld [vmem:[%s12032_s1 + $0x1a4c] ss:$16 sps:$4 sm:$0xff]   ;;  %v9068_v29 = vld [vmem:[%s12032_s1 + $0x1a40] ss:$16 sps:$4 sm:$0xff]  }
 0x30f   :  { %6118 = vmatpush1.bf16.msra.mxu0 %v8978_v14  ;;  %6692 = vmatpush1.bf16.msra.mxu1 %v8981_v30  ;;  %v9071_v14 = vld [vmem:[%s12032_s1 + $0x1a48] ss:$16 sps:$4 sm:$0xff]   ;;  %v9076_v30 = vld [vmem:[%s12032_s1 + $0x1a64] ss:$16 sps:$4 sm:$0xff]  }
 0x310   :  { %6119 = vmatprep.subr.bf16.mxu0 %v8986_v31  ;;  %6693 = vmatprep.subr.bf16.mxu1 %v8989_v25  ;;  %v9079_v31 = vld [vmem:[%s12032_s1 + $0x1a6c] ss:$16 sps:$4 sm:$0xff]   ;;  %v9074_v25 = vld [vmem:[%s12032_s1 + $0x1a60] ss:$16 sps:$4 sm:$0xff]  }
 0x313   :  { %6120 = vmatpush1.bf16.msra.mxu0 %v8984_v32  ;;  %6694 = vmatpush1.bf16.msra.mxu1 %v8987_v33  ;;  %v9077_v32 = vld [vmem:[%s12032_s1 + $0x1a68] ss:$16 sps:$4 sm:$0xff]   ;;  %v9082_v33 = vld [vmem:[%s12032_s1 + $0x1a84] ss:$16 sps:$4 sm:$0xff]  }
 0x314   :  { %6121 = vmatprep.subr.bf16.mxu0 %v8992_v26  ;;  %6695 = vmatprep.subr.bf16.mxu1 %v8995_v36  ;;  %v9085_v26 = vld [vmem:[%s12032_s1 + $0x1a8c] ss:$16 sps:$4 sm:$0xff]   ;;  %v9080_v36 = vld [vmem:[%s12032_s1 + $0x1a80] ss:$16 sps:$4 sm:$0xff]  }
 0x317   :  { %6122 = vmatpush1.bf16.msra.mxu0 %v8990_v37  ;;  %6696 = vmatpush1.bf16.msra.mxu1 %v8993_v21  ;;  %v9083_v37 = vld [vmem:[%s12032_s1 + $0x1a88] ss:$16 sps:$4 sm:$0xff]   ;;  %v9088_v21 = vld [vmem:[%s12032_s1 + $0x1aa4] ss:$16 sps:$4 sm:$0xff]  }
 0x318   :  { %6123 = vmatprep.subr.bf16.mxu0 %v8998_v39  ;;  %6697 = vmatprep.subr.bf16.mxu1 %v9001_v40  ;;  %v9091_v39 = vld [vmem:[%s12032_s1 + $0x1aac] ss:$16 sps:$4 sm:$0xff]   ;;  %v9086_v40 = vld [vmem:[%s12032_s1 + $0x1aa0] ss:$16 sps:$4 sm:$0xff]  }
 0x31b   :  { %6124 = vmatpush1.bf16.msra.mxu0 %v8996_v41  ;;  %6698 = vmatpush1.bf16.msra.mxu1 %v8999_v34  ;;  %v9089_v41 = vld [vmem:[%s12032_s1 + $0x1aa8] ss:$16 sps:$4 sm:$0xff]   ;;  %v9094_v34 = vld [vmem:[%s12032_s1 + $0x1ac4] ss:$16 sps:$4 sm:$0xff]  }
 0x31c   :  { %6125 = vmatprep.subr.bf16.mxu0 %v9004_v43  ;;  %6699 = vmatprep.subr.bf16.mxu1 %v9007_v45  ;;  %v9097_v43 = vld [vmem:[%s12032_s1 + $0x1acc] ss:$16 sps:$4 sm:$0xff]   ;;  %v9092_v45 = vld [vmem:[%s12032_s1 + $0x1ac0] ss:$16 sps:$4 sm:$0xff]  }
 0x31f   :  { %6126 = vmatpush1.bf16.msra.mxu0 %v9002_v46  ;;  %6700 = vmatpush1.bf16.msra.mxu1 %v9005_v35  ;;  %v9095_v46 = vld [vmem:[%s12032_s1 + $0x1ac8] ss:$16 sps:$4 sm:$0xff]   ;;  %v9100_v35 = vld [vmem:[%s12032_s1 + $0x1ae4] ss:$16 sps:$4 sm:$0xff]  }
 0x320   :  { %6127 = vmatprep.subr.bf16.mxu0 %v9010_v50  ;;  %6701 = vmatprep.subr.bf16.mxu1 %v9013_v53  ;;  %v9103_v50 = vld [vmem:[%s12032_s1 + $0x1aec] ss:$16 sps:$4 sm:$0xff]   ;;  %v9098_v53 = vld [vmem:[%s12032_s1 + $0x1ae0] ss:$16 sps:$4 sm:$0xff]  }
 0x323   :  { %6128 = vmatpush1.bf16.msra.mxu0 %v9008_v38  ;;  %6702 = vmatpush1.bf16.msra.mxu1 %v9011_v54  ;;  %v9101_v38 = vld [vmem:[%s12032_s1 + $0x1ae8] ss:$16 sps:$4 sm:$0xff]   ;;  %v9106_v54 = vld [vmem:[%s12032_s1 + $0x1b04] ss:$16 sps:$4 sm:$0xff]  }
 0x324   :  { %6129 = vmatprep.subr.bf16.mxu0 %v9016_v55  ;;  %6703 = vmatprep.subr.bf16.mxu1 %v9019_v56  ;;  %v9109_v55 = vld [vmem:[%s12032_s1 + $0x1b0c] ss:$16 sps:$4 sm:$0xff]   ;;  %v9104_v56 = vld [vmem:[%s12032_s1 + $0x1b00] ss:$16 sps:$4 sm:$0xff]  }
 0x327   :  { %6130 = vmatpush1.bf16.msra.mxu0 %v9014_v47  ;;  %6704 = vmatpush1.bf16.msra.mxu1 %v9017_v57  ;;  %v9107_v47 = vld [vmem:[%s12032_s1 + $0x1b08] ss:$16 sps:$4 sm:$0xff]   ;;  %v9112_v57 = vld [vmem:[%s12032_s1 + $0x1b24] ss:$16 sps:$4 sm:$0xff]  }
 0x328   :  { %6131 = vmatprep.subr.bf16.mxu0 %v9022_v58  ;;  %6705 = vmatprep.subr.bf16.mxu1 %v9025_v59  ;;  %v9115_v58 = vld [vmem:[%s12032_s1 + $0x1b2c] ss:$16 sps:$4 sm:$0xff]   ;;  %v9110_v59 = vld [vmem:[%s12032_s1 + $0x1b20] ss:$16 sps:$4 sm:$0xff]  }
 0x32b   :  { %6132 = vmatpush1.bf16.msra.mxu0 %v9020_v48  ;;  %6706 = vmatpush1.bf16.msra.mxu1 %v9023_v61  ;;  %v9113_v48 = vld [vmem:[%s12032_s1 + $0x1b28] ss:$16 sps:$4 sm:$0xff]   ;;  %v9118_v61 = vld [vmem:[%s12032_s1 + $0x1b44] ss:$16 sps:$4 sm:$0xff]  }
 0x32c   :  { %6133 = vmatprep.subr.bf16.mxu0 %v9028_v63  ;;  %6707 = vmatprep.subr.bf16.mxu1 %v9031_v44  ;;  %v9121_v63 = vld [vmem:[%s12032_s1 + $0x1b4c] ss:$16 sps:$4 sm:$0xff]   ;;  %v9116_v44 = vld [vmem:[%s12032_s1 + $0x1b40] ss:$16 sps:$4 sm:$0xff]  }
 0x32f   :  { %6134 = vmatpush1.bf16.msra.mxu0 %v9026_v1  ;;  %6708 = vmatpush1.bf16.msra.mxu1 %v9029_v51  ;;  %v9119_v1 = vld [vmem:[%s12032_s1 + $0x1b48] ss:$16 sps:$4 sm:$0xff]   ;;  %v9124_v51 = vld [vmem:[%s12032_s1 + $0x1b64] ss:$16 sps:$4 sm:$0xff]  }
 0x330   :  { %6135 = vmatprep.subr.bf16.mxu0 %v9034_v2  ;;  %6709 = vmatprep.subr.bf16.mxu1 %v9037_v3  ;;  %v9127_v2 = vld [vmem:[%s12032_s1 + $0x1b6c] ss:$16 sps:$4 sm:$0xff]   ;;  %v9122_v3 = vld [vmem:[%s12032_s1 + $0x1b60] ss:$16 sps:$4 sm:$0xff]  }
 0x333   :  { %6136 = vmatpush1.bf16.msra.mxu0 %v9032_v4  ;;  %6710 = vmatpush1.bf16.msra.mxu1 %v9035_v60  ;;  %v9125_v4 = vld [vmem:[%s12032_s1 + $0x1b68] ss:$16 sps:$4 sm:$0xff]   ;;  %v9130_v60 = vld [vmem:[%s12032_s1 + $0x1b84] ss:$16 sps:$4 sm:$0xff]  }
 0x334   :  { %6137 = vmatprep.subr.bf16.mxu0 %v9040_v5  ;;  %6711 = vmatprep.subr.bf16.mxu1 %v9043_v6  ;;  %v9133_v5 = vld [vmem:[%s12032_s1 + $0x1b8c] ss:$16 sps:$4 sm:$0xff]   ;;  %v9128_v6 = vld [vmem:[%s12032_s1 + $0x1b80] ss:$16 sps:$4 sm:$0xff]  }
 0x337   :  { %6138 = vmatpush1.bf16.msra.mxu0 %v9038_v7  ;;  %6712 = vmatpush1.bf16.msra.mxu1 %v9041_v62  ;;  %v9131_v7 = vld [vmem:[%s12032_s1 + $0x1b88] ss:$16 sps:$4 sm:$0xff]   ;;  %v9136_v62 = vld [vmem:[%s12032_s1 + $0x1ba4] ss:$16 sps:$4 sm:$0xff]  }
 0x338   :  { %6139 = vmatprep.subr.bf16.mxu0 %v9046_v11  ;;  %6713 = vmatprep.subr.bf16.mxu1 %v9049_v12  ;;  %v9139_v11 = vld [vmem:[%s12032_s1 + $0x1bac] ss:$16 sps:$4 sm:$0xff]   ;;  %v9134_v12 = vld [vmem:[%s12032_s1 + $0x1ba0] ss:$16 sps:$4 sm:$0xff]  }
 0x33b   :  { %6140 = vmatpush1.bf16.msra.mxu0 %v9044_v0  ;;  %6714 = vmatpush1.bf16.msra.mxu1 %v9047_v52  ;;  %v9137_v0 = vld [vmem:[%s12032_s1 + $0x1ba8] ss:$16 sps:$4 sm:$0xff]   ;;  %v9142_v52 = vld [vmem:[%s12032_s1 + $0x1bc4] ss:$16 sps:$4 sm:$0xff]  }
 0x33c   :  { %6141 = vmatprep.subr.bf16.mxu0 %v9052_v15  ;;  %6715 = vmatprep.subr.bf16.mxu1 %v9055_v16  ;;  %v9145_v15 = vld [vmem:[%s12032_s1 + $0x1bcc] ss:$16 sps:$4 sm:$0xff]   ;;  %v9140_v16 = vld [vmem:[%s12032_s1 + $0x1bc0] ss:$16 sps:$4 sm:$0xff]  }
 0x33f   :  { %6142 = vmatpush1.bf16.msra.mxu0 %v9050_v8  ;;  %6716 = vmatpush1.bf16.msra.mxu1 %v9053_v17  ;;  %v9143_v8 = vld [vmem:[%s12032_s1 + $0x1bc8] ss:$16 sps:$4 sm:$0xff]   ;;  %v9148_v17 = vld [vmem:[%s12032_s1 + $0x1be4] ss:$16 sps:$4 sm:$0xff]  }
 0x340   :  { %6152 = vmatprep.subr.bf16.mxu0 %v9058_v18  ;;  %6726 = vmatprep.subr.bf16.mxu1 %v9061_v9  ;;  %v9151_v18 = vld [vmem:[%s12032_s1 + $0x1bec] ss:$16 sps:$4 sm:$0xff]   ;;  %v9146_v9 = vld [vmem:[%s12032_s1 + $0x1be0] ss:$16 sps:$4 sm:$0xff]  }
 0x342   :  { %6144 = vmatmul.mubr.bf16.vlgmr.msra.gmra.mrb[0].mxu0 %v11827_v20  ;;  %6718 = vmatmul.mubr.bf16.vlgmr.msra.gmra.mrb[0].mxu1 %v11827_v20 }
 0x343   :  { %6153 = vmatpush1.bf16.msra.mxu0 %v9056_v22  ;;  %6727 = vmatpush1.bf16.msra.mxu1 %v9059_v23  ;;  %v9149_v22 = vld [vmem:[%s12032_s1 + $0x1be8] ss:$16 sps:$4 sm:$0xff]   ;;  %v1109_v23 = vcombine.high %v11827_v20, %v11827_v20 }
 0x344   :  { %6154 = vmatprep.subr.bf16.mxu0 %v9064_v24  ;;  %6728 = vmatprep.subr.bf16.mxu1 %v9067_v49  ;;  %v918_v24 = vsub.s32 0, %v9293_v42  ;;  %v926_v49 = vsub.s32 2, %v9293_v42 }
 0x345   :  { %6184 = vmatprep.mubr.bf16.mxu0 %v1110_v10  ;;  %6758 = vmatprep.mubr.bf16.mxu1 %v1110_v10  ;;  %v914_v10 = vld [vmem:[%s12034_s2] sm:$0xf] }
 0x346   :  { %v927_v20 = vrot.slane %v914_v10, %v926_v49 }
 0x347   :  { %6155 = vmatpush1.bf16.msra.mxu0 %v9062_v13  ;;  %6729 = vmatpush1.bf16.msra.mxu1 %v9065_v27  ;;  %v922_v13 = vsub.s32 1, %v9293_v42  ;;  %v930_v27 = vsub.s32 3, %v9293_v42 }
 0x348   :  { %6156 = vmatprep.subr.bf16.mxu0 %v9070_v19  ;;  %6730 = vmatprep.subr.bf16.mxu1 %v9073_v28  ;;  %v9155_v19 = vmov 1983009808  }
 0x349   :  { %v6778_v28 = vunpack.c.l.s4 %v9155_v19 }
 0x34b   :  { %6157 = vmatpush1.bf16.msra.mxu0 %v9068_v29  ;;  %6731 = vmatpush1.bf16.msra.mxu1 %v9071_v14  ;;  %v919_v29 = vrot.slane %v914_v10, %v918_v24  ;;  %v923_v14 = vrot.slane %v914_v10, %v922_v13 }
 0x34c   :  { %6158 = vmatprep.subr.bf16.mxu0 %v9076_v30  ;;  %6732 = vmatprep.subr.bf16.mxu1 %v9079_v31  ;;  %v931_v30 = vrot.slane %v914_v10, %v930_v27 }
 0x34f   :  { %6159 = vmatpush1.bf16.msra.mxu0 %v9074_v25  ;;  %6733 = vmatpush1.bf16.msra.mxu1 %v9077_v32  ;;  %v6779_v32 = vunpack.c.0.s8 %v6778_v28 }
 0x350   :  { %6160 = vmatprep.subr.bf16.mxu0 %v9082_v33  ;;  %6734 = vmatprep.subr.bf16.mxu1 %v9085_v26 }
 0x353   :  { %6161 = vmatpush1.bf16.msra.mxu0 %v9080_v36  ;;  %6735 = vmatpush1.bf16.msra.mxu1 %v9083_v37 }
 0x354   :  { %6162 = vmatprep.subr.bf16.mxu0 %v9088_v21  ;;  %6736 = vmatprep.subr.bf16.mxu1 %v9091_v39 }
 0x357   :  { %6163 = vmatpush1.bf16.msra.mxu0 %v9086_v40  ;;  %6737 = vmatpush1.bf16.msra.mxu1 %v9089_v41 }
 0x358   :  { %6164 = vmatprep.subr.bf16.mxu0 %v9094_v34  ;;  %6738 = vmatprep.subr.bf16.mxu1 %v9097_v43 }
 0x35b   :  { %6165 = vmatpush1.bf16.msra.mxu0 %v9092_v45  ;;  %6739 = vmatpush1.bf16.msra.mxu1 %v9095_v46 }
 0x35c   :  { %6166 = vmatprep.subr.bf16.mxu0 %v9100_v35  ;;  %6740 = vmatprep.subr.bf16.mxu1 %v9103_v50  ;;  %v6782_v50 = vsub.s32 %v6779_v32, %v9293_v42 }
 0x35f   :  { %6167 = vmatpush1.bf16.msra.mxu0 %v9098_v53  ;;  %6741 = vmatpush1.bf16.msra.mxu1 %v9101_v38 }
 0x360   :  { %6168 = vmatprep.subr.bf16.mxu0 %v9106_v54  ;;  %6742 = vmatprep.subr.bf16.mxu1 %v9109_v55 }
 0x363   :  { %6169 = vmatpush1.bf16.msra.mxu0 %v9104_v56  ;;  %6743 = vmatpush1.bf16.msra.mxu1 %v9107_v47 }
 0x364   :  { %6170 = vmatprep.subr.bf16.mxu0 %v9112_v57  ;;  %6744 = vmatprep.subr.bf16.mxu1 %v9115_v58 }
 0x367   :  { %6171 = vmatpush1.bf16.msra.mxu0 %v9110_v59  ;;  %6745 = vmatpush1.bf16.msra.mxu1 %v9113_v48 }
 0x368   :  { %6172 = vmatprep.subr.bf16.mxu0 %v9118_v61  ;;  %6746 = vmatprep.subr.bf16.mxu1 %v9121_v63 }
 0x36b   :  { %6173 = vmatpush1.bf16.msra.mxu0 %v9116_v44  ;;  %6747 = vmatpush1.bf16.msra.mxu1 %v9119_v1 }
 0x36c   :  { %6174 = vmatprep.subr.bf16.mxu0 %v9124_v51  ;;  %6748 = vmatprep.subr.bf16.mxu1 %v9127_v2 }
 0x36f   :  { %6175 = vmatpush1.bf16.msra.mxu0 %v9122_v3  ;;  %6749 = vmatpush1.bf16.msra.mxu1 %v9125_v4 }
 0x370   :  { %6176 = vmatprep.subr.bf16.mxu0 %v9130_v60  ;;  %6750 = vmatprep.subr.bf16.mxu1 %v9133_v5 }
 0x373   :  { %6177 = vmatpush1.bf16.msra.mxu0 %v9128_v6  ;;  %6751 = vmatpush1.bf16.msra.mxu1 %v9131_v7 }
 0x374   :  { %6178 = vmatprep.subr.bf16.mxu0 %v9136_v62  ;;  %6752 = vmatprep.subr.bf16.mxu1 %v9139_v11 }
 0x377   :  { %6179 = vmatpush1.bf16.msra.mxu0 %v9134_v12  ;;  %6753 = vmatpush1.bf16.msra.mxu1 %v9137_v0 }
 0x378   :  { %6180 = vmatprep.subr.bf16.mxu0 %v9142_v52  ;;  %6754 = vmatprep.subr.bf16.mxu1 %v9145_v15 }
 0x37b   :  { %6181 = vmatpush1.bf16.msra.mxu0 %v9140_v16  ;;  %6755 = vmatpush1.bf16.msra.mxu1 %v9143_v8 }
 0x37c   :  { %6182 = vmatprep.subr.bf16.mxu0 %v9148_v17  ;;  %6756 = vmatprep.subr.bf16.mxu1 %v9151_v18 }
 0x37f   :  { %6183 = vmatpush1.bf16.msra.mxu0 %v9146_v9  ;;  %6757 = vmatpush1.bf16.msra.mxu1 %v9149_v22 }
 0x382   :  { %6185 = vmatmul.mubr.bf16.vlgmr.msra.gmra.mrb[0].mxu0 %v1109_v23  ;;  %6759 = vmatmul.mubr.bf16.vlgmr.msra.gmra.mrb[0].mxu1 %v1109_v23 }
 0x455   :  { %v6186_v31 = vpop.f32.mrb[0].mxu0  ;;  %v6760_v25 = vpop.f32.mrb[0].mxu1 }
 0x456   :  { %v7695_v33 = vadd.f32 %v6186_v31, %v919_v29  ;;  %v7697_v26 = vadd.f32 %v6760_v25, %v927_v20  ;;  %v6188_v36 = vpop.f32.mrb[1].mxu0  ;;  %v6762_v37 = vpop.f32.mrb[1].mxu1 }
 0x457   :  { %v7696_v21 = vadd.f32 %v6188_v36, %v923_v14  ;;  %v7698_v39 = vadd.f32 %v6762_v37, %v931_v30  ;;  %v6190_v40 = vpop.f32.mrb[2].mxu0  ;;  %v6764_v41 = vpop.f32.mrb[2].mxu1 }
 0x458   :  { %v6767_v34 = vmax.f32 %v7695_v33, 0.0  ;;  %v6769_v43 = vmax.f32 %v7697_v26, 0.0  ;;  %v6191_v45 = vpop.f32.mrb[3].mxu0  ;;  %v6765_v46 = vpop.f32.mrb[3].mxu1 }
 0x459   :  { %v6768_v35 = vmax.f32 %v7696_v21, 0.0  ;;  %v6770_v53 = vmax.f32 %v7698_v39, 0.0 }
 0x45b   :  { %v6775_v38 = vcombine.low %v6767_v34, %v6768_v35  ;;  %v6776_v54 = vcombine.low %v6769_v43, %v6770_v53 }
 0x45d   :  { %v6783_v55 = vrot.slane %v6775_v38, %v6782_v50  ;;  %v6790_v56 = vrot.slane %v6776_v54, %v6782_v50 }
 0x45f   :  { %v6791_v47 = vcombine.low %v6783_v55, %v6790_v56 }
 0x461   :  { %6793 = vst [vmem:[%s12035_s3] sm:$0xff] %v6791_v47 }

</bundles_post_ra>
